<compile_context>
chip_gen: v7x
topology: tpu7x:2x2x1
jax: 0.10.0
libtpu: 0.0.40
codegen_flags: <defaults>
</compile_context>

<pallas_src>
import jax
import jax.numpy as jnp
from jax.experimental import pallas as pl
from jax.experimental.pallas import tpu as pltpu


def _round_up(x, m):
    return ((x + m - 1) // m) * m


def _pick_tm(M, tmax):
    """Pick (tm, Mp): tm a multiple of 8 (<= tmax), Mp = round_up(M, tm),
    minimizing padded rows. Single full-M tile when it fits."""
    Mp8 = _round_up(M, 8)
    if Mp8 <= tmax:
        return Mp8, Mp8
    best_tm, best_mp = tmax, _round_up(M, tmax)
    for tm in range(tmax, 7, -8):
        mp = _round_up(M, tm)
        if mp < best_mp:
            best_tm, best_mp = tm, mp
    return best_tm, best_mp


# ----------------------------------------------------------------------------
# Conv matmul kernel: single K step, fused bias, direct store (no accumulator).
# ----------------------------------------------------------------------------
def _conv_mm_kernel(x_ref, w_ref, b_ref, o_ref):
    o_ref[...] = (
        jnp.dot(x_ref[...], w_ref[...], preferred_element_type=jnp.float32)
        + b_ref[...]
    ).astype(o_ref.dtype)


def conv_matmul(x_bf16, w_p, b_p, *, tmax=512):
    """y = x @ w + b on the MXU; x (M, K) bf16, w_p (Kp, N) bf16, b_p (1, N) f32.
    Returns (M, N) bf16 (feeds only the next im2col / fc1)."""
    M, K = x_bf16.shape
    Kp, N = w_p.shape
    tm, Mp = _pick_tm(M, tmax)
    xp = jnp.pad(x_bf16, ((0, Mp - M), (0, Kp - K)))  # pad the bf16 array

    out = pl.pallas_call(
        _conv_mm_kernel,
        out_shape=jax.ShapeDtypeStruct((Mp, N), jnp.bfloat16),
        grid_spec=pltpu.PrefetchScalarGridSpec(
            num_scalar_prefetch=0,
            grid=(Mp // tm,),
            in_specs=[
                pl.BlockSpec((tm, Kp), lambda i: (i, 0)),
                pl.BlockSpec((Kp, N), lambda i: (0, 0)),
                pl.BlockSpec((1, N), lambda i: (0, 0)),
            ],
            out_specs=pl.BlockSpec((tm, N), lambda i: (i, 0)),
        ),
        compiler_params=pltpu.CompilerParams(
            dimension_semantics=("parallel",),
            vmem_limit_bytes=32 * 1024 * 1024,
        ),
        cost_estimate=pl.CostEstimate(
            flops=2 * Mp * Kp * N,
            transcendentals=0,
            bytes_accessed=(Mp * Kp + Kp * N + Mp * N) * 2 + N * 4,
        ),
    )(xp, w_p, b_p)
    return out[:M]


# ----------------------------------------------------------------------------
# Fused FC tail: fc1 + ReLU -> fc2 + ReLU -> fc3 in one pallas_call.
# All three weights are VMEM-resident (constant index maps); grid only over M.
# ----------------------------------------------------------------------------
def _fc_tail_kernel(x_ref, w1_ref, b1_ref, w2_ref, b2_ref, w3_ref, b3_ref, o_ref):
    h1 = (
        jnp.dot(x_ref[...], w1_ref[...], preferred_element_type=jnp.float32)
        + b1_ref[...]
    )
    h1 = jnp.maximum(h1, 0.0).astype(jnp.bfloat16)
    h2 = (
        jnp.dot(h1, w2_ref[...], preferred_element_type=jnp.float32) + b2_ref[...]
    )
    h2 = jnp.maximum(h2, 0.0).astype(jnp.bfloat16)
    o_ref[...] = (
        jnp.dot(h2, w3_ref[...], preferred_element_type=jnp.float32) + b3_ref[...]
    )


def fc_tail(h_bf16, prep, *, tmax=256):
    """h_bf16: (M, 6272) bf16 NHWC-flattened conv2 output -> (M, 128) f32
    (padded output columns; caller slices n_components)."""
    M, K = h_bf16.shape
    w1, b1 = prep["fc1_w"], prep["fc1_b"]   # (6272, 512) bf16, (1, 512) f32
    w2, b2 = prep["fc2_w"], prep["fc2_b"]   # (512, 512)  bf16, (1, 512) f32
    w3, b3 = prep["fc3_w"], prep["fc3_b"]   # (512, 128)  bf16, (1, 128) f32
    K1, H1 = w1.shape
    H2 = w2.shape[1]
    N3 = w3.shape[1]
    assert K == K1, (K, K1)

    tm, Mp = _pick_tm(M, tmax)
    hp = jnp.pad(h_bf16, ((0, Mp - M), (0, 0)))

    out = pl.pallas_call(
        _fc_tail_kernel,
        out_shape=jax.ShapeDtypeStruct((Mp, N3), jnp.float32),
        grid_spec=pltpu.PrefetchScalarGridSpec(
            num_scalar_prefetch=0,
            grid=(Mp // tm,),
            in_specs=[
                pl.BlockSpec((tm, K1), lambda i: (i, 0)),
                pl.BlockSpec((K1, H1), lambda i: (0, 0)),
                pl.BlockSpec((1, H1), lambda i: (0, 0)),
                pl.BlockSpec((H1, H2), lambda i: (0, 0)),
                pl.BlockSpec((1, H2), lambda i: (0, 0)),
                pl.BlockSpec((H2, N3), lambda i: (0, 0)),
                pl.BlockSpec((1, N3), lambda i: (0, 0)),
            ],
            out_specs=pl.BlockSpec((tm, N3), lambda i: (i, 0)),
        ),
        compiler_params=pltpu.CompilerParams(
            dimension_semantics=("parallel",),
            # Worst case with tm=256: ~21 MiB double-buffered; under v7x's 64 MiB
            # physical / safely inside this explicit limit on every generation.
            vmem_limit_bytes=48 * 1024 * 1024,
        ),
        cost_estimate=pl.CostEstimate(
            flops=2 * Mp * (K1 * H1 + H1 * H2 + H2 * N3),
            transcendentals=0,
            bytes_accessed=(Mp * K1 + K1 * H1 + H1 * H2 + H2 * N3) * 2
            + Mp * N3 * 4,
        ),
    )(hp, w1, b1, w2, b2, w3, b3)
    return out[:M]


# ----------------------------------------------------------------------------
# Conv2d(k=3, s=2, p=1) via NHWC im2col (JAX glue) + Pallas matmul.
# ----------------------------------------------------------------------------
def conv2d_s2_p1_nhwc(x_bf16, w_p, b_p, ksize=3, stride=2, pad=1):
    """x_bf16: (N, H, W, C) bf16; w_p: (Kp, C_out) bf16 (HWIO-flattened rows,
    K possibly padded); b_p: (1, C_out) f32. Returns (N, Ho, Wo, C_out) bf16."""
    n, h, wd, c = x_bf16.shape
    ho = (h + 2 * pad - ksize) // stride + 1
    wo = (wd + 2 * pad - ksize) // stride + 1

    xp = jnp.pad(x_bf16, ((0, 0), (pad, pad), (pad, pad), (0, 0)))
    # TODO(synk): patch gather stays as plain-JAX glue; an in-kernel Element/
    # index_map gather would avoid materializing patches in HBM at large batch.
    taps = []
    for i in range(ksize):
        for j in range(ksize):
            taps.append(
                xp[:, i : i + stride * ho : stride, j : j + stride * wo : stride, :]
            )
    # (N, Ho, Wo, 9, C) with tap index = i*ksize + j (matches HWIO row flatten).
    patches = jnp.stack(taps, axis=3).reshape(n * ho * wo, ksize * ksize * c)

    y = conv_matmul(patches, w_p, b_p)                 # (N*Ho*Wo, C_out) bf16
    return y.reshape(n, ho, wo, w_p.shape[1])          # NHWC, no transpose


# ----------------------------------------------------------------------------
# Parameter init (f32, PyTorch-like layout) + one-time kernel-ready prep.
# ----------------------------------------------------------------------------
def init_params(key, n_components=2):
    ks = jax.random.split(key, 10)

    def w_init(k, shape, fan_in):
        return jax.random.normal(k, shape, jnp.float32) * (1.0 / fan_in) ** 0.5

    return {
        "conv1_w": w_init(ks[0], (64, 1, 3, 3), 1 * 9),
        "conv1_b": w_init(ks[1], (64,), 1 * 9),
        "conv2_w": w_init(ks[2], (128, 64, 3, 3), 64 * 9),
        "conv2_b": w_init(ks[3], (128,), 64 * 9),
        "fc1_w": w_init(ks[4], (6272, 512), 6272),
        "fc1_b": w_init(ks[5], (512,), 6272),
        "fc2_w": w_init(ks[6], (512, 512), 512),
        "fc2_b": w_init(ks[7], (512,), 512),
        "fc3_w": w_init(ks[8], (512, n_components), 512),
        "fc3_b": w_init(ks[9], (n_components,), 512),
    }


def prepare_params(params):
    """One-time prep (outside the per-call path):
      * conv weights -> HWIO-flattened (K, C_out), conv1 K padded only 9->16,
        conv2 K kept at 576; cast to bf16.
      * fc1 weight rows permuted so an NHWC flatten of conv2's output matches
        PyTorch's NCHW Flatten; fc3 output padded to 128 lanes.
      * biases -> (1, N) f32 (fc3 bias padded to 128)."""

    def conv_w(w, kpad):
        o, i, kh, kw = w.shape
        w2d = w.transpose(2, 3, 1, 0).reshape(kh * kw * i, o)   # (K, O), HWIO rows
        return jnp.pad(w2d, ((0, kpad - w2d.shape[0]), (0, 0))).astype(jnp.bfloat16)

    def fc_w(w2d, npad=None):
        k, n = w2d.shape
        npad = n if npad is None else npad
        return jnp.pad(w2d, ((0, 0), (0, npad - n))).astype(jnp.bfloat16)

    def bias(b, npad=None):
        n = b.shape[0]
        npad = n if npad is None else npad
        return jnp.pad(b.reshape(1, n), ((0, 0), (0, npad - n))).astype(jnp.float32)

    # fc1 rows: NCHW index c*49 + h*7 + w  ->  NHWC index h*7*128 + w*128 + c.
    fc1_nhwc = (
        params["fc1_w"].reshape(128, 7, 7, 512).transpose(1, 2, 0, 3).reshape(6272, 512)
    )

    return {
        "conv1_w": conv_w(params["conv1_w"], kpad=16),   # (16, 64)
        "conv1_b": bias(params["conv1_b"]),              # (1, 64)
        "conv2_w": conv_w(params["conv2_w"], kpad=576),  # (576, 128)
        "conv2_b": bias(params["conv2_b"]),              # (1, 128)
        "fc1_w": fc_w(fc1_nhwc),                         # (6272, 512)
        "fc1_b": bias(params["fc1_b"]),                  # (1, 512)
        "fc2_w": fc_w(params["fc2_w"]),                  # (512, 512)
        "fc2_b": bias(params["fc2_b"]),                  # (1, 512)
        "fc3_w": fc_w(params["fc3_w"], npad=128),        # (512, 128)
        "fc3_b": bias(params["fc3_b"], npad=128),        # (1, 128)
    }


def conv_forward(x, prep, n_components=2):
    """x: (N, 1, 28, 28) f32 NCHW -> (N, n_components) f32."""
    # Cast to bf16 once and go NHWC for the whole conv stage (C=1 here, so this
    # transpose is effectively free); no further layout shuffles until fc1.
    h = x.astype(jnp.bfloat16).transpose(0, 2, 3, 1)                  # (N,28,28,1)
    h = conv2d_s2_p1_nhwc(h, prep["conv1_w"], prep["conv1_b"])        # (N,14,14,64)
    h = conv2d_s2_p1_nhwc(h, prep["conv2_w"], prep["conv2_b"])        # (N,7,7,128)
    n = h.shape[0]
    h = h.reshape(n, -1)                                              # NHWC flatten (N, 6272)
    out = fc_tail(h, prep)                                            # (N, 128) f32
    return out[:, :n_components]


# ----------------------------------------------------------------------------
# Reference with matching bf16 operand precision (f32 accumulation).
# ----------------------------------------------------------------------------
def ref_forward(x, p):
    bf = jnp.bfloat16

    def conv(h, w, b):
        return jax.lax.conv_general_dilated(
            h.astype(bf), w.astype(bf), (2, 2), ((1, 1), (1, 1)),
            dimension_numbers=("NCHW", "OIHW", "NCHW"),
            preferred_element_type=jnp.float32,
        ) + b[None, :, None, None]

    def lin(h, w, b):
        return jnp.dot(h.astype(bf), w.astype(bf),
                       preferred_element_type=jnp.float32) + b

    h = conv(x, p["conv1_w"], p["conv1_b"])
    h = conv(h, p["conv2_w"], p["conv2_b"])
    h = h.reshape(h.shape[0], -1)
    h = jnp.maximum(lin(h, p["fc1_w"], p["fc1_b"]), 0.0)
    h = jnp.maximum(lin(h, p["fc2_w"], p["fc2_b"]), 0.0)
    return lin(h, p["fc3_w"], p["fc3_b"])


if __name__ == "__main__":
    key = jax.random.PRNGKey(0)
    k_x, k_p = jax.random.split(key)

    # MNIST-shaped input: batch=2, 1 channel, 28x28 (required by Linear(6272, ...)).
    x = jax.random.uniform(k_x, (2, 1, 28, 28), jnp.float32)
    params = init_params(k_p, n_components=2)
    prep = prepare_params(params)  # hoisted out of the per-call path

    fwd = jax.jit(conv_forward, static_argnames=("n_components",))
    y = fwd(x, prep, n_components=2)
    jax.block_until_ready(y)

    y_ref = ref_forward(x, params)
    assert y.shape == (2, 2), y.shape
    assert jnp.allclose(y, y_ref, atol=2e-2, rtol=2e-2), (y, y_ref)

    print("KERNEL_OK")
</pallas_src>

<mosaic_0001>
module attributes {stable_mosaic.version = 11 : i64} {
  func.func @_conv_mm_kernel(%arg0: i32, %arg1: memref<392x16xbf16, #tpu.memory_space<vmem>>, %arg2: memref<16x64xbf16, #tpu.memory_space<vmem>>, %arg3: memref<1x64xf32, #tpu.memory_space<vmem>>, %arg4: memref<392x64xbf16, #tpu.memory_space<vmem>>) attributes {dimension_semantics = [#tpu.dimension_semantics<parallel>], iteration_bounds = array<i64: 1>, scalar_prefetch = 0 : i64, scratch_operands = 0 : i64, tpu.core_type = #tpu.core_type<tc>, window_params = [{transform_indices = @transform_0, window_bounds = array<i64: 392, 16>}, {pipeline_mode = #tpu.pipeline_mode<synchronous>, transform_indices = @transform_1, window_bounds = array<i64: 16, 64>}, {pipeline_mode = #tpu.pipeline_mode<synchronous>, transform_indices = @transform_2, window_bounds = array<i64: 1, 64>}, {transform_indices = @transform_3, window_bounds = array<i64: 392, 64>}]} {
    %c0 = arith.constant 0 : index
    %c0_0 = arith.constant 0 : index
    %0 = vector.load %arg1[%c0, %c0_0] : memref<392x16xbf16, #tpu.memory_space<vmem>>, vector<392x16xbf16>
    %c0_1 = arith.constant 0 : index
    %c0_2 = arith.constant 0 : index
    %1 = vector.load %arg2[%c0_1, %c0_2] : memref<16x64xbf16, #tpu.memory_space<vmem>>, vector<16x64xbf16>
    %cst = arith.constant dense<0.000000e+00> : vector<392x64xf32>
    %2 = tpu.matmul %0, %1, %cst {dimension_numbers = #tpu.dot_dimension_numbers<[1], [0], [0], [1], [0, 0, 1, 1], [], []>} : vector<392x16xbf16>, vector<16x64xbf16>, vector<392x64xf32> -> vector<392x64xf32>
    %c0_3 = arith.constant 0 : index
    %c0_4 = arith.constant 0 : index
    %3 = vector.load %arg3[%c0_3, %c0_4] : memref<1x64xf32, #tpu.memory_space<vmem>>, vector<1x64xf32>
    %4 = vector.broadcast %3 : vector<1x64xf32> to vector<392x64xf32>
    %5 = arith.addf %2, %4 : vector<392x64xf32>
    %6 = arith.truncf %5 : vector<392x64xf32> to vector<392x64xbf16>
    %c0_5 = arith.constant 0 : index
    %c0_6 = arith.constant 0 : index
    %7 = vector.load %arg4[%c0_5, %c0_6] : memref<392x64xbf16, #tpu.memory_space<vmem>>, vector<392x64xbf16>
    tpu.vector_store %arg4[%c0_5, %c0_6], %6 {strides = array<i32>} : memref<392x64xbf16, #tpu.memory_space<vmem>>, vector<392x64xbf16>,
    return
  }
  func.func @transform_0(%arg0: i32) -> (i32, i32) {
    %c0_i32 = arith.constant 0 : i32
    %c0_i32_0 = arith.constant 0 : i32
    return %arg0, %c0_i32 : i32, i32
  }
  func.func @transform_1(%arg0: i32) -> (i32, i32) {
    %c0_i32 = arith.constant 0 : i32
    %c0_i32_0 = arith.constant 0 : i32
    %c0_i32_1 = arith.constant 0 : i32
    return %c0_i32, %c0_i32_0 : i32, i32
  }
  func.func @transform_2(%arg0: i32) -> (i32, i32) {
    %c0_i32 = arith.constant 0 : i32
    %c0_i32_0 = arith.constant 0 : i32
    %c0_i32_1 = arith.constant 0 : i32
    return %c0_i32, %c0_i32_0 : i32, i32
  }
  func.func @transform_3(%arg0: i32) -> (i32, i32) {
    %c0_i32 = arith.constant 0 : i32
    %c0_i32_0 = arith.constant 0 : i32
    return %arg0, %c0_i32 : i32, i32
  }
}

module attributes {stable_mosaic.version = 11 : i64} {
  func.func @_conv_mm_kernel(%arg0: i32, %arg1: memref<104x576xbf16, #tpu.memory_space<vmem>>, %arg2: memref<576x128xbf16, #tpu.memory_space<vmem>>, %arg3: memref<1x128xf32, #tpu.memory_space<vmem>>, %arg4: memref<104x128xbf16, #tpu.memory_space<vmem>>) attributes {dimension_semantics = [#tpu.dimension_semantics<parallel>], iteration_bounds = array<i64: 1>, scalar_prefetch = 0 : i64, scratch_operands = 0 : i64, tpu.core_type = #tpu.core_type<tc>, window_params = [{transform_indices = @transform_0, window_bounds = array<i64: 104, 576>}, {pipeline_mode = #tpu.pipeline_mode<synchronous>, transform_indices = @transform_1, window_bounds = array<i64: 576, 128>}, {pipeline_mode = #tpu.pipeline_mode<synchronous>, transform_indices = @transform_2, window_bounds = array<i64: 1, 128>}, {transform_indices = @transform_3, window_bounds = array<i64: 104, 128>}]} {
    %c0 = arith.constant 0 : index
    %c0_0 = arith.constant 0 : index
    %0 = vector.load %arg1[%c0, %c0_0] : memref<104x576xbf16, #tpu.memory_space<vmem>>, vector<104x576xbf16>
    %c0_1 = arith.constant 0 : index
    %c0_2 = arith.constant 0 : index
    %1 = vector.load %arg2[%c0_1, %c0_2] : memref<576x128xbf16, #tpu.memory_space<vmem>>, vector<576x128xbf16>
    %cst = arith.constant dense<0.000000e+00> : vector<104x128xf32>
    %2 = tpu.matmul %0, %1, %cst {dimension_numbers = #tpu.dot_dimension_numbers<[1], [0], [0], [1], [0, 0, 1, 1], [], []>} : vector<104x576xbf16>, vector<576x128xbf16>, vector<104x128xf32> -> vector<104x128xf32>
    %c0_3 = arith.constant 0 : index
    %c0_4 = arith.constant 0 : index
    %3 = vector.load %arg3[%c0_3, %c0_4] : memref<1x128xf32, #tpu.memory_space<vmem>>, vector<1x128xf32>
    %4 = vector.broadcast %3 : vector<1x128xf32> to vector<104x128xf32>
    %5 = arith.addf %2, %4 : vector<104x128xf32>
    %6 = arith.truncf %5 : vector<104x128xf32> to vector<104x128xbf16>
    %c0_5 = arith.constant 0 : index
    %c0_6 = arith.constant 0 : index
    %7 = vector.load %arg4[%c0_5, %c0_6] : memref<104x128xbf16, #tpu.memory_space<vmem>>, vector<104x128xbf16>
    tpu.vector_store %arg4[%c0_5, %c0_6], %6 {strides = array<i32>} : memref<104x128xbf16, #tpu.memory_space<vmem>>, vector<104x128xbf16>,
    return
  }
  func.func @transform_0(%arg0: i32) -> (i32, i32) {
    %c0_i32 = arith.constant 0 : i32
    %c0_i32_0 = arith.constant 0 : i32
    return %arg0, %c0_i32 : i32, i32
  }
  func.func @transform_1(%arg0: i32) -> (i32, i32) {
    %c0_i32 = arith.constant 0 : i32
    %c0_i32_0 = arith.constant 0 : i32
    %c0_i32_1 = arith.constant 0 : i32
    return %c0_i32, %c0_i32_0 : i32, i32
  }
  func.func @transform_2(%arg0: i32) -> (i32, i32) {
    %c0_i32 = arith.constant 0 : i32
    %c0_i32_0 = arith.constant 0 : i32
    %c0_i32_1 = arith.constant 0 : i32
    return %c0_i32, %c0_i32_0 : i32, i32
  }
  func.func @transform_3(%arg0: i32) -> (i32, i32) {
    %c0_i32 = arith.constant 0 : i32
    %c0_i32_0 = arith.constant 0 : i32
    return %arg0, %c0_i32 : i32, i32
  }
}

module attributes {stable_mosaic.version = 11 : i64} {
  func.func @_fc_tail_kernel(%arg0: i32, %arg1: memref<8x6272xbf16, #tpu.memory_space<vmem>>, %arg2: memref<6272x512xbf16, #tpu.memory_space<vmem>>, %arg3: memref<1x512xf32, #tpu.memory_space<vmem>>, %arg4: memref<512x512xbf16, #tpu.memory_space<vmem>>, %arg5: memref<1x512xf32, #tpu.memory_space<vmem>>, %arg6: memref<512x128xbf16, #tpu.memory_space<vmem>>, %arg7: memref<1x128xf32, #tpu.memory_space<vmem>>, %arg8: memref<8x128xf32, #tpu.memory_space<vmem>>) attributes {dimension_semantics = [#tpu.dimension_semantics<parallel>], iteration_bounds = array<i64: 1>, scalar_prefetch = 0 : i64, scratch_operands = 0 : i64, tpu.core_type = #tpu.core_type<tc>, window_params = [{transform_indices = @transform_0, window_bounds = array<i64: 8, 6272>}, {pipeline_mode = #tpu.pipeline_mode<synchronous>, transform_indices = @transform_1, window_bounds = array<i64: 6272, 512>}, {pipeline_mode = #tpu.pipeline_mode<synchronous>, transform_indices = @transform_2, window_bounds = array<i64: 1, 512>}, {pipeline_mode = #tpu.pipeline_mode<synchronous>, transform_indices = @transform_3, window_bounds = array<i64: 512, 512>}, {pipeline_mode = #tpu.pipeline_mode<synchronous>, transform_indices = @transform_4, window_bounds = array<i64: 1, 512>}, {pipeline_mode = #tpu.pipeline_mode<synchronous>, transform_indices = @transform_5, window_bounds = array<i64: 512, 128>}, {pipeline_mode = #tpu.pipeline_mode<synchronous>, transform_indices = @transform_6, window_bounds = array<i64: 1, 128>}, {transform_indices = @transform_7, window_bounds = array<i64: 8, 128>}]} {
    %c0 = arith.constant 0 : index
    %c0_0 = arith.constant 0 : index
    %0 = vector.load %arg1[%c0, %c0_0] : memref<8x6272xbf16, #tpu.memory_space<vmem>>, vector<8x6272xbf16>
    %c0_1 = arith.constant 0 : index
    %c0_2 = arith.constant 0 : index
    %1 = vector.load %arg2[%c0_1, %c0_2] : memref<6272x512xbf16, #tpu.memory_space<vmem>>, vector<6272x512xbf16>
    %cst = arith.constant dense<0.000000e+00> : vector<8x512xf32>
    %2 = tpu.matmul %0, %1, %cst {dimension_numbers = #tpu.dot_dimension_numbers<[1], [0], [0], [1], [0, 0, 1, 1], [], []>} : vector<8x6272xbf16>, vector<6272x512xbf16>, vector<8x512xf32> -> vector<8x512xf32>
    %c0_3 = arith.constant 0 : index
    %c0_4 = arith.constant 0 : index
    %3 = vector.load %arg3[%c0_3, %c0_4] : memref<1x512xf32, #tpu.memory_space<vmem>>, vector<1x512xf32>
    %4 = vector.broadcast %3 : vector<1x512xf32> to vector<8x512xf32>
    %5 = arith.addf %2, %4 : vector<8x512xf32>
    %cst_5 = arith.constant 0.000000e+00 : f32
    %6 = vector.broadcast %cst_5 : f32 to vector<8x512xf32>
    %7 = arith.maximumf %5, %6 : vector<8x512xf32>
    %8 = arith.truncf %7 : vector<8x512xf32> to vector<8x512xbf16>
    %c0_6 = arith.constant 0 : index
    %c0_7 = arith.constant 0 : index
    %9 = vector.load %arg4[%c0_6, %c0_7] : memref<512x512xbf16, #tpu.memory_space<vmem>>, vector<512x512xbf16>
    %cst_8 = arith.constant dense<0.000000e+00> : vector<8x512xf32>
    %10 = tpu.matmul %8, %9, %cst_8 {dimension_numbers = #tpu.dot_dimension_numbers<[1], [0], [0], [1], [0, 0, 1, 1], [], []>} : vector<8x512xbf16>, vector<512x512xbf16>, vector<8x512xf32> -> vector<8x512xf32>
    %c0_9 = arith.constant 0 : index
    %c0_10 = arith.constant 0 : index
    %11 = vector.load %arg5[%c0_9, %c0_10] : memref<1x512xf32, #tpu.memory_space<vmem>>, vector<1x512xf32>
    %12 = vector.broadcast %11 : vector<1x512xf32> to vector<8x512xf32>
    %13 = arith.addf %10, %12 : vector<8x512xf32>
    %cst_11 = arith.constant 0.000000e+00 : f32
    %14 = vector.broadcast %cst_11 : f32 to vector<8x512xf32>
    %15 = arith.maximumf %13, %14 : vector<8x512xf32>
    %16 = arith.truncf %15 : vector<8x512xf32> to vector<8x512xbf16>
    %c0_12 = arith.constant 0 : index
    %c0_13 = arith.constant 0 : index
    %17 = vector.load %arg6[%c0_12, %c0_13] : memref<512x128xbf16, #tpu.memory_space<vmem>>, vector<512x128xbf16>
    %cst_14 = arith.constant dense<0.000000e+00> : vector<8x128xf32>
    %18 = tpu.matmul %16, %17, %cst_14 {dimension_numbers = #tpu.dot_dimension_numbers<[1], [0], [0], [1], [0, 0, 1, 1], [], []>} : vector<8x512xbf16>, vector<512x128xbf16>, vector<8x128xf32> -> vector<8x128xf32>
    %c0_15 = arith.constant 0 : index
    %c0_16 = arith.constant 0 : index
    %19 = vector.load %arg7[%c0_15, %c0_16] : memref<1x128xf32, #tpu.memory_space<vmem>>, vector<1x128xf32>
    %20 = vector.broadcast %19 : vector<1x128xf32> to vector<8x128xf32>
    %21 = arith.addf %18, %20 : vector<8x128xf32>
    %c0_17 = arith.constant 0 : index
    %c0_18 = arith.constant 0 : index
    %22 = vector.load %arg8[%c0_17, %c0_18] : memref<8x128xf32, #tpu.memory_space<vmem>>, vector<8x128xf32>
    tpu.vector_store %arg8[%c0_17, %c0_18], %21 {strides = array<i32>} : memref<8x128xf32, #tpu.memory_space<vmem>>, vector<8x128xf32>,
    return
  }
  func.func @transform_0(%arg0: i32) -> (i32, i32) {
    %c0_i32 = arith.constant 0 : i32
    %c0_i32_0 = arith.constant 0 : i32
    return %arg0, %c0_i32 : i32, i32
  }
  func.func @transform_1(%arg0: i32) -> (i32, i32) {
    %c0_i32 = arith.constant 0 : i32
    %c0_i32_0 = arith.constant 0 : i32
    %c0_i32_1 = arith.constant 0 : i32
    return %c0_i32, %c0_i32_0 : i32, i32
  }
  func.func @transform_2(%arg0: i32) -> (i32, i32) {
    %c0_i32 = arith.constant 0 : i32
    %c0_i32_0 = arith.constant 0 : i32
    %c0_i32_1 = arith.constant 0 : i32
    return %c0_i32, %c0_i32_0 : i32, i32
  }
  func.func @transform_3(%arg0: i32) -> (i32, i32) {
    %c0_i32 = arith.constant 0 : i32
    %c0_i32_0 = arith.constant 0 : i32
    %c0_i32_1 = arith.constant 0 : i32
    return %c0_i32, %c0_i32_0 : i32, i32
  }
  func.func @transform_4(%arg0: i32) -> (i32, i32) {
    %c0_i32 = arith.constant 0 : i32
    %c0_i32_0 = arith.constant 0 : i32
    %c0_i32_1 = arith.constant 0 : i32
    return %c0_i32, %c0_i32_0 : i32, i32
  }
  func.func @transform_5(%arg0: i32) -> (i32, i32) {
    %c0_i32 = arith.constant 0 : i32
    %c0_i32_0 = arith.constant 0 : i32
    %c0_i32_1 = arith.constant 0 : i32
    return %c0_i32, %c0_i32_0 : i32, i32
  }
  func.func @transform_6(%arg0: i32) -> (i32, i32) {
    %c0_i32 = arith.constant 0 : i32
    %c0_i32_0 = arith.constant 0 : i32
    %c0_i32_1 = arith.constant 0 : i32
    return %c0_i32, %c0_i32_0 : i32, i32
  }
  func.func @transform_7(%arg0: i32) -> (i32, i32) {
    %c0_i32 = arith.constant 0 : i32
    %c0_i32_0 = arith.constant 0 : i32
    return %arg0, %c0_i32 : i32, i32
  }
}

</mosaic_0001>

<bundles_post_ra>
// kernel: conv_forward.3
= control target key start
LH: loop header
LB: loop body
LE: loop exit
PB: predicated region body
PF: predicated region fallthrough
CT: control target
= control target key end

     0   :  { %8 = vsyncpa [#allocation3], 0  ;;  %s1598_s0 = inlined_call_operand.vmem [shape: bf16[392,16], index: 0, kind: input, shape index: {}]   ;;  %s1599_s1 = inlined_call_operand.hbm [shape: bf16[16,64], index: 1, kind: input, shape index: {}]   ;;  %s1600_s2 = inlined_call_operand.hbm [shape: f32[1,64], index: 2, kind: input, shape index: {}]   ;;  %s1601_s3 = inlined_call_operand.vmem [shape: bf16[392,64], index: 3, kind: output, shape index: {}]  }
   0x1   :  { %9 = vsyncpa [#allocation5], 0  ;;  %s1149_s12 = smov [#allocation2]   ;;  %s1101_s16 = scalar_lea.hbm %s1599_s1, 128 }
   0x2   :  { %s17_s13 = sshll.u32 %s1149_s12, 4  ;;  %p1102_p0 = scmp.ne.s32.totalorder %s1599_s1, %s1101_s16  ;;  %s18_s13 = int_to_ptr.vmem [resolvable:$true] %s17_s13 }
   0x3   :  { %p1105_p1 = scmp.lt.u32.totalorder %s1101_s16, %s1599_s1 }
   0x5   :  { %p1107_p2 = pnand %p1105_p1, %p1102_p0 }
   0x7   :  { %1110 = shalt.err (!%p1107_p2)
}
   0x8   :  { %s1111_s21 = scalar_lea.vmem %s18_s13, 128  ;;  %p1116_p4 = scmp.lt.s32.totalorder %s18_s13, %s18_s13 }
   0x9   :  { %p1112_p3 = scmp.ne.s32.totalorder %s18_s13, %s1111_s21  ;;  %p1117_p5 = scmp.lt.s32.totalorder %s1111_s21, %s1111_s21 }
   0xb   :  { %p1118_p6 = por %p1117_p5, %p1116_p4 }
   0xd   :  { %p1119_p7 = pnand %p1118_p6, %p1112_p3 }
   0xf   :  { %1122 = shalt.err (!%p1119_p7)
}
  0x10   :  { %s1150_s22 = smov 64   ;;  %s1151_s23 = smov 4  }
  0x11   :  { %23 = dma.hbm_to_vmem [thread:$0]  %s1599_s1, 128, %s18_s13, [#allocation3], %s1150_s22, %s1150_s22, %s1151_s23  }
  0x12   :  { %s1152_s26 = smov [#allocation4]   ;;  %s1123_s30 = scalar_lea.hbm %s1600_s2, 16 }
  0x13   :  { %s30_s27 = sshll.u32 %s1152_s26, 4  ;;  %p1124_p8 = scmp.ne.s32.totalorder %s1600_s2, %s1123_s30  ;;  %s31_s27 = int_to_ptr.vmem [resolvable:$true] %s30_s27 }
  0x14   :  { %p1127_p9 = scmp.lt.u32.totalorder %s1123_s30, %s1600_s2 }
  0x16   :  { %p1129_p10 = pnand %p1127_p9, %p1124_p8 }
  0x18   :  { %1132 = shalt.err (!%p1129_p10)
}
  0x19   :  { %s1133_s8 = scalar_lea.vmem %s31_s27, 16  ;;  %s1137_s1 = scalar_lea.vmem %s31_s27, 32 }
  0x1a   :  { %p1134_p11 = scmp.ne.s32.totalorder %s31_s27, %s1133_s8  ;;  %p1138_p12 = scmp.lt.s32.totalorder %s31_s27, %s31_s27 }
  0x1b   :  { %p1139_p13 = scmp.lt.s32.totalorder %s1137_s1, %s1133_s8 }
  0x1d   :  { %p1140_p0 = por %p1139_p13, %p1138_p12 }
  0x1f   :  { %p1141_p1 = pnand %p1140_p0, %p1134_p11 }
  0x21   :  { %1144 = shalt.err (!%p1141_p1)
}
  0x22   :  { %33 = dma.hbm_to_vmem [thread:$0]  %s1600_s2, 16, %s31_s27, [#allocation5]  }
  0x23   :  { %1145 = dma.done.wait [#allocation3], 128  }
  0x24   :  { %1146 = vsyncadd [#allocation3], 4294967168 }
  0x25   :  { %1147 = dma.done.wait [#allocation5], 16  }
  0x26   :  { %1148 = vsyncadd [#allocation5], 4294967280  ;;  %v1153_v0 = vmov 0.0   ;;  %vm1154_vm0 = vmmov 0   ;;  %v1075_v1 = vld [vmem:[#allocation2] sm:$0xff]   ;;  %vm228_vm1 = vcmask 130048  }
  0x27   :  { %965 = vmatprep.subr.bf16.mxu0 %v1153_v0  ;;  %967 = vmatprep.mubr.msk.bf16.mxu0 %vm1154_vm0, %v1153_v0  ;;  %v1076_v2 = vld [vmem:[%s1598_s0] sm:$0xff]   ;;  %v1077_v3 = vld [vmem:[%s1598_s0 + $0x68] sm:$0xff]   ;;  %v1079_v5 = vld [vmem:[%s1598_s0 + $0x70] sm:$0xff]   ;;  %vm733_vm2 = vcmask 519168  }
  0x28   :  { %1067 = vmatprep.subr.bf16.mxu1 %v1153_v0  ;;  %1019 = vmatprep.mubr.msk.bf16.mxu1 %vm1154_vm0, %v1153_v0  ;;  %v1078_v4 = vld [vmem:[%s1598_s0 + $0x8] sm:$0xff]   ;;  %v1080_v6 = vld [vmem:[%s1598_s0 + $0x10] sm:$0xff]   ;;  %v1081_v7 = vld [vmem:[%s1598_s0 + $0x78] sm:$0xff]  }
  0x29   :  { %966 = vmatpush3.bf16.msra.mxu0 %v1075_v1  ;;  %1068 = vmatpush3.bf16.msra.mxu1 %v1075_v1  ;;  %v1082_v8 = vld [vmem:[%s1598_s0 + $0x18] sm:$0xff]   ;;  %v1083_v9 = vld [vmem:[%s1598_s0 + $0x80] sm:$0xff]   ;;  %v1085_v11 = vld [vmem:[%s1598_s0 + $0x88] sm:$0xff]  }
  0x2a   :  { %v1084_v10 = vld [vmem:[%s1598_s0 + $0x20] sm:$0xff]   ;;  %v1086_v12 = vld [vmem:[%s1598_s0 + $0x28] sm:$0xff]   ;;  %v1087_v13 = vld [vmem:[%s1598_s0 + $0x90] sm:$0xff]  }
  0x2b   :  { %v1088_v14 = vld [vmem:[%s1598_s0 + $0x30] sm:$0xff]   ;;  %v1089_v15 = vld [vmem:[%s1598_s0 + $0x98] sm:$0xff]   ;;  %v1091_v17 = vld [vmem:[%s1598_s0 + $0xa0] sm:$0xff]  }
  0x2c   :  { %968 = vmatmul.mubr.msk.bf16.vlgmr.msra.gmra.mrb[0].mxu0 %vm228_vm1, %v1076_v2  ;;  %1020 = vmatmul.mubr.msk.bf16.vlgmr.msra.gmra.mrb[0].mxu1 %vm228_vm1, %v1077_v3  ;;  %v1090_v16 = vld [vmem:[%s1598_s0 + $0x38] sm:$0xff]   ;;  %v1092_v18 = vld [vmem:[%s1598_s0 + $0x40] sm:$0xff]   ;;  %v1093_v19 = vld [vmem:[%s1598_s0 + $0xa8] sm:$0xff]  }
  0x2d   :  { %971 = vmatprep.mubr.msk.bf16.mxu0 %vm1154_vm0, %v1153_v0  ;;  %1023 = vmatprep.mubr.msk.bf16.mxu1 %vm1154_vm0, %v1153_v0  ;;  %v1094_v20 = vld [vmem:[%s1598_s0 + $0x48] sm:$0xff]   ;;  %v1095_v21 = vld [vmem:[%s1598_s0 + $0xb0] sm:$0xff]   ;;  %v1097_v23 = vld [vmem:[%s1598_s0 + $0xb8] sm:$0xff]  }
  0x2e   :  { %v1096_v22 = vld [vmem:[%s1598_s0 + $0x50] sm:$0xff]   ;;  %v1098_v24 = vld [vmem:[%s1598_s0 + $0x58] sm:$0xff]   ;;  %v1099_v25 = vld [vmem:[%s1598_s0 + $0xc0] ss:$0 sps:$4 sm:$0xff]  }
  0x2f   :  { %v1100_v26 = vld [vmem:[%s1598_s0 + $0x60] sm:$0xff]   ;;  %v1351_v27 = vld [vmem:[#allocation4] ss:$0 sm:$0xff] }
  0x34   :  { %972 = vmatmul.mubr.msk.bf16.gmra.mrb[4].mxu0 %vm228_vm1, %v1078_v4  ;;  %1024 = vmatmul.mubr.msk.bf16.gmra.mrb[4].mxu1 %vm228_vm1, %v1079_v5 }
  0x35   :  { %975 = vmatprep.mubr.msk.bf16.mxu0 %vm1154_vm0, %v1153_v0  ;;  %1027 = vmatprep.mubr.msk.bf16.mxu1 %vm1154_vm0, %v1153_v0 }
  0x3c   :  { %976 = vmatmul.mubr.msk.bf16.gmra.mrb[8].mxu0 %vm228_vm1, %v1080_v6  ;;  %1028 = vmatmul.mubr.msk.bf16.gmra.mrb[8].mxu1 %vm228_vm1, %v1081_v7 }
  0x3d   :  { %979 = vmatprep.mubr.msk.bf16.mxu0 %vm1154_vm0, %v1153_v0  ;;  %1031 = vmatprep.mubr.msk.bf16.mxu1 %vm1154_vm0, %v1153_v0 }
  0x44   :  { %980 = vmatmul.mubr.msk.bf16.gmra.mrb[12].mxu0 %vm228_vm1, %v1082_v8  ;;  %1032 = vmatmul.mubr.msk.bf16.gmra.mrb[12].mxu1 %vm228_vm1, %v1083_v9 }
  0x45   :  { %983 = vmatprep.mubr.msk.bf16.mxu0 %vm1154_vm0, %v1153_v0  ;;  %1035 = vmatprep.mubr.msk.bf16.mxu1 %vm1154_vm0, %v1153_v0 }
  0x4c   :  { %984 = vmatmul.mubr.msk.bf16.gmra.mrb[16].mxu0 %vm228_vm1, %v1084_v10  ;;  %1036 = vmatmul.mubr.msk.bf16.gmra.mrb[16].mxu1 %vm228_vm1, %v1085_v11 }
  0x4d   :  { %987 = vmatprep.mubr.msk.bf16.mxu0 %vm1154_vm0, %v1153_v0  ;;  %1039 = vmatprep.mubr.msk.bf16.mxu1 %vm1154_vm0, %v1153_v0 }
  0x54   :  { %988 = vmatmul.mubr.msk.bf16.gmra.mrb[20].mxu0 %vm228_vm1, %v1086_v12  ;;  %1040 = vmatmul.mubr.msk.bf16.gmra.mrb[20].mxu1 %vm228_vm1, %v1087_v13 }
  0x55   :  { %991 = vmatprep.mubr.msk.bf16.mxu0 %vm1154_vm0, %v1153_v0  ;;  %1043 = vmatprep.mubr.msk.bf16.mxu1 %vm1154_vm0, %v1153_v0 }
  0x5c   :  { %992 = vmatmul.mubr.msk.bf16.gmra.mrb[24].mxu0 %vm228_vm1, %v1088_v14  ;;  %1044 = vmatmul.mubr.msk.bf16.gmra.mrb[24].mxu1 %vm228_vm1, %v1089_v15 }
  0x5d   :  { %995 = vmatprep.mubr.msk.bf16.mxu0 %vm1154_vm0, %v1153_v0  ;;  %1047 = vmatprep.mubr.msk.bf16.mxu1 %vm1154_vm0, %v1153_v0 }
  0x64   :  { %996 = vmatmul.mubr.msk.bf16.gmra.mrb[28].mxu0 %vm228_vm1, %v1090_v16  ;;  %1048 = vmatmul.mubr.msk.bf16.gmra.mrb[28].mxu1 %vm228_vm1, %v1091_v17 }
  0x65   :  { %999 = vmatprep.mubr.msk.bf16.mxu0 %vm1154_vm0, %v1153_v0  ;;  %1051 = vmatprep.mubr.msk.bf16.mxu1 %vm1154_vm0, %v1153_v0 }
  0x6c   :  { %1000 = vmatmul.mubr.msk.bf16.gmra.mrb[32].mxu0 %vm228_vm1, %v1092_v18  ;;  %1052 = vmatmul.mubr.msk.bf16.gmra.mrb[32].mxu1 %vm228_vm1, %v1093_v19 }
  0x6d   :  { %1003 = vmatprep.mubr.msk.bf16.mxu0 %vm1154_vm0, %v1153_v0  ;;  %1055 = vmatprep.mubr.msk.bf16.mxu1 %vm1154_vm0, %v1153_v0 }
  0x74   :  { %1004 = vmatmul.mubr.msk.bf16.gmra.mrb[36].mxu0 %vm228_vm1, %v1094_v20  ;;  %1056 = vmatmul.mubr.msk.bf16.gmra.mrb[36].mxu1 %vm228_vm1, %v1095_v21 }
  0x75   :  { %1007 = vmatprep.mubr.msk.bf16.mxu0 %vm1154_vm0, %v1153_v0  ;;  %1059 = vmatprep.mubr.msk.bf16.mxu1 %vm1154_vm0, %v1153_v0 }
  0x7c   :  { %1008 = vmatmul.mubr.msk.bf16.gmra.mrb[40].mxu0 %vm228_vm1, %v1096_v22  ;;  %1060 = vmatmul.mubr.msk.bf16.gmra.mrb[40].mxu1 %vm228_vm1, %v1097_v23 }
  0x7d   :  { %1011 = vmatprep.mubr.msk.bf16.mxu0 %vm1154_vm0, %v1153_v0  ;;  %1063 = vmatprep.mubr.msk.bf16.mxu1 %vm1154_vm0, %v1153_v0 }
  0x84   :  { %1012 = vmatmul.mubr.msk.bf16.gmra.mrb[44].mxu0 %vm228_vm1, %v1098_v24  ;;  %1064 = vmatmul.mubr.msk.bf16.gmra.mrb[44].mxu1 %vm228_vm1, %v1099_v25 }
  0x85   :  { %1015 = vmatprep.mubr.msk.bf16.mxu0 %vm1154_vm0, %v1153_v0 }
  0x8c   :  { %1016 = vmatmul.mubr.msk.bf16.gmra.mrb[48].mxu0 %vm228_vm1, %v1100_v26 }
  0xff   :  { %v338_v28 = vpop.f32.mrb[0].mxu0  ;;  %v442_v29 = vpop.f32.mrb[0].mxu1 }
 0x100   :  { %v339_v30 = vadd.f32 %v1351_v27, %v338_v28  ;;  %v969_v31 = vpop.f32.mrb[1].mxu0  ;;  %v443_v32 = vadd.f32 %v1351_v27, %v442_v29  ;;  %v1021_v33 = vpop.f32.mrb[1].mxu1 }
 0x101   :  { %v341_v34 = vpop.f32.mrb[2].mxu0  ;;  %v445_v35 = vpop.f32.mrb[2].mxu1 }
 0x102   :  { %v890_v36 = vpack.c.bf16 %v339_v30, %v339_v30  ;;  %v342_v37 = vadd.f32 %v1351_v27, %v341_v34  ;;  %v970_v38 = vpop.f32.mrb[3].mxu0  ;;  %v916_v39 = vpack.c.bf16 %v443_v32, %v443_v32  ;;  %v446_v40 = vadd.f32 %v1351_v27, %v445_v35  ;;  %v1022_v41 = vpop.f32.mrb[3].mxu1 }
 0x104   :  { %734 = vst.msk [vmem:[%s1601_s3] sm:$0xf] %vm733_vm2, %v890_v36  ;;  %v891_v42 = vpack.c.bf16 %v342_v37, %v342_v37  ;;  %760 = vst.msk [vmem:[%s1601_s3 + $0x68] sm:$0xf] %vm733_vm2, %v916_v39  ;;  %v917_v43 = vpack.c.bf16 %v446_v40, %v446_v40 }
 0x106   :  { %735 = vst.msk [vmem:[%s1601_s3 + $0x4] sm:$0xf] %vm733_vm2, %v891_v42  ;;  %761 = vst.msk [vmem:[%s1601_s3 + $0x6c] sm:$0xf] %vm733_vm2, %v917_v43 }
 0x107   :  { %v346_v44 = vpop.f32.mrb[4].mxu0  ;;  %v450_v45 = vpop.f32.mrb[4].mxu1 }
 0x108   :  { %v347_v46 = vadd.f32 %v1351_v27, %v346_v44  ;;  %v973_v47 = vpop.f32.mrb[5].mxu0  ;;  %v451_v48 = vadd.f32 %v1351_v27, %v450_v45  ;;  %v1025_v49 = vpop.f32.mrb[5].mxu1 }
 0x109   :  { %v349_v50 = vpop.f32.mrb[6].mxu0  ;;  %v453_v51 = vpop.f32.mrb[6].mxu1 }
 0x10a   :  { %v892_v52 = vpack.c.bf16 %v347_v46, %v347_v46  ;;  %v350_v53 = vadd.f32 %v1351_v27, %v349_v50  ;;  %v974_v54 = vpop.f32.mrb[7].mxu0  ;;  %v918_v55 = vpack.c.bf16 %v451_v48, %v451_v48  ;;  %v454_v56 = vadd.f32 %v1351_v27, %v453_v51  ;;  %v1026_v57 = vpop.f32.mrb[7].mxu1 }
 0x10c   :  { %736 = vst.msk [vmem:[%s1601_s3 + $0x8] sm:$0xf] %vm733_vm2, %v892_v52  ;;  %v893_v58 = vpack.c.bf16 %v350_v53, %v350_v53  ;;  %762 = vst.msk [vmem:[%s1601_s3 + $0x70] sm:$0xf] %vm733_vm2, %v918_v55  ;;  %v919_v59 = vpack.c.bf16 %v454_v56, %v454_v56 }
 0x10e   :  { %737 = vst.msk [vmem:[%s1601_s3 + $0xc] sm:$0xf] %vm733_vm2, %v893_v58  ;;  %763 = vst.msk [vmem:[%s1601_s3 + $0x74] sm:$0xf] %vm733_vm2, %v919_v59 }
 0x10f   :  { %v354_v60 = vpop.f32.mrb[8].mxu0  ;;  %v458_v61 = vpop.f32.mrb[8].mxu1 }
 0x110   :  { %v355_v62 = vadd.f32 %v1351_v27, %v354_v60  ;;  %v977_v63 = vpop.f32.mrb[9].mxu0  ;;  %v459_v0 = vadd.f32 %v1351_v27, %v458_v61  ;;  %v1029_v1 = vpop.f32.mrb[9].mxu1 }
 0x111   :  { %v357_v2 = vpop.f32.mrb[10].mxu0  ;;  %v461_v3 = vpop.f32.mrb[10].mxu1 }
 0x112   :  { %v894_v4 = vpack.c.bf16 %v355_v62, %v355_v62  ;;  %v358_v5 = vadd.f32 %v1351_v27, %v357_v2  ;;  %v978_v6 = vpop.f32.mrb[11].mxu0  ;;  %v920_v7 = vpack.c.bf16 %v459_v0, %v459_v0  ;;  %v462_v8 = vadd.f32 %v1351_v27, %v461_v3  ;;  %v1030_v9 = vpop.f32.mrb[11].mxu1 }
 0x114   :  { %738 = vst.msk [vmem:[%s1601_s3 + $0x10] sm:$0xf] %vm733_vm2, %v894_v4  ;;  %v895_v10 = vpack.c.bf16 %v358_v5, %v358_v5  ;;  %764 = vst.msk [vmem:[%s1601_s3 + $0x78] sm:$0xf] %vm733_vm2, %v920_v7  ;;  %v921_v11 = vpack.c.bf16 %v462_v8, %v462_v8 }
 0x116   :  { %739 = vst.msk [vmem:[%s1601_s3 + $0x14] sm:$0xf] %vm733_vm2, %v895_v10  ;;  %765 = vst.msk [vmem:[%s1601_s3 + $0x7c] sm:$0xf] %vm733_vm2, %v921_v11 }
 0x117   :  { %v362_v12 = vpop.f32.mrb[12].mxu0  ;;  %v466_v13 = vpop.f32.mrb[12].mxu1 }
 0x118   :  { %v363_v14 = vadd.f32 %v1351_v27, %v362_v12  ;;  %v981_v15 = vpop.f32.mrb[13].mxu0  ;;  %v467_v16 = vadd.f32 %v1351_v27, %v466_v13  ;;  %v1033_v17 = vpop.f32.mrb[13].mxu1 }
 0x119   :  { %v365_v18 = vpop.f32.mrb[14].mxu0  ;;  %v469_v19 = vpop.f32.mrb[14].mxu1 }
 0x11a   :  { %v896_v20 = vpack.c.bf16 %v363_v14, %v363_v14  ;;  %v366_v21 = vadd.f32 %v1351_v27, %v365_v18  ;;  %v982_v22 = vpop.f32.mrb[15].mxu0  ;;  %v922_v23 = vpack.c.bf16 %v467_v16, %v467_v16  ;;  %v470_v24 = vadd.f32 %v1351_v27, %v469_v19  ;;  %v1034_v25 = vpop.f32.mrb[15].mxu1 }
 0x11c   :  { %740 = vst.msk [vmem:[%s1601_s3 + $0x18] sm:$0xf] %vm733_vm2, %v896_v20  ;;  %v897_v26 = vpack.c.bf16 %v366_v21, %v366_v21  ;;  %766 = vst.msk [vmem:[%s1601_s3 + $0x80] sm:$0xf] %vm733_vm2, %v922_v23  ;;  %v923_v28 = vpack.c.bf16 %v470_v24, %v470_v24 }
 0x11e   :  { %741 = vst.msk [vmem:[%s1601_s3 + $0x1c] sm:$0xf] %vm733_vm2, %v897_v26  ;;  %767 = vst.msk [vmem:[%s1601_s3 + $0x84] sm:$0xf] %vm733_vm2, %v923_v28 }
 0x11f   :  { %v370_v29 = vpop.f32.mrb[16].mxu0  ;;  %v474_v30 = vpop.f32.mrb[16].mxu1 }
 0x120   :  { %v371_v31 = vadd.f32 %v1351_v27, %v370_v29  ;;  %v985_v32 = vpop.f32.mrb[17].mxu0  ;;  %v475_v33 = vadd.f32 %v1351_v27, %v474_v30  ;;  %v1037_v34 = vpop.f32.mrb[17].mxu1 }
 0x121   :  { %v373_v35 = vpop.f32.mrb[18].mxu0  ;;  %v477_v36 = vpop.f32.mrb[18].mxu1 }
 0x122   :  { %v898_v37 = vpack.c.bf16 %v371_v31, %v371_v31  ;;  %v374_v38 = vadd.f32 %v1351_v27, %v373_v35  ;;  %v986_v39 = vpop.f32.mrb[19].mxu0  ;;  %v924_v40 = vpack.c.bf16 %v475_v33, %v475_v33  ;;  %v478_v41 = vadd.f32 %v1351_v27, %v477_v36  ;;  %v1038_v42 = vpop.f32.mrb[19].mxu1 }
 0x124   :  { %742 = vst.msk [vmem:[%s1601_s3 + $0x20] sm:$0xf] %vm733_vm2, %v898_v37  ;;  %v899_v43 = vpack.c.bf16 %v374_v38, %v374_v38  ;;  %768 = vst.msk [vmem:[%s1601_s3 + $0x88] sm:$0xf] %vm733_vm2, %v924_v40  ;;  %v925_v44 = vpack.c.bf16 %v478_v41, %v478_v41 }
 0x126   :  { %743 = vst.msk [vmem:[%s1601_s3 + $0x24] sm:$0xf] %vm733_vm2, %v899_v43  ;;  %769 = vst.msk [vmem:[%s1601_s3 + $0x8c] sm:$0xf] %vm733_vm2, %v925_v44 }
 0x127   :  { %v378_v45 = vpop.f32.mrb[20].mxu0  ;;  %v482_v46 = vpop.f32.mrb[20].mxu1 }
 0x128   :  { %v379_v47 = vadd.f32 %v1351_v27, %v378_v45  ;;  %v989_v48 = vpop.f32.mrb[21].mxu0  ;;  %v483_v49 = vadd.f32 %v1351_v27, %v482_v46  ;;  %v1041_v50 = vpop.f32.mrb[21].mxu1 }
 0x129   :  { %v381_v51 = vpop.f32.mrb[22].mxu0  ;;  %v485_v52 = vpop.f32.mrb[22].mxu1 }
 0x12a   :  { %v900_v53 = vpack.c.bf16 %v379_v47, %v379_v47  ;;  %v382_v54 = vadd.f32 %v1351_v27, %v381_v51  ;;  %v990_v55 = vpop.f32.mrb[23].mxu0  ;;  %v926_v56 = vpack.c.bf16 %v483_v49, %v483_v49  ;;  %v486_v57 = vadd.f32 %v1351_v27, %v485_v52  ;;  %v1042_v58 = vpop.f32.mrb[23].mxu1 }
 0x12c   :  { %744 = vst.msk [vmem:[%s1601_s3 + $0x28] sm:$0xf] %vm733_vm2, %v900_v53  ;;  %v901_v59 = vpack.c.bf16 %v382_v54, %v382_v54  ;;  %770 = vst.msk [vmem:[%s1601_s3 + $0x90] sm:$0xf] %vm733_vm2, %v926_v56  ;;  %v927_v60 = vpack.c.bf16 %v486_v57, %v486_v57 }
 0x12e   :  { %745 = vst.msk [vmem:[%s1601_s3 + $0x2c] sm:$0xf] %vm733_vm2, %v901_v59  ;;  %771 = vst.msk [vmem:[%s1601_s3 + $0x94] sm:$0xf] %vm733_vm2, %v927_v60 }
 0x12f   :  { %v386_v61 = vpop.f32.mrb[24].mxu0  ;;  %v490_v62 = vpop.f32.mrb[24].mxu1 }
 0x130   :  { %v387_v63 = vadd.f32 %v1351_v27, %v386_v61  ;;  %v993_v0 = vpop.f32.mrb[25].mxu0  ;;  %v491_v1 = vadd.f32 %v1351_v27, %v490_v62  ;;  %v1045_v2 = vpop.f32.mrb[25].mxu1 }
 0x131   :  { %v389_v3 = vpop.f32.mrb[26].mxu0  ;;  %v493_v4 = vpop.f32.mrb[26].mxu1 }
 0x132   :  { %v902_v5 = vpack.c.bf16 %v387_v63, %v387_v63  ;;  %v390_v6 = vadd.f32 %v1351_v27, %v389_v3  ;;  %v994_v7 = vpop.f32.mrb[27].mxu0  ;;  %v928_v8 = vpack.c.bf16 %v491_v1, %v491_v1  ;;  %v494_v9 = vadd.f32 %v1351_v27, %v493_v4  ;;  %v1046_v10 = vpop.f32.mrb[27].mxu1 }
 0x134   :  { %746 = vst.msk [vmem:[%s1601_s3 + $0x30] sm:$0xf] %vm733_vm2, %v902_v5  ;;  %v903_v11 = vpack.c.bf16 %v390_v6, %v390_v6  ;;  %772 = vst.msk [vmem:[%s1601_s3 + $0x98] sm:$0xf] %vm733_vm2, %v928_v8  ;;  %v929_v12 = vpack.c.bf16 %v494_v9, %v494_v9 }
 0x136   :  { %747 = vst.msk [vmem:[%s1601_s3 + $0x34] sm:$0xf] %vm733_vm2, %v903_v11  ;;  %773 = vst.msk [vmem:[%s1601_s3 + $0x9c] sm:$0xf] %vm733_vm2, %v929_v12 }
 0x137   :  { %v394_v13 = vpop.f32.mrb[28].mxu0  ;;  %v498_v14 = vpop.f32.mrb[28].mxu1 }
 0x138   :  { %v395_v15 = vadd.f32 %v1351_v27, %v394_v13  ;;  %v997_v16 = vpop.f32.mrb[29].mxu0  ;;  %v499_v17 = vadd.f32 %v1351_v27, %v498_v14  ;;  %v1049_v18 = vpop.f32.mrb[29].mxu1 }
 0x139   :  { %v397_v19 = vpop.f32.mrb[30].mxu0  ;;  %v501_v20 = vpop.f32.mrb[30].mxu1 }
 0x13a   :  { %v904_v21 = vpack.c.bf16 %v395_v15, %v395_v15  ;;  %v398_v22 = vadd.f32 %v1351_v27, %v397_v19  ;;  %v998_v23 = vpop.f32.mrb[31].mxu0  ;;  %v930_v24 = vpack.c.bf16 %v499_v17, %v499_v17  ;;  %v502_v25 = vadd.f32 %v1351_v27, %v501_v20  ;;  %v1050_v26 = vpop.f32.mrb[31].mxu1 }
 0x13c   :  { %748 = vst.msk [vmem:[%s1601_s3 + $0x38] sm:$0xf] %vm733_vm2, %v904_v21  ;;  %v905_v28 = vpack.c.bf16 %v398_v22, %v398_v22  ;;  %774 = vst.msk [vmem:[%s1601_s3 + $0xa0] sm:$0xf] %vm733_vm2, %v930_v24  ;;  %v931_v29 = vpack.c.bf16 %v502_v25, %v502_v25 }
 0x13e   :  { %749 = vst.msk [vmem:[%s1601_s3 + $0x3c] sm:$0xf] %vm733_vm2, %v905_v28  ;;  %775 = vst.msk [vmem:[%s1601_s3 + $0xa4] sm:$0xf] %vm733_vm2, %v931_v29 }
 0x13f   :  { %v402_v30 = vpop.f32.mrb[32].mxu0  ;;  %v506_v31 = vpop.f32.mrb[32].mxu1 }
 0x140   :  { %v403_v32 = vadd.f32 %v1351_v27, %v402_v30  ;;  %v1001_v33 = vpop.f32.mrb[33].mxu0  ;;  %v507_v34 = vadd.f32 %v1351_v27, %v506_v31  ;;  %v1053_v35 = vpop.f32.mrb[33].mxu1 }
 0x141   :  { %v405_v36 = vpop.f32.mrb[34].mxu0  ;;  %v509_v37 = vpop.f32.mrb[34].mxu1 }
 0x142   :  { %v906_v38 = vpack.c.bf16 %v403_v32, %v403_v32  ;;  %v406_v39 = vadd.f32 %v1351_v27, %v405_v36  ;;  %v1002_v40 = vpop.f32.mrb[35].mxu0  ;;  %v932_v41 = vpack.c.bf16 %v507_v34, %v507_v34  ;;  %v510_v42 = vadd.f32 %v1351_v27, %v509_v37  ;;  %v1054_v43 = vpop.f32.mrb[35].mxu1 }
 0x144   :  { %750 = vst.msk [vmem:[%s1601_s3 + $0x40] sm:$0xf] %vm733_vm2, %v906_v38  ;;  %v907_v44 = vpack.c.bf16 %v406_v39, %v406_v39  ;;  %776 = vst.msk [vmem:[%s1601_s3 + $0xa8] sm:$0xf] %vm733_vm2, %v932_v41  ;;  %v933_v45 = vpack.c.bf16 %v510_v42, %v510_v42 }
 0x146   :  { %751 = vst.msk [vmem:[%s1601_s3 + $0x44] sm:$0xf] %vm733_vm2, %v907_v44  ;;  %777 = vst.msk [vmem:[%s1601_s3 + $0xac] sm:$0xf] %vm733_vm2, %v933_v45 }
 0x147   :  { %v410_v46 = vpop.f32.mrb[36].mxu0  ;;  %v514_v47 = vpop.f32.mrb[36].mxu1 }
 0x148   :  { %v411_v48 = vadd.f32 %v1351_v27, %v410_v46  ;;  %v1005_v49 = vpop.f32.mrb[37].mxu0  ;;  %v515_v50 = vadd.f32 %v1351_v27, %v514_v47  ;;  %v1057_v51 = vpop.f32.mrb[37].mxu1 }
 0x149   :  { %v413_v52 = vpop.f32.mrb[38].mxu0  ;;  %v517_v53 = vpop.f32.mrb[38].mxu1 }
 0x14a   :  { %v908_v54 = vpack.c.bf16 %v411_v48, %v411_v48  ;;  %v414_v55 = vadd.f32 %v1351_v27, %v413_v52  ;;  %v1006_v56 = vpop.f32.mrb[39].mxu0  ;;  %v934_v57 = vpack.c.bf16 %v515_v50, %v515_v50  ;;  %v518_v58 = vadd.f32 %v1351_v27, %v517_v53  ;;  %v1058_v59 = vpop.f32.mrb[39].mxu1 }
 0x14c   :  { %752 = vst.msk [vmem:[%s1601_s3 + $0x48] sm:$0xf] %vm733_vm2, %v908_v54  ;;  %v909_v60 = vpack.c.bf16 %v414_v55, %v414_v55  ;;  %778 = vst.msk [vmem:[%s1601_s3 + $0xb0] sm:$0xf] %vm733_vm2, %v934_v57  ;;  %v935_v61 = vpack.c.bf16 %v518_v58, %v518_v58 }
 0x14e   :  { %753 = vst.msk [vmem:[%s1601_s3 + $0x4c] sm:$0xf] %vm733_vm2, %v909_v60  ;;  %779 = vst.msk [vmem:[%s1601_s3 + $0xb4] sm:$0xf] %vm733_vm2, %v935_v61 }
 0x14f   :  { %v418_v62 = vpop.f32.mrb[40].mxu0  ;;  %v522_v63 = vpop.f32.mrb[40].mxu1 }
 0x150   :  { %v419_v0 = vadd.f32 %v1351_v27, %v418_v62  ;;  %v1009_v1 = vpop.f32.mrb[41].mxu0  ;;  %v523_v2 = vadd.f32 %v1351_v27, %v522_v63  ;;  %v1061_v3 = vpop.f32.mrb[41].mxu1 }
 0x151   :  { %v421_v4 = vpop.f32.mrb[42].mxu0  ;;  %v525_v5 = vpop.f32.mrb[42].mxu1 }
 0x152   :  { %v910_v6 = vpack.c.bf16 %v419_v0, %v419_v0  ;;  %v422_v7 = vadd.f32 %v1351_v27, %v421_v4  ;;  %v1010_v8 = vpop.f32.mrb[43].mxu0  ;;  %v936_v9 = vpack.c.bf16 %v523_v2, %v523_v2  ;;  %v526_v10 = vadd.f32 %v1351_v27, %v525_v5  ;;  %v1062_v11 = vpop.f32.mrb[43].mxu1 }
 0x154   :  { %754 = vst.msk [vmem:[%s1601_s3 + $0x50] sm:$0xf] %vm733_vm2, %v910_v6  ;;  %v911_v12 = vpack.c.bf16 %v422_v7, %v422_v7  ;;  %780 = vst.msk [vmem:[%s1601_s3 + $0xb8] sm:$0xf] %vm733_vm2, %v936_v9  ;;  %v937_v13 = vpack.c.bf16 %v526_v10, %v526_v10 }
 0x156   :  { %755 = vst.msk [vmem:[%s1601_s3 + $0x54] sm:$0xf] %vm733_vm2, %v911_v12  ;;  %781 = vst.msk [vmem:[%s1601_s3 + $0xbc] sm:$0xf] %vm733_vm2, %v937_v13 }
 0x157   :  { %v426_v14 = vpop.f32.mrb[44].mxu0  ;;  %v530_v15 = vpop.f32.mrb[44].mxu1 }
 0x158   :  { %v427_v16 = vadd.f32 %v1351_v27, %v426_v14  ;;  %v1013_v17 = vpop.f32.mrb[45].mxu0  ;;  %v531_v18 = vadd.f32 %v1351_v27, %v530_v15  ;;  %v1065_v19 = vpop.f32.mrb[45].mxu1 }
 0x159   :  { %v429_v20 = vpop.f32.mrb[46].mxu0  ;;  %v533_v21 = vpop.f32.mrb[46].mxu1 }
 0x15a   :  { %v912_v22 = vpack.c.bf16 %v427_v16, %v427_v16  ;;  %v430_v23 = vadd.f32 %v1351_v27, %v429_v20  ;;  %v1014_v24 = vpop.f32.mrb[47].mxu0  ;;  %v938_v25 = vpack.c.bf16 %v531_v18, %v531_v18  ;;  %v1066_v26 = vpop.f32.mrb[47].mxu1 }
 0x15c   :  { %756 = vst.msk [vmem:[%s1601_s3 + $0x58] sm:$0xf] %vm733_vm2, %v912_v22  ;;  %v913_v28 = vpack.c.bf16 %v430_v23, %v430_v23  ;;  %782 = vst.msk [vmem:[%s1601_s3 + $0xc0] sm:$0xf] %vm733_vm2, %v938_v25 }
 0x15e   :  { %757 = vst.msk [vmem:[%s1601_s3 + $0x5c] sm:$0xf] %vm733_vm2, %v913_v28 }
 0x15f   :  { %v434_v29 = vpop.f32.mrb[48].mxu0 }
 0x160   :  { %v435_v30 = vadd.f32 %v1351_v27, %v434_v29  ;;  %v1017_v31 = vpop.f32.mrb[49].mxu0 }
 0x161   :  { %v437_v32 = vpop.f32.mrb[50].mxu0 }
 0x162   :  { %v914_v33 = vpack.c.bf16 %v435_v30, %v435_v30  ;;  %v438_v34 = vadd.f32 %v1351_v27, %v437_v32  ;;  %v1018_v35 = vpop.f32.mrb[51].mxu0 }
 0x164   :  { %758 = vst.msk [vmem:[%s1601_s3 + $0x60] sm:$0xf] %vm733_vm2, %v914_v33  ;;  %v915_v36 = vpack.c.bf16 %v438_v34, %v438_v34 }
 0x166   :  { %759 = vst.msk [vmem:[%s1601_s3 + $0x64] sm:$0xf] %vm733_vm2, %v915_v36 }
 0x167   :  { %787 = vsyncpa [#allocation3], 1 }
 0x168   :  { %788 = vsyncpa [#allocation5], 1 }

// kernel: conv_forward.4
= control target key start
LH: loop header
LB: loop body
LE: loop exit
PB: predicated region body
PF: predicated region fallthrough
CT: control target
= control target key end

     0   :  { %8 = vsyncpa [#allocation3], 0  ;;  %s1586_s0 = inlined_call_operand.vmem [shape: bf16[104,576], index: 0, kind: input, shape index: {}]   ;;  %s1587_s1 = inlined_call_operand.hbm [shape: bf16[576,128], index: 1, kind: input, shape index: {}]   ;;  %s1588_s2 = inlined_call_operand.hbm [shape: f32[1,128], index: 2, kind: input, shape index: {}]   ;;  %s1589_s3 = inlined_call_operand.vmem [shape: bf16[104,128], index: 3, kind: output, shape index: {}]  }
   0x1   :  { %9 = vsyncpa [#allocation5], 0  ;;  %s1348_s12 = smov [#allocation2]   ;;  %s1300_s16 = scalar_lea.hbm %s1587_s1, 4608 }
   0x2   :  { %s17_s13 = sshll.u32 %s1348_s12, 4  ;;  %p1301_p0 = scmp.ne.s32.totalorder %s1587_s1, %s1300_s16  ;;  %s18_s13 = int_to_ptr.vmem [resolvable:$true] %s17_s13 }
   0x3   :  { %p1304_p1 = scmp.lt.u32.totalorder %s1300_s16, %s1587_s1 }
   0x5   :  { %p1306_p2 = pnand %p1304_p1, %p1301_p0 }
   0x7   :  { %1309 = shalt.err (!%p1306_p2)
}
   0x8   :  { %s1310_s21 = scalar_lea.vmem %s18_s13, 4608  ;;  %p1315_p4 = scmp.lt.s32.totalorder %s18_s13, %s18_s13 }
   0x9   :  { %p1311_p3 = scmp.ne.s32.totalorder %s18_s13, %s1310_s21  ;;  %p1316_p5 = scmp.lt.s32.totalorder %s1310_s21, %s1310_s21 }
   0xb   :  { %p1317_p6 = por %p1316_p5, %p1315_p4 }
   0xd   :  { %p1318_p7 = pnand %p1317_p6, %p1311_p3 }
   0xf   :  { %1321 = shalt.err (!%p1318_p7)
}
  0x10   :  { %s1349_s22 = smov 64   ;;  %s1350_s23 = smov 4  }
  0x11   :  { %23 = dma.hbm_to_vmem [thread:$0]  %s1587_s1, 4608, %s18_s13, [#allocation3], %s1349_s22, %s1349_s22, %s1350_s23  }
  0x12   :  { %s1351_s26 = smov [#allocation4]   ;;  %s1322_s30 = scalar_lea.hbm %s1588_s2, 16 }
  0x13   :  { %s30_s27 = sshll.u32 %s1351_s26, 4  ;;  %p1323_p8 = scmp.ne.s32.totalorder %s1588_s2, %s1322_s30  ;;  %s31_s27 = int_to_ptr.vmem [resolvable:$true] %s30_s27 }
  0x14   :  { %p1326_p9 = scmp.lt.u32.totalorder %s1322_s30, %s1588_s2 }
  0x16   :  { %p1328_p10 = pnand %p1326_p9, %p1323_p8 }
  0x18   :  { %1331 = shalt.err (!%p1328_p10)
}
  0x19   :  { %s1332_s8 = scalar_lea.vmem %s31_s27, 16  ;;  %s1336_s1 = scalar_lea.vmem %s31_s27, 32 }
  0x1a   :  { %p1333_p11 = scmp.ne.s32.totalorder %s31_s27, %s1332_s8  ;;  %p1337_p12 = scmp.lt.s32.totalorder %s31_s27, %s31_s27 }
  0x1b   :  { %p1338_p13 = scmp.lt.s32.totalorder %s1336_s1, %s1332_s8 }
  0x1d   :  { %p1339_p0 = por %p1338_p13, %p1337_p12 }
  0x1f   :  { %p1340_p1 = pnand %p1339_p0, %p1333_p11 }
  0x21   :  { %1343 = shalt.err (!%p1340_p1)
}
  0x22   :  { %33 = dma.hbm_to_vmem [thread:$0]  %s1588_s2, 16, %s31_s27, [#allocation5]  }
  0x23   :  { %1344 = dma.done.wait [#allocation3], 4608  }
  0x24   :  { %1345 = vsyncadd [#allocation3], 4294962688 }
  0x25   :  { %1346 = dma.done.wait [#allocation5], 16  }
  0x26   :  { %1347 = vsyncadd [#allocation5], 4294967280  ;;  %v1217_v0 = vld [vmem:[#allocation2 + $0x40] sm:$0xff]   ;;  %v1221_v4 = vld [vmem:[#allocation2 + $0x48] sm:$0xff]   ;;  %v1352_v34 = vmov 0.0   ;;  %vm1353_vm0 = vmmov 0  }
  0x27   :  { %v1218_v1 = vld [vmem:[#allocation2 + $0xc0] sm:$0xff]   ;;  %1040 = vmatprep.subr.bf16.mxu0 %v1217_v0  ;;  %v1222_v5 = vld [vmem:[#allocation2 + $0xc8] sm:$0xff]   ;;  %v1225_v8 = vld [vmem:[#allocation2 + $0x50] sm:$0xff]   ;;  %vm542_vm1 = vcmask 523264  }
  0x28   :  { %v1219_v2 = vld [vmem:[#allocation2] sm:$0xff]   ;;  %1098 = vmatprep.subr.bf16.mxu1 %v1218_v1  ;;  %v1223_v6 = vld [vmem:[#allocation2 + $0x8] sm:$0xff]   ;;  %v1226_v9 = vld [vmem:[#allocation2 + $0xd0] sm:$0xff]  }
  0x29   :  { %v1220_v3 = vld [vmem:[#allocation2 + $0x80] sm:$0xff]   ;;  %1041 = vmatpush3.bf16.msra.mxu0 %v1219_v2  ;;  %v1224_v7 = vld [vmem:[#allocation2 + $0x88] sm:$0xff]   ;;  %v1227_v10 = vld [vmem:[#allocation2 + $0x10] sm:$0xff]  }
  0x2a   :  { %1099 = vmatpush3.bf16.msra.mxu1 %v1220_v3  ;;  %1042 = vmatprep.subr.bf16.mxu0 %v1221_v4  ;;  %v1228_v11 = vld [vmem:[#allocation2 + $0x90] sm:$0xff]   ;;  %v1229_v12 = vld [vmem:[#allocation2 + $0x58] sm:$0xff]   ;;  %v1233_v16 = vld [vmem:[#allocation2 + $0x60] sm:$0xff]  }
  0x2b   :  { %1100 = vmatprep.subr.bf16.mxu1 %v1222_v5  ;;  %v1230_v13 = vld [vmem:[#allocation2 + $0xd8] sm:$0xff]   ;;  %v1234_v17 = vld [vmem:[#allocation2 + $0xe0] sm:$0xff]   ;;  %v1237_v20 = vld [vmem:[#allocation2 + $0x68] sm:$0xff]  }
  0x2c   :  { %v1231_v14 = vld [vmem:[#allocation2 + $0x18] sm:$0xff]   ;;  %v1235_v18 = vld [vmem:[#allocation2 + $0x20] sm:$0xff]   ;;  %v1238_v21 = vld [vmem:[#allocation2 + $0xe8] sm:$0xff]  }
  0x2d   :  { %1043 = vmatpush3.bf16.msra.mxu0 %v1223_v6  ;;  %v1232_v15 = vld [vmem:[#allocation2 + $0x98] sm:$0xff]   ;;  %v1236_v19 = vld [vmem:[#allocation2 + $0xa0] sm:$0xff]   ;;  %v1239_v22 = vld [vmem:[#allocation2 + $0x28] sm:$0xff]  }
  0x2e   :  { %1101 = vmatpush3.bf16.msra.mxu1 %v1224_v7  ;;  %1044 = vmatprep.subr.bf16.mxu0 %v1225_v8  ;;  %v1240_v23 = vld [vmem:[#allocation2 + $0xa8] sm:$0xff]   ;;  %v1241_v24 = vld [vmem:[#allocation2 + $0x70] sm:$0xff]   ;;  %v1245_v28 = vld [vmem:[#allocation2 + $0x78] sm:$0xff]  }
  0x2f   :  { %1102 = vmatprep.subr.bf16.mxu1 %v1226_v9  ;;  %v1242_v25 = vld [vmem:[#allocation2 + $0xf0] sm:$0xff]   ;;  %v1246_v29 = vld [vmem:[#allocation2 + $0xf8] sm:$0xff]   ;;  %v1254_v36 = vld [vmem:[%s1586_s0 + $0xc] ss:$20 sps:$4 sm:$0xff]  }
  0x30   :  { %v1243_v26 = vld [vmem:[#allocation2 + $0x30] sm:$0xff]   ;;  %v1247_v30 = vld [vmem:[#allocation2 + $0x38] sm:$0xff]   ;;  %v1255_v37 = vld [vmem:[#allocation2 + $0x100] sm:$0xff]   ;;  %684 = vmatprep.mubr.bf16.mxu1 %v1254_v36 }
  0x31   :  { %1045 = vmatpush3.bf16.msra.mxu0 %v1227_v10  ;;  %v1244_v27 = vld [vmem:[#allocation2 + $0xb0] sm:$0xff]   ;;  %v1248_v31 = vld [vmem:[#allocation2 + $0xb8] sm:$0xff]   ;;  %v1256_v38 = vld [vmem:[%s1586_s0 + $0x2c] ss:$20 sps:$4 sm:$0xff]  }
  0x32   :  { %1103 = vmatpush3.bf16.msra.mxu1 %v1228_v11  ;;  %1046 = vmatprep.subr.bf16.mxu0 %v1229_v12  ;;  %v1249_v32 = vld [vmem:[%s1586_s0] ss:$20 sps:$4 sm:$0xff]   ;;  %v1251_v33 = vld [vmem:[%s1586_s0 + $0x4] ss:$20 sps:$4 sm:$0xff]   ;;  %v1252_v35 = vld [vmem:[%s1586_s0 + $0x8] ss:$20 sps:$4 sm:$0xff]  }
  0x33   :  { %1104 = vmatprep.subr.bf16.mxu1 %v1230_v13  ;;  %596 = vmatprep.mubr.bf16.mxu0 %v1251_v33  ;;  %v1258_v39 = vld [vmem:[%s1586_s0 + $0x34] ss:$20 sps:$4 sm:$0xff]   ;;  %v1261_v41 = vld [vmem:[%s1586_s0 + $0x30] ss:$20 sps:$4 sm:$0xff]   ;;  %v1268_v47 = vld [vmem:[%s1586_s0 + $0x58] ss:$20 sps:$4 sm:$0xff]  }
  0x34   :  { %v1260_v40 = vld [vmem:[%s1586_s0 + $0x28] ss:$20 sps:$4 sm:$0xff]   ;;  %v1275_v45 = vld [vmem:[#allocation2 + $0x110] sm:$0xff]   ;;  %v1271_v49 = vld [vmem:[%s1586_s0 + $0x84] ss:$20 sps:$4 sm:$0xff]  }
  0x35   :  { %1047 = vmatpush3.bf16.msra.mxu0 %v1231_v14  ;;  %v1262_v42 = vld [vmem:[%s1586_s0 + $0x54] ss:$20 sps:$4 sm:$0xff]   ;;  %v1264_v44 = vld [vmem:[%s1586_s0 + $0x5c] ss:$20 sps:$4 sm:$0xff]   ;;  %v1273_v51 = vld [vmem:[%s1586_s0 + $0x78] ss:$20 sps:$4 sm:$0xff]  }
  0x36   :  { %1105 = vmatpush3.bf16.msra.mxu1 %v1232_v15  ;;  %1048 = vmatprep.subr.bf16.mxu0 %v1233_v16  ;;  %v1266_v43 = vld [vmem:[#allocation2 + $0x108] sm:$0xff]   ;;  %v1267_v46 = vld [vmem:[%s1586_s0 + $0x50] ss:$20 sps:$4 sm:$0xff]   ;;  %v1288_v50 = vld [vmem:[#allocation2 + $0x118] sm:$0xff]  }
  0x37   :  { %1106 = vmatprep.subr.bf16.mxu1 %v1234_v17  ;;  %v1269_v48 = vld [vmem:[%s1586_s0 + $0x7c] ss:$20 sps:$4 sm:$0xff]   ;;  %v1274_v52 = vld [vmem:[%s1586_s0 + $0x80] ss:$20 sps:$4 sm:$0xff]   ;;  %v1276_v53 = vld [vmem:[%s1586_s0 + $0xa4] ss:$20 sps:$4 sm:$0xff]  }
  0x38   :  { %v1278_v54 = vld [vmem:[%s1586_s0 + $0xac] ss:$20 sps:$4 sm:$0xff]   ;;  %v1281_v56 = vld [vmem:[%s1586_s0 + $0xa8] ss:$20 sps:$4 sm:$0xff]   ;;  %v77_v59 = vld [vmem:[%s1586_s0 + $0xf0] sm:$0xff] }
  0x39   :  { %1049 = vmatpush3.bf16.msra.mxu0 %v1235_v18  ;;  %v1280_v55 = vld [vmem:[%s1586_s0 + $0xa0] ss:$20 sps:$4 sm:$0xff]   ;;  %v78_v60 = vld [vmem:[%s1586_s0 + $0xf8] sm:$0xff]  ;;  %v1287_v62 = vld [vmem:[%s1586_s0 + $0xd0] ss:$20 sps:$4 sm:$0xff]   ;;  %v932_v63 = vcombine.high %v77_v59, %v77_v59  ;;  %v931_v1 = vcombine.low %v77_v59, %v77_v59 }
  0x3a   :  { %1107 = vmatpush3.bf16.msra.mxu1 %v1236_v19  ;;  %1050 = vmatprep.subr.bf16.mxu0 %v1237_v20  ;;  %v1282_v57 = vld [vmem:[%s1586_s0 + $0xcc] ss:$20 sps:$4 sm:$0xff]   ;;  %v1284_v58 = vld [vmem:[%s1586_s0 + $0xd4] ss:$20 sps:$4 sm:$0xff]   ;;  %v934_v0 = vcombine.high %v78_v60, %v78_v60  ;;  %v933_v2 = vcombine.low %v78_v60, %v78_v60  ;;  %v1293_v3 = vld [vmem:[%s1586_s0 + $0x10] ss:$20 sps:$4 sm:$0xff]  }
  0x3b   :  { %1108 = vmatprep.subr.bf16.mxu1 %v1238_v21  ;;  %v1286_v61 = vld [vmem:[%s1586_s0 + $0xc8] ss:$20 sps:$4 sm:$0xff]   ;;  %v1294_v4 = vld [vmem:[%s1586_s0 + $0xb0] ss:$20 sps:$4 sm:$0xff]   ;;  %v1295_v5 = vld [vmem:[%s1586_s0 + $0x38] ss:$20 sps:$4 sm:$0xff]  }
  0x3c   :  { %v1296_v6 = vld [vmem:[%s1586_s0 + $0xd8] ss:$20 sps:$4 sm:$0xff]   ;;  %v1297_v7 = vld [vmem:[%s1586_s0 + $0x60] ss:$20 sps:$4 sm:$0xff]   ;;  %v1299_v9 = vld [vmem:[%s1586_s0 + $0x88] ss:$20 sps:$4 sm:$0xff]  }
  0x3d   :  { %1051 = vmatpush3.bf16.msra.mxu0 %v1239_v22  ;;  %v1298_v8 = vld [vmem:[%s1586_s0 + $0x100] ss:$0 sps:$4 sm:$0xff]  }
  0x3e   :  { %1109 = vmatpush3.bf16.msra.mxu1 %v1240_v23  ;;  %1052 = vmatprep.subr.bf16.mxu0 %v1241_v24  ;;  %v1526_v11 = vld [vmem:[#allocation4] ss:$0 sm:$0xff] }
  0x3f   :  { %1110 = vmatprep.subr.bf16.mxu1 %v1242_v25 }
  0x41   :  { %1053 = vmatpush3.bf16.msra.mxu0 %v1243_v26 }
  0x42   :  { %1111 = vmatpush3.bf16.msra.mxu1 %v1244_v27  ;;  %1054 = vmatprep.subr.bf16.mxu0 %v1245_v28 }
  0x43   :  { %1112 = vmatprep.subr.bf16.mxu1 %v1246_v29 }
  0x45   :  { %1055 = vmatpush3.bf16.msra.mxu0 %v1247_v30 }
  0x46   :  { %1113 = vmatpush3.bf16.msra.mxu1 %v1248_v31  ;;  %1167 = vmatprep.subr.bf16.mxu0 %v1352_v34 }
  0x47   :  { %1203 = vmatprep.subr.bf16.mxu1 %v1352_v34 }
  0x48   :  { %597 = vmatmul.mubr.bf16.vlgmr.msra.gmra.mrb[0].mxu0 %v1249_v32 }
  0x49   :  { %685 = vmatmul.mubr.bf16.vlgmr.msra.gmra.mrb[0].mxu1 %v1252_v35  ;;  %1168 = vmatpush3.bf16.msra.mxu0 %v1255_v37 }
  0x4a   :  { %604 = vmatprep.mubr.bf16.mxu0 %v1256_v38  ;;  %1207 = vmatpush3.bf16.msra.mxu1 %v1255_v37 }
  0x4b   :  { %692 = vmatprep.mubr.bf16.mxu1 %v1258_v39  ;;  %1169 = vmatprep.subr.bf16.mxu0 %v1352_v34 }
  0x4c   :  { %1204 = vmatprep.subr.bf16.mxu1 %v1352_v34 }
  0x4d   :  { %1170 = vmatpush3.bf16.msra.mxu0 %v1266_v43 }
  0x4e   :  { %1208 = vmatpush3.bf16.msra.mxu1 %v1266_v43  ;;  %1171 = vmatprep.subr.bf16.mxu0 %v1352_v34 }
  0x4f   :  { %1205 = vmatprep.subr.bf16.mxu1 %v1352_v34 }
  0x50   :  { %605 = vmatmul.mubr.bf16.gmra.mrb[4].mxu0 %v1260_v40 }
  0x51   :  { %693 = vmatmul.mubr.bf16.gmra.mrb[4].mxu1 %v1261_v41  ;;  %612 = vmatprep.mubr.bf16.mxu0 %v1262_v42 }
  0x52   :  { %700 = vmatprep.mubr.bf16.mxu1 %v1264_v44  ;;  %1172 = vmatpush3.bf16.msra.mxu0 %v1275_v45 }
  0x53   :  { %1209 = vmatpush3.bf16.msra.mxu1 %v1275_v45  ;;  %1173 = vmatprep.subr.bf16.mxu0 %v1352_v34 }
  0x54   :  { %1206 = vmatprep.subr.bf16.mxu1 %v1352_v34 }
  0x56   :  { %1174 = vmatpush3.bf16.msra.mxu0 %v1288_v50 }
  0x57   :  { %1210 = vmatpush3.bf16.msra.mxu1 %v1288_v50 }
  0x58   :  { %613 = vmatmul.mubr.bf16.gmra.mrb[8].mxu0 %v1267_v46 }
  0x59   :  { %701 = vmatmul.mubr.bf16.gmra.mrb[8].mxu1 %v1268_v47  ;;  %620 = vmatprep.mubr.bf16.mxu0 %v1269_v48 }
  0x5a   :  { %708 = vmatprep.mubr.bf16.mxu1 %v1271_v49 }
  0x60   :  { %621 = vmatmul.mubr.bf16.gmra.mrb[12].mxu0 %v1273_v51 }
  0x61   :  { %709 = vmatmul.mubr.bf16.gmra.mrb[12].mxu1 %v1274_v52  ;;  %628 = vmatprep.mubr.bf16.mxu0 %v1276_v53 }
  0x62   :  { %716 = vmatprep.mubr.bf16.mxu1 %v1278_v54 }
  0x68   :  { %629 = vmatmul.mubr.bf16.gmra.mrb[16].mxu0 %v1280_v55 }
  0x69   :  { %717 = vmatmul.mubr.bf16.gmra.mrb[16].mxu1 %v1281_v56  ;;  %636 = vmatprep.mubr.bf16.mxu0 %v1282_v57 }
  0x6a   :  { %724 = vmatprep.mubr.bf16.mxu1 %v1284_v58 }
  0x70   :  { %637 = vmatmul.mubr.bf16.gmra.mrb[20].mxu0 %v1286_v61 }
  0x71   :  { %725 = vmatmul.mubr.bf16.gmra.mrb[20].mxu1 %v1287_v62  ;;  %644 = vmatprep.mubr.bf16.mxu0 %v932_v63 }
  0x72   :  { %732 = vmatprep.mubr.bf16.mxu1 %v934_v0 }
  0x78   :  { %645 = vmatmul.mubr.bf16.gmra.mrb[24].mxu0 %v931_v1 }
  0x79   :  { %733 = vmatmul.mubr.bf16.gmra.mrb[24].mxu1 %v933_v2  ;;  %1175 = vmatprep.mubr.msk.bf16.mxu0 %vm1353_vm0, %v1352_v34 }
  0x7a   :  { %1191 = vmatprep.mubr.msk.bf16.mxu1 %vm1353_vm0, %v1352_v34 }
  0x80   :  { %1176 = vmatmul.mubr.msk.bf16.vlgmr.msra.gmra.mrb[28].mxu0 %vm542_vm1, %v1293_v3 }
  0x81   :  { %1192 = vmatmul.mubr.msk.bf16.vlgmr.msra.gmra.mrb[28].mxu1 %vm542_vm1, %v1294_v4  ;;  %1179 = vmatprep.mubr.msk.bf16.mxu0 %vm1353_vm0, %v1352_v34 }
  0x82   :  { %1195 = vmatprep.mubr.msk.bf16.mxu1 %vm1353_vm0, %v1352_v34 }
  0x88   :  { %1180 = vmatmul.mubr.msk.bf16.gmra.mrb[32].mxu0 %vm542_vm1, %v1295_v5 }
  0x89   :  { %1196 = vmatmul.mubr.msk.bf16.gmra.mrb[32].mxu1 %vm542_vm1, %v1296_v6  ;;  %1183 = vmatprep.mubr.msk.bf16.mxu0 %vm1353_vm0, %v1352_v34 }
  0x8a   :  { %1199 = vmatprep.mubr.msk.bf16.mxu1 %vm1353_vm0, %v1352_v34 }
  0x90   :  { %1184 = vmatmul.mubr.msk.bf16.gmra.mrb[36].mxu0 %vm542_vm1, %v1297_v7 }
  0x91   :  { %1200 = vmatmul.mubr.msk.bf16.gmra.mrb[36].mxu1 %vm542_vm1, %v1298_v8  ;;  %1187 = vmatprep.mubr.msk.bf16.mxu0 %vm1353_vm0, %v1352_v34 }
  0x98   :  { %1188 = vmatmul.mubr.msk.bf16.gmra.mrb[40].mxu0 %vm542_vm1, %v1299_v9 }
 0x11b   :  { %v1056_v10 = vpop.f32.mrb[0].mxu0 }
 0x11c   :  { %v1057_v12 = vpop.f32.mrb[1].mxu0  ;;  %v1114_v13 = vpop.f32.mrb[0].mxu1 }
 0x11d   :  { %v1058_v14 = vadd.f32 %v1057_v12, %v1056_v10  ;;  %v1059_v15 = vpop.f32.mrb[2].mxu0  ;;  %v1115_v16 = vpop.f32.mrb[1].mxu1 }
 0x11e   :  { %v1060_v17 = vpop.f32.mrb[3].mxu0  ;;  %v1116_v18 = vadd.f32 %v1115_v16, %v1114_v13  ;;  %v1117_v19 = vpop.f32.mrb[2].mxu1 }
 0x11f   :  { %v599_v20 = vadd.f32 %v1058_v14, %v1526_v11  ;;  %v1061_v21 = vadd.f32 %v1060_v17, %v1059_v15  ;;  %v1118_v22 = vpop.f32.mrb[3].mxu1 }
 0x120   :  { %v1119_v23 = vadd.f32 %v1118_v22, %v1117_v19 }
 0x121   :  { %v602_v24 = vadd.f32 %v1061_v21, %v1526_v11  ;;  %v1530_v25 = vadd.f32 %v1116_v18, %v599_v20 }
 0x123   :  { %v1062_v26 = vpop.f32.mrb[4].mxu0  ;;  %v1532_v27 = vadd.f32 %v1119_v23, %v602_v24 }
 0x124   :  { %v1063_v28 = vpop.f32.mrb[5].mxu0  ;;  %v1120_v29 = vpop.f32.mrb[4].mxu1 }
 0x125   :  { %v1064_v30 = vadd.f32 %v1063_v28, %v1062_v26  ;;  %v1065_v31 = vpop.f32.mrb[6].mxu0  ;;  %v1121_v32 = vpop.f32.mrb[5].mxu1 }
 0x126   :  { %v1066_v33 = vpop.f32.mrb[7].mxu0  ;;  %v1122_v34 = vadd.f32 %v1121_v32, %v1120_v29  ;;  %v1123_v35 = vpop.f32.mrb[6].mxu1 }
 0x127   :  { %v607_v36 = vadd.f32 %v1064_v30, %v1526_v11  ;;  %v1067_v37 = vadd.f32 %v1066_v33, %v1065_v31  ;;  %v1124_v38 = vpop.f32.mrb[7].mxu1 }
 0x128   :  { %v1125_v39 = vadd.f32 %v1124_v38, %v1123_v35 }
 0x129   :  { %v610_v40 = vadd.f32 %v1067_v37, %v1526_v11  ;;  %v1536_v41 = vadd.f32 %v1122_v34, %v607_v36 }
 0x12b   :  { %v1068_v42 = vpop.f32.mrb[8].mxu0  ;;  %v1538_v43 = vadd.f32 %v1125_v39, %v610_v40 }
 0x12c   :  { %v1069_v44 = vpop.f32.mrb[9].mxu0  ;;  %v1126_v45 = vpop.f32.mrb[8].mxu1 }
 0x12d   :  { %v1070_v46 = vadd.f32 %v1069_v44, %v1068_v42  ;;  %v1071_v47 = vpop.f32.mrb[10].mxu0  ;;  %v1127_v48 = vpop.f32.mrb[9].mxu1 }
 0x12e   :  { %v1072_v49 = vpop.f32.mrb[11].mxu0  ;;  %v1128_v50 = vadd.f32 %v1127_v48, %v1126_v45  ;;  %v1129_v51 = vpop.f32.mrb[10].mxu1 }
 0x12f   :  { %v615_v52 = vadd.f32 %v1070_v46, %v1526_v11  ;;  %v1073_v53 = vadd.f32 %v1072_v49, %v1071_v47  ;;  %v1130_v54 = vpop.f32.mrb[11].mxu1 }
 0x130   :  { %v1131_v55 = vadd.f32 %v1130_v54, %v1129_v51 }
 0x131   :  { %v618_v56 = vadd.f32 %v1073_v53, %v1526_v11  ;;  %v1542_v57 = vadd.f32 %v1128_v50, %v615_v52 }
 0x133   :  { %v1074_v58 = vpop.f32.mrb[12].mxu0  ;;  %v1544_v59 = vadd.f32 %v1131_v55, %v618_v56 }
 0x134   :  { %v1075_v60 = vpop.f32.mrb[13].mxu0  ;;  %v1132_v61 = vpop.f32.mrb[12].mxu1 }
 0x135   :  { %v1076_v62 = vadd.f32 %v1075_v60, %v1074_v58  ;;  %v1077_v63 = vpop.f32.mrb[14].mxu0  ;;  %v1133_v0 = vpop.f32.mrb[13].mxu1 }
 0x136   :  { %v1078_v1 = vpop.f32.mrb[15].mxu0  ;;  %v1134_v2 = vadd.f32 %v1133_v0, %v1132_v61  ;;  %v1135_v3 = vpop.f32.mrb[14].mxu1 }
 0x137   :  { %v623_v4 = vadd.f32 %v1076_v62, %v1526_v11  ;;  %v1079_v5 = vadd.f32 %v1078_v1, %v1077_v63  ;;  %v1136_v6 = vpop.f32.mrb[15].mxu1 }
 0x138   :  { %v1137_v7 = vadd.f32 %v1136_v6, %v1135_v3 }
 0x139   :  { %v626_v8 = vadd.f32 %v1079_v5, %v1526_v11  ;;  %v1548_v9 = vadd.f32 %v1134_v2, %v623_v4 }
 0x13b   :  { %v1080_v10 = vpop.f32.mrb[16].mxu0  ;;  %v1550_v12 = vadd.f32 %v1137_v7, %v626_v8 }
 0x13c   :  { %v1081_v13 = vpop.f32.mrb[17].mxu0  ;;  %v1138_v14 = vpop.f32.mrb[16].mxu1 }
 0x13d   :  { %v1082_v15 = vadd.f32 %v1081_v13, %v1080_v10  ;;  %v1083_v16 = vpop.f32.mrb[18].mxu0  ;;  %v1139_v17 = vpop.f32.mrb[17].mxu1 }
 0x13e   :  { %v1084_v18 = vpop.f32.mrb[19].mxu0  ;;  %v1140_v19 = vadd.f32 %v1139_v17, %v1138_v14  ;;  %v1141_v20 = vpop.f32.mrb[18].mxu1 }
 0x13f   :  { %v631_v21 = vadd.f32 %v1082_v15, %v1526_v11  ;;  %v1085_v22 = vadd.f32 %v1084_v18, %v1083_v16  ;;  %v1142_v23 = vpop.f32.mrb[19].mxu1 }
 0x140   :  { %v1143_v24 = vadd.f32 %v1142_v23, %v1141_v20 }
 0x141   :  { %v634_v26 = vadd.f32 %v1085_v22, %v1526_v11  ;;  %v719_v28 = vadd.f32 %v1140_v19, %v631_v21 }
 0x143   :  { %v1086_v29 = vpop.f32.mrb[20].mxu0  ;;  %v722_v30 = vadd.f32 %v1143_v24, %v634_v26 }
 0x144   :  { %v1087_v31 = vpop.f32.mrb[21].mxu0  ;;  %v1144_v32 = vpop.f32.mrb[20].mxu1 }
 0x145   :  { %v1088_v33 = vadd.f32 %v1087_v31, %v1086_v29  ;;  %v1089_v34 = vpop.f32.mrb[22].mxu0  ;;  %v1145_v35 = vpop.f32.mrb[21].mxu1 }
 0x146   :  { %v1090_v36 = vpop.f32.mrb[23].mxu0  ;;  %v1146_v37 = vadd.f32 %v1145_v35, %v1144_v32  ;;  %v1147_v38 = vpop.f32.mrb[22].mxu1 }
 0x147   :  { %v639_v39 = vadd.f32 %v1088_v33, %v1526_v11  ;;  %v1091_v40 = vadd.f32 %v1090_v36, %v1089_v34  ;;  %v1148_v42 = vpop.f32.mrb[23].mxu1 }
 0x148   :  { %v1149_v44 = vadd.f32 %v1148_v42, %v1147_v38 }
 0x149   :  { %v642_v45 = vadd.f32 %v1091_v40, %v1526_v11  ;;  %v727_v46 = vadd.f32 %v1146_v37, %v639_v39 }
 0x14b   :  { %v1092_v47 = vpop.f32.mrb[24].mxu0  ;;  %v730_v48 = vadd.f32 %v1149_v44, %v642_v45 }
 0x14c   :  { %v1093_v49 = vpop.f32.mrb[25].mxu0  ;;  %v1150_v50 = vpop.f32.mrb[24].mxu1 }
 0x14d   :  { %v1094_v51 = vadd.f32 %v1093_v49, %v1092_v47  ;;  %v1095_v52 = vpop.f32.mrb[26].mxu0  ;;  %v1151_v53 = vpop.f32.mrb[25].mxu1 }
 0x14e   :  { %v1096_v54 = vpop.f32.mrb[27].mxu0  ;;  %v1152_v55 = vadd.f32 %v1151_v53, %v1150_v50  ;;  %v1153_v56 = vpop.f32.mrb[26].mxu1 }
 0x14f   :  { %v647_v58 = vadd.f32 %v1094_v51, %v1526_v11  ;;  %v1154_v60 = vpop.f32.mrb[27].mxu1 }
 0x151   :  { %v735_v61 = vadd.f32 %v1152_v55, %v647_v58 }
 0x153   :  { %v774_v62 = vpop.f32.mrb[28].mxu0 }
 0x154   :  { %v775_v63 = vadd.f32 %v774_v62, %v1530_v25  ;;  %v806_v0 = vpop.f32.mrb[28].mxu1  ;;  %v1177_v1 = vpop.f32.mrb[29].mxu0 }
 0x155   :  { %v807_v2 = vadd.f32 %v806_v0, %v719_v28  ;;  %v1193_v3 = vpop.f32.mrb[29].mxu1  ;;  %v777_v4 = vpop.f32.mrb[30].mxu0 }
 0x156   :  { %v778_v5 = vadd.f32 %v777_v4, %v1532_v27  ;;  %v809_v6 = vpop.f32.mrb[30].mxu1  ;;  %v1178_v7 = vpop.f32.mrb[31].mxu0 }
 0x157   :  { %v810_v8 = vadd.f32 %v809_v6, %v722_v30  ;;  %v1194_v10 = vpop.f32.mrb[31].mxu1 }
 0x158   :  { %v1008_v13 = vpack.c.bf16 %v778_v5, %v775_v63 }
 0x159   :  { %v1028_v14 = vpack.c.bf16 %v810_v8, %v807_v2 }
 0x15a   :  { %1009 = vst [vmem:[%s1589_s3] sm:$0xff] %v1008_v13  }
 0x15b   :  { %1038 = vst [vmem:[%s1589_s3 + $0x20] sm:$0xff] %v1028_v14   ;;  %v782_v11 = vpop.f32.mrb[32].mxu0 }
 0x15c   :  { %v783_v25 = vadd.f32 %v782_v11, %v1536_v41  ;;  %v814_v15 = vpop.f32.mrb[32].mxu1  ;;  %v1181_v16 = vpop.f32.mrb[33].mxu0 }
 0x15d   :  { %v815_v27 = vadd.f32 %v814_v15, %v727_v46  ;;  %v1197_v17 = vpop.f32.mrb[33].mxu1  ;;  %v785_v18 = vpop.f32.mrb[34].mxu0 }
 0x15e   :  { %v786_v19 = vadd.f32 %v785_v18, %v1538_v43  ;;  %v817_v20 = vpop.f32.mrb[34].mxu1  ;;  %v1182_v21 = vpop.f32.mrb[35].mxu0 }
 0x15f   :  { %v818_v22 = vadd.f32 %v817_v20, %v730_v48  ;;  %v1198_v23 = vpop.f32.mrb[35].mxu1 }
 0x160   :  { %v1013_v24 = vpack.c.bf16 %v786_v19, %v783_v25 }
 0x161   :  { %v1033_v26 = vpack.c.bf16 %v818_v22, %v815_v27 }
 0x162   :  { %1035 = vst [vmem:[%s1589_s3 + $0x8] sm:$0xff] %v1013_v24  }
 0x163   :  { %1039 = vst [vmem:[%s1589_s3 + $0x28] sm:$0xff] %v1033_v26   ;;  %v790_v41 = vpop.f32.mrb[36].mxu0 }
 0x164   :  { %v791_v28 = vadd.f32 %v790_v41, %v1542_v57  ;;  %v822_v29 = vpop.f32.mrb[36].mxu1  ;;  %v1185_v30 = vpop.f32.mrb[37].mxu0 }
 0x165   :  { %v823_v43 = vadd.f32 %v822_v29, %v735_v61  ;;  %v793_v31 = vpop.f32.mrb[38].mxu0  ;;  %v1201_v32 = vpop.f32.mrb[37].mxu1 }
 0x166   :  { %v794_v33 = vadd.f32 %v793_v31, %v1544_v59  ;;  %v1186_v34 = vpop.f32.mrb[39].mxu0  ;;  %v825_v35 = vpop.f32.mrb[38].mxu1 }
 0x167   :  { %v1004_v36 = vpack.c.bf16 %v823_v43, %v823_v43  ;;  %v1202_v37 = vpop.f32.mrb[39].mxu1 }
 0x168   :  { %v1018_v38 = vpack.c.bf16 %v794_v33, %v791_v28 }
 0x169   :  { %893 = vst [vmem:[%s1589_s3 + $0x30] sm:$0xf] %v1004_v36 }
 0x16a   :  { %1036 = vst [vmem:[%s1589_s3 + $0x10] sm:$0xff] %v1018_v38  }
 0x16b   :  { %v798_v57 = vpop.f32.mrb[40].mxu0 }
 0x16c   :  { %v799_v39 = vadd.f32 %v798_v57, %v1548_v9  ;;  %v1189_v40 = vpop.f32.mrb[41].mxu0 }
 0x16d   :  { %v801_v42 = vpop.f32.mrb[42].mxu0 }
 0x16e   :  { %v802_v59 = vadd.f32 %v801_v42, %v1550_v12  ;;  %v1190_v44 = vpop.f32.mrb[43].mxu0 }
 0x170   :  { %v1023_v45 = vpack.c.bf16 %v802_v59, %v799_v39 }
 0x172   :  { %1037 = vst [vmem:[%s1589_s3 + $0x18] sm:$0xff] %v1023_v45  }
 0x173   :  { %898 = vsyncpa [#allocation3], 1 }
 0x174   :  { %899 = vsyncpa [#allocation5], 1 }

// kernel: conv_forward.5
= control target key start
LH: loop header
LB: loop body
LE: loop exit
PB: predicated region body
PF: predicated region fallthrough
CT: control target
= control target key end

     0   :  { %12 = vsyncpa [#allocation3], 0  ;;  %s18278_s0 = inlined_call_operand.vmem [shape: bf16[8,6272], index: 0, kind: input, shape index: {}]   ;;  %s18279_s1 = inlined_call_operand.hbm [shape: bf16[6272,512], index: 1, kind: input, shape index: {}]   ;;  %s18280_s2 = inlined_call_operand.hbm [shape: f32[1,512], index: 2, kind: input, shape index: {}]   ;;  %s18281_s3 = inlined_call_operand.hbm [shape: bf16[512,512], index: 3, kind: input, shape index: {}]   ;;  %s18282_s4 = inlined_call_operand.hbm [shape: f32[1,512], index: 4, kind: input, shape index: {}]   ;;  %s18283_s5 = inlined_call_operand.hbm [shape: bf16[512,128], index: 5, kind: input, shape index: {}]   ;;  %s18284_s6 = inlined_call_operand.hbm [shape: f32[1,128], index: 6, kind: input, shape index: {}]   ;;  %s18285_s7 = inlined_call_operand.vmem [shape: f32[8,128], index: 7, kind: output, shape index: {}]  }
   0x1   :  { %13 = vsyncpa [#allocation5], 0 }
   0x2   :  { %14 = vsyncpa [#allocation8], 0 }
   0x3   :  { %15 = vsyncpa [#allocation11], 0  ;;  %s17908_s24 = smov [#allocation4]   ;;  %s17909_s26 = smov [#allocation7]  }
   0x4   :  { %s36_s25 = sshll.u32 %s17908_s24, 4  ;;  %s58_s27 = sshll.u32 %s17909_s26, 4  ;;  %s37_s25 = int_to_ptr.vmem [resolvable:$true] %s36_s25  ;;  %s59_s27 = int_to_ptr.vmem [resolvable:$true] %s58_s27 }
   0x5   :  { %s17768_s30 = scalar_lea.hbm %s18280_s2, 64 }
   0x6   :  { %p17769_p0 = scmp.ne.s32.totalorder %s18280_s2, %s17768_s30  ;;  %p17772_p1 = scmp.lt.u32.totalorder %s17768_s30, %s18280_s2 }
   0x8   :  { %p17774_p2 = pnand %p17772_p1, %p17769_p0 }
   0xa   :  { %17777 = shalt.err (!%p17774_p2)
}
   0xb   :  { %s17778_s12 = scalar_lea.vmem %s37_s25, 64  ;;  %p17783_p4 = scmp.lt.s32.totalorder %s37_s25, %s37_s25 }
   0xc   :  { %p17779_p3 = scmp.ne.s32.totalorder %s37_s25, %s17778_s12  ;;  %p17784_p5 = scmp.lt.s32.totalorder %s17778_s12, %s17778_s12 }
   0xe   :  { %p17785_p6 = por %p17784_p5, %p17783_p4 }
  0x10   :  { %p17786_p7 = pnand %p17785_p6, %p17779_p3 }
  0x12   :  { %17789 = shalt.err (!%p17786_p7)
}
  0x13   :  { %39 = dma.hbm_to_vmem [thread:$0]  %s18280_s2, 64, %s37_s25, [#allocation5]  }
  0x14   :  { %s17790_s17 = scalar_lea.hbm %s18282_s4, 64 }
  0x15   :  { %p17791_p8 = scmp.ne.s32.totalorder %s18282_s4, %s17790_s17  ;;  %p17794_p9 = scmp.lt.u32.totalorder %s17790_s17, %s18282_s4 }
  0x17   :  { %p17796_p10 = pnand %p17794_p9, %p17791_p8 }
  0x19   :  { %17799 = shalt.err (!%p17796_p10)
}
  0x1a   :  { %s17800_s22 = scalar_lea.vmem %s59_s27, 64  ;;  %p17805_p12 = scmp.lt.s32.totalorder %s59_s27, %s59_s27 }
  0x1b   :  { %p17801_p11 = scmp.ne.s32.totalorder %s59_s27, %s17800_s22  ;;  %p17806_p13 = scmp.lt.s32.totalorder %s17800_s22, %s17800_s22 }
  0x1d   :  { %p17807_p0 = por %p17806_p13, %p17805_p12 }
  0x1f   :  { %p17808_p1 = pnand %p17807_p0, %p17801_p11 }
  0x21   :  { %17811 = shalt.err (!%p17808_p1)
}
  0x22   :  { %61 = dma.hbm_to_vmem [thread:$0]  %s18282_s4, 64, %s59_s27, [#allocation8]  }
  0x23   :  { %s17910_s24 = smov [#allocation2]   ;;  %s17812_s29 = scalar_lea.hbm %s18279_s1, 200704 }
  0x24   :  { %s23_s25 = sshll.u32 %s17910_s24, 4  ;;  %p17813_p2 = scmp.ne.s32.totalorder %s18279_s1, %s17812_s29  ;;  %s24_s25 = int_to_ptr.vmem [resolvable:$true] %s23_s25 }
  0x25   :  { %p17816_p3 = scmp.lt.u32.totalorder %s17812_s29, %s18279_s1 }
  0x27   :  { %p17818_p4 = pnand %p17816_p3, %p17813_p2 }
  0x29   :  { %17821 = shalt.err (!%p17818_p4)
}
  0x2a   :  { %s17822_s11 = scalar_lea.vmem %s24_s25, 200704  ;;  %p17827_p6 = scmp.lt.s32.totalorder %s24_s25, %s24_s25 }
  0x2b   :  { %p17823_p5 = scmp.ne.s32.totalorder %s24_s25, %s17822_s11  ;;  %p17828_p7 = scmp.lt.s32.totalorder %s17822_s11, %s17822_s11 }
  0x2d   :  { %p17829_p8 = por %p17828_p7, %p17827_p6 }
  0x2f   :  { %p17830_p9 = pnand %p17829_p8, %p17823_p5 }
  0x31   :  { %17833 = shalt.err (!%p17830_p9)
}
  0x32   :  { %s17911_s4 = smov 256   ;;  %s17912_s27 = smov 16  }
  0x33   :  { %29 = dma.hbm_to_vmem [thread:$0]  %s18279_s1, 200704, %s24_s25, [#allocation3], %s17911_s4, %s17911_s4, %s17912_s27  }
  0x34   :  { %s17913_s14 = smov [#allocation6]   ;;  %s17914_s16 = smov [#allocation9]  }
  0x35   :  { %s45_s15 = sshll.u32 %s17913_s14, 4  ;;  %s67_s17 = sshll.u32 %s17914_s16, 4  ;;  %s46_s15 = int_to_ptr.vmem [resolvable:$true] %s45_s15  ;;  %s68_s17 = int_to_ptr.vmem [resolvable:$true] %s67_s17 }
  0x36   :  { %s17834_s20 = scalar_lea.hbm %s18281_s3, 16384 }
  0x37   :  { %p17835_p10 = scmp.ne.s32.totalorder %s18281_s3, %s17834_s20  ;;  %p17838_p11 = scmp.lt.u32.totalorder %s17834_s20, %s18281_s3 }
  0x39   :  { %p17840_p12 = pnand %p17838_p11, %p17835_p10 }
  0x3b   :  { %17843 = shalt.err (!%p17840_p12)
}
  0x3c   :  { %s17844_s1 = scalar_lea.vmem %s46_s15, 16384  ;;  %p17849_p0 = scmp.lt.s32.totalorder %s46_s15, %s46_s15 }
  0x3d   :  { %p17845_p13 = scmp.ne.s32.totalorder %s46_s15, %s17844_s1  ;;  %p17850_p1 = scmp.lt.s32.totalorder %s17844_s1, %s17844_s1 }
  0x3f   :  { %p17851_p2 = por %p17850_p1, %p17849_p0 }
  0x41   :  { %p17852_p3 = pnand %p17851_p2, %p17845_p13 }
  0x43   :  { %17855 = shalt.err (!%p17852_p3)
}
  0x44   :  { %51 = dma.hbm_to_vmem [thread:$0]  %s18281_s3, 16384, %s46_s15, [#allocation5], %s17911_s4, %s17911_s4, %s17912_s27  }
  0x45   :  { %s17856_s29 = scalar_lea.hbm %s18283_s5, 4096 }
  0x46   :  { %p17857_p4 = scmp.ne.s32.totalorder %s18283_s5, %s17856_s29  ;;  %p17860_p5 = scmp.lt.u32.totalorder %s17856_s29, %s18283_s5 }
  0x48   :  { %p17862_p6 = pnand %p17860_p5, %p17857_p4 }
  0x4a   :  { %17865 = shalt.err (!%p17862_p6)
}
  0x4b   :  { %s17866_s11 = scalar_lea.vmem %s68_s17, 4096  ;;  %p17871_p8 = scmp.lt.s32.totalorder %s68_s17, %s68_s17 }
  0x4c   :  { %p17867_p7 = scmp.ne.s32.totalorder %s68_s17, %s17866_s11  ;;  %p17872_p9 = scmp.lt.s32.totalorder %s17866_s11, %s17866_s11 }
  0x4e   :  { %p17873_p10 = por %p17872_p9, %p17871_p8 }
  0x50   :  { %p17874_p11 = pnand %p17873_p10, %p17867_p7 }
  0x52   :  { %17877 = shalt.err (!%p17874_p11)
}
  0x53   :  { %s17915_s3 = smov 64   ;;  %s17916_s4 = smov 4  }
  0x54   :  { %73 = dma.hbm_to_vmem [thread:$0]  %s18283_s5, 4096, %s68_s17, [#allocation8], %s17915_s3, %s17915_s3, %s17916_s4  }
  0x55   :  { %s17917_s13 = smov [#allocation10]   ;;  %s17878_s18 = scalar_lea.hbm %s18284_s6, 16 }
  0x56   :  { %s80_s14 = sshll.u32 %s17917_s13, 4  ;;  %p17879_p12 = scmp.ne.s32.totalorder %s18284_s6, %s17878_s18  ;;  %s81_s14 = int_to_ptr.vmem [resolvable:$true] %s80_s14 }
  0x57   :  { %p17882_p13 = scmp.lt.u32.totalorder %s17878_s18, %s18284_s6 }
  0x59   :  { %p17884_p0 = pnand %p17882_p13, %p17879_p12 }
  0x5b   :  { %17887 = shalt.err (!%p17884_p0)
}
  0x5c   :  { %s17888_s2 = scalar_lea.vmem %s81_s14, 16  ;;  %s17892_s5 = scalar_lea.vmem %s81_s14, 32 }
  0x5d   :  { %p17889_p1 = scmp.ne.s32.totalorder %s81_s14, %s17888_s2  ;;  %p17893_p2 = scmp.lt.s32.totalorder %s81_s14, %s81_s14 }
  0x5e   :  { %p17894_p3 = scmp.lt.s32.totalorder %s17892_s5, %s17888_s2 }
  0x60   :  { %p17895_p4 = por %p17894_p3, %p17893_p2 }
  0x62   :  { %p17896_p5 = pnand %p17895_p4, %p17889_p1 }
  0x64   :  { %17899 = shalt.err (!%p17896_p5)
}
  0x65   :  { %83 = dma.hbm_to_vmem [thread:$0]  %s18284_s6, 16, %s81_s14, [#allocation11]  }
  0x66   :  { %17900 = dma.done.wait [#allocation3], 200704  }
  0x67   :  { %17901 = vsyncadd [#allocation3], 4294766592 }
  0x68   :  { %17902 = dma.done.wait [#allocation5], 16448  }
  0x69   :  { %17903 = vsyncadd [#allocation5], 4294950848 }
  0x6a   :  { %17904 = dma.done.wait [#allocation8], 4160  }
  0x6b   :  { %17905 = vsyncadd [#allocation8], 4294963136 }
  0x6c   :  { %17906 = dma.done.wait [#allocation11], 16  }
  0x6d   :  { %17907 = vsyncadd [#allocation11], 4294967280  ;;  %v15143_v0 = vld [vmem:[#allocation2 + $0x4] ss:$16 sps:$4 sm:$0xff]   ;;  %v15145_v1 = vld [vmem:[#allocation2 + $0xc] ss:$16 sps:$4 sm:$0xff]  }
  0x6e   :  { %9730 = vmatprep.subr.bf16.mxu0 %v15143_v0  ;;  %v15147_v2 = vld [vmem:[#allocation2] ss:$16 sps:$4 sm:$0xff]   ;;  %v15148_v3 = vld [vmem:[#allocation2 + $0x8] ss:$16 sps:$4 sm:$0xff]   ;;  %10755 = vmatprep.subr.bf16.mxu1 %v15145_v1  ;;  %v15149_v4 = vld [vmem:[#allocation2 + $0x24] ss:$16 sps:$4 sm:$0xff]  }
  0x6f   :  { %9731 = vmatpush1.bf16.msra.mxu0 %v15147_v2  ;;  %10756 = vmatpush1.bf16.msra.mxu1 %v15148_v3  ;;  %v15151_v5 = vld [vmem:[#allocation2 + $0x2c] ss:$16 sps:$4 sm:$0xff]   ;;  %v15153_v6 = vld [vmem:[#allocation2 + $0x20] ss:$16 sps:$4 sm:$0xff]   ;;  %v15154_v7 = vld [vmem:[#allocation2 + $0x28] ss:$16 sps:$4 sm:$0xff]  }
  0x70   :  { %9732 = vmatprep.subr.bf16.mxu0 %v15149_v4  ;;  %10757 = vmatprep.subr.bf16.mxu1 %v15151_v5  ;;  %v15155_v8 = vld [vmem:[#allocation2 + $0x44] ss:$16 sps:$4 sm:$0xff]   ;;  %v15157_v9 = vld [vmem:[#allocation2 + $0x4c] ss:$16 sps:$4 sm:$0xff]   ;;  %v15159_v10 = vld [vmem:[#allocation2 + $0x40] ss:$16 sps:$4 sm:$0xff]  }
  0x71   :  { %v15160_v11 = vld [vmem:[#allocation2 + $0x48] ss:$16 sps:$4 sm:$0xff]   ;;  %v15161_v12 = vld [vmem:[#allocation2 + $0x64] ss:$16 sps:$4 sm:$0xff]   ;;  %v15163_v13 = vld [vmem:[#allocation2 + $0x6c] ss:$16 sps:$4 sm:$0xff]  }
  0x72   :  { %v15165_v14 = vld [vmem:[#allocation2 + $0x60] ss:$16 sps:$4 sm:$0xff]   ;;  %v15166_v15 = vld [vmem:[#allocation2 + $0x68] ss:$16 sps:$4 sm:$0xff]   ;;  %v15167_v16 = vld [vmem:[#allocation2 + $0x84] ss:$16 sps:$4 sm:$0xff]  }
  0x73   :  { %9733 = vmatpush1.bf16.msra.mxu0 %v15153_v6  ;;  %10758 = vmatpush1.bf16.msra.mxu1 %v15154_v7  ;;  %v15169_v17 = vld [vmem:[#allocation2 + $0x8c] ss:$16 sps:$4 sm:$0xff]   ;;  %v15171_v18 = vld [vmem:[#allocation2 + $0x80] ss:$16 sps:$4 sm:$0xff]   ;;  %v15172_v19 = vld [vmem:[#allocation2 + $0x88] ss:$16 sps:$4 sm:$0xff]  }
  0x74   :  { %9734 = vmatprep.subr.bf16.mxu0 %v15155_v8  ;;  %10759 = vmatprep.subr.bf16.mxu1 %v15157_v9  ;;  %v15173_v20 = vld [vmem:[#allocation2 + $0xa4] ss:$16 sps:$4 sm:$0xff]   ;;  %v15175_v21 = vld [vmem:[#allocation2 + $0xac] ss:$16 sps:$4 sm:$0xff]   ;;  %v15177_v22 = vld [vmem:[#allocation2 + $0xa0] ss:$16 sps:$4 sm:$0xff]  }
  0x75   :  { %v15178_v23 = vld [vmem:[#allocation2 + $0xa8] ss:$16 sps:$4 sm:$0xff]   ;;  %v15179_v24 = vld [vmem:[#allocation2 + $0xc4] ss:$16 sps:$4 sm:$0xff]   ;;  %v15181_v25 = vld [vmem:[#allocation2 + $0xcc] ss:$16 sps:$4 sm:$0xff]  }
  0x76   :  { %v15183_v26 = vld [vmem:[#allocation2 + $0xc0] ss:$16 sps:$4 sm:$0xff]   ;;  %v15184_v27 = vld [vmem:[#allocation2 + $0xc8] ss:$16 sps:$4 sm:$0xff]   ;;  %v15185_v28 = vld [vmem:[#allocation2 + $0xe4] ss:$16 sps:$4 sm:$0xff]  }
  0x77   :  { %9735 = vmatpush1.bf16.msra.mxu0 %v15159_v10  ;;  %10760 = vmatpush1.bf16.msra.mxu1 %v15160_v11  ;;  %v15187_v29 = vld [vmem:[#allocation2 + $0xec] ss:$16 sps:$4 sm:$0xff]   ;;  %v15189_v30 = vld [vmem:[#allocation2 + $0xe0] ss:$16 sps:$4 sm:$0xff]   ;;  %v15190_v31 = vld [vmem:[#allocation2 + $0xe8] ss:$16 sps:$4 sm:$0xff]  }
  0x78   :  { %9736 = vmatprep.subr.bf16.mxu0 %v15161_v12  ;;  %10761 = vmatprep.subr.bf16.mxu1 %v15163_v13  ;;  %v15191_v32 = vld [vmem:[#allocation2 + $0x104] ss:$16 sps:$4 sm:$0xff]   ;;  %v15193_v33 = vld [vmem:[#allocation2 + $0x10c] ss:$16 sps:$4 sm:$0xff]   ;;  %v15195_v34 = vld [vmem:[#allocation2 + $0x100] ss:$16 sps:$4 sm:$0xff]  }
  0x79   :  { %v15196_v35 = vld [vmem:[#allocation2 + $0x108] ss:$16 sps:$4 sm:$0xff]   ;;  %v15197_v36 = vld [vmem:[#allocation2 + $0x124] ss:$16 sps:$4 sm:$0xff]   ;;  %v15199_v37 = vld [vmem:[#allocation2 + $0x12c] ss:$16 sps:$4 sm:$0xff]  }
  0x7a   :  { %v15201_v38 = vld [vmem:[#allocation2 + $0x120] ss:$16 sps:$4 sm:$0xff]   ;;  %v15202_v39 = vld [vmem:[#allocation2 + $0x128] ss:$16 sps:$4 sm:$0xff]   ;;  %v15203_v40 = vld [vmem:[#allocation2 + $0x144] ss:$16 sps:$4 sm:$0xff]  }
  0x7b   :  { %9737 = vmatpush1.bf16.msra.mxu0 %v15165_v14  ;;  %10762 = vmatpush1.bf16.msra.mxu1 %v15166_v15  ;;  %v15205_v41 = vld [vmem:[#allocation2 + $0x14c] ss:$16 sps:$4 sm:$0xff]   ;;  %v15207_v42 = vld [vmem:[#allocation2 + $0x140] ss:$16 sps:$4 sm:$0xff]   ;;  %v15208_v43 = vld [vmem:[#allocation2 + $0x148] ss:$16 sps:$4 sm:$0xff]  }
  0x7c   :  { %9738 = vmatprep.subr.bf16.mxu0 %v15167_v16  ;;  %10763 = vmatprep.subr.bf16.mxu1 %v15169_v17  ;;  %v15209_v44 = vld [vmem:[#allocation2 + $0x164] ss:$16 sps:$4 sm:$0xff]   ;;  %v15211_v45 = vld [vmem:[#allocation2 + $0x16c] ss:$16 sps:$4 sm:$0xff]   ;;  %v15213_v47 = vld [vmem:[#allocation2 + $0x160] ss:$16 sps:$4 sm:$0xff]  }
  0x7d   :  { %v103_v46 = vld [vmem:[%s18278_s0] sm:$0xff]  ;;  %v15214_v49 = vld [vmem:[#allocation2 + $0x168] ss:$16 sps:$4 sm:$0xff]   ;;  %v15217_v51 = vld [vmem:[#allocation2 + $0x18c] ss:$16 sps:$4 sm:$0xff]  }
  0x7e   :  { %v13103_v48 = vcombine.high %v103_v46, %v103_v46  ;;  %v15215_v50 = vld [vmem:[#allocation2 + $0x184] ss:$16 sps:$4 sm:$0xff]   ;;  %v15219_v52 = vld [vmem:[#allocation2 + $0x180] ss:$16 sps:$4 sm:$0xff]   ;;  %v15220_v53 = vld [vmem:[#allocation2 + $0x188] ss:$16 sps:$4 sm:$0xff]   ;;  %v13102_v4 = vcombine.low %v103_v46, %v103_v46 }
  0x7f   :  { %9739 = vmatpush1.bf16.msra.mxu0 %v15171_v18  ;;  %10764 = vmatpush1.bf16.msra.mxu1 %v15172_v19  ;;  %v15221_v54 = vld [vmem:[#allocation2 + $0x1a4] ss:$16 sps:$4 sm:$0xff]   ;;  %v15223_v55 = vld [vmem:[#allocation2 + $0x1ac] ss:$16 sps:$4 sm:$0xff]   ;;  %v15225_v56 = vld [vmem:[#allocation2 + $0x1a0] ss:$16 sps:$4 sm:$0xff]  }
  0x80   :  { %9740 = vmatprep.subr.bf16.mxu0 %v15173_v20  ;;  %10765 = vmatprep.subr.bf16.mxu1 %v15175_v21  ;;  %v15226_v57 = vld [vmem:[#allocation2 + $0x1a8] ss:$16 sps:$4 sm:$0xff]   ;;  %v15227_v58 = vld [vmem:[#allocation2 + $0x1c4] ss:$16 sps:$4 sm:$0xff]   ;;  %v15229_v59 = vld [vmem:[#allocation2 + $0x1cc] ss:$16 sps:$4 sm:$0xff]  }
  0x81   :  { %9762 = vmatprep.mubr.bf16.mxu0 %v13103_v48  ;;  %10787 = vmatprep.mubr.bf16.mxu1 %v13103_v48  ;;  %v15231_v60 = vld [vmem:[#allocation2 + $0x1c0] ss:$16 sps:$4 sm:$0xff]   ;;  %v15232_v61 = vld [vmem:[#allocation2 + $0x1c8] ss:$16 sps:$4 sm:$0xff]   ;;  %v15233_v62 = vld [vmem:[#allocation2 + $0x1e4] ss:$16 sps:$4 sm:$0xff]  }
  0x82   :  { %v15235_v63 = vld [vmem:[#allocation2 + $0x1ec] ss:$16 sps:$4 sm:$0xff]   ;;  %v15237_v0 = vld [vmem:[#allocation2 + $0x1e0] ss:$16 sps:$4 sm:$0xff]   ;;  %v15238_v1 = vld [vmem:[#allocation2 + $0x1e8] ss:$16 sps:$4 sm:$0xff]  }
  0x83   :  { %9741 = vmatpush1.bf16.msra.mxu0 %v15177_v22  ;;  %10766 = vmatpush1.bf16.msra.mxu1 %v15178_v23  ;;  %v15243_v2 = vld [vmem:[#allocation2 + $0x204] ss:$16 sps:$4 sm:$0xff]   ;;  %v15246_v3 = vld [vmem:[#allocation2 + $0x20c] ss:$16 sps:$4 sm:$0xff]   ;;  %v15241_v5 = vld [vmem:[#allocation2 + $0x200] ss:$16 sps:$4 sm:$0xff]  }
  0x84   :  { %9742 = vmatprep.subr.bf16.mxu0 %v15179_v24  ;;  %10767 = vmatprep.subr.bf16.mxu1 %v15181_v25  ;;  %v15244_v6 = vld [vmem:[#allocation2 + $0x208] ss:$16 sps:$4 sm:$0xff]   ;;  %v15249_v7 = vld [vmem:[#allocation2 + $0x224] ss:$16 sps:$4 sm:$0xff]   ;;  %v15252_v8 = vld [vmem:[#allocation2 + $0x22c] ss:$16 sps:$4 sm:$0xff]  }
  0x85   :  { %v15247_v9 = vld [vmem:[#allocation2 + $0x220] ss:$16 sps:$4 sm:$0xff]   ;;  %v15250_v10 = vld [vmem:[#allocation2 + $0x228] ss:$16 sps:$4 sm:$0xff]   ;;  %v15255_v11 = vld [vmem:[#allocation2 + $0x244] ss:$16 sps:$4 sm:$0xff]  }
  0x86   :  { %v15258_v12 = vld [vmem:[#allocation2 + $0x24c] ss:$16 sps:$4 sm:$0xff]   ;;  %v15253_v13 = vld [vmem:[#allocation2 + $0x240] ss:$16 sps:$4 sm:$0xff]   ;;  %v15256_v14 = vld [vmem:[#allocation2 + $0x248] ss:$16 sps:$4 sm:$0xff]  }
  0x87   :  { %9743 = vmatpush1.bf16.msra.mxu0 %v15183_v26  ;;  %10768 = vmatpush1.bf16.msra.mxu1 %v15184_v27  ;;  %v15261_v15 = vld [vmem:[#allocation2 + $0x264] ss:$16 sps:$4 sm:$0xff]   ;;  %v15264_v16 = vld [vmem:[#allocation2 + $0x26c] ss:$16 sps:$4 sm:$0xff]   ;;  %v15259_v17 = vld [vmem:[#allocation2 + $0x260] ss:$16 sps:$4 sm:$0xff]  }
  0x88   :  { %9744 = vmatprep.subr.bf16.mxu0 %v15185_v28  ;;  %10769 = vmatprep.subr.bf16.mxu1 %v15187_v29  ;;  %v15262_v18 = vld [vmem:[#allocation2 + $0x268] ss:$16 sps:$4 sm:$0xff]   ;;  %v15267_v19 = vld [vmem:[#allocation2 + $0x284] ss:$16 sps:$4 sm:$0xff]   ;;  %v15270_v20 = vld [vmem:[#allocation2 + $0x28c] ss:$16 sps:$4 sm:$0xff]  }
  0x89   :  { %v15265_v21 = vld [vmem:[#allocation2 + $0x280] ss:$16 sps:$4 sm:$0xff]   ;;  %v15268_v22 = vld [vmem:[#allocation2 + $0x288] ss:$16 sps:$4 sm:$0xff]   ;;  %v15273_v23 = vld [vmem:[#allocation2 + $0x2a4] ss:$16 sps:$4 sm:$0xff]  }
  0x8a   :  { %v15276_v24 = vld [vmem:[#allocation2 + $0x2ac] ss:$16 sps:$4 sm:$0xff]   ;;  %v15271_v25 = vld [vmem:[#allocation2 + $0x2a0] ss:$16 sps:$4 sm:$0xff]   ;;  %v15274_v26 = vld [vmem:[#allocation2 + $0x2a8] ss:$16 sps:$4 sm:$0xff]  }
  0x8b   :  { %9745 = vmatpush1.bf16.msra.mxu0 %v15189_v30  ;;  %10770 = vmatpush1.bf16.msra.mxu1 %v15190_v31  ;;  %v15279_v27 = vld [vmem:[#allocation2 + $0x2c4] ss:$16 sps:$4 sm:$0xff]   ;;  %v15282_v28 = vld [vmem:[#allocation2 + $0x2cc] ss:$16 sps:$4 sm:$0xff]   ;;  %v15277_v31 = vld [vmem:[#allocation2 + $0x2c0] ss:$16 sps:$4 sm:$0xff]  }
  0x8c   :  { %9746 = vmatprep.subr.bf16.mxu0 %v15191_v32  ;;  %10771 = vmatprep.subr.bf16.mxu1 %v15193_v33  ;;  %v18037_v29 = vld [vmem:[%s18278_s0 + $0x8] sm:$0xff]  ;;  %v15285_v33 = vld [vmem:[#allocation2 + $0x2e4] ss:$16 sps:$4 sm:$0xff]  }
  0x8d   :  { %v13105_v30 = vcombine.high %v18037_v29, %v18037_v29  ;;  %v15280_v32 = vld [vmem:[#allocation2 + $0x2c8] ss:$16 sps:$4 sm:$0xff]   ;;  %v15306_v46 = vld [vmem:[#allocation2 + $0x34c] ss:$16 sps:$4 sm:$0xff]  }
  0x8e   :  { %v15304_v48 = vld [vmem:[#allocation2 + $0x348] ss:$16 sps:$4 sm:$0xff]  }
  0x8f   :  { %9747 = vmatpush1.bf16.msra.mxu0 %v15195_v34  ;;  %10772 = vmatpush1.bf16.msra.mxu1 %v15196_v35  ;;  %v15288_v34 = vld [vmem:[#allocation2 + $0x2ec] ss:$16 sps:$4 sm:$0xff]   ;;  %v15283_v35 = vld [vmem:[#allocation2 + $0x2e0] ss:$16 sps:$4 sm:$0xff]  }
  0x90   :  { %9748 = vmatprep.subr.bf16.mxu0 %v15197_v36  ;;  %10773 = vmatprep.subr.bf16.mxu1 %v15199_v37  ;;  %v15286_v36 = vld [vmem:[#allocation2 + $0x2e8] ss:$16 sps:$4 sm:$0xff]   ;;  %v15291_v37 = vld [vmem:[#allocation2 + $0x304] ss:$16 sps:$4 sm:$0xff]  }
  0x93   :  { %9749 = vmatpush1.bf16.msra.mxu0 %v15201_v38  ;;  %10774 = vmatpush1.bf16.msra.mxu1 %v15202_v39  ;;  %v15294_v38 = vld [vmem:[#allocation2 + $0x30c] ss:$16 sps:$4 sm:$0xff]   ;;  %v15289_v39 = vld [vmem:[#allocation2 + $0x300] ss:$16 sps:$4 sm:$0xff]  }
  0x94   :  { %9750 = vmatprep.subr.bf16.mxu0 %v15203_v40  ;;  %10775 = vmatprep.subr.bf16.mxu1 %v15205_v41  ;;  %v15292_v40 = vld [vmem:[#allocation2 + $0x308] ss:$16 sps:$4 sm:$0xff]   ;;  %v15297_v41 = vld [vmem:[#allocation2 + $0x324] ss:$16 sps:$4 sm:$0xff]  }
  0x97   :  { %9751 = vmatpush1.bf16.msra.mxu0 %v15207_v42  ;;  %10776 = vmatpush1.bf16.msra.mxu1 %v15208_v43  ;;  %v15300_v42 = vld [vmem:[#allocation2 + $0x32c] ss:$16 sps:$4 sm:$0xff]   ;;  %v15295_v43 = vld [vmem:[#allocation2 + $0x320] ss:$16 sps:$4 sm:$0xff]  }
  0x98   :  { %9752 = vmatprep.subr.bf16.mxu0 %v15209_v44  ;;  %10777 = vmatprep.subr.bf16.mxu1 %v15211_v45  ;;  %v15298_v44 = vld [vmem:[#allocation2 + $0x328] ss:$16 sps:$4 sm:$0xff]   ;;  %v15303_v45 = vld [vmem:[#allocation2 + $0x344] ss:$16 sps:$4 sm:$0xff]  }
  0x9b   :  { %9753 = vmatpush1.bf16.msra.mxu0 %v15213_v47  ;;  %10778 = vmatpush1.bf16.msra.mxu1 %v15214_v49  ;;  %v15301_v47 = vld [vmem:[#allocation2 + $0x340] ss:$16 sps:$4 sm:$0xff]   ;;  %v15309_v49 = vld [vmem:[#allocation2 + $0x364] ss:$16 sps:$4 sm:$0xff]  }
  0x9c   :  { %9754 = vmatprep.subr.bf16.mxu0 %v15215_v50  ;;  %10779 = vmatprep.subr.bf16.mxu1 %v15217_v51  ;;  %v15312_v50 = vld [vmem:[#allocation2 + $0x36c] ss:$16 sps:$4 sm:$0xff]   ;;  %v15307_v51 = vld [vmem:[#allocation2 + $0x360] ss:$16 sps:$4 sm:$0xff]  }
  0x9f   :  { %9755 = vmatpush1.bf16.msra.mxu0 %v15219_v52  ;;  %10780 = vmatpush1.bf16.msra.mxu1 %v15220_v53  ;;  %v15310_v52 = vld [vmem:[#allocation2 + $0x368] ss:$16 sps:$4 sm:$0xff]   ;;  %v15315_v53 = vld [vmem:[#allocation2 + $0x384] ss:$16 sps:$4 sm:$0xff]  }
  0xa0   :  { %9756 = vmatprep.subr.bf16.mxu0 %v15221_v54  ;;  %10781 = vmatprep.subr.bf16.mxu1 %v15223_v55  ;;  %v15318_v54 = vld [vmem:[#allocation2 + $0x38c] ss:$16 sps:$4 sm:$0xff]   ;;  %v15313_v55 = vld [vmem:[#allocation2 + $0x380] ss:$16 sps:$4 sm:$0xff]  }
  0xa3   :  { %9757 = vmatpush1.bf16.msra.mxu0 %v15225_v56  ;;  %10782 = vmatpush1.bf16.msra.mxu1 %v15226_v57  ;;  %v15316_v56 = vld [vmem:[#allocation2 + $0x388] ss:$16 sps:$4 sm:$0xff]   ;;  %v15321_v57 = vld [vmem:[#allocation2 + $0x3a4] ss:$16 sps:$4 sm:$0xff]  }
  0xa4   :  { %9758 = vmatprep.subr.bf16.mxu0 %v15227_v58  ;;  %10783 = vmatprep.subr.bf16.mxu1 %v15229_v59  ;;  %v15324_v58 = vld [vmem:[#allocation2 + $0x3ac] ss:$16 sps:$4 sm:$0xff]   ;;  %v15319_v59 = vld [vmem:[#allocation2 + $0x3a0] ss:$16 sps:$4 sm:$0xff]  }
  0xa7   :  { %9759 = vmatpush1.bf16.msra.mxu0 %v15231_v60  ;;  %10784 = vmatpush1.bf16.msra.mxu1 %v15232_v61  ;;  %v15322_v60 = vld [vmem:[#allocation2 + $0x3a8] ss:$16 sps:$4 sm:$0xff]   ;;  %v15327_v61 = vld [vmem:[#allocation2 + $0x3c4] ss:$16 sps:$4 sm:$0xff]  }
  0xa8   :  { %9760 = vmatprep.subr.bf16.mxu0 %v15233_v62  ;;  %10785 = vmatprep.subr.bf16.mxu1 %v15235_v63  ;;  %v15330_v62 = vld [vmem:[#allocation2 + $0x3cc] ss:$16 sps:$4 sm:$0xff]   ;;  %v15325_v63 = vld [vmem:[#allocation2 + $0x3c0] ss:$16 sps:$4 sm:$0xff]  }
  0xab   :  { %9761 = vmatpush1.bf16.msra.mxu0 %v15237_v0  ;;  %10786 = vmatpush1.bf16.msra.mxu1 %v15238_v1  ;;  %v15328_v0 = vld [vmem:[#allocation2 + $0x3c8] ss:$16 sps:$4 sm:$0xff]   ;;  %v15333_v1 = vld [vmem:[#allocation2 + $0x3e4] ss:$16 sps:$4 sm:$0xff]  }
  0xac   :  { %9771 = vmatprep.subr.bf16.mxu0 %v15243_v2  ;;  %10796 = vmatprep.subr.bf16.mxu1 %v15246_v3  ;;  %v15336_v2 = vld [vmem:[#allocation2 + $0x3ec] ss:$16 sps:$4 sm:$0xff]   ;;  %v15331_v3 = vld [vmem:[#allocation2 + $0x3e0] ss:$16 sps:$4 sm:$0xff]  }
  0xae   :  { %9763 = vmatmul.mubr.bf16.vlgmr.msra.gmra.mrb[0].mxu0 %v13102_v4  ;;  %10788 = vmatmul.mubr.bf16.vlgmr.msra.gmra.mrb[0].mxu1 %v13102_v4  ;;  %v15334_v4 = vld [vmem:[#allocation2 + $0x3e8] ss:$16 sps:$4 sm:$0xff]  }
  0xaf   :  { %9772 = vmatpush1.bf16.msra.mxu0 %v15241_v5  ;;  %10797 = vmatpush1.bf16.msra.mxu1 %v15244_v6  ;;  %v15341_v5 = vld [vmem:[#allocation2 + $0x404] ss:$16 sps:$4 sm:$0xff]   ;;  %v15344_v6 = vld [vmem:[#allocation2 + $0x40c] ss:$16 sps:$4 sm:$0xff]  }
  0xb0   :  { %9773 = vmatprep.subr.bf16.mxu0 %v15249_v7  ;;  %10798 = vmatprep.subr.bf16.mxu1 %v15252_v8  ;;  %v13104_v7 = vcombine.low %v18037_v29, %v18037_v29  ;;  %v15339_v8 = vld [vmem:[#allocation2 + $0x400] ss:$16 sps:$4 sm:$0xff]   ;;  %v15374_v29 = vld [vmem:[#allocation2 + $0x4ac] ss:$16 sps:$4 sm:$0xff]  }
  0xb1   :  { %9803 = vmatprep.mubr.bf16.mxu0 %v13105_v30  ;;  %10828 = vmatprep.mubr.bf16.mxu1 %v13105_v30  ;;  %v15369_v30 = vld [vmem:[#allocation2 + $0x4a0] ss:$16 sps:$4 sm:$0xff]  }
  0xb3   :  { %9774 = vmatpush1.bf16.msra.mxu0 %v15247_v9  ;;  %10799 = vmatpush1.bf16.msra.mxu1 %v15250_v10  ;;  %v15342_v9 = vld [vmem:[#allocation2 + $0x408] ss:$16 sps:$4 sm:$0xff]   ;;  %v15347_v10 = vld [vmem:[#allocation2 + $0x424] ss:$16 sps:$4 sm:$0xff]  }
  0xb4   :  { %9775 = vmatprep.subr.bf16.mxu0 %v15255_v11  ;;  %10800 = vmatprep.subr.bf16.mxu1 %v15258_v12  ;;  %v18046_v11 = vld [vmem:[%s18278_s0 + $0x10] sm:$0xff]  ;;  %v15350_v12 = vld [vmem:[#allocation2 + $0x42c] ss:$16 sps:$4 sm:$0xff]  }
  0xb7   :  { %9776 = vmatpush1.bf16.msra.mxu0 %v15253_v13  ;;  %10801 = vmatpush1.bf16.msra.mxu1 %v15256_v14  ;;  %v13107_v13 = vcombine.high %v18046_v11, %v18046_v11  ;;  %v15345_v14 = vld [vmem:[#allocation2 + $0x420] ss:$16 sps:$4 sm:$0xff]  }
  0xb8   :  { %9777 = vmatprep.subr.bf16.mxu0 %v15261_v15  ;;  %10802 = vmatprep.subr.bf16.mxu1 %v15264_v16  ;;  %v15348_v15 = vld [vmem:[#allocation2 + $0x428] ss:$16 sps:$4 sm:$0xff]   ;;  %v15353_v16 = vld [vmem:[#allocation2 + $0x444] ss:$16 sps:$4 sm:$0xff]  }
  0xbb   :  { %9778 = vmatpush1.bf16.msra.mxu0 %v15259_v17  ;;  %10803 = vmatpush1.bf16.msra.mxu1 %v15262_v18  ;;  %v15356_v17 = vld [vmem:[#allocation2 + $0x44c] ss:$16 sps:$4 sm:$0xff]   ;;  %v15351_v18 = vld [vmem:[#allocation2 + $0x440] ss:$16 sps:$4 sm:$0xff]  }
  0xbc   :  { %9779 = vmatprep.subr.bf16.mxu0 %v15267_v19  ;;  %10804 = vmatprep.subr.bf16.mxu1 %v15270_v20  ;;  %v15354_v19 = vld [vmem:[#allocation2 + $0x448] ss:$16 sps:$4 sm:$0xff]   ;;  %v15359_v20 = vld [vmem:[#allocation2 + $0x464] ss:$16 sps:$4 sm:$0xff]  }
  0xbf   :  { %9780 = vmatpush1.bf16.msra.mxu0 %v15265_v21  ;;  %10805 = vmatpush1.bf16.msra.mxu1 %v15268_v22  ;;  %v15362_v21 = vld [vmem:[#allocation2 + $0x46c] ss:$16 sps:$4 sm:$0xff]   ;;  %v15357_v22 = vld [vmem:[#allocation2 + $0x460] ss:$16 sps:$4 sm:$0xff]  }
  0xc0   :  { %9781 = vmatprep.subr.bf16.mxu0 %v15273_v23  ;;  %10806 = vmatprep.subr.bf16.mxu1 %v15276_v24  ;;  %v15360_v23 = vld [vmem:[#allocation2 + $0x468] ss:$16 sps:$4 sm:$0xff]   ;;  %v15365_v24 = vld [vmem:[#allocation2 + $0x484] ss:$16 sps:$4 sm:$0xff]  }
  0xc3   :  { %9782 = vmatpush1.bf16.msra.mxu0 %v15271_v25  ;;  %10807 = vmatpush1.bf16.msra.mxu1 %v15274_v26  ;;  %v15368_v25 = vld [vmem:[#allocation2 + $0x48c] ss:$16 sps:$4 sm:$0xff]   ;;  %v15363_v26 = vld [vmem:[#allocation2 + $0x480] ss:$16 sps:$4 sm:$0xff]  }
  0xc4   :  { %9783 = vmatprep.subr.bf16.mxu0 %v15279_v27  ;;  %10808 = vmatprep.subr.bf16.mxu1 %v15282_v28  ;;  %v15366_v27 = vld [vmem:[#allocation2 + $0x488] ss:$16 sps:$4 sm:$0xff]   ;;  %v15371_v28 = vld [vmem:[#allocation2 + $0x4a4] ss:$16 sps:$4 sm:$0xff]  }
  0xc7   :  { %9784 = vmatpush1.bf16.msra.mxu0 %v15277_v31  ;;  %10809 = vmatpush1.bf16.msra.mxu1 %v15280_v32  ;;  %v15372_v31 = vld [vmem:[#allocation2 + $0x4a8] ss:$16 sps:$4 sm:$0xff]   ;;  %v15377_v32 = vld [vmem:[#allocation2 + $0x4c4] ss:$16 sps:$4 sm:$0xff]  }
  0xc8   :  { %9785 = vmatprep.subr.bf16.mxu0 %v15285_v33  ;;  %10810 = vmatprep.subr.bf16.mxu1 %v15288_v34  ;;  %v15380_v33 = vld [vmem:[#allocation2 + $0x4cc] ss:$16 sps:$4 sm:$0xff]   ;;  %v15375_v34 = vld [vmem:[#allocation2 + $0x4c0] ss:$16 sps:$4 sm:$0xff]  }
  0xcb   :  { %9786 = vmatpush1.bf16.msra.mxu0 %v15283_v35  ;;  %10811 = vmatpush1.bf16.msra.mxu1 %v15286_v36  ;;  %v15378_v35 = vld [vmem:[#allocation2 + $0x4c8] ss:$16 sps:$4 sm:$0xff]   ;;  %v15383_v36 = vld [vmem:[#allocation2 + $0x4e4] ss:$16 sps:$4 sm:$0xff]  }
  0xcc   :  { %9787 = vmatprep.subr.bf16.mxu0 %v15291_v37  ;;  %10812 = vmatprep.subr.bf16.mxu1 %v15294_v38  ;;  %v15386_v37 = vld [vmem:[#allocation2 + $0x4ec] ss:$16 sps:$4 sm:$0xff]   ;;  %v15381_v38 = vld [vmem:[#allocation2 + $0x4e0] ss:$16 sps:$4 sm:$0xff]  }
  0xcf   :  { %9788 = vmatpush1.bf16.msra.mxu0 %v15289_v39  ;;  %10813 = vmatpush1.bf16.msra.mxu1 %v15292_v40  ;;  %v15384_v39 = vld [vmem:[#allocation2 + $0x4e8] ss:$16 sps:$4 sm:$0xff]   ;;  %v15389_v40 = vld [vmem:[#allocation2 + $0x504] ss:$16 sps:$4 sm:$0xff]  }
  0xd0   :  { %9789 = vmatprep.subr.bf16.mxu0 %v15297_v41  ;;  %10814 = vmatprep.subr.bf16.mxu1 %v15300_v42  ;;  %v15392_v41 = vld [vmem:[#allocation2 + $0x50c] ss:$16 sps:$4 sm:$0xff]   ;;  %v15387_v42 = vld [vmem:[#allocation2 + $0x500] ss:$16 sps:$4 sm:$0xff]  }
  0xd3   :  { %9790 = vmatpush1.bf16.msra.mxu0 %v15295_v43  ;;  %10815 = vmatpush1.bf16.msra.mxu1 %v15298_v44  ;;  %v15390_v43 = vld [vmem:[#allocation2 + $0x508] ss:$16 sps:$4 sm:$0xff]   ;;  %v15395_v44 = vld [vmem:[#allocation2 + $0x524] ss:$16 sps:$4 sm:$0xff]  }
  0xd4   :  { %9791 = vmatprep.subr.bf16.mxu0 %v15303_v45  ;;  %10816 = vmatprep.subr.bf16.mxu1 %v15306_v46  ;;  %v15398_v45 = vld [vmem:[#allocation2 + $0x52c] ss:$16 sps:$4 sm:$0xff]   ;;  %v15393_v46 = vld [vmem:[#allocation2 + $0x520] ss:$16 sps:$4 sm:$0xff]  }
  0xd7   :  { %9792 = vmatpush1.bf16.msra.mxu0 %v15301_v47  ;;  %10817 = vmatpush1.bf16.msra.mxu1 %v15304_v48  ;;  %v15396_v47 = vld [vmem:[#allocation2 + $0x528] ss:$16 sps:$4 sm:$0xff]   ;;  %v15401_v48 = vld [vmem:[#allocation2 + $0x544] ss:$16 sps:$4 sm:$0xff]  }
  0xd8   :  { %9793 = vmatprep.subr.bf16.mxu0 %v15309_v49  ;;  %10818 = vmatprep.subr.bf16.mxu1 %v15312_v50  ;;  %v15404_v49 = vld [vmem:[#allocation2 + $0x54c] ss:$16 sps:$4 sm:$0xff]   ;;  %v15399_v50 = vld [vmem:[#allocation2 + $0x540] ss:$16 sps:$4 sm:$0xff]  }
  0xdb   :  { %9794 = vmatpush1.bf16.msra.mxu0 %v15307_v51  ;;  %10819 = vmatpush1.bf16.msra.mxu1 %v15310_v52  ;;  %v15402_v51 = vld [vmem:[#allocation2 + $0x548] ss:$16 sps:$4 sm:$0xff]   ;;  %v15407_v52 = vld [vmem:[#allocation2 + $0x564] ss:$16 sps:$4 sm:$0xff]  }
  0xdc   :  { %9795 = vmatprep.subr.bf16.mxu0 %v15315_v53  ;;  %10820 = vmatprep.subr.bf16.mxu1 %v15318_v54  ;;  %v15410_v53 = vld [vmem:[#allocation2 + $0x56c] ss:$16 sps:$4 sm:$0xff]   ;;  %v15405_v54 = vld [vmem:[#allocation2 + $0x560] ss:$16 sps:$4 sm:$0xff]  }
  0xdf   :  { %9796 = vmatpush1.bf16.msra.mxu0 %v15313_v55  ;;  %10821 = vmatpush1.bf16.msra.mxu1 %v15316_v56  ;;  %v15408_v55 = vld [vmem:[#allocation2 + $0x568] ss:$16 sps:$4 sm:$0xff]   ;;  %v15413_v56 = vld [vmem:[#allocation2 + $0x584] ss:$16 sps:$4 sm:$0xff]  }
  0xe0   :  { %9797 = vmatprep.subr.bf16.mxu0 %v15321_v57  ;;  %10822 = vmatprep.subr.bf16.mxu1 %v15324_v58  ;;  %v15416_v57 = vld [vmem:[#allocation2 + $0x58c] ss:$16 sps:$4 sm:$0xff]   ;;  %v15411_v58 = vld [vmem:[#allocation2 + $0x580] ss:$16 sps:$4 sm:$0xff]  }
  0xe3   :  { %9798 = vmatpush1.bf16.msra.mxu0 %v15319_v59  ;;  %10823 = vmatpush1.bf16.msra.mxu1 %v15322_v60  ;;  %v15414_v59 = vld [vmem:[#allocation2 + $0x588] ss:$16 sps:$4 sm:$0xff]   ;;  %v15419_v60 = vld [vmem:[#allocation2 + $0x5a4] ss:$16 sps:$4 sm:$0xff]  }
  0xe4   :  { %9799 = vmatprep.subr.bf16.mxu0 %v15327_v61  ;;  %10824 = vmatprep.subr.bf16.mxu1 %v15330_v62  ;;  %v15422_v61 = vld [vmem:[#allocation2 + $0x5ac] ss:$16 sps:$4 sm:$0xff]   ;;  %v15417_v62 = vld [vmem:[#allocation2 + $0x5a0] ss:$16 sps:$4 sm:$0xff]  }
  0xe7   :  { %9800 = vmatpush1.bf16.msra.mxu0 %v15325_v63  ;;  %10825 = vmatpush1.bf16.msra.mxu1 %v15328_v0  ;;  %v15420_v63 = vld [vmem:[#allocation2 + $0x5a8] ss:$16 sps:$4 sm:$0xff]   ;;  %v15425_v0 = vld [vmem:[#allocation2 + $0x5c4] ss:$16 sps:$4 sm:$0xff]  }
  0xe8   :  { %9801 = vmatprep.subr.bf16.mxu0 %v15333_v1  ;;  %10826 = vmatprep.subr.bf16.mxu1 %v15336_v2  ;;  %v15428_v1 = vld [vmem:[#allocation2 + $0x5cc] ss:$16 sps:$4 sm:$0xff]   ;;  %v15423_v2 = vld [vmem:[#allocation2 + $0x5c0] ss:$16 sps:$4 sm:$0xff]  }
  0xeb   :  { %9802 = vmatpush1.bf16.msra.mxu0 %v15331_v3  ;;  %10827 = vmatpush1.bf16.msra.mxu1 %v15334_v4  ;;  %v15426_v3 = vld [vmem:[#allocation2 + $0x5c8] ss:$16 sps:$4 sm:$0xff]   ;;  %v15431_v4 = vld [vmem:[#allocation2 + $0x5e4] ss:$16 sps:$4 sm:$0xff]  }
  0xec   :  { %9812 = vmatprep.subr.bf16.mxu0 %v15341_v5  ;;  %10837 = vmatprep.subr.bf16.mxu1 %v15344_v6  ;;  %v15434_v5 = vld [vmem:[#allocation2 + $0x5ec] ss:$16 sps:$4 sm:$0xff]   ;;  %v15429_v6 = vld [vmem:[#allocation2 + $0x5e0] ss:$16 sps:$4 sm:$0xff]  }
  0xee   :  { %9804 = vmatmul.mubr.bf16.vlgmr.msra.gmra.mrb[0].mxu0 %v13104_v7  ;;  %10829 = vmatmul.mubr.bf16.vlgmr.msra.gmra.mrb[0].mxu1 %v13104_v7  ;;  %v15432_v7 = vld [vmem:[#allocation2 + $0x5e8] ss:$16 sps:$4 sm:$0xff]  }
  0xef   :  { %9813 = vmatpush1.bf16.msra.mxu0 %v15339_v8  ;;  %10838 = vmatpush1.bf16.msra.mxu1 %v15342_v9  ;;  %v15439_v8 = vld [vmem:[#allocation2 + $0x604] ss:$16 sps:$4 sm:$0xff]   ;;  %v15442_v9 = vld [vmem:[#allocation2 + $0x60c] ss:$16 sps:$4 sm:$0xff]  }
  0xf0   :  { %9814 = vmatprep.subr.bf16.mxu0 %v15347_v10  ;;  %10839 = vmatprep.subr.bf16.mxu1 %v15350_v12  ;;  %v15437_v10 = vld [vmem:[#allocation2 + $0x600] ss:$16 sps:$4 sm:$0xff]   ;;  %v13106_v12 = vcombine.low %v18046_v11, %v18046_v11  ;;  %v15451_v11 = vld [vmem:[#allocation2 + $0x644] ss:$16 sps:$4 sm:$0xff]  }
  0xf1   :  { %9844 = vmatprep.mubr.bf16.mxu0 %v13107_v13  ;;  %10869 = vmatprep.mubr.bf16.mxu1 %v13107_v13  ;;  %v15440_v13 = vld [vmem:[#allocation2 + $0x608] ss:$16 sps:$4 sm:$0xff]  }
  0xf3   :  { %9815 = vmatpush1.bf16.msra.mxu0 %v15345_v14  ;;  %10840 = vmatpush1.bf16.msra.mxu1 %v15348_v15  ;;  %v18055_v14 = vld [vmem:[%s18278_s0 + $0x18] sm:$0xff]  ;;  %v15445_v15 = vld [vmem:[#allocation2 + $0x624] ss:$16 sps:$4 sm:$0xff]  }
  0xf4   :  { %9816 = vmatprep.subr.bf16.mxu0 %v15353_v16  ;;  %10841 = vmatprep.subr.bf16.mxu1 %v15356_v17  ;;  %v15448_v16 = vld [vmem:[#allocation2 + $0x62c] ss:$16 sps:$4 sm:$0xff]   ;;  %v13109_v17 = vcombine.high %v18055_v14, %v18055_v14 }
  0xf7   :  { %9817 = vmatpush1.bf16.msra.mxu0 %v15351_v18  ;;  %10842 = vmatpush1.bf16.msra.mxu1 %v15354_v19  ;;  %v15443_v18 = vld [vmem:[#allocation2 + $0x620] ss:$16 sps:$4 sm:$0xff]   ;;  %v15446_v19 = vld [vmem:[#allocation2 + $0x628] ss:$16 sps:$4 sm:$0xff]  }
  0xf8   :  { %9818 = vmatprep.subr.bf16.mxu0 %v15359_v20  ;;  %10843 = vmatprep.subr.bf16.mxu1 %v15362_v21  ;;  %v15454_v20 = vld [vmem:[#allocation2 + $0x64c] ss:$16 sps:$4 sm:$0xff]   ;;  %v15449_v21 = vld [vmem:[#allocation2 + $0x640] ss:$16 sps:$4 sm:$0xff]  }
  0xfb   :  { %9819 = vmatpush1.bf16.msra.mxu0 %v15357_v22  ;;  %10844 = vmatpush1.bf16.msra.mxu1 %v15360_v23  ;;  %v15452_v22 = vld [vmem:[#allocation2 + $0x648] ss:$16 sps:$4 sm:$0xff]   ;;  %v15457_v23 = vld [vmem:[#allocation2 + $0x664] ss:$16 sps:$4 sm:$0xff]  }
  0xfc   :  { %9820 = vmatprep.subr.bf16.mxu0 %v15365_v24  ;;  %10845 = vmatprep.subr.bf16.mxu1 %v15368_v25  ;;  %v15460_v24 = vld [vmem:[#allocation2 + $0x66c] ss:$16 sps:$4 sm:$0xff]   ;;  %v15455_v25 = vld [vmem:[#allocation2 + $0x660] ss:$16 sps:$4 sm:$0xff]  }
  0xff   :  { %9821 = vmatpush1.bf16.msra.mxu0 %v15363_v26  ;;  %10846 = vmatpush1.bf16.msra.mxu1 %v15366_v27  ;;  %v15458_v26 = vld [vmem:[#allocation2 + $0x668] ss:$16 sps:$4 sm:$0xff]   ;;  %v15463_v27 = vld [vmem:[#allocation2 + $0x684] ss:$16 sps:$4 sm:$0xff]  }
 0x100   :  { %9822 = vmatprep.subr.bf16.mxu0 %v15371_v28  ;;  %10847 = vmatprep.subr.bf16.mxu1 %v15374_v29  ;;  %v15466_v28 = vld [vmem:[#allocation2 + $0x68c] ss:$16 sps:$4 sm:$0xff]   ;;  %v15461_v29 = vld [vmem:[#allocation2 + $0x680] ss:$16 sps:$4 sm:$0xff]  }
 0x103   :  { %9823 = vmatpush1.bf16.msra.mxu0 %v15369_v30  ;;  %10848 = vmatpush1.bf16.msra.mxu1 %v15372_v31  ;;  %v15464_v30 = vld [vmem:[#allocation2 + $0x688] ss:$16 sps:$4 sm:$0xff]   ;;  %v15469_v31 = vld [vmem:[#allocation2 + $0x6a4] ss:$16 sps:$4 sm:$0xff]  }
 0x104   :  { %9824 = vmatprep.subr.bf16.mxu0 %v15377_v32  ;;  %10849 = vmatprep.subr.bf16.mxu1 %v15380_v33  ;;  %v15472_v32 = vld [vmem:[#allocation2 + $0x6ac] ss:$16 sps:$4 sm:$0xff]   ;;  %v15467_v33 = vld [vmem:[#allocation2 + $0x6a0] ss:$16 sps:$4 sm:$0xff]  }
 0x107   :  { %9825 = vmatpush1.bf16.msra.mxu0 %v15375_v34  ;;  %10850 = vmatpush1.bf16.msra.mxu1 %v15378_v35  ;;  %v15470_v34 = vld [vmem:[#allocation2 + $0x6a8] ss:$16 sps:$4 sm:$0xff]   ;;  %v15475_v35 = vld [vmem:[#allocation2 + $0x6c4] ss:$16 sps:$4 sm:$0xff]  }
 0x108   :  { %9826 = vmatprep.subr.bf16.mxu0 %v15383_v36  ;;  %10851 = vmatprep.subr.bf16.mxu1 %v15386_v37  ;;  %v15478_v36 = vld [vmem:[#allocation2 + $0x6cc] ss:$16 sps:$4 sm:$0xff]   ;;  %v15473_v37 = vld [vmem:[#allocation2 + $0x6c0] ss:$16 sps:$4 sm:$0xff]  }
 0x10b   :  { %9827 = vmatpush1.bf16.msra.mxu0 %v15381_v38  ;;  %10852 = vmatpush1.bf16.msra.mxu1 %v15384_v39  ;;  %v15476_v38 = vld [vmem:[#allocation2 + $0x6c8] ss:$16 sps:$4 sm:$0xff]   ;;  %v15481_v39 = vld [vmem:[#allocation2 + $0x6e4] ss:$16 sps:$4 sm:$0xff]  }
 0x10c   :  { %9828 = vmatprep.subr.bf16.mxu0 %v15389_v40  ;;  %10853 = vmatprep.subr.bf16.mxu1 %v15392_v41  ;;  %v15484_v40 = vld [vmem:[#allocation2 + $0x6ec] ss:$16 sps:$4 sm:$0xff]   ;;  %v15479_v41 = vld [vmem:[#allocation2 + $0x6e0] ss:$16 sps:$4 sm:$0xff]  }
 0x10f   :  { %9829 = vmatpush1.bf16.msra.mxu0 %v15387_v42  ;;  %10854 = vmatpush1.bf16.msra.mxu1 %v15390_v43  ;;  %v15482_v42 = vld [vmem:[#allocation2 + $0x6e8] ss:$16 sps:$4 sm:$0xff]   ;;  %v15487_v43 = vld [vmem:[#allocation2 + $0x704] ss:$16 sps:$4 sm:$0xff]  }
 0x110   :  { %9830 = vmatprep.subr.bf16.mxu0 %v15395_v44  ;;  %10855 = vmatprep.subr.bf16.mxu1 %v15398_v45  ;;  %v15490_v44 = vld [vmem:[#allocation2 + $0x70c] ss:$16 sps:$4 sm:$0xff]   ;;  %v15485_v45 = vld [vmem:[#allocation2 + $0x700] ss:$16 sps:$4 sm:$0xff]  }
 0x113   :  { %9831 = vmatpush1.bf16.msra.mxu0 %v15393_v46  ;;  %10856 = vmatpush1.bf16.msra.mxu1 %v15396_v47  ;;  %v15488_v46 = vld [vmem:[#allocation2 + $0x708] ss:$16 sps:$4 sm:$0xff]   ;;  %v15493_v47 = vld [vmem:[#allocation2 + $0x724] ss:$16 sps:$4 sm:$0xff]  }
 0x114   :  { %9832 = vmatprep.subr.bf16.mxu0 %v15401_v48  ;;  %10857 = vmatprep.subr.bf16.mxu1 %v15404_v49  ;;  %v15496_v48 = vld [vmem:[#allocation2 + $0x72c] ss:$16 sps:$4 sm:$0xff]   ;;  %v15491_v49 = vld [vmem:[#allocation2 + $0x720] ss:$16 sps:$4 sm:$0xff]  }
 0x117   :  { %9833 = vmatpush1.bf16.msra.mxu0 %v15399_v50  ;;  %10858 = vmatpush1.bf16.msra.mxu1 %v15402_v51  ;;  %v15494_v50 = vld [vmem:[#allocation2 + $0x728] ss:$16 sps:$4 sm:$0xff]   ;;  %v15499_v51 = vld [vmem:[#allocation2 + $0x744] ss:$16 sps:$4 sm:$0xff]  }
 0x118   :  { %9834 = vmatprep.subr.bf16.mxu0 %v15407_v52  ;;  %10859 = vmatprep.subr.bf16.mxu1 %v15410_v53  ;;  %v15502_v52 = vld [vmem:[#allocation2 + $0x74c] ss:$16 sps:$4 sm:$0xff]   ;;  %v15497_v53 = vld [vmem:[#allocation2 + $0x740] ss:$16 sps:$4 sm:$0xff]  }
 0x11b   :  { %9835 = vmatpush1.bf16.msra.mxu0 %v15405_v54  ;;  %10860 = vmatpush1.bf16.msra.mxu1 %v15408_v55  ;;  %v15500_v54 = vld [vmem:[#allocation2 + $0x748] ss:$16 sps:$4 sm:$0xff]   ;;  %v15505_v55 = vld [vmem:[#allocation2 + $0x764] ss:$16 sps:$4 sm:$0xff]  }
 0x11c   :  { %9836 = vmatprep.subr.bf16.mxu0 %v15413_v56  ;;  %10861 = vmatprep.subr.bf16.mxu1 %v15416_v57  ;;  %v15508_v56 = vld [vmem:[#allocation2 + $0x76c] ss:$16 sps:$4 sm:$0xff]   ;;  %v15503_v57 = vld [vmem:[#allocation2 + $0x760] ss:$16 sps:$4 sm:$0xff]  }
 0x11f   :  { %9837 = vmatpush1.bf16.msra.mxu0 %v15411_v58  ;;  %10862 = vmatpush1.bf16.msra.mxu1 %v15414_v59  ;;  %v15506_v58 = vld [vmem:[#allocation2 + $0x768] ss:$16 sps:$4 sm:$0xff]   ;;  %v15511_v59 = vld [vmem:[#allocation2 + $0x784] ss:$16 sps:$4 sm:$0xff]  }
 0x120   :  { %9838 = vmatprep.subr.bf16.mxu0 %v15419_v60  ;;  %10863 = vmatprep.subr.bf16.mxu1 %v15422_v61  ;;  %v15514_v60 = vld [vmem:[#allocation2 + $0x78c] ss:$16 sps:$4 sm:$0xff]   ;;  %v15509_v61 = vld [vmem:[#allocation2 + $0x780] ss:$16 sps:$4 sm:$0xff]  }
 0x123   :  { %9839 = vmatpush1.bf16.msra.mxu0 %v15417_v62  ;;  %10864 = vmatpush1.bf16.msra.mxu1 %v15420_v63  ;;  %v15512_v62 = vld [vmem:[#allocation2 + $0x788] ss:$16 sps:$4 sm:$0xff]   ;;  %v15517_v63 = vld [vmem:[#allocation2 + $0x7a4] ss:$16 sps:$4 sm:$0xff]  }
 0x124   :  { %9840 = vmatprep.subr.bf16.mxu0 %v15425_v0  ;;  %10865 = vmatprep.subr.bf16.mxu1 %v15428_v1  ;;  %v15520_v0 = vld [vmem:[#allocation2 + $0x7ac] ss:$16 sps:$4 sm:$0xff]   ;;  %v15515_v1 = vld [vmem:[#allocation2 + $0x7a0] ss:$16 sps:$4 sm:$0xff]  }
 0x127   :  { %9841 = vmatpush1.bf16.msra.mxu0 %v15423_v2  ;;  %10866 = vmatpush1.bf16.msra.mxu1 %v15426_v3  ;;  %v15518_v2 = vld [vmem:[#allocation2 + $0x7a8] ss:$16 sps:$4 sm:$0xff]   ;;  %v15523_v3 = vld [vmem:[#allocation2 + $0x7c4] ss:$16 sps:$4 sm:$0xff]  }
 0x128   :  { %9842 = vmatprep.subr.bf16.mxu0 %v15431_v4  ;;  %10867 = vmatprep.subr.bf16.mxu1 %v15434_v5  ;;  %v15526_v4 = vld [vmem:[#allocation2 + $0x7cc] ss:$16 sps:$4 sm:$0xff]   ;;  %v15521_v5 = vld [vmem:[#allocation2 + $0x7c0] ss:$16 sps:$4 sm:$0xff]  }
 0x12b   :  { %9843 = vmatpush1.bf16.msra.mxu0 %v15429_v6  ;;  %10868 = vmatpush1.bf16.msra.mxu1 %v15432_v7  ;;  %v15524_v6 = vld [vmem:[#allocation2 + $0x7c8] ss:$16 sps:$4 sm:$0xff]   ;;  %v15529_v7 = vld [vmem:[#allocation2 + $0x7e4] ss:$16 sps:$4 sm:$0xff]  }
 0x12c   :  { %9853 = vmatprep.subr.bf16.mxu0 %v15439_v8  ;;  %10878 = vmatprep.subr.bf16.mxu1 %v15442_v9  ;;  %v15532_v8 = vld [vmem:[#allocation2 + $0x7ec] ss:$16 sps:$4 sm:$0xff]   ;;  %v15527_v9 = vld [vmem:[#allocation2 + $0x7e0] ss:$16 sps:$4 sm:$0xff]  }
 0x12e   :  { %9845 = vmatmul.mubr.bf16.vlgmr.msra.gmra.mrb[0].mxu0 %v13106_v12  ;;  %10870 = vmatmul.mubr.bf16.vlgmr.msra.gmra.mrb[0].mxu1 %v13106_v12  ;;  %v15537_v12 = vld [vmem:[#allocation2 + $0x804] ss:$16 sps:$4 sm:$0xff]  }
 0x12f   :  { %9854 = vmatpush1.bf16.msra.mxu0 %v15437_v10  ;;  %10879 = vmatpush1.bf16.msra.mxu1 %v15440_v13  ;;  %v15530_v10 = vld [vmem:[#allocation2 + $0x7e8] ss:$16 sps:$4 sm:$0xff]   ;;  %v15540_v13 = vld [vmem:[#allocation2 + $0x80c] ss:$16 sps:$4 sm:$0xff]  }
 0x130   :  { %9855 = vmatprep.subr.bf16.mxu0 %v15445_v15  ;;  %10880 = vmatprep.subr.bf16.mxu1 %v15448_v16  ;;  %v15535_v15 = vld [vmem:[#allocation2 + $0x800] ss:$16 sps:$4 sm:$0xff]   ;;  %v13108_v16 = vcombine.low %v18055_v14, %v18055_v14 }
 0x131   :  { %9885 = vmatprep.mubr.bf16.mxu0 %v13109_v17  ;;  %10910 = vmatprep.mubr.bf16.mxu1 %v13109_v17  ;;  %v18064_v17 = vld [vmem:[%s18278_s0 + $0x20] sm:$0xff] }
 0x132   :  { %v15541_v14 = vld [vmem:[#allocation2 + $0x820] ss:$16 sps:$4 sm:$0xff]  }
 0x133   :  { %9856 = vmatpush1.bf16.msra.mxu0 %v15443_v18  ;;  %10881 = vmatpush1.bf16.msra.mxu1 %v15446_v19  ;;  %v15538_v18 = vld [vmem:[#allocation2 + $0x808] ss:$16 sps:$4 sm:$0xff]   ;;  %v15543_v19 = vld [vmem:[#allocation2 + $0x824] ss:$16 sps:$4 sm:$0xff]  }
 0x134   :  { %9857 = vmatprep.subr.bf16.mxu0 %v15451_v11  ;;  %10882 = vmatprep.subr.bf16.mxu1 %v15454_v20  ;;  %v15546_v11 = vld [vmem:[#allocation2 + $0x82c] ss:$16 sps:$4 sm:$0xff]   ;;  %v13111_v20 = vcombine.high %v18064_v17, %v18064_v17 }
 0x137   :  { %9858 = vmatpush1.bf16.msra.mxu0 %v15449_v21  ;;  %10883 = vmatpush1.bf16.msra.mxu1 %v15452_v22  ;;  %v15544_v21 = vld [vmem:[#allocation2 + $0x828] ss:$16 sps:$4 sm:$0xff]   ;;  %v15549_v22 = vld [vmem:[#allocation2 + $0x844] ss:$16 sps:$4 sm:$0xff]  }
 0x138   :  { %9859 = vmatprep.subr.bf16.mxu0 %v15457_v23  ;;  %10884 = vmatprep.subr.bf16.mxu1 %v15460_v24  ;;  %v15552_v23 = vld [vmem:[#allocation2 + $0x84c] ss:$16 sps:$4 sm:$0xff]   ;;  %v15547_v24 = vld [vmem:[#allocation2 + $0x840] ss:$16 sps:$4 sm:$0xff]  }
 0x13b   :  { %9860 = vmatpush1.bf16.msra.mxu0 %v15455_v25  ;;  %10885 = vmatpush1.bf16.msra.mxu1 %v15458_v26  ;;  %v15550_v25 = vld [vmem:[#allocation2 + $0x848] ss:$16 sps:$4 sm:$0xff]   ;;  %v15555_v26 = vld [vmem:[#allocation2 + $0x864] ss:$16 sps:$4 sm:$0xff]  }
 0x13c   :  { %9861 = vmatprep.subr.bf16.mxu0 %v15463_v27  ;;  %10886 = vmatprep.subr.bf16.mxu1 %v15466_v28  ;;  %v15558_v27 = vld [vmem:[#allocation2 + $0x86c] ss:$16 sps:$4 sm:$0xff]   ;;  %v15553_v28 = vld [vmem:[#allocation2 + $0x860] ss:$16 sps:$4 sm:$0xff]  }
 0x13f   :  { %9862 = vmatpush1.bf16.msra.mxu0 %v15461_v29  ;;  %10887 = vmatpush1.bf16.msra.mxu1 %v15464_v30  ;;  %v15556_v29 = vld [vmem:[#allocation2 + $0x868] ss:$16 sps:$4 sm:$0xff]   ;;  %v15561_v30 = vld [vmem:[#allocation2 + $0x884] ss:$16 sps:$4 sm:$0xff]  }
 0x140   :  { %9863 = vmatprep.subr.bf16.mxu0 %v15469_v31  ;;  %10888 = vmatprep.subr.bf16.mxu1 %v15472_v32  ;;  %v15564_v31 = vld [vmem:[#allocation2 + $0x88c] ss:$16 sps:$4 sm:$0xff]   ;;  %v15559_v32 = vld [vmem:[#allocation2 + $0x880] ss:$16 sps:$4 sm:$0xff]  }
 0x143   :  { %9864 = vmatpush1.bf16.msra.mxu0 %v15467_v33  ;;  %10889 = vmatpush1.bf16.msra.mxu1 %v15470_v34  ;;  %v15562_v33 = vld [vmem:[#allocation2 + $0x888] ss:$16 sps:$4 sm:$0xff]   ;;  %v15567_v34 = vld [vmem:[#allocation2 + $0x8a4] ss:$16 sps:$4 sm:$0xff]  }
 0x144   :  { %9865 = vmatprep.subr.bf16.mxu0 %v15475_v35  ;;  %10890 = vmatprep.subr.bf16.mxu1 %v15478_v36  ;;  %v15570_v35 = vld [vmem:[#allocation2 + $0x8ac] ss:$16 sps:$4 sm:$0xff]   ;;  %v15565_v36 = vld [vmem:[#allocation2 + $0x8a0] ss:$16 sps:$4 sm:$0xff]  }
 0x147   :  { %9866 = vmatpush1.bf16.msra.mxu0 %v15473_v37  ;;  %10891 = vmatpush1.bf16.msra.mxu1 %v15476_v38  ;;  %v15568_v37 = vld [vmem:[#allocation2 + $0x8a8] ss:$16 sps:$4 sm:$0xff]   ;;  %v15573_v38 = vld [vmem:[#allocation2 + $0x8c4] ss:$16 sps:$4 sm:$0xff]  }
 0x148   :  { %9867 = vmatprep.subr.bf16.mxu0 %v15481_v39  ;;  %10892 = vmatprep.subr.bf16.mxu1 %v15484_v40  ;;  %v15576_v39 = vld [vmem:[#allocation2 + $0x8cc] ss:$16 sps:$4 sm:$0xff]   ;;  %v15571_v40 = vld [vmem:[#allocation2 + $0x8c0] ss:$16 sps:$4 sm:$0xff]  }
 0x14b   :  { %9868 = vmatpush1.bf16.msra.mxu0 %v15479_v41  ;;  %10893 = vmatpush1.bf16.msra.mxu1 %v15482_v42  ;;  %v15574_v41 = vld [vmem:[#allocation2 + $0x8c8] ss:$16 sps:$4 sm:$0xff]   ;;  %v15579_v42 = vld [vmem:[#allocation2 + $0x8e4] ss:$16 sps:$4 sm:$0xff]  }
 0x14c   :  { %9869 = vmatprep.subr.bf16.mxu0 %v15487_v43  ;;  %10894 = vmatprep.subr.bf16.mxu1 %v15490_v44  ;;  %v15582_v43 = vld [vmem:[#allocation2 + $0x8ec] ss:$16 sps:$4 sm:$0xff]   ;;  %v15577_v44 = vld [vmem:[#allocation2 + $0x8e0] ss:$16 sps:$4 sm:$0xff]  }
 0x14f   :  { %9870 = vmatpush1.bf16.msra.mxu0 %v15485_v45  ;;  %10895 = vmatpush1.bf16.msra.mxu1 %v15488_v46  ;;  %v15580_v45 = vld [vmem:[#allocation2 + $0x8e8] ss:$16 sps:$4 sm:$0xff]   ;;  %v15585_v46 = vld [vmem:[#allocation2 + $0x904] ss:$16 sps:$4 sm:$0xff]  }
 0x150   :  { %9871 = vmatprep.subr.bf16.mxu0 %v15493_v47  ;;  %10896 = vmatprep.subr.bf16.mxu1 %v15496_v48  ;;  %v15588_v47 = vld [vmem:[#allocation2 + $0x90c] ss:$16 sps:$4 sm:$0xff]   ;;  %v15583_v48 = vld [vmem:[#allocation2 + $0x900] ss:$16 sps:$4 sm:$0xff]  }
 0x153   :  { %9872 = vmatpush1.bf16.msra.mxu0 %v15491_v49  ;;  %10897 = vmatpush1.bf16.msra.mxu1 %v15494_v50  ;;  %v15586_v49 = vld [vmem:[#allocation2 + $0x908] ss:$16 sps:$4 sm:$0xff]   ;;  %v15591_v50 = vld [vmem:[#allocation2 + $0x924] ss:$16 sps:$4 sm:$0xff]  }
 0x154   :  { %9873 = vmatprep.subr.bf16.mxu0 %v15499_v51  ;;  %10898 = vmatprep.subr.bf16.mxu1 %v15502_v52  ;;  %v15594_v51 = vld [vmem:[#allocation2 + $0x92c] ss:$16 sps:$4 sm:$0xff]   ;;  %v15589_v52 = vld [vmem:[#allocation2 + $0x920] ss:$16 sps:$4 sm:$0xff]  }
 0x157   :  { %9874 = vmatpush1.bf16.msra.mxu0 %v15497_v53  ;;  %10899 = vmatpush1.bf16.msra.mxu1 %v15500_v54  ;;  %v15592_v53 = vld [vmem:[#allocation2 + $0x928] ss:$16 sps:$4 sm:$0xff]   ;;  %v15597_v54 = vld [vmem:[#allocation2 + $0x944] ss:$16 sps:$4 sm:$0xff]  }
 0x158   :  { %9875 = vmatprep.subr.bf16.mxu0 %v15505_v55  ;;  %10900 = vmatprep.subr.bf16.mxu1 %v15508_v56  ;;  %v15600_v55 = vld [vmem:[#allocation2 + $0x94c] ss:$16 sps:$4 sm:$0xff]   ;;  %v15595_v56 = vld [vmem:[#allocation2 + $0x940] ss:$16 sps:$4 sm:$0xff]  }
 0x15b   :  { %9876 = vmatpush1.bf16.msra.mxu0 %v15503_v57  ;;  %10901 = vmatpush1.bf16.msra.mxu1 %v15506_v58  ;;  %v15598_v57 = vld [vmem:[#allocation2 + $0x948] ss:$16 sps:$4 sm:$0xff]   ;;  %v15603_v58 = vld [vmem:[#allocation2 + $0x964] ss:$16 sps:$4 sm:$0xff]  }
 0x15c   :  { %9877 = vmatprep.subr.bf16.mxu0 %v15511_v59  ;;  %10902 = vmatprep.subr.bf16.mxu1 %v15514_v60  ;;  %v15606_v59 = vld [vmem:[#allocation2 + $0x96c] ss:$16 sps:$4 sm:$0xff]   ;;  %v15601_v60 = vld [vmem:[#allocation2 + $0x960] ss:$16 sps:$4 sm:$0xff]  }
 0x15f   :  { %9878 = vmatpush1.bf16.msra.mxu0 %v15509_v61  ;;  %10903 = vmatpush1.bf16.msra.mxu1 %v15512_v62  ;;  %v15604_v61 = vld [vmem:[#allocation2 + $0x968] ss:$16 sps:$4 sm:$0xff]   ;;  %v15609_v62 = vld [vmem:[#allocation2 + $0x984] ss:$16 sps:$4 sm:$0xff]  }
 0x160   :  { %9879 = vmatprep.subr.bf16.mxu0 %v15517_v63  ;;  %10904 = vmatprep.subr.bf16.mxu1 %v15520_v0  ;;  %v15612_v63 = vld [vmem:[#allocation2 + $0x98c] ss:$16 sps:$4 sm:$0xff]   ;;  %v15607_v0 = vld [vmem:[#allocation2 + $0x980] ss:$16 sps:$4 sm:$0xff]  }
 0x163   :  { %9880 = vmatpush1.bf16.msra.mxu0 %v15515_v1  ;;  %10905 = vmatpush1.bf16.msra.mxu1 %v15518_v2  ;;  %v15610_v1 = vld [vmem:[#allocation2 + $0x988] ss:$16 sps:$4 sm:$0xff]   ;;  %v15615_v2 = vld [vmem:[#allocation2 + $0x9a4] ss:$16 sps:$4 sm:$0xff]  }
 0x164   :  { %9881 = vmatprep.subr.bf16.mxu0 %v15523_v3  ;;  %10906 = vmatprep.subr.bf16.mxu1 %v15526_v4  ;;  %v15618_v3 = vld [vmem:[#allocation2 + $0x9ac] ss:$16 sps:$4 sm:$0xff]   ;;  %v15613_v4 = vld [vmem:[#allocation2 + $0x9a0] ss:$16 sps:$4 sm:$0xff]  }
 0x167   :  { %9882 = vmatpush1.bf16.msra.mxu0 %v15521_v5  ;;  %10907 = vmatpush1.bf16.msra.mxu1 %v15524_v6  ;;  %v15616_v5 = vld [vmem:[#allocation2 + $0x9a8] ss:$16 sps:$4 sm:$0xff]   ;;  %v15621_v6 = vld [vmem:[#allocation2 + $0x9c4] ss:$16 sps:$4 sm:$0xff]  }
 0x168   :  { %9883 = vmatprep.subr.bf16.mxu0 %v15529_v7  ;;  %10908 = vmatprep.subr.bf16.mxu1 %v15532_v8  ;;  %v15624_v7 = vld [vmem:[#allocation2 + $0x9cc] ss:$16 sps:$4 sm:$0xff]   ;;  %v15619_v8 = vld [vmem:[#allocation2 + $0x9c0] ss:$16 sps:$4 sm:$0xff]  }
 0x16b   :  { %9884 = vmatpush1.bf16.msra.mxu0 %v15527_v9  ;;  %10909 = vmatpush1.bf16.msra.mxu1 %v15530_v10  ;;  %v15622_v9 = vld [vmem:[#allocation2 + $0x9c8] ss:$16 sps:$4 sm:$0xff]   ;;  %v15627_v10 = vld [vmem:[#allocation2 + $0x9e4] ss:$16 sps:$4 sm:$0xff]  }
 0x16c   :  { %9894 = vmatprep.subr.bf16.mxu0 %v15537_v12  ;;  %10919 = vmatprep.subr.bf16.mxu1 %v15540_v13  ;;  %v15630_v12 = vld [vmem:[#allocation2 + $0x9ec] ss:$16 sps:$4 sm:$0xff]   ;;  %v15625_v13 = vld [vmem:[#allocation2 + $0x9e0] ss:$16 sps:$4 sm:$0xff]  }
 0x16e   :  { %9886 = vmatmul.mubr.bf16.vlgmr.msra.gmra.mrb[0].mxu0 %v13108_v16  ;;  %10911 = vmatmul.mubr.bf16.vlgmr.msra.gmra.mrb[0].mxu1 %v13108_v16  ;;  %v15635_v16 = vld [vmem:[#allocation2 + $0xa04] ss:$16 sps:$4 sm:$0xff]  }
 0x16f   :  { %9895 = vmatpush1.bf16.msra.mxu0 %v15535_v15  ;;  %10920 = vmatpush1.bf16.msra.mxu1 %v15538_v18  ;;  %v15628_v15 = vld [vmem:[#allocation2 + $0x9e8] ss:$16 sps:$4 sm:$0xff]   ;;  %v15638_v18 = vld [vmem:[#allocation2 + $0xa0c] ss:$16 sps:$4 sm:$0xff]  }
 0x170   :  { %9896 = vmatprep.subr.bf16.mxu0 %v15543_v19  ;;  %10921 = vmatprep.subr.bf16.mxu1 %v15546_v11  ;;  %v18071_v19 = vld [vmem:[%s18278_s0 + $0x28] sm:$0xff]  ;;  %v13110_v11 = vcombine.low %v18064_v17, %v18064_v17  ;;  %v15647_v17 = vld [vmem:[#allocation2 + $0xa44] ss:$16 sps:$4 sm:$0xff]  }
 0x171   :  { %9926 = vmatprep.mubr.bf16.mxu0 %v13111_v20  ;;  %10951 = vmatprep.mubr.bf16.mxu1 %v13111_v20  ;;  %v15633_v20 = vld [vmem:[#allocation2 + $0xa00] ss:$16 sps:$4 sm:$0xff]  }
 0x173   :  { %9897 = vmatpush1.bf16.msra.mxu0 %v15541_v14  ;;  %10922 = vmatpush1.bf16.msra.mxu1 %v15544_v21  ;;  %v15636_v14 = vld [vmem:[#allocation2 + $0xa08] ss:$16 sps:$4 sm:$0xff]   ;;  %v15641_v21 = vld [vmem:[#allocation2 + $0xa24] ss:$16 sps:$4 sm:$0xff]  }
 0x174   :  { %9898 = vmatprep.subr.bf16.mxu0 %v15549_v22  ;;  %10923 = vmatprep.subr.bf16.mxu1 %v15552_v23  ;;  %v15644_v22 = vld [vmem:[#allocation2 + $0xa2c] ss:$16 sps:$4 sm:$0xff]   ;;  %v13113_v23 = vcombine.high %v18071_v19, %v18071_v19 }
 0x177   :  { %9899 = vmatpush1.bf16.msra.mxu0 %v15547_v24  ;;  %10924 = vmatpush1.bf16.msra.mxu1 %v15550_v25  ;;  %v15639_v24 = vld [vmem:[#allocation2 + $0xa20] ss:$16 sps:$4 sm:$0xff]   ;;  %v15642_v25 = vld [vmem:[#allocation2 + $0xa28] ss:$16 sps:$4 sm:$0xff]  }
 0x178   :  { %9900 = vmatprep.subr.bf16.mxu0 %v15555_v26  ;;  %10925 = vmatprep.subr.bf16.mxu1 %v15558_v27  ;;  %v15650_v26 = vld [vmem:[#allocation2 + $0xa4c] ss:$16 sps:$4 sm:$0xff]   ;;  %v15645_v27 = vld [vmem:[#allocation2 + $0xa40] ss:$16 sps:$4 sm:$0xff]  }
 0x17b   :  { %9901 = vmatpush1.bf16.msra.mxu0 %v15553_v28  ;;  %10926 = vmatpush1.bf16.msra.mxu1 %v15556_v29  ;;  %v15648_v28 = vld [vmem:[#allocation2 + $0xa48] ss:$16 sps:$4 sm:$0xff]   ;;  %v15653_v29 = vld [vmem:[#allocation2 + $0xa64] ss:$16 sps:$4 sm:$0xff]  }
 0x17c   :  { %9902 = vmatprep.subr.bf16.mxu0 %v15561_v30  ;;  %10927 = vmatprep.subr.bf16.mxu1 %v15564_v31  ;;  %v15656_v30 = vld [vmem:[#allocation2 + $0xa6c] ss:$16 sps:$4 sm:$0xff]   ;;  %v15651_v31 = vld [vmem:[#allocation2 + $0xa60] ss:$16 sps:$4 sm:$0xff]  }
 0x17f   :  { %9903 = vmatpush1.bf16.msra.mxu0 %v15559_v32  ;;  %10928 = vmatpush1.bf16.msra.mxu1 %v15562_v33  ;;  %v15654_v32 = vld [vmem:[#allocation2 + $0xa68] ss:$16 sps:$4 sm:$0xff]   ;;  %v15659_v33 = vld [vmem:[#allocation2 + $0xa84] ss:$16 sps:$4 sm:$0xff]  }
 0x180   :  { %9904 = vmatprep.subr.bf16.mxu0 %v15567_v34  ;;  %10929 = vmatprep.subr.bf16.mxu1 %v15570_v35  ;;  %v15662_v34 = vld [vmem:[#allocation2 + $0xa8c] ss:$16 sps:$4 sm:$0xff]   ;;  %v15657_v35 = vld [vmem:[#allocation2 + $0xa80] ss:$16 sps:$4 sm:$0xff]  }
 0x183   :  { %9905 = vmatpush1.bf16.msra.mxu0 %v15565_v36  ;;  %10930 = vmatpush1.bf16.msra.mxu1 %v15568_v37  ;;  %v15660_v36 = vld [vmem:[#allocation2 + $0xa88] ss:$16 sps:$4 sm:$0xff]   ;;  %v15665_v37 = vld [vmem:[#allocation2 + $0xaa4] ss:$16 sps:$4 sm:$0xff]  }
 0x184   :  { %9906 = vmatprep.subr.bf16.mxu0 %v15573_v38  ;;  %10931 = vmatprep.subr.bf16.mxu1 %v15576_v39  ;;  %v15668_v38 = vld [vmem:[#allocation2 + $0xaac] ss:$16 sps:$4 sm:$0xff]   ;;  %v15663_v39 = vld [vmem:[#allocation2 + $0xaa0] ss:$16 sps:$4 sm:$0xff]  }
 0x187   :  { %9907 = vmatpush1.bf16.msra.mxu0 %v15571_v40  ;;  %10932 = vmatpush1.bf16.msra.mxu1 %v15574_v41  ;;  %v15666_v40 = vld [vmem:[#allocation2 + $0xaa8] ss:$16 sps:$4 sm:$0xff]   ;;  %v15671_v41 = vld [vmem:[#allocation2 + $0xac4] ss:$16 sps:$4 sm:$0xff]  }
 0x188   :  { %9908 = vmatprep.subr.bf16.mxu0 %v15579_v42  ;;  %10933 = vmatprep.subr.bf16.mxu1 %v15582_v43  ;;  %v15674_v42 = vld [vmem:[#allocation2 + $0xacc] ss:$16 sps:$4 sm:$0xff]   ;;  %v15669_v43 = vld [vmem:[#allocation2 + $0xac0] ss:$16 sps:$4 sm:$0xff]  }
 0x18b   :  { %9909 = vmatpush1.bf16.msra.mxu0 %v15577_v44  ;;  %10934 = vmatpush1.bf16.msra.mxu1 %v15580_v45  ;;  %v15672_v44 = vld [vmem:[#allocation2 + $0xac8] ss:$16 sps:$4 sm:$0xff]   ;;  %v15677_v45 = vld [vmem:[#allocation2 + $0xae4] ss:$16 sps:$4 sm:$0xff]  }
 0x18c   :  { %9910 = vmatprep.subr.bf16.mxu0 %v15585_v46  ;;  %10935 = vmatprep.subr.bf16.mxu1 %v15588_v47  ;;  %v15680_v46 = vld [vmem:[#allocation2 + $0xaec] ss:$16 sps:$4 sm:$0xff]   ;;  %v15675_v47 = vld [vmem:[#allocation2 + $0xae0] ss:$16 sps:$4 sm:$0xff]  }
 0x18f   :  { %9911 = vmatpush1.bf16.msra.mxu0 %v15583_v48  ;;  %10936 = vmatpush1.bf16.msra.mxu1 %v15586_v49  ;;  %v15678_v48 = vld [vmem:[#allocation2 + $0xae8] ss:$16 sps:$4 sm:$0xff]   ;;  %v15683_v49 = vld [vmem:[#allocation2 + $0xb04] ss:$16 sps:$4 sm:$0xff]  }
 0x190   :  { %9912 = vmatprep.subr.bf16.mxu0 %v15591_v50  ;;  %10937 = vmatprep.subr.bf16.mxu1 %v15594_v51  ;;  %v15686_v50 = vld [vmem:[#allocation2 + $0xb0c] ss:$16 sps:$4 sm:$0xff]   ;;  %v15681_v51 = vld [vmem:[#allocation2 + $0xb00] ss:$16 sps:$4 sm:$0xff]  }
 0x193   :  { %9913 = vmatpush1.bf16.msra.mxu0 %v15589_v52  ;;  %10938 = vmatpush1.bf16.msra.mxu1 %v15592_v53  ;;  %v15684_v52 = vld [vmem:[#allocation2 + $0xb08] ss:$16 sps:$4 sm:$0xff]   ;;  %v15689_v53 = vld [vmem:[#allocation2 + $0xb24] ss:$16 sps:$4 sm:$0xff]  }
 0x194   :  { %9914 = vmatprep.subr.bf16.mxu0 %v15597_v54  ;;  %10939 = vmatprep.subr.bf16.mxu1 %v15600_v55  ;;  %v15692_v54 = vld [vmem:[#allocation2 + $0xb2c] ss:$16 sps:$4 sm:$0xff]   ;;  %v15687_v55 = vld [vmem:[#allocation2 + $0xb20] ss:$16 sps:$4 sm:$0xff]  }
 0x197   :  { %9915 = vmatpush1.bf16.msra.mxu0 %v15595_v56  ;;  %10940 = vmatpush1.bf16.msra.mxu1 %v15598_v57  ;;  %v15690_v56 = vld [vmem:[#allocation2 + $0xb28] ss:$16 sps:$4 sm:$0xff]   ;;  %v15695_v57 = vld [vmem:[#allocation2 + $0xb44] ss:$16 sps:$4 sm:$0xff]  }
 0x198   :  { %9916 = vmatprep.subr.bf16.mxu0 %v15603_v58  ;;  %10941 = vmatprep.subr.bf16.mxu1 %v15606_v59  ;;  %v15698_v58 = vld [vmem:[#allocation2 + $0xb4c] ss:$16 sps:$4 sm:$0xff]   ;;  %v15693_v59 = vld [vmem:[#allocation2 + $0xb40] ss:$16 sps:$4 sm:$0xff]  }
 0x19b   :  { %9917 = vmatpush1.bf16.msra.mxu0 %v15601_v60  ;;  %10942 = vmatpush1.bf16.msra.mxu1 %v15604_v61  ;;  %v15696_v60 = vld [vmem:[#allocation2 + $0xb48] ss:$16 sps:$4 sm:$0xff]   ;;  %v15701_v61 = vld [vmem:[#allocation2 + $0xb64] ss:$16 sps:$4 sm:$0xff]  }
 0x19c   :  { %9918 = vmatprep.subr.bf16.mxu0 %v15609_v62  ;;  %10943 = vmatprep.subr.bf16.mxu1 %v15612_v63  ;;  %v15704_v62 = vld [vmem:[#allocation2 + $0xb6c] ss:$16 sps:$4 sm:$0xff]   ;;  %v15699_v63 = vld [vmem:[#allocation2 + $0xb60] ss:$16 sps:$4 sm:$0xff]  }
 0x19f   :  { %9919 = vmatpush1.bf16.msra.mxu0 %v15607_v0  ;;  %10944 = vmatpush1.bf16.msra.mxu1 %v15610_v1  ;;  %v15702_v0 = vld [vmem:[#allocation2 + $0xb68] ss:$16 sps:$4 sm:$0xff]   ;;  %v15707_v1 = vld [vmem:[#allocation2 + $0xb84] ss:$16 sps:$4 sm:$0xff]  }
 0x1a0   :  { %9920 = vmatprep.subr.bf16.mxu0 %v15615_v2  ;;  %10945 = vmatprep.subr.bf16.mxu1 %v15618_v3  ;;  %v15710_v2 = vld [vmem:[#allocation2 + $0xb8c] ss:$16 sps:$4 sm:$0xff]   ;;  %v15705_v3 = vld [vmem:[#allocation2 + $0xb80] ss:$16 sps:$4 sm:$0xff]  }
 0x1a3   :  { %9921 = vmatpush1.bf16.msra.mxu0 %v15613_v4  ;;  %10946 = vmatpush1.bf16.msra.mxu1 %v15616_v5  ;;  %v15708_v4 = vld [vmem:[#allocation2 + $0xb88] ss:$16 sps:$4 sm:$0xff]   ;;  %v15713_v5 = vld [vmem:[#allocation2 + $0xba4] ss:$16 sps:$4 sm:$0xff]  }
 0x1a4   :  { %9922 = vmatprep.subr.bf16.mxu0 %v15621_v6  ;;  %10947 = vmatprep.subr.bf16.mxu1 %v15624_v7  ;;  %v15716_v6 = vld [vmem:[#allocation2 + $0xbac] ss:$16 sps:$4 sm:$0xff]   ;;  %v15711_v7 = vld [vmem:[#allocation2 + $0xba0] ss:$16 sps:$4 sm:$0xff]  }
 0x1a7   :  { %9923 = vmatpush1.bf16.msra.mxu0 %v15619_v8  ;;  %10948 = vmatpush1.bf16.msra.mxu1 %v15622_v9  ;;  %v15714_v8 = vld [vmem:[#allocation2 + $0xba8] ss:$16 sps:$4 sm:$0xff]   ;;  %v15719_v9 = vld [vmem:[#allocation2 + $0xbc4] ss:$16 sps:$4 sm:$0xff]  }
 0x1a8   :  { %9924 = vmatprep.subr.bf16.mxu0 %v15627_v10  ;;  %10949 = vmatprep.subr.bf16.mxu1 %v15630_v12  ;;  %v15722_v10 = vld [vmem:[#allocation2 + $0xbcc] ss:$16 sps:$4 sm:$0xff]   ;;  %v15717_v12 = vld [vmem:[#allocation2 + $0xbc0] ss:$16 sps:$4 sm:$0xff]  }
 0x1ab   :  { %9925 = vmatpush1.bf16.msra.mxu0 %v15625_v13  ;;  %10950 = vmatpush1.bf16.msra.mxu1 %v15628_v15  ;;  %v15720_v13 = vld [vmem:[#allocation2 + $0xbc8] ss:$16 sps:$4 sm:$0xff]   ;;  %v15725_v15 = vld [vmem:[#allocation2 + $0xbe4] ss:$16 sps:$4 sm:$0xff]  }
 0x1ac   :  { %9935 = vmatprep.subr.bf16.mxu0 %v15635_v16  ;;  %10960 = vmatprep.subr.bf16.mxu1 %v15638_v18  ;;  %v15728_v16 = vld [vmem:[#allocation2 + $0xbec] ss:$16 sps:$4 sm:$0xff]   ;;  %v15723_v18 = vld [vmem:[#allocation2 + $0xbe0] ss:$16 sps:$4 sm:$0xff]  }
 0x1ae   :  { %9927 = vmatmul.mubr.bf16.vlgmr.msra.gmra.mrb[0].mxu0 %v13110_v11  ;;  %10952 = vmatmul.mubr.bf16.vlgmr.msra.gmra.mrb[0].mxu1 %v13110_v11  ;;  %v15726_v11 = vld [vmem:[#allocation2 + $0xbe8] ss:$16 sps:$4 sm:$0xff]  }
 0x1af   :  { %9936 = vmatpush1.bf16.msra.mxu0 %v15633_v20  ;;  %10961 = vmatpush1.bf16.msra.mxu1 %v15636_v14  ;;  %v15733_v20 = vld [vmem:[#allocation2 + $0xc04] ss:$16 sps:$4 sm:$0xff]   ;;  %v15736_v14 = vld [vmem:[#allocation2 + $0xc0c] ss:$16 sps:$4 sm:$0xff]  }
 0x1b0   :  { %9937 = vmatprep.subr.bf16.mxu0 %v15641_v21  ;;  %10962 = vmatprep.subr.bf16.mxu1 %v15644_v22  ;;  %v18080_v21 = vld [vmem:[%s18278_s0 + $0x30] sm:$0xff]  ;;  %v13112_v22 = vcombine.low %v18071_v19, %v18071_v19 }
 0x1b1   :  { %9967 = vmatprep.mubr.bf16.mxu0 %v13113_v23  ;;  %10992 = vmatprep.mubr.bf16.mxu1 %v13113_v23  ;;  %v15731_v23 = vld [vmem:[#allocation2 + $0xc00] ss:$16 sps:$4 sm:$0xff]   ;;  %v15745_v19 = vld [vmem:[#allocation2 + $0xc44] ss:$16 sps:$4 sm:$0xff]  }
 0x1b3   :  { %9938 = vmatpush1.bf16.msra.mxu0 %v15639_v24  ;;  %10963 = vmatpush1.bf16.msra.mxu1 %v15642_v25  ;;  %v15734_v24 = vld [vmem:[#allocation2 + $0xc08] ss:$16 sps:$4 sm:$0xff]   ;;  %v15739_v25 = vld [vmem:[#allocation2 + $0xc24] ss:$16 sps:$4 sm:$0xff]  }
 0x1b4   :  { %9939 = vmatprep.subr.bf16.mxu0 %v15647_v17  ;;  %10964 = vmatprep.subr.bf16.mxu1 %v15650_v26  ;;  %v15742_v17 = vld [vmem:[#allocation2 + $0xc2c] ss:$16 sps:$4 sm:$0xff]   ;;  %v13115_v26 = vcombine.high %v18080_v21, %v18080_v21 }
 0x1b7   :  { %9940 = vmatpush1.bf16.msra.mxu0 %v15645_v27  ;;  %10965 = vmatpush1.bf16.msra.mxu1 %v15648_v28  ;;  %v15737_v27 = vld [vmem:[#allocation2 + $0xc20] ss:$16 sps:$4 sm:$0xff]   ;;  %v15740_v28 = vld [vmem:[#allocation2 + $0xc28] ss:$16 sps:$4 sm:$0xff]  }
 0x1b8   :  { %9941 = vmatprep.subr.bf16.mxu0 %v15653_v29  ;;  %10966 = vmatprep.subr.bf16.mxu1 %v15656_v30  ;;  %v15748_v29 = vld [vmem:[#allocation2 + $0xc4c] ss:$16 sps:$4 sm:$0xff]   ;;  %v15743_v30 = vld [vmem:[#allocation2 + $0xc40] ss:$16 sps:$4 sm:$0xff]  }
 0x1bb   :  { %9942 = vmatpush1.bf16.msra.mxu0 %v15651_v31  ;;  %10967 = vmatpush1.bf16.msra.mxu1 %v15654_v32  ;;  %v15746_v31 = vld [vmem:[#allocation2 + $0xc48] ss:$16 sps:$4 sm:$0xff]   ;;  %v15751_v32 = vld [vmem:[#allocation2 + $0xc64] ss:$16 sps:$4 sm:$0xff]  }
 0x1bc   :  { %9943 = vmatprep.subr.bf16.mxu0 %v15659_v33  ;;  %10968 = vmatprep.subr.bf16.mxu1 %v15662_v34  ;;  %v15754_v33 = vld [vmem:[#allocation2 + $0xc6c] ss:$16 sps:$4 sm:$0xff]   ;;  %v15749_v34 = vld [vmem:[#allocation2 + $0xc60] ss:$16 sps:$4 sm:$0xff]  }
 0x1bf   :  { %9944 = vmatpush1.bf16.msra.mxu0 %v15657_v35  ;;  %10969 = vmatpush1.bf16.msra.mxu1 %v15660_v36  ;;  %v15752_v35 = vld [vmem:[#allocation2 + $0xc68] ss:$16 sps:$4 sm:$0xff]   ;;  %v15757_v36 = vld [vmem:[#allocation2 + $0xc84] ss:$16 sps:$4 sm:$0xff]  }
 0x1c0   :  { %9945 = vmatprep.subr.bf16.mxu0 %v15665_v37  ;;  %10970 = vmatprep.subr.bf16.mxu1 %v15668_v38  ;;  %v15760_v37 = vld [vmem:[#allocation2 + $0xc8c] ss:$16 sps:$4 sm:$0xff]   ;;  %v15755_v38 = vld [vmem:[#allocation2 + $0xc80] ss:$16 sps:$4 sm:$0xff]  }
 0x1c3   :  { %9946 = vmatpush1.bf16.msra.mxu0 %v15663_v39  ;;  %10971 = vmatpush1.bf16.msra.mxu1 %v15666_v40  ;;  %v15758_v39 = vld [vmem:[#allocation2 + $0xc88] ss:$16 sps:$4 sm:$0xff]   ;;  %v15763_v40 = vld [vmem:[#allocation2 + $0xca4] ss:$16 sps:$4 sm:$0xff]  }
 0x1c4   :  { %9947 = vmatprep.subr.bf16.mxu0 %v15671_v41  ;;  %10972 = vmatprep.subr.bf16.mxu1 %v15674_v42  ;;  %v15766_v41 = vld [vmem:[#allocation2 + $0xcac] ss:$16 sps:$4 sm:$0xff]   ;;  %v15761_v42 = vld [vmem:[#allocation2 + $0xca0] ss:$16 sps:$4 sm:$0xff]  }
 0x1c7   :  { %9948 = vmatpush1.bf16.msra.mxu0 %v15669_v43  ;;  %10973 = vmatpush1.bf16.msra.mxu1 %v15672_v44  ;;  %v15764_v43 = vld [vmem:[#allocation2 + $0xca8] ss:$16 sps:$4 sm:$0xff]   ;;  %v15769_v44 = vld [vmem:[#allocation2 + $0xcc4] ss:$16 sps:$4 sm:$0xff]  }
 0x1c8   :  { %9949 = vmatprep.subr.bf16.mxu0 %v15677_v45  ;;  %10974 = vmatprep.subr.bf16.mxu1 %v15680_v46  ;;  %v15772_v45 = vld [vmem:[#allocation2 + $0xccc] ss:$16 sps:$4 sm:$0xff]   ;;  %v15767_v46 = vld [vmem:[#allocation2 + $0xcc0] ss:$16 sps:$4 sm:$0xff]  }
 0x1cb   :  { %9950 = vmatpush1.bf16.msra.mxu0 %v15675_v47  ;;  %10975 = vmatpush1.bf16.msra.mxu1 %v15678_v48  ;;  %v15770_v47 = vld [vmem:[#allocation2 + $0xcc8] ss:$16 sps:$4 sm:$0xff]   ;;  %v15775_v48 = vld [vmem:[#allocation2 + $0xce4] ss:$16 sps:$4 sm:$0xff]  }
 0x1cc   :  { %9951 = vmatprep.subr.bf16.mxu0 %v15683_v49  ;;  %10976 = vmatprep.subr.bf16.mxu1 %v15686_v50  ;;  %v15778_v49 = vld [vmem:[#allocation2 + $0xcec] ss:$16 sps:$4 sm:$0xff]   ;;  %v15773_v50 = vld [vmem:[#allocation2 + $0xce0] ss:$16 sps:$4 sm:$0xff]  }
 0x1cf   :  { %9952 = vmatpush1.bf16.msra.mxu0 %v15681_v51  ;;  %10977 = vmatpush1.bf16.msra.mxu1 %v15684_v52  ;;  %v15776_v51 = vld [vmem:[#allocation2 + $0xce8] ss:$16 sps:$4 sm:$0xff]   ;;  %v15781_v52 = vld [vmem:[#allocation2 + $0xd04] ss:$16 sps:$4 sm:$0xff]  }
 0x1d0   :  { %9953 = vmatprep.subr.bf16.mxu0 %v15689_v53  ;;  %10978 = vmatprep.subr.bf16.mxu1 %v15692_v54  ;;  %v15784_v53 = vld [vmem:[#allocation2 + $0xd0c] ss:$16 sps:$4 sm:$0xff]   ;;  %v15779_v54 = vld [vmem:[#allocation2 + $0xd00] ss:$16 sps:$4 sm:$0xff]  }
 0x1d3   :  { %9954 = vmatpush1.bf16.msra.mxu0 %v15687_v55  ;;  %10979 = vmatpush1.bf16.msra.mxu1 %v15690_v56  ;;  %v15782_v55 = vld [vmem:[#allocation2 + $0xd08] ss:$16 sps:$4 sm:$0xff]   ;;  %v15787_v56 = vld [vmem:[#allocation2 + $0xd24] ss:$16 sps:$4 sm:$0xff]  }
 0x1d4   :  { %9955 = vmatprep.subr.bf16.mxu0 %v15695_v57  ;;  %10980 = vmatprep.subr.bf16.mxu1 %v15698_v58  ;;  %v15790_v57 = vld [vmem:[#allocation2 + $0xd2c] ss:$16 sps:$4 sm:$0xff]   ;;  %v15785_v58 = vld [vmem:[#allocation2 + $0xd20] ss:$16 sps:$4 sm:$0xff]  }
 0x1d7   :  { %9956 = vmatpush1.bf16.msra.mxu0 %v15693_v59  ;;  %10981 = vmatpush1.bf16.msra.mxu1 %v15696_v60  ;;  %v15788_v59 = vld [vmem:[#allocation2 + $0xd28] ss:$16 sps:$4 sm:$0xff]   ;;  %v15793_v60 = vld [vmem:[#allocation2 + $0xd44] ss:$16 sps:$4 sm:$0xff]  }
 0x1d8   :  { %9957 = vmatprep.subr.bf16.mxu0 %v15701_v61  ;;  %10982 = vmatprep.subr.bf16.mxu1 %v15704_v62  ;;  %v15796_v61 = vld [vmem:[#allocation2 + $0xd4c] ss:$16 sps:$4 sm:$0xff]   ;;  %v15791_v62 = vld [vmem:[#allocation2 + $0xd40] ss:$16 sps:$4 sm:$0xff]  }
 0x1db   :  { %9958 = vmatpush1.bf16.msra.mxu0 %v15699_v63  ;;  %10983 = vmatpush1.bf16.msra.mxu1 %v15702_v0  ;;  %v15794_v63 = vld [vmem:[#allocation2 + $0xd48] ss:$16 sps:$4 sm:$0xff]   ;;  %v15799_v0 = vld [vmem:[#allocation2 + $0xd64] ss:$16 sps:$4 sm:$0xff]  }
 0x1dc   :  { %9959 = vmatprep.subr.bf16.mxu0 %v15707_v1  ;;  %10984 = vmatprep.subr.bf16.mxu1 %v15710_v2  ;;  %v15802_v1 = vld [vmem:[#allocation2 + $0xd6c] ss:$16 sps:$4 sm:$0xff]   ;;  %v15797_v2 = vld [vmem:[#allocation2 + $0xd60] ss:$16 sps:$4 sm:$0xff]  }
 0x1df   :  { %9960 = vmatpush1.bf16.msra.mxu0 %v15705_v3  ;;  %10985 = vmatpush1.bf16.msra.mxu1 %v15708_v4  ;;  %v15800_v3 = vld [vmem:[#allocation2 + $0xd68] ss:$16 sps:$4 sm:$0xff]   ;;  %v15805_v4 = vld [vmem:[#allocation2 + $0xd84] ss:$16 sps:$4 sm:$0xff]  }
 0x1e0   :  { %9961 = vmatprep.subr.bf16.mxu0 %v15713_v5  ;;  %10986 = vmatprep.subr.bf16.mxu1 %v15716_v6  ;;  %v15808_v5 = vld [vmem:[#allocation2 + $0xd8c] ss:$16 sps:$4 sm:$0xff]   ;;  %v15803_v6 = vld [vmem:[#allocation2 + $0xd80] ss:$16 sps:$4 sm:$0xff]  }
 0x1e3   :  { %9962 = vmatpush1.bf16.msra.mxu0 %v15711_v7  ;;  %10987 = vmatpush1.bf16.msra.mxu1 %v15714_v8  ;;  %v15806_v7 = vld [vmem:[#allocation2 + $0xd88] ss:$16 sps:$4 sm:$0xff]   ;;  %v15811_v8 = vld [vmem:[#allocation2 + $0xda4] ss:$16 sps:$4 sm:$0xff]  }
 0x1e4   :  { %9963 = vmatprep.subr.bf16.mxu0 %v15719_v9  ;;  %10988 = vmatprep.subr.bf16.mxu1 %v15722_v10  ;;  %v15814_v9 = vld [vmem:[#allocation2 + $0xdac] ss:$16 sps:$4 sm:$0xff]   ;;  %v15809_v10 = vld [vmem:[#allocation2 + $0xda0] ss:$16 sps:$4 sm:$0xff]  }
 0x1e7   :  { %9964 = vmatpush1.bf16.msra.mxu0 %v15717_v12  ;;  %10989 = vmatpush1.bf16.msra.mxu1 %v15720_v13  ;;  %v15812_v12 = vld [vmem:[#allocation2 + $0xda8] ss:$16 sps:$4 sm:$0xff]   ;;  %v15817_v13 = vld [vmem:[#allocation2 + $0xdc4] ss:$16 sps:$4 sm:$0xff]  }
 0x1e8   :  { %9965 = vmatprep.subr.bf16.mxu0 %v15725_v15  ;;  %10990 = vmatprep.subr.bf16.mxu1 %v15728_v16  ;;  %v15820_v15 = vld [vmem:[#allocation2 + $0xdcc] ss:$16 sps:$4 sm:$0xff]   ;;  %v15815_v16 = vld [vmem:[#allocation2 + $0xdc0] ss:$16 sps:$4 sm:$0xff]  }
 0x1eb   :  { %9966 = vmatpush1.bf16.msra.mxu0 %v15723_v18  ;;  %10991 = vmatpush1.bf16.msra.mxu1 %v15726_v11  ;;  %v15818_v18 = vld [vmem:[#allocation2 + $0xdc8] ss:$16 sps:$4 sm:$0xff]   ;;  %v15823_v11 = vld [vmem:[#allocation2 + $0xde4] ss:$16 sps:$4 sm:$0xff]  }
 0x1ec   :  { %9976 = vmatprep.subr.bf16.mxu0 %v15733_v20  ;;  %11001 = vmatprep.subr.bf16.mxu1 %v15736_v14  ;;  %v15826_v20 = vld [vmem:[#allocation2 + $0xdec] ss:$16 sps:$4 sm:$0xff]   ;;  %v15821_v14 = vld [vmem:[#allocation2 + $0xde0] ss:$16 sps:$4 sm:$0xff]  }
 0x1ee   :  { %9968 = vmatmul.mubr.bf16.vlgmr.msra.gmra.mrb[0].mxu0 %v13112_v22  ;;  %10993 = vmatmul.mubr.bf16.vlgmr.msra.gmra.mrb[0].mxu1 %v13112_v22  ;;  %v15824_v22 = vld [vmem:[#allocation2 + $0xde8] ss:$16 sps:$4 sm:$0xff]  }
 0x1ef   :  { %9977 = vmatpush1.bf16.msra.mxu0 %v15731_v23  ;;  %11002 = vmatpush1.bf16.msra.mxu1 %v15734_v24  ;;  %v15831_v23 = vld [vmem:[#allocation2 + $0xe04] ss:$16 sps:$4 sm:$0xff]   ;;  %v15834_v24 = vld [vmem:[#allocation2 + $0xe0c] ss:$16 sps:$4 sm:$0xff]  }
 0x1f0   :  { %9978 = vmatprep.subr.bf16.mxu0 %v15739_v25  ;;  %11003 = vmatprep.subr.bf16.mxu1 %v15742_v17  ;;  %v18089_v25 = vld [vmem:[%s18278_s0 + $0x38] sm:$0xff]  ;;  %v13114_v17 = vcombine.low %v18080_v21, %v18080_v21  ;;  %v15843_v21 = vld [vmem:[#allocation2 + $0xe44] ss:$16 sps:$4 sm:$0xff]  }
 0x1f1   :  { %10008 = vmatprep.mubr.bf16.mxu0 %v13115_v26  ;;  %11033 = vmatprep.mubr.bf16.mxu1 %v13115_v26  ;;  %v15829_v26 = vld [vmem:[#allocation2 + $0xe00] ss:$16 sps:$4 sm:$0xff]  }
 0x1f3   :  { %9979 = vmatpush1.bf16.msra.mxu0 %v15737_v27  ;;  %11004 = vmatpush1.bf16.msra.mxu1 %v15740_v28  ;;  %v15832_v27 = vld [vmem:[#allocation2 + $0xe08] ss:$16 sps:$4 sm:$0xff]   ;;  %v15837_v28 = vld [vmem:[#allocation2 + $0xe24] ss:$16 sps:$4 sm:$0xff]  }
 0x1f4   :  { %9980 = vmatprep.subr.bf16.mxu0 %v15745_v19  ;;  %11005 = vmatprep.subr.bf16.mxu1 %v15748_v29  ;;  %v15840_v19 = vld [vmem:[#allocation2 + $0xe2c] ss:$16 sps:$4 sm:$0xff]   ;;  %v13117_v29 = vcombine.high %v18089_v25, %v18089_v25 }
 0x1f7   :  { %9981 = vmatpush1.bf16.msra.mxu0 %v15743_v30  ;;  %11006 = vmatpush1.bf16.msra.mxu1 %v15746_v31  ;;  %v15835_v30 = vld [vmem:[#allocation2 + $0xe20] ss:$16 sps:$4 sm:$0xff]   ;;  %v15838_v31 = vld [vmem:[#allocation2 + $0xe28] ss:$16 sps:$4 sm:$0xff]  }
 0x1f8   :  { %9982 = vmatprep.subr.bf16.mxu0 %v15751_v32  ;;  %11007 = vmatprep.subr.bf16.mxu1 %v15754_v33  ;;  %v15846_v32 = vld [vmem:[#allocation2 + $0xe4c] ss:$16 sps:$4 sm:$0xff]   ;;  %v15841_v33 = vld [vmem:[#allocation2 + $0xe40] ss:$16 sps:$4 sm:$0xff]  }
 0x1fb   :  { %9983 = vmatpush1.bf16.msra.mxu0 %v15749_v34  ;;  %11008 = vmatpush1.bf16.msra.mxu1 %v15752_v35  ;;  %v15844_v34 = vld [vmem:[#allocation2 + $0xe48] ss:$16 sps:$4 sm:$0xff]   ;;  %v15849_v35 = vld [vmem:[#allocation2 + $0xe64] ss:$16 sps:$4 sm:$0xff]  }
 0x1fc   :  { %9984 = vmatprep.subr.bf16.mxu0 %v15757_v36  ;;  %11009 = vmatprep.subr.bf16.mxu1 %v15760_v37  ;;  %v15852_v36 = vld [vmem:[#allocation2 + $0xe6c] ss:$16 sps:$4 sm:$0xff]   ;;  %v15847_v37 = vld [vmem:[#allocation2 + $0xe60] ss:$16 sps:$4 sm:$0xff]  }
 0x1ff   :  { %9985 = vmatpush1.bf16.msra.mxu0 %v15755_v38  ;;  %11010 = vmatpush1.bf16.msra.mxu1 %v15758_v39  ;;  %v15850_v38 = vld [vmem:[#allocation2 + $0xe68] ss:$16 sps:$4 sm:$0xff]   ;;  %v15855_v39 = vld [vmem:[#allocation2 + $0xe84] ss:$16 sps:$4 sm:$0xff]  }
 0x200   :  { %9986 = vmatprep.subr.bf16.mxu0 %v15763_v40  ;;  %11011 = vmatprep.subr.bf16.mxu1 %v15766_v41  ;;  %v15858_v40 = vld [vmem:[#allocation2 + $0xe8c] ss:$16 sps:$4 sm:$0xff]   ;;  %v15853_v41 = vld [vmem:[#allocation2 + $0xe80] ss:$16 sps:$4 sm:$0xff]  }
 0x203   :  { %9987 = vmatpush1.bf16.msra.mxu0 %v15761_v42  ;;  %11012 = vmatpush1.bf16.msra.mxu1 %v15764_v43  ;;  %v15856_v42 = vld [vmem:[#allocation2 + $0xe88] ss:$16 sps:$4 sm:$0xff]   ;;  %v15861_v43 = vld [vmem:[#allocation2 + $0xea4] ss:$16 sps:$4 sm:$0xff]  }
 0x204   :  { %9988 = vmatprep.subr.bf16.mxu0 %v15769_v44  ;;  %11013 = vmatprep.subr.bf16.mxu1 %v15772_v45  ;;  %v15864_v44 = vld [vmem:[#allocation2 + $0xeac] ss:$16 sps:$4 sm:$0xff]   ;;  %v15859_v45 = vld [vmem:[#allocation2 + $0xea0] ss:$16 sps:$4 sm:$0xff]  }
 0x207   :  { %9989 = vmatpush1.bf16.msra.mxu0 %v15767_v46  ;;  %11014 = vmatpush1.bf16.msra.mxu1 %v15770_v47  ;;  %v15862_v46 = vld [vmem:[#allocation2 + $0xea8] ss:$16 sps:$4 sm:$0xff]   ;;  %v15867_v47 = vld [vmem:[#allocation2 + $0xec4] ss:$16 sps:$4 sm:$0xff]  }
 0x208   :  { %9990 = vmatprep.subr.bf16.mxu0 %v15775_v48  ;;  %11015 = vmatprep.subr.bf16.mxu1 %v15778_v49  ;;  %v15870_v48 = vld [vmem:[#allocation2 + $0xecc] ss:$16 sps:$4 sm:$0xff]   ;;  %v15865_v49 = vld [vmem:[#allocation2 + $0xec0] ss:$16 sps:$4 sm:$0xff]  }
 0x20b   :  { %9991 = vmatpush1.bf16.msra.mxu0 %v15773_v50  ;;  %11016 = vmatpush1.bf16.msra.mxu1 %v15776_v51  ;;  %v15868_v50 = vld [vmem:[#allocation2 + $0xec8] ss:$16 sps:$4 sm:$0xff]   ;;  %v15873_v51 = vld [vmem:[#allocation2 + $0xee4] ss:$16 sps:$4 sm:$0xff]  }
 0x20c   :  { %9992 = vmatprep.subr.bf16.mxu0 %v15781_v52  ;;  %11017 = vmatprep.subr.bf16.mxu1 %v15784_v53  ;;  %v15876_v52 = vld [vmem:[#allocation2 + $0xeec] ss:$16 sps:$4 sm:$0xff]   ;;  %v15871_v53 = vld [vmem:[#allocation2 + $0xee0] ss:$16 sps:$4 sm:$0xff]  }
 0x20f   :  { %9993 = vmatpush1.bf16.msra.mxu0 %v15779_v54  ;;  %11018 = vmatpush1.bf16.msra.mxu1 %v15782_v55  ;;  %v15874_v54 = vld [vmem:[#allocation2 + $0xee8] ss:$16 sps:$4 sm:$0xff]   ;;  %v15879_v55 = vld [vmem:[#allocation2 + $0xf04] ss:$16 sps:$4 sm:$0xff]  }
 0x210   :  { %9994 = vmatprep.subr.bf16.mxu0 %v15787_v56  ;;  %11019 = vmatprep.subr.bf16.mxu1 %v15790_v57  ;;  %v15882_v56 = vld [vmem:[#allocation2 + $0xf0c] ss:$16 sps:$4 sm:$0xff]   ;;  %v15877_v57 = vld [vmem:[#allocation2 + $0xf00] ss:$16 sps:$4 sm:$0xff]  }
 0x213   :  { %9995 = vmatpush1.bf16.msra.mxu0 %v15785_v58  ;;  %11020 = vmatpush1.bf16.msra.mxu1 %v15788_v59  ;;  %v15880_v58 = vld [vmem:[#allocation2 + $0xf08] ss:$16 sps:$4 sm:$0xff]   ;;  %v15885_v59 = vld [vmem:[#allocation2 + $0xf24] ss:$16 sps:$4 sm:$0xff]  }
 0x214   :  { %9996 = vmatprep.subr.bf16.mxu0 %v15793_v60  ;;  %11021 = vmatprep.subr.bf16.mxu1 %v15796_v61  ;;  %v15888_v60 = vld [vmem:[#allocation2 + $0xf2c] ss:$16 sps:$4 sm:$0xff]   ;;  %v15883_v61 = vld [vmem:[#allocation2 + $0xf20] ss:$16 sps:$4 sm:$0xff]  }
 0x217   :  { %9997 = vmatpush1.bf16.msra.mxu0 %v15791_v62  ;;  %11022 = vmatpush1.bf16.msra.mxu1 %v15794_v63  ;;  %v15886_v62 = vld [vmem:[#allocation2 + $0xf28] ss:$16 sps:$4 sm:$0xff]   ;;  %v15891_v63 = vld [vmem:[#allocation2 + $0xf44] ss:$16 sps:$4 sm:$0xff]  }
 0x218   :  { %9998 = vmatprep.subr.bf16.mxu0 %v15799_v0  ;;  %11023 = vmatprep.subr.bf16.mxu1 %v15802_v1  ;;  %v15894_v0 = vld [vmem:[#allocation2 + $0xf4c] ss:$16 sps:$4 sm:$0xff]   ;;  %v15889_v1 = vld [vmem:[#allocation2 + $0xf40] ss:$16 sps:$4 sm:$0xff]  }
 0x21b   :  { %9999 = vmatpush1.bf16.msra.mxu0 %v15797_v2  ;;  %11024 = vmatpush1.bf16.msra.mxu1 %v15800_v3  ;;  %v15892_v2 = vld [vmem:[#allocation2 + $0xf48] ss:$16 sps:$4 sm:$0xff]   ;;  %v15897_v3 = vld [vmem:[#allocation2 + $0xf64] ss:$16 sps:$4 sm:$0xff]  }
 0x21c   :  { %10000 = vmatprep.subr.bf16.mxu0 %v15805_v4  ;;  %11025 = vmatprep.subr.bf16.mxu1 %v15808_v5  ;;  %v15900_v4 = vld [vmem:[#allocation2 + $0xf6c] ss:$16 sps:$4 sm:$0xff]   ;;  %v15895_v5 = vld [vmem:[#allocation2 + $0xf60] ss:$16 sps:$4 sm:$0xff]  }
 0x21f   :  { %10001 = vmatpush1.bf16.msra.mxu0 %v15803_v6  ;;  %11026 = vmatpush1.bf16.msra.mxu1 %v15806_v7  ;;  %v15898_v6 = vld [vmem:[#allocation2 + $0xf68] ss:$16 sps:$4 sm:$0xff]   ;;  %v15903_v7 = vld [vmem:[#allocation2 + $0xf84] ss:$16 sps:$4 sm:$0xff]  }
 0x220   :  { %10002 = vmatprep.subr.bf16.mxu0 %v15811_v8  ;;  %11027 = vmatprep.subr.bf16.mxu1 %v15814_v9  ;;  %v15906_v8 = vld [vmem:[#allocation2 + $0xf8c] ss:$16 sps:$4 sm:$0xff]   ;;  %v15901_v9 = vld [vmem:[#allocation2 + $0xf80] ss:$16 sps:$4 sm:$0xff]  }
 0x223   :  { %10003 = vmatpush1.bf16.msra.mxu0 %v15809_v10  ;;  %11028 = vmatpush1.bf16.msra.mxu1 %v15812_v12  ;;  %v15904_v10 = vld [vmem:[#allocation2 + $0xf88] ss:$16 sps:$4 sm:$0xff]   ;;  %v15909_v12 = vld [vmem:[#allocation2 + $0xfa4] ss:$16 sps:$4 sm:$0xff]  }
 0x224   :  { %10004 = vmatprep.subr.bf16.mxu0 %v15817_v13  ;;  %11029 = vmatprep.subr.bf16.mxu1 %v15820_v15  ;;  %v15912_v13 = vld [vmem:[#allocation2 + $0xfac] ss:$16 sps:$4 sm:$0xff]   ;;  %v15907_v15 = vld [vmem:[#allocation2 + $0xfa0] ss:$16 sps:$4 sm:$0xff]  }
 0x227   :  { %10005 = vmatpush1.bf16.msra.mxu0 %v15815_v16  ;;  %11030 = vmatpush1.bf16.msra.mxu1 %v15818_v18  ;;  %v15910_v16 = vld [vmem:[#allocation2 + $0xfa8] ss:$16 sps:$4 sm:$0xff]   ;;  %v15915_v18 = vld [vmem:[#allocation2 + $0xfc4] ss:$16 sps:$4 sm:$0xff]  }
 0x228   :  { %10006 = vmatprep.subr.bf16.mxu0 %v15823_v11  ;;  %11031 = vmatprep.subr.bf16.mxu1 %v15826_v20  ;;  %v15918_v11 = vld [vmem:[#allocation2 + $0xfcc] ss:$16 sps:$4 sm:$0xff]   ;;  %v15913_v20 = vld [vmem:[#allocation2 + $0xfc0] ss:$16 sps:$4 sm:$0xff]  }
 0x22b   :  { %10007 = vmatpush1.bf16.msra.mxu0 %v15821_v14  ;;  %11032 = vmatpush1.bf16.msra.mxu1 %v15824_v22  ;;  %v15916_v14 = vld [vmem:[#allocation2 + $0xfc8] ss:$16 sps:$4 sm:$0xff]   ;;  %v15921_v22 = vld [vmem:[#allocation2 + $0xfe4] ss:$16 sps:$4 sm:$0xff]  }
 0x22c   :  { %10017 = vmatprep.subr.bf16.mxu0 %v15831_v23  ;;  %11042 = vmatprep.subr.bf16.mxu1 %v15834_v24  ;;  %v15924_v23 = vld [vmem:[#allocation2 + $0xfec] ss:$16 sps:$4 sm:$0xff]   ;;  %v15919_v24 = vld [vmem:[#allocation2 + $0xfe0] ss:$16 sps:$4 sm:$0xff]  }
 0x22e   :  { %10009 = vmatmul.mubr.bf16.vlgmr.msra.gmra.mrb[0].mxu0 %v13114_v17  ;;  %11034 = vmatmul.mubr.bf16.vlgmr.msra.gmra.mrb[0].mxu1 %v13114_v17  ;;  %v15922_v17 = vld [vmem:[#allocation2 + $0xfe8] ss:$16 sps:$4 sm:$0xff]  }
 0x22f   :  { %10018 = vmatpush1.bf16.msra.mxu0 %v15829_v26  ;;  %11043 = vmatpush1.bf16.msra.mxu1 %v15832_v27  ;;  %v15929_v26 = vld [vmem:[#allocation2 + $0x1004] ss:$16 sps:$4 sm:$0xff]   ;;  %v15932_v27 = vld [vmem:[#allocation2 + $0x100c] ss:$16 sps:$4 sm:$0xff]  }
 0x230   :  { %10019 = vmatprep.subr.bf16.mxu0 %v15837_v28  ;;  %11044 = vmatprep.subr.bf16.mxu1 %v15840_v19  ;;  %v18098_v28 = vld [vmem:[%s18278_s0 + $0x40] sm:$0xff]  ;;  %v13116_v19 = vcombine.low %v18089_v25, %v18089_v25 }
 0x231   :  { %10049 = vmatprep.mubr.bf16.mxu0 %v13117_v29  ;;  %11074 = vmatprep.mubr.bf16.mxu1 %v13117_v29  ;;  %v15927_v29 = vld [vmem:[#allocation2 + $0x1000] ss:$16 sps:$4 sm:$0xff]   ;;  %v15941_v25 = vld [vmem:[#allocation2 + $0x1044] ss:$16 sps:$4 sm:$0xff]  }
 0x233   :  { %10020 = vmatpush1.bf16.msra.mxu0 %v15835_v30  ;;  %11045 = vmatpush1.bf16.msra.mxu1 %v15838_v31  ;;  %v15930_v30 = vld [vmem:[#allocation2 + $0x1008] ss:$16 sps:$4 sm:$0xff]   ;;  %v15935_v31 = vld [vmem:[#allocation2 + $0x1024] ss:$16 sps:$4 sm:$0xff]  }
 0x234   :  { %10021 = vmatprep.subr.bf16.mxu0 %v15843_v21  ;;  %11046 = vmatprep.subr.bf16.mxu1 %v15846_v32  ;;  %v15938_v21 = vld [vmem:[#allocation2 + $0x102c] ss:$16 sps:$4 sm:$0xff]   ;;  %v13119_v32 = vcombine.high %v18098_v28, %v18098_v28 }
 0x237   :  { %10022 = vmatpush1.bf16.msra.mxu0 %v15841_v33  ;;  %11047 = vmatpush1.bf16.msra.mxu1 %v15844_v34  ;;  %v15933_v33 = vld [vmem:[#allocation2 + $0x1020] ss:$16 sps:$4 sm:$0xff]   ;;  %v15936_v34 = vld [vmem:[#allocation2 + $0x1028] ss:$16 sps:$4 sm:$0xff]  }
 0x238   :  { %10023 = vmatprep.subr.bf16.mxu0 %v15849_v35  ;;  %11048 = vmatprep.subr.bf16.mxu1 %v15852_v36  ;;  %v15944_v35 = vld [vmem:[#allocation2 + $0x104c] ss:$16 sps:$4 sm:$0xff]   ;;  %v15939_v36 = vld [vmem:[#allocation2 + $0x1040] ss:$16 sps:$4 sm:$0xff]  }
 0x23b   :  { %10024 = vmatpush1.bf16.msra.mxu0 %v15847_v37  ;;  %11049 = vmatpush1.bf16.msra.mxu1 %v15850_v38  ;;  %v15942_v37 = vld [vmem:[#allocation2 + $0x1048] ss:$16 sps:$4 sm:$0xff]   ;;  %v15947_v38 = vld [vmem:[#allocation2 + $0x1064] ss:$16 sps:$4 sm:$0xff]  }
 0x23c   :  { %10025 = vmatprep.subr.bf16.mxu0 %v15855_v39  ;;  %11050 = vmatprep.subr.bf16.mxu1 %v15858_v40  ;;  %v15950_v39 = vld [vmem:[#allocation2 + $0x106c] ss:$16 sps:$4 sm:$0xff]   ;;  %v15945_v40 = vld [vmem:[#allocation2 + $0x1060] ss:$16 sps:$4 sm:$0xff]  }
 0x23f   :  { %10026 = vmatpush1.bf16.msra.mxu0 %v15853_v41  ;;  %11051 = vmatpush1.bf16.msra.mxu1 %v15856_v42  ;;  %v15948_v41 = vld [vmem:[#allocation2 + $0x1068] ss:$16 sps:$4 sm:$0xff]   ;;  %v15953_v42 = vld [vmem:[#allocation2 + $0x1084] ss:$16 sps:$4 sm:$0xff]  }
 0x240   :  { %10027 = vmatprep.subr.bf16.mxu0 %v15861_v43  ;;  %11052 = vmatprep.subr.bf16.mxu1 %v15864_v44  ;;  %v15956_v43 = vld [vmem:[#allocation2 + $0x108c] ss:$16 sps:$4 sm:$0xff]   ;;  %v15951_v44 = vld [vmem:[#allocation2 + $0x1080] ss:$16 sps:$4 sm:$0xff]  }
 0x243   :  { %10028 = vmatpush1.bf16.msra.mxu0 %v15859_v45  ;;  %11053 = vmatpush1.bf16.msra.mxu1 %v15862_v46  ;;  %v15954_v45 = vld [vmem:[#allocation2 + $0x1088] ss:$16 sps:$4 sm:$0xff]   ;;  %v15959_v46 = vld [vmem:[#allocation2 + $0x10a4] ss:$16 sps:$4 sm:$0xff]  }
 0x244   :  { %10029 = vmatprep.subr.bf16.mxu0 %v15867_v47  ;;  %11054 = vmatprep.subr.bf16.mxu1 %v15870_v48  ;;  %v15962_v47 = vld [vmem:[#allocation2 + $0x10ac] ss:$16 sps:$4 sm:$0xff]   ;;  %v15957_v48 = vld [vmem:[#allocation2 + $0x10a0] ss:$16 sps:$4 sm:$0xff]  }
 0x247   :  { %10030 = vmatpush1.bf16.msra.mxu0 %v15865_v49  ;;  %11055 = vmatpush1.bf16.msra.mxu1 %v15868_v50  ;;  %v15960_v49 = vld [vmem:[#allocation2 + $0x10a8] ss:$16 sps:$4 sm:$0xff]   ;;  %v15965_v50 = vld [vmem:[#allocation2 + $0x10c4] ss:$16 sps:$4 sm:$0xff]  }
 0x248   :  { %10031 = vmatprep.subr.bf16.mxu0 %v15873_v51  ;;  %11056 = vmatprep.subr.bf16.mxu1 %v15876_v52  ;;  %v15968_v51 = vld [vmem:[#allocation2 + $0x10cc] ss:$16 sps:$4 sm:$0xff]   ;;  %v15963_v52 = vld [vmem:[#allocation2 + $0x10c0] ss:$16 sps:$4 sm:$0xff]  }
 0x24b   :  { %10032 = vmatpush1.bf16.msra.mxu0 %v15871_v53  ;;  %11057 = vmatpush1.bf16.msra.mxu1 %v15874_v54  ;;  %v15966_v53 = vld [vmem:[#allocation2 + $0x10c8] ss:$16 sps:$4 sm:$0xff]   ;;  %v15971_v54 = vld [vmem:[#allocation2 + $0x10e4] ss:$16 sps:$4 sm:$0xff]  }
 0x24c   :  { %10033 = vmatprep.subr.bf16.mxu0 %v15879_v55  ;;  %11058 = vmatprep.subr.bf16.mxu1 %v15882_v56  ;;  %v15974_v55 = vld [vmem:[#allocation2 + $0x10ec] ss:$16 sps:$4 sm:$0xff]   ;;  %v15969_v56 = vld [vmem:[#allocation2 + $0x10e0] ss:$16 sps:$4 sm:$0xff]  }
 0x24f   :  { %10034 = vmatpush1.bf16.msra.mxu0 %v15877_v57  ;;  %11059 = vmatpush1.bf16.msra.mxu1 %v15880_v58  ;;  %v15972_v57 = vld [vmem:[#allocation2 + $0x10e8] ss:$16 sps:$4 sm:$0xff]   ;;  %v15977_v58 = vld [vmem:[#allocation2 + $0x1104] ss:$16 sps:$4 sm:$0xff]  }
 0x250   :  { %10035 = vmatprep.subr.bf16.mxu0 %v15885_v59  ;;  %11060 = vmatprep.subr.bf16.mxu1 %v15888_v60  ;;  %v15980_v59 = vld [vmem:[#allocation2 + $0x110c] ss:$16 sps:$4 sm:$0xff]   ;;  %v15975_v60 = vld [vmem:[#allocation2 + $0x1100] ss:$16 sps:$4 sm:$0xff]  }
 0x253   :  { %10036 = vmatpush1.bf16.msra.mxu0 %v15883_v61  ;;  %11061 = vmatpush1.bf16.msra.mxu1 %v15886_v62  ;;  %v15978_v61 = vld [vmem:[#allocation2 + $0x1108] ss:$16 sps:$4 sm:$0xff]   ;;  %v15983_v62 = vld [vmem:[#allocation2 + $0x1124] ss:$16 sps:$4 sm:$0xff]  }
 0x254   :  { %10037 = vmatprep.subr.bf16.mxu0 %v15891_v63  ;;  %11062 = vmatprep.subr.bf16.mxu1 %v15894_v0  ;;  %v15986_v63 = vld [vmem:[#allocation2 + $0x112c] ss:$16 sps:$4 sm:$0xff]   ;;  %v15981_v0 = vld [vmem:[#allocation2 + $0x1120] ss:$16 sps:$4 sm:$0xff]  }
 0x257   :  { %10038 = vmatpush1.bf16.msra.mxu0 %v15889_v1  ;;  %11063 = vmatpush1.bf16.msra.mxu1 %v15892_v2  ;;  %v15984_v1 = vld [vmem:[#allocation2 + $0x1128] ss:$16 sps:$4 sm:$0xff]   ;;  %v15989_v2 = vld [vmem:[#allocation2 + $0x1144] ss:$16 sps:$4 sm:$0xff]  }
 0x258   :  { %10039 = vmatprep.subr.bf16.mxu0 %v15897_v3  ;;  %11064 = vmatprep.subr.bf16.mxu1 %v15900_v4  ;;  %v15992_v3 = vld [vmem:[#allocation2 + $0x114c] ss:$16 sps:$4 sm:$0xff]   ;;  %v15987_v4 = vld [vmem:[#allocation2 + $0x1140] ss:$16 sps:$4 sm:$0xff]  }
 0x25b   :  { %10040 = vmatpush1.bf16.msra.mxu0 %v15895_v5  ;;  %11065 = vmatpush1.bf16.msra.mxu1 %v15898_v6  ;;  %v15990_v5 = vld [vmem:[#allocation2 + $0x1148] ss:$16 sps:$4 sm:$0xff]   ;;  %v15995_v6 = vld [vmem:[#allocation2 + $0x1164] ss:$16 sps:$4 sm:$0xff]  }
 0x25c   :  { %10041 = vmatprep.subr.bf16.mxu0 %v15903_v7  ;;  %11066 = vmatprep.subr.bf16.mxu1 %v15906_v8  ;;  %v15998_v7 = vld [vmem:[#allocation2 + $0x116c] ss:$16 sps:$4 sm:$0xff]   ;;  %v15993_v8 = vld [vmem:[#allocation2 + $0x1160] ss:$16 sps:$4 sm:$0xff]  }
 0x25f   :  { %10042 = vmatpush1.bf16.msra.mxu0 %v15901_v9  ;;  %11067 = vmatpush1.bf16.msra.mxu1 %v15904_v10  ;;  %v15996_v9 = vld [vmem:[#allocation2 + $0x1168] ss:$16 sps:$4 sm:$0xff]   ;;  %v16001_v10 = vld [vmem:[#allocation2 + $0x1184] ss:$16 sps:$4 sm:$0xff]  }
 0x260   :  { %10043 = vmatprep.subr.bf16.mxu0 %v15909_v12  ;;  %11068 = vmatprep.subr.bf16.mxu1 %v15912_v13  ;;  %v16004_v12 = vld [vmem:[#allocation2 + $0x118c] ss:$16 sps:$4 sm:$0xff]   ;;  %v15999_v13 = vld [vmem:[#allocation2 + $0x1180] ss:$16 sps:$4 sm:$0xff]  }
 0x263   :  { %10044 = vmatpush1.bf16.msra.mxu0 %v15907_v15  ;;  %11069 = vmatpush1.bf16.msra.mxu1 %v15910_v16  ;;  %v16002_v15 = vld [vmem:[#allocation2 + $0x1188] ss:$16 sps:$4 sm:$0xff]   ;;  %v16007_v16 = vld [vmem:[#allocation2 + $0x11a4] ss:$16 sps:$4 sm:$0xff]  }
 0x264   :  { %10045 = vmatprep.subr.bf16.mxu0 %v15915_v18  ;;  %11070 = vmatprep.subr.bf16.mxu1 %v15918_v11  ;;  %v16010_v18 = vld [vmem:[#allocation2 + $0x11ac] ss:$16 sps:$4 sm:$0xff]   ;;  %v16005_v11 = vld [vmem:[#allocation2 + $0x11a0] ss:$16 sps:$4 sm:$0xff]  }
 0x267   :  { %10046 = vmatpush1.bf16.msra.mxu0 %v15913_v20  ;;  %11071 = vmatpush1.bf16.msra.mxu1 %v15916_v14  ;;  %v16008_v20 = vld [vmem:[#allocation2 + $0x11a8] ss:$16 sps:$4 sm:$0xff]   ;;  %v16013_v14 = vld [vmem:[#allocation2 + $0x11c4] ss:$16 sps:$4 sm:$0xff]  }
 0x268   :  { %10047 = vmatprep.subr.bf16.mxu0 %v15921_v22  ;;  %11072 = vmatprep.subr.bf16.mxu1 %v15924_v23  ;;  %v16016_v22 = vld [vmem:[#allocation2 + $0x11cc] ss:$16 sps:$4 sm:$0xff]   ;;  %v16011_v23 = vld [vmem:[#allocation2 + $0x11c0] ss:$16 sps:$4 sm:$0xff]  }
 0x26b   :  { %10048 = vmatpush1.bf16.msra.mxu0 %v15919_v24  ;;  %11073 = vmatpush1.bf16.msra.mxu1 %v15922_v17  ;;  %v16014_v24 = vld [vmem:[#allocation2 + $0x11c8] ss:$16 sps:$4 sm:$0xff]   ;;  %v16019_v17 = vld [vmem:[#allocation2 + $0x11e4] ss:$16 sps:$4 sm:$0xff]  }
 0x26c   :  { %10058 = vmatprep.subr.bf16.mxu0 %v15929_v26  ;;  %11083 = vmatprep.subr.bf16.mxu1 %v15932_v27  ;;  %v16022_v26 = vld [vmem:[#allocation2 + $0x11ec] ss:$16 sps:$4 sm:$0xff]   ;;  %v16017_v27 = vld [vmem:[#allocation2 + $0x11e0] ss:$16 sps:$4 sm:$0xff]  }
 0x26e   :  { %10050 = vmatmul.mubr.bf16.vlgmr.msra.gmra.mrb[0].mxu0 %v13116_v19  ;;  %11075 = vmatmul.mubr.bf16.vlgmr.msra.gmra.mrb[0].mxu1 %v13116_v19  ;;  %v16020_v19 = vld [vmem:[#allocation2 + $0x11e8] ss:$16 sps:$4 sm:$0xff]  }
 0x26f   :  { %10059 = vmatpush1.bf16.msra.mxu0 %v15927_v29  ;;  %11084 = vmatpush1.bf16.msra.mxu1 %v15930_v30  ;;  %v16027_v29 = vld [vmem:[#allocation2 + $0x1204] ss:$16 sps:$4 sm:$0xff]   ;;  %v16030_v30 = vld [vmem:[#allocation2 + $0x120c] ss:$16 sps:$4 sm:$0xff]  }
 0x270   :  { %10060 = vmatprep.subr.bf16.mxu0 %v15935_v31  ;;  %11085 = vmatprep.subr.bf16.mxu1 %v15938_v21  ;;  %v18107_v31 = vld [vmem:[%s18278_s0 + $0x48] sm:$0xff]  ;;  %v13118_v21 = vcombine.low %v18098_v28, %v18098_v28  ;;  %v16039_v28 = vld [vmem:[#allocation2 + $0x1244] ss:$16 sps:$4 sm:$0xff]  }
 0x271   :  { %10090 = vmatprep.mubr.bf16.mxu0 %v13119_v32  ;;  %11115 = vmatprep.mubr.bf16.mxu1 %v13119_v32  ;;  %v16025_v32 = vld [vmem:[#allocation2 + $0x1200] ss:$16 sps:$4 sm:$0xff]  }
 0x273   :  { %10061 = vmatpush1.bf16.msra.mxu0 %v15933_v33  ;;  %11086 = vmatpush1.bf16.msra.mxu1 %v15936_v34  ;;  %v16028_v33 = vld [vmem:[#allocation2 + $0x1208] ss:$16 sps:$4 sm:$0xff]   ;;  %v16033_v34 = vld [vmem:[#allocation2 + $0x1224] ss:$16 sps:$4 sm:$0xff]  }
 0x274   :  { %10062 = vmatprep.subr.bf16.mxu0 %v15941_v25  ;;  %11087 = vmatprep.subr.bf16.mxu1 %v15944_v35  ;;  %v16036_v25 = vld [vmem:[#allocation2 + $0x122c] ss:$16 sps:$4 sm:$0xff]   ;;  %v13121_v35 = vcombine.high %v18107_v31, %v18107_v31 }
 0x277   :  { %10063 = vmatpush1.bf16.msra.mxu0 %v15939_v36  ;;  %11088 = vmatpush1.bf16.msra.mxu1 %v15942_v37  ;;  %v16031_v36 = vld [vmem:[#allocation2 + $0x1220] ss:$16 sps:$4 sm:$0xff]   ;;  %v16034_v37 = vld [vmem:[#allocation2 + $0x1228] ss:$16 sps:$4 sm:$0xff]  }
 0x278   :  { %10064 = vmatprep.subr.bf16.mxu0 %v15947_v38  ;;  %11089 = vmatprep.subr.bf16.mxu1 %v15950_v39  ;;  %v16042_v38 = vld [vmem:[#allocation2 + $0x124c] ss:$16 sps:$4 sm:$0xff]   ;;  %v16037_v39 = vld [vmem:[#allocation2 + $0x1240] ss:$16 sps:$4 sm:$0xff]  }
 0x27b   :  { %10065 = vmatpush1.bf16.msra.mxu0 %v15945_v40  ;;  %11090 = vmatpush1.bf16.msra.mxu1 %v15948_v41  ;;  %v16040_v40 = vld [vmem:[#allocation2 + $0x1248] ss:$16 sps:$4 sm:$0xff]   ;;  %v16045_v41 = vld [vmem:[#allocation2 + $0x1264] ss:$16 sps:$4 sm:$0xff]  }
 0x27c   :  { %10066 = vmatprep.subr.bf16.mxu0 %v15953_v42  ;;  %11091 = vmatprep.subr.bf16.mxu1 %v15956_v43  ;;  %v16048_v42 = vld [vmem:[#allocation2 + $0x126c] ss:$16 sps:$4 sm:$0xff]   ;;  %v16043_v43 = vld [vmem:[#allocation2 + $0x1260] ss:$16 sps:$4 sm:$0xff]  }
 0x27f   :  { %10067 = vmatpush1.bf16.msra.mxu0 %v15951_v44  ;;  %11092 = vmatpush1.bf16.msra.mxu1 %v15954_v45  ;;  %v16046_v44 = vld [vmem:[#allocation2 + $0x1268] ss:$16 sps:$4 sm:$0xff]   ;;  %v16051_v45 = vld [vmem:[#allocation2 + $0x1284] ss:$16 sps:$4 sm:$0xff]  }
 0x280   :  { %10068 = vmatprep.subr.bf16.mxu0 %v15959_v46  ;;  %11093 = vmatprep.subr.bf16.mxu1 %v15962_v47  ;;  %v16054_v46 = vld [vmem:[#allocation2 + $0x128c] ss:$16 sps:$4 sm:$0xff]   ;;  %v16049_v47 = vld [vmem:[#allocation2 + $0x1280] ss:$16 sps:$4 sm:$0xff]  }
 0x283   :  { %10069 = vmatpush1.bf16.msra.mxu0 %v15957_v48  ;;  %11094 = vmatpush1.bf16.msra.mxu1 %v15960_v49  ;;  %v16052_v48 = vld [vmem:[#allocation2 + $0x1288] ss:$16 sps:$4 sm:$0xff]   ;;  %v16057_v49 = vld [vmem:[#allocation2 + $0x12a4] ss:$16 sps:$4 sm:$0xff]  }
 0x284   :  { %10070 = vmatprep.subr.bf16.mxu0 %v15965_v50  ;;  %11095 = vmatprep.subr.bf16.mxu1 %v15968_v51  ;;  %v16060_v50 = vld [vmem:[#allocation2 + $0x12ac] ss:$16 sps:$4 sm:$0xff]   ;;  %v16055_v51 = vld [vmem:[#allocation2 + $0x12a0] ss:$16 sps:$4 sm:$0xff]  }
 0x287   :  { %10071 = vmatpush1.bf16.msra.mxu0 %v15963_v52  ;;  %11096 = vmatpush1.bf16.msra.mxu1 %v15966_v53  ;;  %v16058_v52 = vld [vmem:[#allocation2 + $0x12a8] ss:$16 sps:$4 sm:$0xff]   ;;  %v16063_v53 = vld [vmem:[#allocation2 + $0x12c4] ss:$16 sps:$4 sm:$0xff]  }
 0x288   :  { %10072 = vmatprep.subr.bf16.mxu0 %v15971_v54  ;;  %11097 = vmatprep.subr.bf16.mxu1 %v15974_v55  ;;  %v16066_v54 = vld [vmem:[#allocation2 + $0x12cc] ss:$16 sps:$4 sm:$0xff]   ;;  %v16061_v55 = vld [vmem:[#allocation2 + $0x12c0] ss:$16 sps:$4 sm:$0xff]  }
 0x28b   :  { %10073 = vmatpush1.bf16.msra.mxu0 %v15969_v56  ;;  %11098 = vmatpush1.bf16.msra.mxu1 %v15972_v57  ;;  %v16064_v56 = vld [vmem:[#allocation2 + $0x12c8] ss:$16 sps:$4 sm:$0xff]   ;;  %v16069_v57 = vld [vmem:[#allocation2 + $0x12e4] ss:$16 sps:$4 sm:$0xff]  }
 0x28c   :  { %10074 = vmatprep.subr.bf16.mxu0 %v15977_v58  ;;  %11099 = vmatprep.subr.bf16.mxu1 %v15980_v59  ;;  %v16072_v58 = vld [vmem:[#allocation2 + $0x12ec] ss:$16 sps:$4 sm:$0xff]   ;;  %v16067_v59 = vld [vmem:[#allocation2 + $0x12e0] ss:$16 sps:$4 sm:$0xff]  }
 0x28f   :  { %10075 = vmatpush1.bf16.msra.mxu0 %v15975_v60  ;;  %11100 = vmatpush1.bf16.msra.mxu1 %v15978_v61  ;;  %v16070_v60 = vld [vmem:[#allocation2 + $0x12e8] ss:$16 sps:$4 sm:$0xff]   ;;  %v16075_v61 = vld [vmem:[#allocation2 + $0x1304] ss:$16 sps:$4 sm:$0xff]  }
 0x290   :  { %10076 = vmatprep.subr.bf16.mxu0 %v15983_v62  ;;  %11101 = vmatprep.subr.bf16.mxu1 %v15986_v63  ;;  %v16078_v62 = vld [vmem:[#allocation2 + $0x130c] ss:$16 sps:$4 sm:$0xff]   ;;  %v16073_v63 = vld [vmem:[#allocation2 + $0x1300] ss:$16 sps:$4 sm:$0xff]  }
 0x293   :  { %10077 = vmatpush1.bf16.msra.mxu0 %v15981_v0  ;;  %11102 = vmatpush1.bf16.msra.mxu1 %v15984_v1  ;;  %v16076_v0 = vld [vmem:[#allocation2 + $0x1308] ss:$16 sps:$4 sm:$0xff]   ;;  %v16081_v1 = vld [vmem:[#allocation2 + $0x1324] ss:$16 sps:$4 sm:$0xff]  }
 0x294   :  { %10078 = vmatprep.subr.bf16.mxu0 %v15989_v2  ;;  %11103 = vmatprep.subr.bf16.mxu1 %v15992_v3  ;;  %v16084_v2 = vld [vmem:[#allocation2 + $0x132c] ss:$16 sps:$4 sm:$0xff]   ;;  %v16079_v3 = vld [vmem:[#allocation2 + $0x1320] ss:$16 sps:$4 sm:$0xff]  }
 0x297   :  { %10079 = vmatpush1.bf16.msra.mxu0 %v15987_v4  ;;  %11104 = vmatpush1.bf16.msra.mxu1 %v15990_v5  ;;  %v16082_v4 = vld [vmem:[#allocation2 + $0x1328] ss:$16 sps:$4 sm:$0xff]   ;;  %v16087_v5 = vld [vmem:[#allocation2 + $0x1344] ss:$16 sps:$4 sm:$0xff]  }
 0x298   :  { %10080 = vmatprep.subr.bf16.mxu0 %v15995_v6  ;;  %11105 = vmatprep.subr.bf16.mxu1 %v15998_v7  ;;  %v16090_v6 = vld [vmem:[#allocation2 + $0x134c] ss:$16 sps:$4 sm:$0xff]   ;;  %v16085_v7 = vld [vmem:[#allocation2 + $0x1340] ss:$16 sps:$4 sm:$0xff]  }
 0x29b   :  { %10081 = vmatpush1.bf16.msra.mxu0 %v15993_v8  ;;  %11106 = vmatpush1.bf16.msra.mxu1 %v15996_v9  ;;  %v16088_v8 = vld [vmem:[#allocation2 + $0x1348] ss:$16 sps:$4 sm:$0xff]   ;;  %v16093_v9 = vld [vmem:[#allocation2 + $0x1364] ss:$16 sps:$4 sm:$0xff]  }
 0x29c   :  { %10082 = vmatprep.subr.bf16.mxu0 %v16001_v10  ;;  %11107 = vmatprep.subr.bf16.mxu1 %v16004_v12  ;;  %v16096_v10 = vld [vmem:[#allocation2 + $0x136c] ss:$16 sps:$4 sm:$0xff]   ;;  %v16091_v12 = vld [vmem:[#allocation2 + $0x1360] ss:$16 sps:$4 sm:$0xff]  }
 0x29f   :  { %10083 = vmatpush1.bf16.msra.mxu0 %v15999_v13  ;;  %11108 = vmatpush1.bf16.msra.mxu1 %v16002_v15  ;;  %v16094_v13 = vld [vmem:[#allocation2 + $0x1368] ss:$16 sps:$4 sm:$0xff]   ;;  %v16099_v15 = vld [vmem:[#allocation2 + $0x1384] ss:$16 sps:$4 sm:$0xff]  }
 0x2a0   :  { %10084 = vmatprep.subr.bf16.mxu0 %v16007_v16  ;;  %11109 = vmatprep.subr.bf16.mxu1 %v16010_v18  ;;  %v16102_v16 = vld [vmem:[#allocation2 + $0x138c] ss:$16 sps:$4 sm:$0xff]   ;;  %v16097_v18 = vld [vmem:[#allocation2 + $0x1380] ss:$16 sps:$4 sm:$0xff]  }
 0x2a3   :  { %10085 = vmatpush1.bf16.msra.mxu0 %v16005_v11  ;;  %11110 = vmatpush1.bf16.msra.mxu1 %v16008_v20  ;;  %v16100_v11 = vld [vmem:[#allocation2 + $0x1388] ss:$16 sps:$4 sm:$0xff]   ;;  %v16105_v20 = vld [vmem:[#allocation2 + $0x13a4] ss:$16 sps:$4 sm:$0xff]  }
 0x2a4   :  { %10086 = vmatprep.subr.bf16.mxu0 %v16013_v14  ;;  %11111 = vmatprep.subr.bf16.mxu1 %v16016_v22  ;;  %v16108_v14 = vld [vmem:[#allocation2 + $0x13ac] ss:$16 sps:$4 sm:$0xff]   ;;  %v16103_v22 = vld [vmem:[#allocation2 + $0x13a0] ss:$16 sps:$4 sm:$0xff]  }
 0x2a7   :  { %10087 = vmatpush1.bf16.msra.mxu0 %v16011_v23  ;;  %11112 = vmatpush1.bf16.msra.mxu1 %v16014_v24  ;;  %v16106_v23 = vld [vmem:[#allocation2 + $0x13a8] ss:$16 sps:$4 sm:$0xff]   ;;  %v16111_v24 = vld [vmem:[#allocation2 + $0x13c4] ss:$16 sps:$4 sm:$0xff]  }
 0x2a8   :  { %10088 = vmatprep.subr.bf16.mxu0 %v16019_v17  ;;  %11113 = vmatprep.subr.bf16.mxu1 %v16022_v26  ;;  %v16114_v17 = vld [vmem:[#allocation2 + $0x13cc] ss:$16 sps:$4 sm:$0xff]   ;;  %v16109_v26 = vld [vmem:[#allocation2 + $0x13c0] ss:$16 sps:$4 sm:$0xff]  }
 0x2ab   :  { %10089 = vmatpush1.bf16.msra.mxu0 %v16017_v27  ;;  %11114 = vmatpush1.bf16.msra.mxu1 %v16020_v19  ;;  %v16112_v27 = vld [vmem:[#allocation2 + $0x13c8] ss:$16 sps:$4 sm:$0xff]   ;;  %v16117_v19 = vld [vmem:[#allocation2 + $0x13e4] ss:$16 sps:$4 sm:$0xff]  }
 0x2ac   :  { %10099 = vmatprep.subr.bf16.mxu0 %v16027_v29  ;;  %11124 = vmatprep.subr.bf16.mxu1 %v16030_v30  ;;  %v16120_v29 = vld [vmem:[#allocation2 + $0x13ec] ss:$16 sps:$4 sm:$0xff]   ;;  %v16115_v30 = vld [vmem:[#allocation2 + $0x13e0] ss:$16 sps:$4 sm:$0xff]  }
 0x2ae   :  { %10091 = vmatmul.mubr.bf16.vlgmr.msra.gmra.mrb[0].mxu0 %v13118_v21  ;;  %11116 = vmatmul.mubr.bf16.vlgmr.msra.gmra.mrb[0].mxu1 %v13118_v21  ;;  %v16118_v21 = vld [vmem:[#allocation2 + $0x13e8] ss:$16 sps:$4 sm:$0xff]  }
 0x2af   :  { %10100 = vmatpush1.bf16.msra.mxu0 %v16025_v32  ;;  %11125 = vmatpush1.bf16.msra.mxu1 %v16028_v33  ;;  %v16125_v32 = vld [vmem:[#allocation2 + $0x1404] ss:$16 sps:$4 sm:$0xff]   ;;  %v16128_v33 = vld [vmem:[#allocation2 + $0x140c] ss:$16 sps:$4 sm:$0xff]  }
 0x2b0   :  { %10101 = vmatprep.subr.bf16.mxu0 %v16033_v34  ;;  %11126 = vmatprep.subr.bf16.mxu1 %v16036_v25  ;;  %v18116_v34 = vld [vmem:[%s18278_s0 + $0x50] sm:$0xff]  ;;  %v13120_v25 = vcombine.low %v18107_v31, %v18107_v31 }
 0x2b1   :  { %10131 = vmatprep.mubr.bf16.mxu0 %v13121_v35  ;;  %11156 = vmatprep.mubr.bf16.mxu1 %v13121_v35  ;;  %v16123_v35 = vld [vmem:[#allocation2 + $0x1400] ss:$16 sps:$4 sm:$0xff]   ;;  %v16137_v31 = vld [vmem:[#allocation2 + $0x1444] ss:$16 sps:$4 sm:$0xff]  }
 0x2b3   :  { %10102 = vmatpush1.bf16.msra.mxu0 %v16031_v36  ;;  %11127 = vmatpush1.bf16.msra.mxu1 %v16034_v37  ;;  %v16126_v36 = vld [vmem:[#allocation2 + $0x1408] ss:$16 sps:$4 sm:$0xff]   ;;  %v16131_v37 = vld [vmem:[#allocation2 + $0x1424] ss:$16 sps:$4 sm:$0xff]  }
 0x2b4   :  { %10103 = vmatprep.subr.bf16.mxu0 %v16039_v28  ;;  %11128 = vmatprep.subr.bf16.mxu1 %v16042_v38  ;;  %v16134_v28 = vld [vmem:[#allocation2 + $0x142c] ss:$16 sps:$4 sm:$0xff]   ;;  %v13123_v38 = vcombine.high %v18116_v34, %v18116_v34 }
 0x2b7   :  { %10104 = vmatpush1.bf16.msra.mxu0 %v16037_v39  ;;  %11129 = vmatpush1.bf16.msra.mxu1 %v16040_v40  ;;  %v16129_v39 = vld [vmem:[#allocation2 + $0x1420] ss:$16 sps:$4 sm:$0xff]   ;;  %v16132_v40 = vld [vmem:[#allocation2 + $0x1428] ss:$16 sps:$4 sm:$0xff]  }
 0x2b8   :  { %10105 = vmatprep.subr.bf16.mxu0 %v16045_v41  ;;  %11130 = vmatprep.subr.bf16.mxu1 %v16048_v42  ;;  %v16140_v41 = vld [vmem:[#allocation2 + $0x144c] ss:$16 sps:$4 sm:$0xff]   ;;  %v16135_v42 = vld [vmem:[#allocation2 + $0x1440] ss:$16 sps:$4 sm:$0xff]  }
 0x2bb   :  { %10106 = vmatpush1.bf16.msra.mxu0 %v16043_v43  ;;  %11131 = vmatpush1.bf16.msra.mxu1 %v16046_v44  ;;  %v16138_v43 = vld [vmem:[#allocation2 + $0x1448] ss:$16 sps:$4 sm:$0xff]   ;;  %v16143_v44 = vld [vmem:[#allocation2 + $0x1464] ss:$16 sps:$4 sm:$0xff]  }
 0x2bc   :  { %10107 = vmatprep.subr.bf16.mxu0 %v16051_v45  ;;  %11132 = vmatprep.subr.bf16.mxu1 %v16054_v46  ;;  %v16146_v45 = vld [vmem:[#allocation2 + $0x146c] ss:$16 sps:$4 sm:$0xff]   ;;  %v16141_v46 = vld [vmem:[#allocation2 + $0x1460] ss:$16 sps:$4 sm:$0xff]  }
 0x2bf   :  { %10108 = vmatpush1.bf16.msra.mxu0 %v16049_v47  ;;  %11133 = vmatpush1.bf16.msra.mxu1 %v16052_v48  ;;  %v16144_v47 = vld [vmem:[#allocation2 + $0x1468] ss:$16 sps:$4 sm:$0xff]   ;;  %v16149_v48 = vld [vmem:[#allocation2 + $0x1484] ss:$16 sps:$4 sm:$0xff]  }
 0x2c0   :  { %10109 = vmatprep.subr.bf16.mxu0 %v16057_v49  ;;  %11134 = vmatprep.subr.bf16.mxu1 %v16060_v50  ;;  %v16152_v49 = vld [vmem:[#allocation2 + $0x148c] ss:$16 sps:$4 sm:$0xff]   ;;  %v16147_v50 = vld [vmem:[#allocation2 + $0x1480] ss:$16 sps:$4 sm:$0xff]  }
 0x2c3   :  { %10110 = vmatpush1.bf16.msra.mxu0 %v16055_v51  ;;  %11135 = vmatpush1.bf16.msra.mxu1 %v16058_v52  ;;  %v16150_v51 = vld [vmem:[#allocation2 + $0x1488] ss:$16 sps:$4 sm:$0xff]   ;;  %v16155_v52 = vld [vmem:[#allocation2 + $0x14a4] ss:$16 sps:$4 sm:$0xff]  }
 0x2c4   :  { %10111 = vmatprep.subr.bf16.mxu0 %v16063_v53  ;;  %11136 = vmatprep.subr.bf16.mxu1 %v16066_v54  ;;  %v16158_v53 = vld [vmem:[#allocation2 + $0x14ac] ss:$16 sps:$4 sm:$0xff]   ;;  %v16153_v54 = vld [vmem:[#allocation2 + $0x14a0] ss:$16 sps:$4 sm:$0xff]  }
 0x2c7   :  { %10112 = vmatpush1.bf16.msra.mxu0 %v16061_v55  ;;  %11137 = vmatpush1.bf16.msra.mxu1 %v16064_v56  ;;  %v16156_v55 = vld [vmem:[#allocation2 + $0x14a8] ss:$16 sps:$4 sm:$0xff]   ;;  %v16161_v56 = vld [vmem:[#allocation2 + $0x14c4] ss:$16 sps:$4 sm:$0xff]  }
 0x2c8   :  { %10113 = vmatprep.subr.bf16.mxu0 %v16069_v57  ;;  %11138 = vmatprep.subr.bf16.mxu1 %v16072_v58  ;;  %v16164_v57 = vld [vmem:[#allocation2 + $0x14cc] ss:$16 sps:$4 sm:$0xff]   ;;  %v16159_v58 = vld [vmem:[#allocation2 + $0x14c0] ss:$16 sps:$4 sm:$0xff]  }
 0x2cb   :  { %10114 = vmatpush1.bf16.msra.mxu0 %v16067_v59  ;;  %11139 = vmatpush1.bf16.msra.mxu1 %v16070_v60  ;;  %v16162_v59 = vld [vmem:[#allocation2 + $0x14c8] ss:$16 sps:$4 sm:$0xff]   ;;  %v16167_v60 = vld [vmem:[#allocation2 + $0x14e4] ss:$16 sps:$4 sm:$0xff]  }
 0x2cc   :  { %10115 = vmatprep.subr.bf16.mxu0 %v16075_v61  ;;  %11140 = vmatprep.subr.bf16.mxu1 %v16078_v62  ;;  %v16170_v61 = vld [vmem:[#allocation2 + $0x14ec] ss:$16 sps:$4 sm:$0xff]   ;;  %v16165_v62 = vld [vmem:[#allocation2 + $0x14e0] ss:$16 sps:$4 sm:$0xff]  }
 0x2cf   :  { %10116 = vmatpush1.bf16.msra.mxu0 %v16073_v63  ;;  %11141 = vmatpush1.bf16.msra.mxu1 %v16076_v0  ;;  %v16168_v63 = vld [vmem:[#allocation2 + $0x14e8] ss:$16 sps:$4 sm:$0xff]   ;;  %v16173_v0 = vld [vmem:[#allocation2 + $0x1504] ss:$16 sps:$4 sm:$0xff]  }
 0x2d0   :  { %10117 = vmatprep.subr.bf16.mxu0 %v16081_v1  ;;  %11142 = vmatprep.subr.bf16.mxu1 %v16084_v2  ;;  %v16176_v1 = vld [vmem:[#allocation2 + $0x150c] ss:$16 sps:$4 sm:$0xff]   ;;  %v16171_v2 = vld [vmem:[#allocation2 + $0x1500] ss:$16 sps:$4 sm:$0xff]  }
 0x2d3   :  { %10118 = vmatpush1.bf16.msra.mxu0 %v16079_v3  ;;  %11143 = vmatpush1.bf16.msra.mxu1 %v16082_v4  ;;  %v16174_v3 = vld [vmem:[#allocation2 + $0x1508] ss:$16 sps:$4 sm:$0xff]   ;;  %v16179_v4 = vld [vmem:[#allocation2 + $0x1524] ss:$16 sps:$4 sm:$0xff]  }
 0x2d4   :  { %10119 = vmatprep.subr.bf16.mxu0 %v16087_v5  ;;  %11144 = vmatprep.subr.bf16.mxu1 %v16090_v6  ;;  %v16182_v5 = vld [vmem:[#allocation2 + $0x152c] ss:$16 sps:$4 sm:$0xff]   ;;  %v16177_v6 = vld [vmem:[#allocation2 + $0x1520] ss:$16 sps:$4 sm:$0xff]  }
 0x2d7   :  { %10120 = vmatpush1.bf16.msra.mxu0 %v16085_v7  ;;  %11145 = vmatpush1.bf16.msra.mxu1 %v16088_v8  ;;  %v16180_v7 = vld [vmem:[#allocation2 + $0x1528] ss:$16 sps:$4 sm:$0xff]   ;;  %v16185_v8 = vld [vmem:[#allocation2 + $0x1544] ss:$16 sps:$4 sm:$0xff]  }
 0x2d8   :  { %10121 = vmatprep.subr.bf16.mxu0 %v16093_v9  ;;  %11146 = vmatprep.subr.bf16.mxu1 %v16096_v10  ;;  %v16188_v9 = vld [vmem:[#allocation2 + $0x154c] ss:$16 sps:$4 sm:$0xff]   ;;  %v16183_v10 = vld [vmem:[#allocation2 + $0x1540] ss:$16 sps:$4 sm:$0xff]  }
 0x2db   :  { %10122 = vmatpush1.bf16.msra.mxu0 %v16091_v12  ;;  %11147 = vmatpush1.bf16.msra.mxu1 %v16094_v13  ;;  %v16186_v12 = vld [vmem:[#allocation2 + $0x1548] ss:$16 sps:$4 sm:$0xff]   ;;  %v16191_v13 = vld [vmem:[#allocation2 + $0x1564] ss:$16 sps:$4 sm:$0xff]  }
 0x2dc   :  { %10123 = vmatprep.subr.bf16.mxu0 %v16099_v15  ;;  %11148 = vmatprep.subr.bf16.mxu1 %v16102_v16  ;;  %v16194_v15 = vld [vmem:[#allocation2 + $0x156c] ss:$16 sps:$4 sm:$0xff]   ;;  %v16189_v16 = vld [vmem:[#allocation2 + $0x1560] ss:$16 sps:$4 sm:$0xff]  }
 0x2df   :  { %10124 = vmatpush1.bf16.msra.mxu0 %v16097_v18  ;;  %11149 = vmatpush1.bf16.msra.mxu1 %v16100_v11  ;;  %v16192_v18 = vld [vmem:[#allocation2 + $0x1568] ss:$16 sps:$4 sm:$0xff]   ;;  %v16197_v11 = vld [vmem:[#allocation2 + $0x1584] ss:$16 sps:$4 sm:$0xff]  }
 0x2e0   :  { %10125 = vmatprep.subr.bf16.mxu0 %v16105_v20  ;;  %11150 = vmatprep.subr.bf16.mxu1 %v16108_v14  ;;  %v16200_v20 = vld [vmem:[#allocation2 + $0x158c] ss:$16 sps:$4 sm:$0xff]   ;;  %v16195_v14 = vld [vmem:[#allocation2 + $0x1580] ss:$16 sps:$4 sm:$0xff]  }
 0x2e3   :  { %10126 = vmatpush1.bf16.msra.mxu0 %v16103_v22  ;;  %11151 = vmatpush1.bf16.msra.mxu1 %v16106_v23  ;;  %v16198_v22 = vld [vmem:[#allocation2 + $0x1588] ss:$16 sps:$4 sm:$0xff]   ;;  %v16203_v23 = vld [vmem:[#allocation2 + $0x15a4] ss:$16 sps:$4 sm:$0xff]  }
 0x2e4   :  { %10127 = vmatprep.subr.bf16.mxu0 %v16111_v24  ;;  %11152 = vmatprep.subr.bf16.mxu1 %v16114_v17  ;;  %v16206_v24 = vld [vmem:[#allocation2 + $0x15ac] ss:$16 sps:$4 sm:$0xff]   ;;  %v16201_v17 = vld [vmem:[#allocation2 + $0x15a0] ss:$16 sps:$4 sm:$0xff]  }
 0x2e7   :  { %10128 = vmatpush1.bf16.msra.mxu0 %v16109_v26  ;;  %11153 = vmatpush1.bf16.msra.mxu1 %v16112_v27  ;;  %v16204_v26 = vld [vmem:[#allocation2 + $0x15a8] ss:$16 sps:$4 sm:$0xff]   ;;  %v16209_v27 = vld [vmem:[#allocation2 + $0x15c4] ss:$16 sps:$4 sm:$0xff]  }
 0x2e8   :  { %10129 = vmatprep.subr.bf16.mxu0 %v16117_v19  ;;  %11154 = vmatprep.subr.bf16.mxu1 %v16120_v29  ;;  %v16212_v19 = vld [vmem:[#allocation2 + $0x15cc] ss:$16 sps:$4 sm:$0xff]   ;;  %v16207_v29 = vld [vmem:[#allocation2 + $0x15c0] ss:$16 sps:$4 sm:$0xff]  }
 0x2eb   :  { %10130 = vmatpush1.bf16.msra.mxu0 %v16115_v30  ;;  %11155 = vmatpush1.bf16.msra.mxu1 %v16118_v21  ;;  %v16210_v30 = vld [vmem:[#allocation2 + $0x15c8] ss:$16 sps:$4 sm:$0xff]   ;;  %v16215_v21 = vld [vmem:[#allocation2 + $0x15e4] ss:$16 sps:$4 sm:$0xff]  }
 0x2ec   :  { %10140 = vmatprep.subr.bf16.mxu0 %v16125_v32  ;;  %11165 = vmatprep.subr.bf16.mxu1 %v16128_v33  ;;  %v16218_v32 = vld [vmem:[#allocation2 + $0x15ec] ss:$16 sps:$4 sm:$0xff]   ;;  %v16213_v33 = vld [vmem:[#allocation2 + $0x15e0] ss:$16 sps:$4 sm:$0xff]  }
 0x2ee   :  { %10132 = vmatmul.mubr.bf16.vlgmr.msra.gmra.mrb[0].mxu0 %v13120_v25  ;;  %11157 = vmatmul.mubr.bf16.vlgmr.msra.gmra.mrb[0].mxu1 %v13120_v25  ;;  %v16216_v25 = vld [vmem:[#allocation2 + $0x15e8] ss:$16 sps:$4 sm:$0xff]  }
 0x2ef   :  { %10141 = vmatpush1.bf16.msra.mxu0 %v16123_v35  ;;  %11166 = vmatpush1.bf16.msra.mxu1 %v16126_v36  ;;  %v16223_v35 = vld [vmem:[#allocation2 + $0x1604] ss:$16 sps:$4 sm:$0xff]   ;;  %v16226_v36 = vld [vmem:[#allocation2 + $0x160c] ss:$16 sps:$4 sm:$0xff]  }
 0x2f0   :  { %10142 = vmatprep.subr.bf16.mxu0 %v16131_v37  ;;  %11167 = vmatprep.subr.bf16.mxu1 %v16134_v28  ;;  %v18125_v37 = vld [vmem:[%s18278_s0 + $0x58] sm:$0xff]  ;;  %v13122_v28 = vcombine.low %v18116_v34, %v18116_v34  ;;  %v16235_v34 = vld [vmem:[#allocation2 + $0x1644] ss:$16 sps:$4 sm:$0xff]  }
 0x2f1   :  { %10172 = vmatprep.mubr.bf16.mxu0 %v13123_v38  ;;  %11197 = vmatprep.mubr.bf16.mxu1 %v13123_v38  ;;  %v16221_v38 = vld [vmem:[#allocation2 + $0x1600] ss:$16 sps:$4 sm:$0xff]  }
 0x2f3   :  { %10143 = vmatpush1.bf16.msra.mxu0 %v16129_v39  ;;  %11168 = vmatpush1.bf16.msra.mxu1 %v16132_v40  ;;  %v16224_v39 = vld [vmem:[#allocation2 + $0x1608] ss:$16 sps:$4 sm:$0xff]   ;;  %v16229_v40 = vld [vmem:[#allocation2 + $0x1624] ss:$16 sps:$4 sm:$0xff]  }
 0x2f4   :  { %10144 = vmatprep.subr.bf16.mxu0 %v16137_v31  ;;  %11169 = vmatprep.subr.bf16.mxu1 %v16140_v41  ;;  %v16232_v31 = vld [vmem:[#allocation2 + $0x162c] ss:$16 sps:$4 sm:$0xff]   ;;  %v13125_v41 = vcombine.high %v18125_v37, %v18125_v37 }
 0x2f7   :  { %10145 = vmatpush1.bf16.msra.mxu0 %v16135_v42  ;;  %11170 = vmatpush1.bf16.msra.mxu1 %v16138_v43  ;;  %v16227_v42 = vld [vmem:[#allocation2 + $0x1620] ss:$16 sps:$4 sm:$0xff]   ;;  %v16230_v43 = vld [vmem:[#allocation2 + $0x1628] ss:$16 sps:$4 sm:$0xff]  }
 0x2f8   :  { %10146 = vmatprep.subr.bf16.mxu0 %v16143_v44  ;;  %11171 = vmatprep.subr.bf16.mxu1 %v16146_v45  ;;  %v16238_v44 = vld [vmem:[#allocation2 + $0x164c] ss:$16 sps:$4 sm:$0xff]   ;;  %v16233_v45 = vld [vmem:[#allocation2 + $0x1640] ss:$16 sps:$4 sm:$0xff]  }
 0x2fb   :  { %10147 = vmatpush1.bf16.msra.mxu0 %v16141_v46  ;;  %11172 = vmatpush1.bf16.msra.mxu1 %v16144_v47  ;;  %v16236_v46 = vld [vmem:[#allocation2 + $0x1648] ss:$16 sps:$4 sm:$0xff]   ;;  %v16241_v47 = vld [vmem:[#allocation2 + $0x1664] ss:$16 sps:$4 sm:$0xff]  }
 0x2fc   :  { %10148 = vmatprep.subr.bf16.mxu0 %v16149_v48  ;;  %11173 = vmatprep.subr.bf16.mxu1 %v16152_v49  ;;  %v16244_v48 = vld [vmem:[#allocation2 + $0x166c] ss:$16 sps:$4 sm:$0xff]   ;;  %v16239_v49 = vld [vmem:[#allocation2 + $0x1660] ss:$16 sps:$4 sm:$0xff]  }
 0x2ff   :  { %10149 = vmatpush1.bf16.msra.mxu0 %v16147_v50  ;;  %11174 = vmatpush1.bf16.msra.mxu1 %v16150_v51  ;;  %v16242_v50 = vld [vmem:[#allocation2 + $0x1668] ss:$16 sps:$4 sm:$0xff]   ;;  %v16247_v51 = vld [vmem:[#allocation2 + $0x1684] ss:$16 sps:$4 sm:$0xff]  }
 0x300   :  { %10150 = vmatprep.subr.bf16.mxu0 %v16155_v52  ;;  %11175 = vmatprep.subr.bf16.mxu1 %v16158_v53  ;;  %v16250_v52 = vld [vmem:[#allocation2 + $0x168c] ss:$16 sps:$4 sm:$0xff]   ;;  %v16245_v53 = vld [vmem:[#allocation2 + $0x1680] ss:$16 sps:$4 sm:$0xff]  }
 0x303   :  { %10151 = vmatpush1.bf16.msra.mxu0 %v16153_v54  ;;  %11176 = vmatpush1.bf16.msra.mxu1 %v16156_v55  ;;  %v16248_v54 = vld [vmem:[#allocation2 + $0x1688] ss:$16 sps:$4 sm:$0xff]   ;;  %v16253_v55 = vld [vmem:[#allocation2 + $0x16a4] ss:$16 sps:$4 sm:$0xff]  }
 0x304   :  { %10152 = vmatprep.subr.bf16.mxu0 %v16161_v56  ;;  %11177 = vmatprep.subr.bf16.mxu1 %v16164_v57  ;;  %v16256_v56 = vld [vmem:[#allocation2 + $0x16ac] ss:$16 sps:$4 sm:$0xff]   ;;  %v16251_v57 = vld [vmem:[#allocation2 + $0x16a0] ss:$16 sps:$4 sm:$0xff]  }
 0x307   :  { %10153 = vmatpush1.bf16.msra.mxu0 %v16159_v58  ;;  %11178 = vmatpush1.bf16.msra.mxu1 %v16162_v59  ;;  %v16254_v58 = vld [vmem:[#allocation2 + $0x16a8] ss:$16 sps:$4 sm:$0xff]   ;;  %v16259_v59 = vld [vmem:[#allocation2 + $0x16c4] ss:$16 sps:$4 sm:$0xff]  }
 0x308   :  { %10154 = vmatprep.subr.bf16.mxu0 %v16167_v60  ;;  %11179 = vmatprep.subr.bf16.mxu1 %v16170_v61  ;;  %v16262_v60 = vld [vmem:[#allocation2 + $0x16cc] ss:$16 sps:$4 sm:$0xff]   ;;  %v16257_v61 = vld [vmem:[#allocation2 + $0x16c0] ss:$16 sps:$4 sm:$0xff]  }
 0x30b   :  { %10155 = vmatpush1.bf16.msra.mxu0 %v16165_v62  ;;  %11180 = vmatpush1.bf16.msra.mxu1 %v16168_v63  ;;  %v16260_v62 = vld [vmem:[#allocation2 + $0x16c8] ss:$16 sps:$4 sm:$0xff]   ;;  %v16265_v63 = vld [vmem:[#allocation2 + $0x16e4] ss:$16 sps:$4 sm:$0xff]  }
 0x30c   :  { %10156 = vmatprep.subr.bf16.mxu0 %v16173_v0  ;;  %11181 = vmatprep.subr.bf16.mxu1 %v16176_v1  ;;  %v16268_v0 = vld [vmem:[#allocation2 + $0x16ec] ss:$16 sps:$4 sm:$0xff]   ;;  %v16263_v1 = vld [vmem:[#allocation2 + $0x16e0] ss:$16 sps:$4 sm:$0xff]  }
 0x30f   :  { %10157 = vmatpush1.bf16.msra.mxu0 %v16171_v2  ;;  %11182 = vmatpush1.bf16.msra.mxu1 %v16174_v3  ;;  %v16266_v2 = vld [vmem:[#allocation2 + $0x16e8] ss:$16 sps:$4 sm:$0xff]   ;;  %v16271_v3 = vld [vmem:[#allocation2 + $0x1704] ss:$16 sps:$4 sm:$0xff]  }
 0x310   :  { %10158 = vmatprep.subr.bf16.mxu0 %v16179_v4  ;;  %11183 = vmatprep.subr.bf16.mxu1 %v16182_v5  ;;  %v16274_v4 = vld [vmem:[#allocation2 + $0x170c] ss:$16 sps:$4 sm:$0xff]   ;;  %v16269_v5 = vld [vmem:[#allocation2 + $0x1700] ss:$16 sps:$4 sm:$0xff]  }
 0x313   :  { %10159 = vmatpush1.bf16.msra.mxu0 %v16177_v6  ;;  %11184 = vmatpush1.bf16.msra.mxu1 %v16180_v7  ;;  %v16272_v6 = vld [vmem:[#allocation2 + $0x1708] ss:$16 sps:$4 sm:$0xff]   ;;  %v16277_v7 = vld [vmem:[#allocation2 + $0x1724] ss:$16 sps:$4 sm:$0xff]  }
 0x314   :  { %10160 = vmatprep.subr.bf16.mxu0 %v16185_v8  ;;  %11185 = vmatprep.subr.bf16.mxu1 %v16188_v9  ;;  %v16280_v8 = vld [vmem:[#allocation2 + $0x172c] ss:$16 sps:$4 sm:$0xff]   ;;  %v16275_v9 = vld [vmem:[#allocation2 + $0x1720] ss:$16 sps:$4 sm:$0xff]  }
 0x317   :  { %10161 = vmatpush1.bf16.msra.mxu0 %v16183_v10  ;;  %11186 = vmatpush1.bf16.msra.mxu1 %v16186_v12  ;;  %v16278_v10 = vld [vmem:[#allocation2 + $0x1728] ss:$16 sps:$4 sm:$0xff]   ;;  %v16283_v12 = vld [vmem:[#allocation2 + $0x1744] ss:$16 sps:$4 sm:$0xff]  }
 0x318   :  { %10162 = vmatprep.subr.bf16.mxu0 %v16191_v13  ;;  %11187 = vmatprep.subr.bf16.mxu1 %v16194_v15  ;;  %v16286_v13 = vld [vmem:[#allocation2 + $0x174c] ss:$16 sps:$4 sm:$0xff]   ;;  %v16281_v15 = vld [vmem:[#allocation2 + $0x1740] ss:$16 sps:$4 sm:$0xff]  }
 0x31b   :  { %10163 = vmatpush1.bf16.msra.mxu0 %v16189_v16  ;;  %11188 = vmatpush1.bf16.msra.mxu1 %v16192_v18  ;;  %v16284_v16 = vld [vmem:[#allocation2 + $0x1748] ss:$16 sps:$4 sm:$0xff]   ;;  %v16289_v18 = vld [vmem:[#allocation2 + $0x1764] ss:$16 sps:$4 sm:$0xff]  }
 0x31c   :  { %10164 = vmatprep.subr.bf16.mxu0 %v16197_v11  ;;  %11189 = vmatprep.subr.bf16.mxu1 %v16200_v20  ;;  %v16292_v11 = vld [vmem:[#allocation2 + $0x176c] ss:$16 sps:$4 sm:$0xff]   ;;  %v16287_v20 = vld [vmem:[#allocation2 + $0x1760] ss:$16 sps:$4 sm:$0xff]  }
 0x31f   :  { %10165 = vmatpush1.bf16.msra.mxu0 %v16195_v14  ;;  %11190 = vmatpush1.bf16.msra.mxu1 %v16198_v22  ;;  %v16290_v14 = vld [vmem:[#allocation2 + $0x1768] ss:$16 sps:$4 sm:$0xff]   ;;  %v16295_v22 = vld [vmem:[#allocation2 + $0x1784] ss:$16 sps:$4 sm:$0xff]  }
 0x320   :  { %10166 = vmatprep.subr.bf16.mxu0 %v16203_v23  ;;  %11191 = vmatprep.subr.bf16.mxu1 %v16206_v24  ;;  %v16298_v23 = vld [vmem:[#allocation2 + $0x178c] ss:$16 sps:$4 sm:$0xff]   ;;  %v16293_v24 = vld [vmem:[#allocation2 + $0x1780] ss:$16 sps:$4 sm:$0xff]  }
 0x323   :  { %10167 = vmatpush1.bf16.msra.mxu0 %v16201_v17  ;;  %11192 = vmatpush1.bf16.msra.mxu1 %v16204_v26  ;;  %v16296_v17 = vld [vmem:[#allocation2 + $0x1788] ss:$16 sps:$4 sm:$0xff]   ;;  %v16301_v26 = vld [vmem:[#allocation2 + $0x17a4] ss:$16 sps:$4 sm:$0xff]  }
 0x324   :  { %10168 = vmatprep.subr.bf16.mxu0 %v16209_v27  ;;  %11193 = vmatprep.subr.bf16.mxu1 %v16212_v19  ;;  %v16304_v27 = vld [vmem:[#allocation2 + $0x17ac] ss:$16 sps:$4 sm:$0xff]   ;;  %v16299_v19 = vld [vmem:[#allocation2 + $0x17a0] ss:$16 sps:$4 sm:$0xff]  }
 0x327   :  { %10169 = vmatpush1.bf16.msra.mxu0 %v16207_v29  ;;  %11194 = vmatpush1.bf16.msra.mxu1 %v16210_v30  ;;  %v16302_v29 = vld [vmem:[#allocation2 + $0x17a8] ss:$16 sps:$4 sm:$0xff]   ;;  %v16307_v30 = vld [vmem:[#allocation2 + $0x17c4] ss:$16 sps:$4 sm:$0xff]  }
 0x328   :  { %10170 = vmatprep.subr.bf16.mxu0 %v16215_v21  ;;  %11195 = vmatprep.subr.bf16.mxu1 %v16218_v32  ;;  %v16310_v21 = vld [vmem:[#allocation2 + $0x17cc] ss:$16 sps:$4 sm:$0xff]   ;;  %v16305_v32 = vld [vmem:[#allocation2 + $0x17c0] ss:$16 sps:$4 sm:$0xff]  }
 0x32b   :  { %10171 = vmatpush1.bf16.msra.mxu0 %v16213_v33  ;;  %11196 = vmatpush1.bf16.msra.mxu1 %v16216_v25  ;;  %v16308_v33 = vld [vmem:[#allocation2 + $0x17c8] ss:$16 sps:$4 sm:$0xff]   ;;  %v16313_v25 = vld [vmem:[#allocation2 + $0x17e4] ss:$16 sps:$4 sm:$0xff]  }
 0x32c   :  { %10181 = vmatprep.subr.bf16.mxu0 %v16223_v35  ;;  %11206 = vmatprep.subr.bf16.mxu1 %v16226_v36  ;;  %v16316_v35 = vld [vmem:[#allocation2 + $0x17ec] ss:$16 sps:$4 sm:$0xff]   ;;  %v16311_v36 = vld [vmem:[#allocation2 + $0x17e0] ss:$16 sps:$4 sm:$0xff]  }
 0x32e   :  { %10173 = vmatmul.mubr.bf16.vlgmr.msra.gmra.mrb[0].mxu0 %v13122_v28  ;;  %11198 = vmatmul.mubr.bf16.vlgmr.msra.gmra.mrb[0].mxu1 %v13122_v28  ;;  %v16314_v28 = vld [vmem:[#allocation2 + $0x17e8] ss:$16 sps:$4 sm:$0xff]  }
 0x32f   :  { %10182 = vmatpush1.bf16.msra.mxu0 %v16221_v38  ;;  %11207 = vmatpush1.bf16.msra.mxu1 %v16224_v39  ;;  %v16321_v38 = vld [vmem:[#allocation2 + $0x1804] ss:$16 sps:$4 sm:$0xff]   ;;  %v16324_v39 = vld [vmem:[#allocation2 + $0x180c] ss:$16 sps:$4 sm:$0xff]  }
 0x330   :  { %10183 = vmatprep.subr.bf16.mxu0 %v16229_v40  ;;  %11208 = vmatprep.subr.bf16.mxu1 %v16232_v31  ;;  %v18134_v40 = vld [vmem:[%s18278_s0 + $0x60] sm:$0xff]  ;;  %v13124_v31 = vcombine.low %v18125_v37, %v18125_v37 }
 0x331   :  { %10213 = vmatprep.mubr.bf16.mxu0 %v13125_v41  ;;  %11238 = vmatprep.mubr.bf16.mxu1 %v13125_v41  ;;  %v16319_v41 = vld [vmem:[#allocation2 + $0x1800] ss:$16 sps:$4 sm:$0xff]   ;;  %v16333_v37 = vld [vmem:[#allocation2 + $0x1844] ss:$16 sps:$4 sm:$0xff]  }
 0x333   :  { %10184 = vmatpush1.bf16.msra.mxu0 %v16227_v42  ;;  %11209 = vmatpush1.bf16.msra.mxu1 %v16230_v43  ;;  %v16322_v42 = vld [vmem:[#allocation2 + $0x1808] ss:$16 sps:$4 sm:$0xff]   ;;  %v16327_v43 = vld [vmem:[#allocation2 + $0x1824] ss:$16 sps:$4 sm:$0xff]  }
 0x334   :  { %10185 = vmatprep.subr.bf16.mxu0 %v16235_v34  ;;  %11210 = vmatprep.subr.bf16.mxu1 %v16238_v44  ;;  %v16330_v34 = vld [vmem:[#allocation2 + $0x182c] ss:$16 sps:$4 sm:$0xff]   ;;  %v13127_v44 = vcombine.high %v18134_v40, %v18134_v40 }
 0x337   :  { %10186 = vmatpush1.bf16.msra.mxu0 %v16233_v45  ;;  %11211 = vmatpush1.bf16.msra.mxu1 %v16236_v46  ;;  %v16325_v45 = vld [vmem:[#allocation2 + $0x1820] ss:$16 sps:$4 sm:$0xff]   ;;  %v16328_v46 = vld [vmem:[#allocation2 + $0x1828] ss:$16 sps:$4 sm:$0xff]  }
 0x338   :  { %10187 = vmatprep.subr.bf16.mxu0 %v16241_v47  ;;  %11212 = vmatprep.subr.bf16.mxu1 %v16244_v48  ;;  %v16336_v47 = vld [vmem:[#allocation2 + $0x184c] ss:$16 sps:$4 sm:$0xff]   ;;  %v16331_v48 = vld [vmem:[#allocation2 + $0x1840] ss:$16 sps:$4 sm:$0xff]  }
 0x33b   :  { %10188 = vmatpush1.bf16.msra.mxu0 %v16239_v49  ;;  %11213 = vmatpush1.bf16.msra.mxu1 %v16242_v50  ;;  %v16334_v49 = vld [vmem:[#allocation2 + $0x1848] ss:$16 sps:$4 sm:$0xff]   ;;  %v16339_v50 = vld [vmem:[#allocation2 + $0x1864] ss:$16 sps:$4 sm:$0xff]  }
 0x33c   :  { %10189 = vmatprep.subr.bf16.mxu0 %v16247_v51  ;;  %11214 = vmatprep.subr.bf16.mxu1 %v16250_v52  ;;  %v16342_v51 = vld [vmem:[#allocation2 + $0x186c] ss:$16 sps:$4 sm:$0xff]   ;;  %v16337_v52 = vld [vmem:[#allocation2 + $0x1860] ss:$16 sps:$4 sm:$0xff]  }
 0x33f   :  { %10190 = vmatpush1.bf16.msra.mxu0 %v16245_v53  ;;  %11215 = vmatpush1.bf16.msra.mxu1 %v16248_v54  ;;  %v16340_v53 = vld [vmem:[#allocation2 + $0x1868] ss:$16 sps:$4 sm:$0xff]   ;;  %v16345_v54 = vld [vmem:[#allocation2 + $0x1884] ss:$16 sps:$4 sm:$0xff]  }
 0x340   :  { %10191 = vmatprep.subr.bf16.mxu0 %v16253_v55  ;;  %11216 = vmatprep.subr.bf16.mxu1 %v16256_v56  ;;  %v16348_v55 = vld [vmem:[#allocation2 + $0x188c] ss:$16 sps:$4 sm:$0xff]   ;;  %v16343_v56 = vld [vmem:[#allocation2 + $0x1880] ss:$16 sps:$4 sm:$0xff]  }
 0x343   :  { %10192 = vmatpush1.bf16.msra.mxu0 %v16251_v57  ;;  %11217 = vmatpush1.bf16.msra.mxu1 %v16254_v58  ;;  %v16346_v57 = vld [vmem:[#allocation2 + $0x1888] ss:$16 sps:$4 sm:$0xff]   ;;  %v16351_v58 = vld [vmem:[#allocation2 + $0x18a4] ss:$16 sps:$4 sm:$0xff]  }
 0x344   :  { %10193 = vmatprep.subr.bf16.mxu0 %v16259_v59  ;;  %11218 = vmatprep.subr.bf16.mxu1 %v16262_v60  ;;  %v16354_v59 = vld [vmem:[#allocation2 + $0x18ac] ss:$16 sps:$4 sm:$0xff]   ;;  %v16349_v60 = vld [vmem:[#allocation2 + $0x18a0] ss:$16 sps:$4 sm:$0xff]  }
 0x347   :  { %10194 = vmatpush1.bf16.msra.mxu0 %v16257_v61  ;;  %11219 = vmatpush1.bf16.msra.mxu1 %v16260_v62  ;;  %v16352_v61 = vld [vmem:[#allocation2 + $0x18a8] ss:$16 sps:$4 sm:$0xff]   ;;  %v16357_v62 = vld [vmem:[#allocation2 + $0x18c4] ss:$16 sps:$4 sm:$0xff]  }
 0x348   :  { %10195 = vmatprep.subr.bf16.mxu0 %v16265_v63  ;;  %11220 = vmatprep.subr.bf16.mxu1 %v16268_v0  ;;  %v16360_v63 = vld [vmem:[#allocation2 + $0x18cc] ss:$16 sps:$4 sm:$0xff]   ;;  %v16355_v0 = vld [vmem:[#allocation2 + $0x18c0] ss:$16 sps:$4 sm:$0xff]  }
 0x34b   :  { %10196 = vmatpush1.bf16.msra.mxu0 %v16263_v1  ;;  %11221 = vmatpush1.bf16.msra.mxu1 %v16266_v2  ;;  %v16358_v1 = vld [vmem:[#allocation2 + $0x18c8] ss:$16 sps:$4 sm:$0xff]   ;;  %v16363_v2 = vld [vmem:[#allocation2 + $0x18e4] ss:$16 sps:$4 sm:$0xff]  }
 0x34c   :  { %10197 = vmatprep.subr.bf16.mxu0 %v16271_v3  ;;  %11222 = vmatprep.subr.bf16.mxu1 %v16274_v4  ;;  %v16366_v3 = vld [vmem:[#allocation2 + $0x18ec] ss:$16 sps:$4 sm:$0xff]   ;;  %v16361_v4 = vld [vmem:[#allocation2 + $0x18e0] ss:$16 sps:$4 sm:$0xff]  }
 0x34f   :  { %10198 = vmatpush1.bf16.msra.mxu0 %v16269_v5  ;;  %11223 = vmatpush1.bf16.msra.mxu1 %v16272_v6  ;;  %v16364_v5 = vld [vmem:[#allocation2 + $0x18e8] ss:$16 sps:$4 sm:$0xff]   ;;  %v16369_v6 = vld [vmem:[#allocation2 + $0x1904] ss:$16 sps:$4 sm:$0xff]  }
 0x350   :  { %10199 = vmatprep.subr.bf16.mxu0 %v16277_v7  ;;  %11224 = vmatprep.subr.bf16.mxu1 %v16280_v8  ;;  %v16372_v7 = vld [vmem:[#allocation2 + $0x190c] ss:$16 sps:$4 sm:$0xff]   ;;  %v16367_v8 = vld [vmem:[#allocation2 + $0x1900] ss:$16 sps:$4 sm:$0xff]  }
 0x353   :  { %10200 = vmatpush1.bf16.msra.mxu0 %v16275_v9  ;;  %11225 = vmatpush1.bf16.msra.mxu1 %v16278_v10  ;;  %v16370_v9 = vld [vmem:[#allocation2 + $0x1908] ss:$16 sps:$4 sm:$0xff]   ;;  %v16375_v10 = vld [vmem:[#allocation2 + $0x1924] ss:$16 sps:$4 sm:$0xff]  }
 0x354   :  { %10201 = vmatprep.subr.bf16.mxu0 %v16283_v12  ;;  %11226 = vmatprep.subr.bf16.mxu1 %v16286_v13  ;;  %v16378_v12 = vld [vmem:[#allocation2 + $0x192c] ss:$16 sps:$4 sm:$0xff]   ;;  %v16373_v13 = vld [vmem:[#allocation2 + $0x1920] ss:$16 sps:$4 sm:$0xff]  }
 0x357   :  { %10202 = vmatpush1.bf16.msra.mxu0 %v16281_v15  ;;  %11227 = vmatpush1.bf16.msra.mxu1 %v16284_v16  ;;  %v16376_v15 = vld [vmem:[#allocation2 + $0x1928] ss:$16 sps:$4 sm:$0xff]   ;;  %v16381_v16 = vld [vmem:[#allocation2 + $0x1944] ss:$16 sps:$4 sm:$0xff]  }
 0x358   :  { %10203 = vmatprep.subr.bf16.mxu0 %v16289_v18  ;;  %11228 = vmatprep.subr.bf16.mxu1 %v16292_v11  ;;  %v16384_v18 = vld [vmem:[#allocation2 + $0x194c] ss:$16 sps:$4 sm:$0xff]   ;;  %v16379_v11 = vld [vmem:[#allocation2 + $0x1940] ss:$16 sps:$4 sm:$0xff]  }
 0x35b   :  { %10204 = vmatpush1.bf16.msra.mxu0 %v16287_v20  ;;  %11229 = vmatpush1.bf16.msra.mxu1 %v16290_v14  ;;  %v16382_v20 = vld [vmem:[#allocation2 + $0x1948] ss:$16 sps:$4 sm:$0xff]   ;;  %v16387_v14 = vld [vmem:[#allocation2 + $0x1964] ss:$16 sps:$4 sm:$0xff]  }
 0x35c   :  { %10205 = vmatprep.subr.bf16.mxu0 %v16295_v22  ;;  %11230 = vmatprep.subr.bf16.mxu1 %v16298_v23  ;;  %v16390_v22 = vld [vmem:[#allocation2 + $0x196c] ss:$16 sps:$4 sm:$0xff]   ;;  %v16385_v23 = vld [vmem:[#allocation2 + $0x1960] ss:$16 sps:$4 sm:$0xff]  }
 0x35f   :  { %10206 = vmatpush1.bf16.msra.mxu0 %v16293_v24  ;;  %11231 = vmatpush1.bf16.msra.mxu1 %v16296_v17  ;;  %v16388_v24 = vld [vmem:[#allocation2 + $0x1968] ss:$16 sps:$4 sm:$0xff]   ;;  %v16393_v17 = vld [vmem:[#allocation2 + $0x1984] ss:$16 sps:$4 sm:$0xff]  }
 0x360   :  { %10207 = vmatprep.subr.bf16.mxu0 %v16301_v26  ;;  %11232 = vmatprep.subr.bf16.mxu1 %v16304_v27  ;;  %v16396_v26 = vld [vmem:[#allocation2 + $0x198c] ss:$16 sps:$4 sm:$0xff]   ;;  %v16391_v27 = vld [vmem:[#allocation2 + $0x1980] ss:$16 sps:$4 sm:$0xff]  }
 0x363   :  { %10208 = vmatpush1.bf16.msra.mxu0 %v16299_v19  ;;  %11233 = vmatpush1.bf16.msra.mxu1 %v16302_v29  ;;  %v16394_v19 = vld [vmem:[#allocation2 + $0x1988] ss:$16 sps:$4 sm:$0xff]   ;;  %v16399_v29 = vld [vmem:[#allocation2 + $0x19a4] ss:$16 sps:$4 sm:$0xff]  }
 0x364   :  { %10209 = vmatprep.subr.bf16.mxu0 %v16307_v30  ;;  %11234 = vmatprep.subr.bf16.mxu1 %v16310_v21  ;;  %v16402_v30 = vld [vmem:[#allocation2 + $0x19ac] ss:$16 sps:$4 sm:$0xff]   ;;  %v16397_v21 = vld [vmem:[#allocation2 + $0x19a0] ss:$16 sps:$4 sm:$0xff]  }
 0x367   :  { %10210 = vmatpush1.bf16.msra.mxu0 %v16305_v32  ;;  %11235 = vmatpush1.bf16.msra.mxu1 %v16308_v33  ;;  %v16400_v32 = vld [vmem:[#allocation2 + $0x19a8] ss:$16 sps:$4 sm:$0xff]   ;;  %v16405_v33 = vld [vmem:[#allocation2 + $0x19c4] ss:$16 sps:$4 sm:$0xff]  }
 0x368   :  { %10211 = vmatprep.subr.bf16.mxu0 %v16313_v25  ;;  %11236 = vmatprep.subr.bf16.mxu1 %v16316_v35  ;;  %v16408_v25 = vld [vmem:[#allocation2 + $0x19cc] ss:$16 sps:$4 sm:$0xff]   ;;  %v16403_v35 = vld [vmem:[#allocation2 + $0x19c0] ss:$16 sps:$4 sm:$0xff]  }
 0x36b   :  { %10212 = vmatpush1.bf16.msra.mxu0 %v16311_v36  ;;  %11237 = vmatpush1.bf16.msra.mxu1 %v16314_v28  ;;  %v16406_v36 = vld [vmem:[#allocation2 + $0x19c8] ss:$16 sps:$4 sm:$0xff]   ;;  %v16411_v28 = vld [vmem:[#allocation2 + $0x19e4] ss:$16 sps:$4 sm:$0xff]  }
 0x36c   :  { %10222 = vmatprep.subr.bf16.mxu0 %v16321_v38  ;;  %11247 = vmatprep.subr.bf16.mxu1 %v16324_v39  ;;  %v16414_v38 = vld [vmem:[#allocation2 + $0x19ec] ss:$16 sps:$4 sm:$0xff]   ;;  %v16409_v39 = vld [vmem:[#allocation2 + $0x19e0] ss:$16 sps:$4 sm:$0xff]  }
 0x36e   :  { %10214 = vmatmul.mubr.bf16.vlgmr.msra.gmra.mrb[0].mxu0 %v13124_v31  ;;  %11239 = vmatmul.mubr.bf16.vlgmr.msra.gmra.mrb[0].mxu1 %v13124_v31  ;;  %v16412_v31 = vld [vmem:[#allocation2 + $0x19e8] ss:$16 sps:$4 sm:$0xff]  }
 0x36f   :  { %10223 = vmatpush1.bf16.msra.mxu0 %v16319_v41  ;;  %11248 = vmatpush1.bf16.msra.mxu1 %v16322_v42  ;;  %v16419_v41 = vld [vmem:[#allocation2 + $0x1a04] ss:$16 sps:$4 sm:$0xff]   ;;  %v16422_v42 = vld [vmem:[#allocation2 + $0x1a0c] ss:$16 sps:$4 sm:$0xff]  }
 0x370   :  { %10224 = vmatprep.subr.bf16.mxu0 %v16327_v43  ;;  %11249 = vmatprep.subr.bf16.mxu1 %v16330_v34  ;;  %v18143_v43 = vld [vmem:[%s18278_s0 + $0x68] sm:$0xff]  ;;  %v13126_v34 = vcombine.low %v18134_v40, %v18134_v40  ;;  %v16431_v40 = vld [vmem:[#allocation2 + $0x1a44] ss:$16 sps:$4 sm:$0xff]  }
 0x371   :  { %10254 = vmatprep.mubr.bf16.mxu0 %v13127_v44  ;;  %11279 = vmatprep.mubr.bf16.mxu1 %v13127_v44  ;;  %v16417_v44 = vld [vmem:[#allocation2 + $0x1a00] ss:$16 sps:$4 sm:$0xff]  }
 0x373   :  { %10225 = vmatpush1.bf16.msra.mxu0 %v16325_v45  ;;  %11250 = vmatpush1.bf16.msra.mxu1 %v16328_v46  ;;  %v16420_v45 = vld [vmem:[#allocation2 + $0x1a08] ss:$16 sps:$4 sm:$0xff]   ;;  %v16425_v46 = vld [vmem:[#allocation2 + $0x1a24] ss:$16 sps:$4 sm:$0xff]  }
 0x374   :  { %10226 = vmatprep.subr.bf16.mxu0 %v16333_v37  ;;  %11251 = vmatprep.subr.bf16.mxu1 %v16336_v47  ;;  %v16428_v37 = vld [vmem:[#allocation2 + $0x1a2c] ss:$16 sps:$4 sm:$0xff]   ;;  %v13129_v47 = vcombine.high %v18143_v43, %v18143_v43 }
 0x377   :  { %10227 = vmatpush1.bf16.msra.mxu0 %v16331_v48  ;;  %11252 = vmatpush1.bf16.msra.mxu1 %v16334_v49  ;;  %v16423_v48 = vld [vmem:[#allocation2 + $0x1a20] ss:$16 sps:$4 sm:$0xff]   ;;  %v16426_v49 = vld [vmem:[#allocation2 + $0x1a28] ss:$16 sps:$4 sm:$0xff]  }
 0x378   :  { %10228 = vmatprep.subr.bf16.mxu0 %v16339_v50  ;;  %11253 = vmatprep.subr.bf16.mxu1 %v16342_v51  ;;  %v16434_v50 = vld [vmem:[#allocation2 + $0x1a4c] ss:$16 sps:$4 sm:$0xff]   ;;  %v16429_v51 = vld [vmem:[#allocation2 + $0x1a40] ss:$16 sps:$4 sm:$0xff]  }
 0x37b   :  { %10229 = vmatpush1.bf16.msra.mxu0 %v16337_v52  ;;  %11254 = vmatpush1.bf16.msra.mxu1 %v16340_v53  ;;  %v16432_v52 = vld [vmem:[#allocation2 + $0x1a48] ss:$16 sps:$4 sm:$0xff]   ;;  %v16437_v53 = vld [vmem:[#allocation2 + $0x1a64] ss:$16 sps:$4 sm:$0xff]  }
 0x37c   :  { %10230 = vmatprep.subr.bf16.mxu0 %v16345_v54  ;;  %11255 = vmatprep.subr.bf16.mxu1 %v16348_v55  ;;  %v16440_v54 = vld [vmem:[#allocation2 + $0x1a6c] ss:$16 sps:$4 sm:$0xff]   ;;  %v16435_v55 = vld [vmem:[#allocation2 + $0x1a60] ss:$16 sps:$4 sm:$0xff]  }
 0x37f   :  { %10231 = vmatpush1.bf16.msra.mxu0 %v16343_v56  ;;  %11256 = vmatpush1.bf16.msra.mxu1 %v16346_v57  ;;  %v16438_v56 = vld [vmem:[#allocation2 + $0x1a68] ss:$16 sps:$4 sm:$0xff]   ;;  %v16443_v57 = vld [vmem:[#allocation2 + $0x1a84] ss:$16 sps:$4 sm:$0xff]  }
 0x380   :  { %10232 = vmatprep.subr.bf16.mxu0 %v16351_v58  ;;  %11257 = vmatprep.subr.bf16.mxu1 %v16354_v59  ;;  %v16446_v58 = vld [vmem:[#allocation2 + $0x1a8c] ss:$16 sps:$4 sm:$0xff]   ;;  %v16441_v59 = vld [vmem:[#allocation2 + $0x1a80] ss:$16 sps:$4 sm:$0xff]  }
 0x383   :  { %10233 = vmatpush1.bf16.msra.mxu0 %v16349_v60  ;;  %11258 = vmatpush1.bf16.msra.mxu1 %v16352_v61  ;;  %v16444_v60 = vld [vmem:[#allocation2 + $0x1a88] ss:$16 sps:$4 sm:$0xff]   ;;  %v16449_v61 = vld [vmem:[#allocation2 + $0x1aa4] ss:$16 sps:$4 sm:$0xff]  }
 0x384   :  { %10234 = vmatprep.subr.bf16.mxu0 %v16357_v62  ;;  %11259 = vmatprep.subr.bf16.mxu1 %v16360_v63  ;;  %v16452_v62 = vld [vmem:[#allocation2 + $0x1aac] ss:$16 sps:$4 sm:$0xff]   ;;  %v16447_v63 = vld [vmem:[#allocation2 + $0x1aa0] ss:$16 sps:$4 sm:$0xff]  }
 0x387   :  { %10235 = vmatpush1.bf16.msra.mxu0 %v16355_v0  ;;  %11260 = vmatpush1.bf16.msra.mxu1 %v16358_v1  ;;  %v16450_v0 = vld [vmem:[#allocation2 + $0x1aa8] ss:$16 sps:$4 sm:$0xff]   ;;  %v16455_v1 = vld [vmem:[#allocation2 + $0x1ac4] ss:$16 sps:$4 sm:$0xff]  }
 0x388   :  { %10236 = vmatprep.subr.bf16.mxu0 %v16363_v2  ;;  %11261 = vmatprep.subr.bf16.mxu1 %v16366_v3  ;;  %v16458_v2 = vld [vmem:[#allocation2 + $0x1acc] ss:$16 sps:$4 sm:$0xff]   ;;  %v16453_v3 = vld [vmem:[#allocation2 + $0x1ac0] ss:$16 sps:$4 sm:$0xff]  }
 0x38b   :  { %10237 = vmatpush1.bf16.msra.mxu0 %v16361_v4  ;;  %11262 = vmatpush1.bf16.msra.mxu1 %v16364_v5  ;;  %v16456_v4 = vld [vmem:[#allocation2 + $0x1ac8] ss:$16 sps:$4 sm:$0xff]   ;;  %v16461_v5 = vld [vmem:[#allocation2 + $0x1ae4] ss:$16 sps:$4 sm:$0xff]  }
 0x38c   :  { %10238 = vmatprep.subr.bf16.mxu0 %v16369_v6  ;;  %11263 = vmatprep.subr.bf16.mxu1 %v16372_v7  ;;  %v16464_v6 = vld [vmem:[#allocation2 + $0x1aec] ss:$16 sps:$4 sm:$0xff]   ;;  %v16459_v7 = vld [vmem:[#allocation2 + $0x1ae0] ss:$16 sps:$4 sm:$0xff]  }
 0x38f   :  { %10239 = vmatpush1.bf16.msra.mxu0 %v16367_v8  ;;  %11264 = vmatpush1.bf16.msra.mxu1 %v16370_v9  ;;  %v16462_v8 = vld [vmem:[#allocation2 + $0x1ae8] ss:$16 sps:$4 sm:$0xff]   ;;  %v16467_v9 = vld [vmem:[#allocation2 + $0x1b04] ss:$16 sps:$4 sm:$0xff]  }
 0x390   :  { %10240 = vmatprep.subr.bf16.mxu0 %v16375_v10  ;;  %11265 = vmatprep.subr.bf16.mxu1 %v16378_v12  ;;  %v16470_v10 = vld [vmem:[#allocation2 + $0x1b0c] ss:$16 sps:$4 sm:$0xff]   ;;  %v16465_v12 = vld [vmem:[#allocation2 + $0x1b00] ss:$16 sps:$4 sm:$0xff]  }
 0x393   :  { %10241 = vmatpush1.bf16.msra.mxu0 %v16373_v13  ;;  %11266 = vmatpush1.bf16.msra.mxu1 %v16376_v15  ;;  %v16468_v13 = vld [vmem:[#allocation2 + $0x1b08] ss:$16 sps:$4 sm:$0xff]   ;;  %v16473_v15 = vld [vmem:[#allocation2 + $0x1b24] ss:$16 sps:$4 sm:$0xff]  }
 0x394   :  { %10242 = vmatprep.subr.bf16.mxu0 %v16381_v16  ;;  %11267 = vmatprep.subr.bf16.mxu1 %v16384_v18  ;;  %v16476_v16 = vld [vmem:[#allocation2 + $0x1b2c] ss:$16 sps:$4 sm:$0xff]   ;;  %v16471_v18 = vld [vmem:[#allocation2 + $0x1b20] ss:$16 sps:$4 sm:$0xff]  }
 0x397   :  { %10243 = vmatpush1.bf16.msra.mxu0 %v16379_v11  ;;  %11268 = vmatpush1.bf16.msra.mxu1 %v16382_v20  ;;  %v16474_v11 = vld [vmem:[#allocation2 + $0x1b28] ss:$16 sps:$4 sm:$0xff]   ;;  %v16479_v20 = vld [vmem:[#allocation2 + $0x1b44] ss:$16 sps:$4 sm:$0xff]  }
 0x398   :  { %10244 = vmatprep.subr.bf16.mxu0 %v16387_v14  ;;  %11269 = vmatprep.subr.bf16.mxu1 %v16390_v22  ;;  %v16482_v14 = vld [vmem:[#allocation2 + $0x1b4c] ss:$16 sps:$4 sm:$0xff]   ;;  %v16477_v22 = vld [vmem:[#allocation2 + $0x1b40] ss:$16 sps:$4 sm:$0xff]  }
 0x39b   :  { %10245 = vmatpush1.bf16.msra.mxu0 %v16385_v23  ;;  %11270 = vmatpush1.bf16.msra.mxu1 %v16388_v24  ;;  %v16480_v23 = vld [vmem:[#allocation2 + $0x1b48] ss:$16 sps:$4 sm:$0xff]   ;;  %v16485_v24 = vld [vmem:[#allocation2 + $0x1b64] ss:$16 sps:$4 sm:$0xff]  }
 0x39c   :  { %10246 = vmatprep.subr.bf16.mxu0 %v16393_v17  ;;  %11271 = vmatprep.subr.bf16.mxu1 %v16396_v26  ;;  %v16488_v17 = vld [vmem:[#allocation2 + $0x1b6c] ss:$16 sps:$4 sm:$0xff]   ;;  %v16483_v26 = vld [vmem:[#allocation2 + $0x1b60] ss:$16 sps:$4 sm:$0xff]  }
 0x39f   :  { %10247 = vmatpush1.bf16.msra.mxu0 %v16391_v27  ;;  %11272 = vmatpush1.bf16.msra.mxu1 %v16394_v19  ;;  %v16486_v27 = vld [vmem:[#allocation2 + $0x1b68] ss:$16 sps:$4 sm:$0xff]   ;;  %v16491_v19 = vld [vmem:[#allocation2 + $0x1b84] ss:$16 sps:$4 sm:$0xff]  }
 0x3a0   :  { %10248 = vmatprep.subr.bf16.mxu0 %v16399_v29  ;;  %11273 = vmatprep.subr.bf16.mxu1 %v16402_v30  ;;  %v16494_v29 = vld [vmem:[#allocation2 + $0x1b8c] ss:$16 sps:$4 sm:$0xff]   ;;  %v16489_v30 = vld [vmem:[#allocation2 + $0x1b80] ss:$16 sps:$4 sm:$0xff]  }
 0x3a3   :  { %10249 = vmatpush1.bf16.msra.mxu0 %v16397_v21  ;;  %11274 = vmatpush1.bf16.msra.mxu1 %v16400_v32  ;;  %v16492_v21 = vld [vmem:[#allocation2 + $0x1b88] ss:$16 sps:$4 sm:$0xff]   ;;  %v16497_v32 = vld [vmem:[#allocation2 + $0x1ba4] ss:$16 sps:$4 sm:$0xff]  }
 0x3a4   :  { %10250 = vmatprep.subr.bf16.mxu0 %v16405_v33  ;;  %11275 = vmatprep.subr.bf16.mxu1 %v16408_v25  ;;  %v16500_v33 = vld [vmem:[#allocation2 + $0x1bac] ss:$16 sps:$4 sm:$0xff]   ;;  %v16495_v25 = vld [vmem:[#allocation2 + $0x1ba0] ss:$16 sps:$4 sm:$0xff]  }
 0x3a7   :  { %10251 = vmatpush1.bf16.msra.mxu0 %v16403_v35  ;;  %11276 = vmatpush1.bf16.msra.mxu1 %v16406_v36  ;;  %v16498_v35 = vld [vmem:[#allocation2 + $0x1ba8] ss:$16 sps:$4 sm:$0xff]   ;;  %v16503_v36 = vld [vmem:[#allocation2 + $0x1bc4] ss:$16 sps:$4 sm:$0xff]  }
 0x3a8   :  { %10252 = vmatprep.subr.bf16.mxu0 %v16411_v28  ;;  %11277 = vmatprep.subr.bf16.mxu1 %v16414_v38  ;;  %v16506_v28 = vld [vmem:[#allocation2 + $0x1bcc] ss:$16 sps:$4 sm:$0xff]   ;;  %v16501_v38 = vld [vmem:[#allocation2 + $0x1bc0] ss:$16 sps:$4 sm:$0xff]  }
 0x3ab   :  { %10253 = vmatpush1.bf16.msra.mxu0 %v16409_v39  ;;  %11278 = vmatpush1.bf16.msra.mxu1 %v16412_v31  ;;  %v16504_v39 = vld [vmem:[#allocation2 + $0x1bc8] ss:$16 sps:$4 sm:$0xff]   ;;  %v16509_v31 = vld [vmem:[#allocation2 + $0x1be4] ss:$16 sps:$4 sm:$0xff]  }
 0x3ac   :  { %10263 = vmatprep.subr.bf16.mxu0 %v16419_v41  ;;  %11288 = vmatprep.subr.bf16.mxu1 %v16422_v42  ;;  %v16512_v41 = vld [vmem:[#allocation2 + $0x1bec] ss:$16 sps:$4 sm:$0xff]   ;;  %v16507_v42 = vld [vmem:[#allocation2 + $0x1be0] ss:$16 sps:$4 sm:$0xff]  }
 0x3ae   :  { %10255 = vmatmul.mubr.bf16.vlgmr.msra.gmra.mrb[0].mxu0 %v13126_v34  ;;  %11280 = vmatmul.mubr.bf16.vlgmr.msra.gmra.mrb[0].mxu1 %v13126_v34  ;;  %v16510_v34 = vld [vmem:[#allocation2 + $0x1be8] ss:$16 sps:$4 sm:$0xff]  }
 0x3af   :  { %10264 = vmatpush1.bf16.msra.mxu0 %v16417_v44  ;;  %11289 = vmatpush1.bf16.msra.mxu1 %v16420_v45  ;;  %v16517_v44 = vld [vmem:[#allocation2 + $0x1c04] ss:$16 sps:$4 sm:$0xff]   ;;  %v16520_v45 = vld [vmem:[#allocation2 + $0x1c0c] ss:$16 sps:$4 sm:$0xff]  }
 0x3b0   :  { %10265 = vmatprep.subr.bf16.mxu0 %v16425_v46  ;;  %11290 = vmatprep.subr.bf16.mxu1 %v16428_v37  ;;  %v18152_v46 = vld [vmem:[%s18278_s0 + $0x70] sm:$0xff]  ;;  %v13128_v37 = vcombine.low %v18143_v43, %v18143_v43 }
 0x3b1   :  { %10295 = vmatprep.mubr.bf16.mxu0 %v13129_v47  ;;  %11320 = vmatprep.mubr.bf16.mxu1 %v13129_v47  ;;  %v16515_v47 = vld [vmem:[#allocation2 + $0x1c00] ss:$16 sps:$4 sm:$0xff]   ;;  %v16529_v43 = vld [vmem:[#allocation2 + $0x1c44] ss:$16 sps:$4 sm:$0xff]  }
 0x3b3   :  { %10266 = vmatpush1.bf16.msra.mxu0 %v16423_v48  ;;  %11291 = vmatpush1.bf16.msra.mxu1 %v16426_v49  ;;  %v16518_v48 = vld [vmem:[#allocation2 + $0x1c08] ss:$16 sps:$4 sm:$0xff]   ;;  %v16523_v49 = vld [vmem:[#allocation2 + $0x1c24] ss:$16 sps:$4 sm:$0xff]  }
 0x3b4   :  { %10267 = vmatprep.subr.bf16.mxu0 %v16431_v40  ;;  %11292 = vmatprep.subr.bf16.mxu1 %v16434_v50  ;;  %v16526_v40 = vld [vmem:[#allocation2 + $0x1c2c] ss:$16 sps:$4 sm:$0xff]   ;;  %v13131_v50 = vcombine.high %v18152_v46, %v18152_v46 }
 0x3b7   :  { %10268 = vmatpush1.bf16.msra.mxu0 %v16429_v51  ;;  %11293 = vmatpush1.bf16.msra.mxu1 %v16432_v52  ;;  %v16521_v51 = vld [vmem:[#allocation2 + $0x1c20] ss:$16 sps:$4 sm:$0xff]   ;;  %v16524_v52 = vld [vmem:[#allocation2 + $0x1c28] ss:$16 sps:$4 sm:$0xff]  }
 0x3b8   :  { %10269 = vmatprep.subr.bf16.mxu0 %v16437_v53  ;;  %11294 = vmatprep.subr.bf16.mxu1 %v16440_v54  ;;  %v16532_v53 = vld [vmem:[#allocation2 + $0x1c4c] ss:$16 sps:$4 sm:$0xff]   ;;  %v16527_v54 = vld [vmem:[#allocation2 + $0x1c40] ss:$16 sps:$4 sm:$0xff]  }
 0x3bb   :  { %10270 = vmatpush1.bf16.msra.mxu0 %v16435_v55  ;;  %11295 = vmatpush1.bf16.msra.mxu1 %v16438_v56  ;;  %v16530_v55 = vld [vmem:[#allocation2 + $0x1c48] ss:$16 sps:$4 sm:$0xff]   ;;  %v16535_v56 = vld [vmem:[#allocation2 + $0x1c64] ss:$16 sps:$4 sm:$0xff]  }
 0x3bc   :  { %10271 = vmatprep.subr.bf16.mxu0 %v16443_v57  ;;  %11296 = vmatprep.subr.bf16.mxu1 %v16446_v58  ;;  %v16538_v57 = vld [vmem:[#allocation2 + $0x1c6c] ss:$16 sps:$4 sm:$0xff]   ;;  %v16533_v58 = vld [vmem:[#allocation2 + $0x1c60] ss:$16 sps:$4 sm:$0xff]  }
 0x3bf   :  { %10272 = vmatpush1.bf16.msra.mxu0 %v16441_v59  ;;  %11297 = vmatpush1.bf16.msra.mxu1 %v16444_v60  ;;  %v16536_v59 = vld [vmem:[#allocation2 + $0x1c68] ss:$16 sps:$4 sm:$0xff]   ;;  %v16541_v60 = vld [vmem:[#allocation2 + $0x1c84] ss:$16 sps:$4 sm:$0xff]  }
 0x3c0   :  { %10273 = vmatprep.subr.bf16.mxu0 %v16449_v61  ;;  %11298 = vmatprep.subr.bf16.mxu1 %v16452_v62  ;;  %v16544_v61 = vld [vmem:[#allocation2 + $0x1c8c] ss:$16 sps:$4 sm:$0xff]   ;;  %v16539_v62 = vld [vmem:[#allocation2 + $0x1c80] ss:$16 sps:$4 sm:$0xff]  }
 0x3c3   :  { %10274 = vmatpush1.bf16.msra.mxu0 %v16447_v63  ;;  %11299 = vmatpush1.bf16.msra.mxu1 %v16450_v0  ;;  %v16542_v63 = vld [vmem:[#allocation2 + $0x1c88] ss:$16 sps:$4 sm:$0xff]   ;;  %v16547_v0 = vld [vmem:[#allocation2 + $0x1ca4] ss:$16 sps:$4 sm:$0xff]  }
 0x3c4   :  { %10275 = vmatprep.subr.bf16.mxu0 %v16455_v1  ;;  %11300 = vmatprep.subr.bf16.mxu1 %v16458_v2  ;;  %v16550_v1 = vld [vmem:[#allocation2 + $0x1cac] ss:$16 sps:$4 sm:$0xff]   ;;  %v16545_v2 = vld [vmem:[#allocation2 + $0x1ca0] ss:$16 sps:$4 sm:$0xff]  }
 0x3c7   :  { %10276 = vmatpush1.bf16.msra.mxu0 %v16453_v3  ;;  %11301 = vmatpush1.bf16.msra.mxu1 %v16456_v4  ;;  %v16548_v3 = vld [vmem:[#allocation2 + $0x1ca8] ss:$16 sps:$4 sm:$0xff]   ;;  %v16553_v4 = vld [vmem:[#allocation2 + $0x1cc4] ss:$16 sps:$4 sm:$0xff]  }
 0x3c8   :  { %10277 = vmatprep.subr.bf16.mxu0 %v16461_v5  ;;  %11302 = vmatprep.subr.bf16.mxu1 %v16464_v6  ;;  %v16556_v5 = vld [vmem:[#allocation2 + $0x1ccc] ss:$16 sps:$4 sm:$0xff]   ;;  %v16551_v6 = vld [vmem:[#allocation2 + $0x1cc0] ss:$16 sps:$4 sm:$0xff]  }
 0x3cb   :  { %10278 = vmatpush1.bf16.msra.mxu0 %v16459_v7  ;;  %11303 = vmatpush1.bf16.msra.mxu1 %v16462_v8  ;;  %v16554_v7 = vld [vmem:[#allocation2 + $0x1cc8] ss:$16 sps:$4 sm:$0xff]   ;;  %v16559_v8 = vld [vmem:[#allocation2 + $0x1ce4] ss:$16 sps:$4 sm:$0xff]  }
 0x3cc   :  { %10279 = vmatprep.subr.bf16.mxu0 %v16467_v9  ;;  %11304 = vmatprep.subr.bf16.mxu1 %v16470_v10  ;;  %v16562_v9 = vld [vmem:[#allocation2 + $0x1cec] ss:$16 sps:$4 sm:$0xff]   ;;  %v16557_v10 = vld [vmem:[#allocation2 + $0x1ce0] ss:$16 sps:$4 sm:$0xff]  }
 0x3cf   :  { %10280 = vmatpush1.bf16.msra.mxu0 %v16465_v12  ;;  %11305 = vmatpush1.bf16.msra.mxu1 %v16468_v13  ;;  %v16560_v12 = vld [vmem:[#allocation2 + $0x1ce8] ss:$16 sps:$4 sm:$0xff]   ;;  %v16565_v13 = vld [vmem:[#allocation2 + $0x1d04] ss:$16 sps:$4 sm:$0xff]  }
 0x3d0   :  { %10281 = vmatprep.subr.bf16.mxu0 %v16473_v15  ;;  %11306 = vmatprep.subr.bf16.mxu1 %v16476_v16  ;;  %v16568_v15 = vld [vmem:[#allocation2 + $0x1d0c] ss:$16 sps:$4 sm:$0xff]   ;;  %v16563_v16 = vld [vmem:[#allocation2 + $0x1d00] ss:$16 sps:$4 sm:$0xff]  }
 0x3d3   :  { %10282 = vmatpush1.bf16.msra.mxu0 %v16471_v18  ;;  %11307 = vmatpush1.bf16.msra.mxu1 %v16474_v11  ;;  %v16566_v18 = vld [vmem:[#allocation2 + $0x1d08] ss:$16 sps:$4 sm:$0xff]   ;;  %v16571_v11 = vld [vmem:[#allocation2 + $0x1d24] ss:$16 sps:$4 sm:$0xff]  }
 0x3d4   :  { %10283 = vmatprep.subr.bf16.mxu0 %v16479_v20  ;;  %11308 = vmatprep.subr.bf16.mxu1 %v16482_v14  ;;  %v16574_v20 = vld [vmem:[#allocation2 + $0x1d2c] ss:$16 sps:$4 sm:$0xff]   ;;  %v16569_v14 = vld [vmem:[#allocation2 + $0x1d20] ss:$16 sps:$4 sm:$0xff]  }
 0x3d7   :  { %10284 = vmatpush1.bf16.msra.mxu0 %v16477_v22  ;;  %11309 = vmatpush1.bf16.msra.mxu1 %v16480_v23  ;;  %v16572_v22 = vld [vmem:[#allocation2 + $0x1d28] ss:$16 sps:$4 sm:$0xff]   ;;  %v16577_v23 = vld [vmem:[#allocation2 + $0x1d44] ss:$16 sps:$4 sm:$0xff]  }
 0x3d8   :  { %10285 = vmatprep.subr.bf16.mxu0 %v16485_v24  ;;  %11310 = vmatprep.subr.bf16.mxu1 %v16488_v17  ;;  %v16580_v24 = vld [vmem:[#allocation2 + $0x1d4c] ss:$16 sps:$4 sm:$0xff]   ;;  %v16575_v17 = vld [vmem:[#allocation2 + $0x1d40] ss:$16 sps:$4 sm:$0xff]  }
 0x3db   :  { %10286 = vmatpush1.bf16.msra.mxu0 %v16483_v26  ;;  %11311 = vmatpush1.bf16.msra.mxu1 %v16486_v27  ;;  %v16578_v26 = vld [vmem:[#allocation2 + $0x1d48] ss:$16 sps:$4 sm:$0xff]   ;;  %v16583_v27 = vld [vmem:[#allocation2 + $0x1d64] ss:$16 sps:$4 sm:$0xff]  }
 0x3dc   :  { %10287 = vmatprep.subr.bf16.mxu0 %v16491_v19  ;;  %11312 = vmatprep.subr.bf16.mxu1 %v16494_v29  ;;  %v16586_v19 = vld [vmem:[#allocation2 + $0x1d6c] ss:$16 sps:$4 sm:$0xff]   ;;  %v16581_v29 = vld [vmem:[#allocation2 + $0x1d60] ss:$16 sps:$4 sm:$0xff]  }
 0x3df   :  { %10288 = vmatpush1.bf16.msra.mxu0 %v16489_v30  ;;  %11313 = vmatpush1.bf16.msra.mxu1 %v16492_v21  ;;  %v16584_v30 = vld [vmem:[#allocation2 + $0x1d68] ss:$16 sps:$4 sm:$0xff]   ;;  %v16589_v21 = vld [vmem:[#allocation2 + $0x1d84] ss:$16 sps:$4 sm:$0xff]  }
 0x3e0   :  { %10289 = vmatprep.subr.bf16.mxu0 %v16497_v32  ;;  %11314 = vmatprep.subr.bf16.mxu1 %v16500_v33  ;;  %v16592_v32 = vld [vmem:[#allocation2 + $0x1d8c] ss:$16 sps:$4 sm:$0xff]   ;;  %v16587_v33 = vld [vmem:[#allocation2 + $0x1d80] ss:$16 sps:$4 sm:$0xff]  }
 0x3e3   :  { %10290 = vmatpush1.bf16.msra.mxu0 %v16495_v25  ;;  %11315 = vmatpush1.bf16.msra.mxu1 %v16498_v35  ;;  %v16590_v25 = vld [vmem:[#allocation2 + $0x1d88] ss:$16 sps:$4 sm:$0xff]   ;;  %v16595_v35 = vld [vmem:[#allocation2 + $0x1da4] ss:$16 sps:$4 sm:$0xff]  }
 0x3e4   :  { %10291 = vmatprep.subr.bf16.mxu0 %v16503_v36  ;;  %11316 = vmatprep.subr.bf16.mxu1 %v16506_v28  ;;  %v16598_v36 = vld [vmem:[#allocation2 + $0x1dac] ss:$16 sps:$4 sm:$0xff]   ;;  %v16593_v28 = vld [vmem:[#allocation2 + $0x1da0] ss:$16 sps:$4 sm:$0xff]  }
 0x3e7   :  { %10292 = vmatpush1.bf16.msra.mxu0 %v16501_v38  ;;  %11317 = vmatpush1.bf16.msra.mxu1 %v16504_v39  ;;  %v16596_v38 = vld [vmem:[#allocation2 + $0x1da8] ss:$16 sps:$4 sm:$0xff]   ;;  %v16601_v39 = vld [vmem:[#allocation2 + $0x1dc4] ss:$16 sps:$4 sm:$0xff]  }
 0x3e8   :  { %10293 = vmatprep.subr.bf16.mxu0 %v16509_v31  ;;  %11318 = vmatprep.subr.bf16.mxu1 %v16512_v41  ;;  %v16604_v31 = vld [vmem:[#allocation2 + $0x1dcc] ss:$16 sps:$4 sm:$0xff]   ;;  %v16599_v41 = vld [vmem:[#allocation2 + $0x1dc0] ss:$16 sps:$4 sm:$0xff]  }
 0x3eb   :  { %10294 = vmatpush1.bf16.msra.mxu0 %v16507_v42  ;;  %11319 = vmatpush1.bf16.msra.mxu1 %v16510_v34  ;;  %v16602_v42 = vld [vmem:[#allocation2 + $0x1dc8] ss:$16 sps:$4 sm:$0xff]   ;;  %v16607_v34 = vld [vmem:[#allocation2 + $0x1de4] ss:$16 sps:$4 sm:$0xff]  }
 0x3ec   :  { %10304 = vmatprep.subr.bf16.mxu0 %v16517_v44  ;;  %11329 = vmatprep.subr.bf16.mxu1 %v16520_v45  ;;  %v16610_v44 = vld [vmem:[#allocation2 + $0x1dec] ss:$16 sps:$4 sm:$0xff]   ;;  %v16605_v45 = vld [vmem:[#allocation2 + $0x1de0] ss:$16 sps:$4 sm:$0xff]  }
 0x3ee   :  { %10296 = vmatmul.mubr.bf16.vlgmr.msra.gmra.mrb[0].mxu0 %v13128_v37  ;;  %11321 = vmatmul.mubr.bf16.vlgmr.msra.gmra.mrb[0].mxu1 %v13128_v37  ;;  %v16608_v37 = vld [vmem:[#allocation2 + $0x1de8] ss:$16 sps:$4 sm:$0xff]  }
 0x3ef   :  { %10305 = vmatpush1.bf16.msra.mxu0 %v16515_v47  ;;  %11330 = vmatpush1.bf16.msra.mxu1 %v16518_v48  ;;  %v16615_v47 = vld [vmem:[#allocation2 + $0x1e04] ss:$16 sps:$4 sm:$0xff]   ;;  %v16618_v48 = vld [vmem:[#allocation2 + $0x1e0c] ss:$16 sps:$4 sm:$0xff]  }
 0x3f0   :  { %10306 = vmatprep.subr.bf16.mxu0 %v16523_v49  ;;  %11331 = vmatprep.subr.bf16.mxu1 %v16526_v40  ;;  %v13130_v49 = vcombine.low %v18152_v46, %v18152_v46  ;;  %v18163_v40 = vld [vmem:[%s18278_s0 + $0x78] sm:$0xff]  ;;  %v16619_v46 = vld [vmem:[#allocation2 + $0x1e20] ss:$16 sps:$4 sm:$0xff]  }
 0x3f1   :  { %10336 = vmatprep.mubr.bf16.mxu0 %v13131_v50  ;;  %11361 = vmatprep.mubr.bf16.mxu1 %v13131_v50  ;;  %v16613_v50 = vld [vmem:[#allocation2 + $0x1e00] ss:$16 sps:$4 sm:$0xff]  }
 0x3f3   :  { %10307 = vmatpush1.bf16.msra.mxu0 %v16521_v51  ;;  %11332 = vmatpush1.bf16.msra.mxu1 %v16524_v52  ;;  %v16616_v51 = vld [vmem:[#allocation2 + $0x1e08] ss:$16 sps:$4 sm:$0xff]   ;;  %v16621_v52 = vld [vmem:[#allocation2 + $0x1e24] ss:$16 sps:$4 sm:$0xff]  }
 0x3f4   :  { %10308 = vmatprep.subr.bf16.mxu0 %v16529_v43  ;;  %11333 = vmatprep.subr.bf16.mxu1 %v16532_v53  ;;  %v16624_v43 = vld [vmem:[#allocation2 + $0x1e2c] ss:$16 sps:$4 sm:$0xff]   ;;  %v13133_v53 = vcombine.high %v18163_v40, %v18163_v40 }
 0x3f7   :  { %10309 = vmatpush1.bf16.msra.mxu0 %v16527_v54  ;;  %11334 = vmatpush1.bf16.msra.mxu1 %v16530_v55  ;;  %v16622_v54 = vld [vmem:[#allocation2 + $0x1e28] ss:$16 sps:$4 sm:$0xff]   ;;  %v16627_v55 = vld [vmem:[#allocation2 + $0x1e44] ss:$16 sps:$4 sm:$0xff]  }
 0x3f8   :  { %10310 = vmatprep.subr.bf16.mxu0 %v16535_v56  ;;  %11335 = vmatprep.subr.bf16.mxu1 %v16538_v57  ;;  %v16630_v56 = vld [vmem:[#allocation2 + $0x1e4c] ss:$16 sps:$4 sm:$0xff]   ;;  %v16625_v57 = vld [vmem:[#allocation2 + $0x1e40] ss:$16 sps:$4 sm:$0xff]  }
 0x3fb   :  { %10311 = vmatpush1.bf16.msra.mxu0 %v16533_v58  ;;  %11336 = vmatpush1.bf16.msra.mxu1 %v16536_v59  ;;  %v16628_v58 = vld [vmem:[#allocation2 + $0x1e48] ss:$16 sps:$4 sm:$0xff]   ;;  %v16633_v59 = vld [vmem:[#allocation2 + $0x1e64] ss:$16 sps:$4 sm:$0xff]  }
 0x3fc   :  { %10312 = vmatprep.subr.bf16.mxu0 %v16541_v60  ;;  %11337 = vmatprep.subr.bf16.mxu1 %v16544_v61  ;;  %v16636_v60 = vld [vmem:[#allocation2 + $0x1e6c] ss:$16 sps:$4 sm:$0xff]   ;;  %v16631_v61 = vld [vmem:[#allocation2 + $0x1e60] ss:$16 sps:$4 sm:$0xff]  }
 0x3ff   :  { %10313 = vmatpush1.bf16.msra.mxu0 %v16539_v62  ;;  %11338 = vmatpush1.bf16.msra.mxu1 %v16542_v63  ;;  %v16634_v62 = vld [vmem:[#allocation2 + $0x1e68] ss:$16 sps:$4 sm:$0xff]   ;;  %v16639_v63 = vld [vmem:[#allocation2 + $0x1e84] ss:$16 sps:$4 sm:$0xff]  }
 0x400   :  { %10314 = vmatprep.subr.bf16.mxu0 %v16547_v0  ;;  %11339 = vmatprep.subr.bf16.mxu1 %v16550_v1  ;;  %v16642_v0 = vld [vmem:[#allocation2 + $0x1e8c] ss:$16 sps:$4 sm:$0xff]   ;;  %v16637_v1 = vld [vmem:[#allocation2 + $0x1e80] ss:$16 sps:$4 sm:$0xff]  }
 0x403   :  { %10315 = vmatpush1.bf16.msra.mxu0 %v16545_v2  ;;  %11340 = vmatpush1.bf16.msra.mxu1 %v16548_v3  ;;  %v16640_v2 = vld [vmem:[#allocation2 + $0x1e88] ss:$16 sps:$4 sm:$0xff]   ;;  %v16645_v3 = vld [vmem:[#allocation2 + $0x1ea4] ss:$16 sps:$4 sm:$0xff]  }
 0x404   :  { %10316 = vmatprep.subr.bf16.mxu0 %v16553_v4  ;;  %11341 = vmatprep.subr.bf16.mxu1 %v16556_v5  ;;  %v16648_v4 = vld [vmem:[#allocation2 + $0x1eac] ss:$16 sps:$4 sm:$0xff]   ;;  %v16643_v5 = vld [vmem:[#allocation2 + $0x1ea0] ss:$16 sps:$4 sm:$0xff]  }
 0x407   :  { %10317 = vmatpush1.bf16.msra.mxu0 %v16551_v6  ;;  %11342 = vmatpush1.bf16.msra.mxu1 %v16554_v7  ;;  %v16646_v6 = vld [vmem:[#allocation2 + $0x1ea8] ss:$16 sps:$4 sm:$0xff]   ;;  %v16651_v7 = vld [vmem:[#allocation2 + $0x1ec4] ss:$16 sps:$4 sm:$0xff]  }
 0x408   :  { %10318 = vmatprep.subr.bf16.mxu0 %v16559_v8  ;;  %11343 = vmatprep.subr.bf16.mxu1 %v16562_v9  ;;  %v16654_v8 = vld [vmem:[#allocation2 + $0x1ecc] ss:$16 sps:$4 sm:$0xff]   ;;  %v16649_v9 = vld [vmem:[#allocation2 + $0x1ec0] ss:$16 sps:$4 sm:$0xff]  }
 0x40b   :  { %10319 = vmatpush1.bf16.msra.mxu0 %v16557_v10  ;;  %11344 = vmatpush1.bf16.msra.mxu1 %v16560_v12  ;;  %v16652_v10 = vld [vmem:[#allocation2 + $0x1ec8] ss:$16 sps:$4 sm:$0xff]   ;;  %v16657_v12 = vld [vmem:[#allocation2 + $0x1ee4] ss:$16 sps:$4 sm:$0xff]  }
 0x40c   :  { %10320 = vmatprep.subr.bf16.mxu0 %v16565_v13  ;;  %11345 = vmatprep.subr.bf16.mxu1 %v16568_v15  ;;  %v16660_v13 = vld [vmem:[#allocation2 + $0x1eec] ss:$16 sps:$4 sm:$0xff]   ;;  %v16655_v15 = vld [vmem:[#allocation2 + $0x1ee0] ss:$16 sps:$4 sm:$0xff]  }
 0x40f   :  { %10321 = vmatpush1.bf16.msra.mxu0 %v16563_v16  ;;  %11346 = vmatpush1.bf16.msra.mxu1 %v16566_v18  ;;  %v16658_v16 = vld [vmem:[#allocation2 + $0x1ee8] ss:$16 sps:$4 sm:$0xff]   ;;  %v16663_v18 = vld [vmem:[#allocation2 + $0x1f04] ss:$16 sps:$4 sm:$0xff]  }
 0x410   :  { %10322 = vmatprep.subr.bf16.mxu0 %v16571_v11  ;;  %11347 = vmatprep.subr.bf16.mxu1 %v16574_v20  ;;  %v16666_v11 = vld [vmem:[#allocation2 + $0x1f0c] ss:$16 sps:$4 sm:$0xff]   ;;  %v16661_v20 = vld [vmem:[#allocation2 + $0x1f00] ss:$16 sps:$4 sm:$0xff]  }
 0x413   :  { %10323 = vmatpush1.bf16.msra.mxu0 %v16569_v14  ;;  %11348 = vmatpush1.bf16.msra.mxu1 %v16572_v22  ;;  %v16664_v14 = vld [vmem:[#allocation2 + $0x1f08] ss:$16 sps:$4 sm:$0xff]   ;;  %v16669_v22 = vld [vmem:[#allocation2 + $0x1f24] ss:$16 sps:$4 sm:$0xff]  }
 0x414   :  { %10324 = vmatprep.subr.bf16.mxu0 %v16577_v23  ;;  %11349 = vmatprep.subr.bf16.mxu1 %v16580_v24  ;;  %v16672_v23 = vld [vmem:[#allocation2 + $0x1f2c] ss:$16 sps:$4 sm:$0xff]   ;;  %v16667_v24 = vld [vmem:[#allocation2 + $0x1f20] ss:$16 sps:$4 sm:$0xff]  }
 0x417   :  { %10325 = vmatpush1.bf16.msra.mxu0 %v16575_v17  ;;  %11350 = vmatpush1.bf16.msra.mxu1 %v16578_v26  ;;  %v16670_v17 = vld [vmem:[#allocation2 + $0x1f28] ss:$16 sps:$4 sm:$0xff]   ;;  %v16675_v26 = vld [vmem:[#allocation2 + $0x1f44] ss:$16 sps:$4 sm:$0xff]  }
 0x418   :  { %10326 = vmatprep.subr.bf16.mxu0 %v16583_v27  ;;  %11351 = vmatprep.subr.bf16.mxu1 %v16586_v19  ;;  %v16678_v27 = vld [vmem:[#allocation2 + $0x1f4c] ss:$16 sps:$4 sm:$0xff]   ;;  %v16673_v19 = vld [vmem:[#allocation2 + $0x1f40] ss:$16 sps:$4 sm:$0xff]  }
 0x41b   :  { %10327 = vmatpush1.bf16.msra.mxu0 %v16581_v29  ;;  %11352 = vmatpush1.bf16.msra.mxu1 %v16584_v30  ;;  %v16676_v29 = vld [vmem:[#allocation2 + $0x1f48] ss:$16 sps:$4 sm:$0xff]   ;;  %v16681_v30 = vld [vmem:[#allocation2 + $0x1f64] ss:$16 sps:$4 sm:$0xff]  }
 0x41c   :  { %10328 = vmatprep.subr.bf16.mxu0 %v16589_v21  ;;  %11353 = vmatprep.subr.bf16.mxu1 %v16592_v32  ;;  %v16684_v21 = vld [vmem:[#allocation2 + $0x1f6c] ss:$16 sps:$4 sm:$0xff]   ;;  %v16679_v32 = vld [vmem:[#allocation2 + $0x1f60] ss:$16 sps:$4 sm:$0xff]  }
 0x41f   :  { %10329 = vmatpush1.bf16.msra.mxu0 %v16587_v33  ;;  %11354 = vmatpush1.bf16.msra.mxu1 %v16590_v25  ;;  %v16682_v33 = vld [vmem:[#allocation2 + $0x1f68] ss:$16 sps:$4 sm:$0xff]   ;;  %v16687_v25 = vld [vmem:[#allocation2 + $0x1f84] ss:$16 sps:$4 sm:$0xff]  }
 0x420   :  { %10330 = vmatprep.subr.bf16.mxu0 %v16595_v35  ;;  %11355 = vmatprep.subr.bf16.mxu1 %v16598_v36  ;;  %v16690_v35 = vld [vmem:[#allocation2 + $0x1f8c] ss:$16 sps:$4 sm:$0xff]   ;;  %v16685_v36 = vld [vmem:[#allocation2 + $0x1f80] ss:$16 sps:$4 sm:$0xff]  }
 0x423   :  { %10331 = vmatpush1.bf16.msra.mxu0 %v16593_v28  ;;  %11356 = vmatpush1.bf16.msra.mxu1 %v16596_v38  ;;  %v16688_v28 = vld [vmem:[#allocation2 + $0x1f88] ss:$16 sps:$4 sm:$0xff]   ;;  %v16693_v38 = vld [vmem:[#allocation2 + $0x1fa4] ss:$16 sps:$4 sm:$0xff]  }
 0x424   :  { %10332 = vmatprep.subr.bf16.mxu0 %v16601_v39  ;;  %11357 = vmatprep.subr.bf16.mxu1 %v16604_v31  ;;  %v16696_v39 = vld [vmem:[#allocation2 + $0x1fac] ss:$16 sps:$4 sm:$0xff]   ;;  %v16691_v31 = vld [vmem:[#allocation2 + $0x1fa0] ss:$16 sps:$4 sm:$0xff]  }
 0x427   :  { %10333 = vmatpush1.bf16.msra.mxu0 %v16599_v41  ;;  %11358 = vmatpush1.bf16.msra.mxu1 %v16602_v42  ;;  %v16694_v41 = vld [vmem:[#allocation2 + $0x1fa8] ss:$16 sps:$4 sm:$0xff]   ;;  %v16699_v42 = vld [vmem:[#allocation2 + $0x1fc4] ss:$16 sps:$4 sm:$0xff]  }
 0x428   :  { %10334 = vmatprep.subr.bf16.mxu0 %v16607_v34  ;;  %11359 = vmatprep.subr.bf16.mxu1 %v16610_v44  ;;  %v16702_v34 = vld [vmem:[#allocation2 + $0x1fcc] ss:$16 sps:$4 sm:$0xff]   ;;  %v16697_v44 = vld [vmem:[#allocation2 + $0x1fc0] ss:$16 sps:$4 sm:$0xff]  }
 0x42b   :  { %10335 = vmatpush1.bf16.msra.mxu0 %v16605_v45  ;;  %11360 = vmatpush1.bf16.msra.mxu1 %v16608_v37  ;;  %v16700_v45 = vld [vmem:[#allocation2 + $0x1fc8] ss:$16 sps:$4 sm:$0xff]   ;;  %v16705_v37 = vld [vmem:[#allocation2 + $0x1fe4] ss:$16 sps:$4 sm:$0xff]  }
 0x42c   :  { %10345 = vmatprep.subr.bf16.mxu0 %v16615_v47  ;;  %11370 = vmatprep.subr.bf16.mxu1 %v16618_v48  ;;  %v16708_v47 = vld [vmem:[#allocation2 + $0x1fec] ss:$16 sps:$4 sm:$0xff]   ;;  %v16703_v48 = vld [vmem:[#allocation2 + $0x1fe0] ss:$16 sps:$4 sm:$0xff]  }
 0x42e   :  { %10337 = vmatmul.mubr.bf16.vlgmr.msra.gmra.mrb[0].mxu0 %v13130_v49  ;;  %11362 = vmatmul.mubr.bf16.vlgmr.msra.gmra.mrb[0].mxu1 %v13130_v49  ;;  %v16706_v49 = vld [vmem:[#allocation2 + $0x1fe8] ss:$16 sps:$4 sm:$0xff]  }
 0x42f   :  { %10346 = vmatpush1.bf16.msra.mxu0 %v16613_v50  ;;  %11371 = vmatpush1.bf16.msra.mxu1 %v16616_v51  ;;  %v16713_v50 = vld [vmem:[#allocation2 + $0x2004] ss:$16 sps:$4 sm:$0xff]   ;;  %v16716_v51 = vld [vmem:[#allocation2 + $0x200c] ss:$16 sps:$4 sm:$0xff]  }
 0x430   :  { %10347 = vmatprep.subr.bf16.mxu0 %v16621_v52  ;;  %11372 = vmatprep.subr.bf16.mxu1 %v16624_v43  ;;  %v13132_v52 = vcombine.low %v18163_v40, %v18163_v40  ;;  %v18172_v43 = vld [vmem:[%s18278_s0 + $0x80] sm:$0xff] }
 0x431   :  { %10377 = vmatprep.mubr.bf16.mxu0 %v13133_v53  ;;  %11402 = vmatprep.mubr.bf16.mxu1 %v13133_v53  ;;  %v16711_v53 = vld [vmem:[#allocation2 + $0x2000] ss:$16 sps:$4 sm:$0xff]  }
 0x432   :  { %v16717_v40 = vld [vmem:[#allocation2 + $0x2020] ss:$16 sps:$4 sm:$0xff]  }
 0x433   :  { %10348 = vmatpush1.bf16.msra.mxu0 %v16619_v46  ;;  %11373 = vmatpush1.bf16.msra.mxu1 %v16622_v54  ;;  %v16714_v46 = vld [vmem:[#allocation2 + $0x2008] ss:$16 sps:$4 sm:$0xff]   ;;  %v16719_v54 = vld [vmem:[#allocation2 + $0x2024] ss:$16 sps:$4 sm:$0xff]  }
 0x434   :  { %10349 = vmatprep.subr.bf16.mxu0 %v16627_v55  ;;  %11374 = vmatprep.subr.bf16.mxu1 %v16630_v56  ;;  %v16722_v55 = vld [vmem:[#allocation2 + $0x202c] ss:$16 sps:$4 sm:$0xff]   ;;  %v13135_v56 = vcombine.high %v18172_v43, %v18172_v43 }
 0x437   :  { %10350 = vmatpush1.bf16.msra.mxu0 %v16625_v57  ;;  %11375 = vmatpush1.bf16.msra.mxu1 %v16628_v58  ;;  %v16720_v57 = vld [vmem:[#allocation2 + $0x2028] ss:$16 sps:$4 sm:$0xff]   ;;  %v16725_v58 = vld [vmem:[#allocation2 + $0x2044] ss:$16 sps:$4 sm:$0xff]  }
 0x438   :  { %10351 = vmatprep.subr.bf16.mxu0 %v16633_v59  ;;  %11376 = vmatprep.subr.bf16.mxu1 %v16636_v60  ;;  %v16728_v59 = vld [vmem:[#allocation2 + $0x204c] ss:$16 sps:$4 sm:$0xff]   ;;  %v16723_v60 = vld [vmem:[#allocation2 + $0x2040] ss:$16 sps:$4 sm:$0xff]  }
 0x43b   :  { %10352 = vmatpush1.bf16.msra.mxu0 %v16631_v61  ;;  %11377 = vmatpush1.bf16.msra.mxu1 %v16634_v62  ;;  %v16726_v61 = vld [vmem:[#allocation2 + $0x2048] ss:$16 sps:$4 sm:$0xff]   ;;  %v16731_v62 = vld [vmem:[#allocation2 + $0x2064] ss:$16 sps:$4 sm:$0xff]  }
 0x43c   :  { %10353 = vmatprep.subr.bf16.mxu0 %v16639_v63  ;;  %11378 = vmatprep.subr.bf16.mxu1 %v16642_v0  ;;  %v16734_v63 = vld [vmem:[#allocation2 + $0x206c] ss:$16 sps:$4 sm:$0xff]   ;;  %v16729_v0 = vld [vmem:[#allocation2 + $0x2060] ss:$16 sps:$4 sm:$0xff]  }
 0x43f   :  { %10354 = vmatpush1.bf16.msra.mxu0 %v16637_v1  ;;  %11379 = vmatpush1.bf16.msra.mxu1 %v16640_v2  ;;  %v16732_v1 = vld [vmem:[#allocation2 + $0x2068] ss:$16 sps:$4 sm:$0xff]   ;;  %v16737_v2 = vld [vmem:[#allocation2 + $0x2084] ss:$16 sps:$4 sm:$0xff]  }
 0x440   :  { %10355 = vmatprep.subr.bf16.mxu0 %v16645_v3  ;;  %11380 = vmatprep.subr.bf16.mxu1 %v16648_v4  ;;  %v16740_v3 = vld [vmem:[#allocation2 + $0x208c] ss:$16 sps:$4 sm:$0xff]   ;;  %v16735_v4 = vld [vmem:[#allocation2 + $0x2080] ss:$16 sps:$4 sm:$0xff]  }
 0x443   :  { %10356 = vmatpush1.bf16.msra.mxu0 %v16643_v5  ;;  %11381 = vmatpush1.bf16.msra.mxu1 %v16646_v6  ;;  %v16738_v5 = vld [vmem:[#allocation2 + $0x2088] ss:$16 sps:$4 sm:$0xff]   ;;  %v16743_v6 = vld [vmem:[#allocation2 + $0x20a4] ss:$16 sps:$4 sm:$0xff]  }
 0x444   :  { %10357 = vmatprep.subr.bf16.mxu0 %v16651_v7  ;;  %11382 = vmatprep.subr.bf16.mxu1 %v16654_v8  ;;  %v16746_v7 = vld [vmem:[#allocation2 + $0x20ac] ss:$16 sps:$4 sm:$0xff]   ;;  %v16741_v8 = vld [vmem:[#allocation2 + $0x20a0] ss:$16 sps:$4 sm:$0xff]  }
 0x447   :  { %10358 = vmatpush1.bf16.msra.mxu0 %v16649_v9  ;;  %11383 = vmatpush1.bf16.msra.mxu1 %v16652_v10  ;;  %v16744_v9 = vld [vmem:[#allocation2 + $0x20a8] ss:$16 sps:$4 sm:$0xff]   ;;  %v16749_v10 = vld [vmem:[#allocation2 + $0x20c4] ss:$16 sps:$4 sm:$0xff]  }
 0x448   :  { %10359 = vmatprep.subr.bf16.mxu0 %v16657_v12  ;;  %11384 = vmatprep.subr.bf16.mxu1 %v16660_v13  ;;  %v16752_v12 = vld [vmem:[#allocation2 + $0x20cc] ss:$16 sps:$4 sm:$0xff]   ;;  %v16747_v13 = vld [vmem:[#allocation2 + $0x20c0] ss:$16 sps:$4 sm:$0xff]  }
 0x44b   :  { %10360 = vmatpush1.bf16.msra.mxu0 %v16655_v15  ;;  %11385 = vmatpush1.bf16.msra.mxu1 %v16658_v16  ;;  %v16750_v15 = vld [vmem:[#allocation2 + $0x20c8] ss:$16 sps:$4 sm:$0xff]   ;;  %v16755_v16 = vld [vmem:[#allocation2 + $0x20e4] ss:$16 sps:$4 sm:$0xff]  }
 0x44c   :  { %10361 = vmatprep.subr.bf16.mxu0 %v16663_v18  ;;  %11386 = vmatprep.subr.bf16.mxu1 %v16666_v11  ;;  %v16758_v18 = vld [vmem:[#allocation2 + $0x20ec] ss:$16 sps:$4 sm:$0xff]   ;;  %v16753_v11 = vld [vmem:[#allocation2 + $0x20e0] ss:$16 sps:$4 sm:$0xff]  }
 0x44f   :  { %10362 = vmatpush1.bf16.msra.mxu0 %v16661_v20  ;;  %11387 = vmatpush1.bf16.msra.mxu1 %v16664_v14  ;;  %v16756_v20 = vld [vmem:[#allocation2 + $0x20e8] ss:$16 sps:$4 sm:$0xff]   ;;  %v16761_v14 = vld [vmem:[#allocation2 + $0x2104] ss:$16 sps:$4 sm:$0xff]  }
 0x450   :  { %10363 = vmatprep.subr.bf16.mxu0 %v16669_v22  ;;  %11388 = vmatprep.subr.bf16.mxu1 %v16672_v23  ;;  %v16764_v22 = vld [vmem:[#allocation2 + $0x210c] ss:$16 sps:$4 sm:$0xff]   ;;  %v16759_v23 = vld [vmem:[#allocation2 + $0x2100] ss:$16 sps:$4 sm:$0xff]  }
 0x453   :  { %10364 = vmatpush1.bf16.msra.mxu0 %v16667_v24  ;;  %11389 = vmatpush1.bf16.msra.mxu1 %v16670_v17  ;;  %v16762_v24 = vld [vmem:[#allocation2 + $0x2108] ss:$16 sps:$4 sm:$0xff]   ;;  %v16767_v17 = vld [vmem:[#allocation2 + $0x2124] ss:$16 sps:$4 sm:$0xff]  }
 0x454   :  { %10365 = vmatprep.subr.bf16.mxu0 %v16675_v26  ;;  %11390 = vmatprep.subr.bf16.mxu1 %v16678_v27  ;;  %v16770_v26 = vld [vmem:[#allocation2 + $0x212c] ss:$16 sps:$4 sm:$0xff]   ;;  %v16765_v27 = vld [vmem:[#allocation2 + $0x2120] ss:$16 sps:$4 sm:$0xff]  }
 0x457   :  { %10366 = vmatpush1.bf16.msra.mxu0 %v16673_v19  ;;  %11391 = vmatpush1.bf16.msra.mxu1 %v16676_v29  ;;  %v16768_v19 = vld [vmem:[#allocation2 + $0x2128] ss:$16 sps:$4 sm:$0xff]   ;;  %v16773_v29 = vld [vmem:[#allocation2 + $0x2144] ss:$16 sps:$4 sm:$0xff]  }
 0x458   :  { %10367 = vmatprep.subr.bf16.mxu0 %v16681_v30  ;;  %11392 = vmatprep.subr.bf16.mxu1 %v16684_v21  ;;  %v16776_v30 = vld [vmem:[#allocation2 + $0x214c] ss:$16 sps:$4 sm:$0xff]   ;;  %v16771_v21 = vld [vmem:[#allocation2 + $0x2140] ss:$16 sps:$4 sm:$0xff]  }
 0x45b   :  { %10368 = vmatpush1.bf16.msra.mxu0 %v16679_v32  ;;  %11393 = vmatpush1.bf16.msra.mxu1 %v16682_v33  ;;  %v16774_v32 = vld [vmem:[#allocation2 + $0x2148] ss:$16 sps:$4 sm:$0xff]   ;;  %v16779_v33 = vld [vmem:[#allocation2 + $0x2164] ss:$16 sps:$4 sm:$0xff]  }
 0x45c   :  { %10369 = vmatprep.subr.bf16.mxu0 %v16687_v25  ;;  %11394 = vmatprep.subr.bf16.mxu1 %v16690_v35  ;;  %v16782_v25 = vld [vmem:[#allocation2 + $0x216c] ss:$16 sps:$4 sm:$0xff]   ;;  %v16777_v35 = vld [vmem:[#allocation2 + $0x2160] ss:$16 sps:$4 sm:$0xff]  }
 0x45f   :  { %10370 = vmatpush1.bf16.msra.mxu0 %v16685_v36  ;;  %11395 = vmatpush1.bf16.msra.mxu1 %v16688_v28  ;;  %v16780_v36 = vld [vmem:[#allocation2 + $0x2168] ss:$16 sps:$4 sm:$0xff]   ;;  %v16785_v28 = vld [vmem:[#allocation2 + $0x2184] ss:$16 sps:$4 sm:$0xff]  }
 0x460   :  { %10371 = vmatprep.subr.bf16.mxu0 %v16693_v38  ;;  %11396 = vmatprep.subr.bf16.mxu1 %v16696_v39  ;;  %v16788_v38 = vld [vmem:[#allocation2 + $0x218c] ss:$16 sps:$4 sm:$0xff]   ;;  %v16783_v39 = vld [vmem:[#allocation2 + $0x2180] ss:$16 sps:$4 sm:$0xff]  }
 0x463   :  { %10372 = vmatpush1.bf16.msra.mxu0 %v16691_v31  ;;  %11397 = vmatpush1.bf16.msra.mxu1 %v16694_v41  ;;  %v16786_v31 = vld [vmem:[#allocation2 + $0x2188] ss:$16 sps:$4 sm:$0xff]   ;;  %v16791_v41 = vld [vmem:[#allocation2 + $0x21a4] ss:$16 sps:$4 sm:$0xff]  }
 0x464   :  { %10373 = vmatprep.subr.bf16.mxu0 %v16699_v42  ;;  %11398 = vmatprep.subr.bf16.mxu1 %v16702_v34  ;;  %v16794_v42 = vld [vmem:[#allocation2 + $0x21ac] ss:$16 sps:$4 sm:$0xff]   ;;  %v16789_v34 = vld [vmem:[#allocation2 + $0x21a0] ss:$16 sps:$4 sm:$0xff]  }
 0x467   :  { %10374 = vmatpush1.bf16.msra.mxu0 %v16697_v44  ;;  %11399 = vmatpush1.bf16.msra.mxu1 %v16700_v45  ;;  %v16792_v44 = vld [vmem:[#allocation2 + $0x21a8] ss:$16 sps:$4 sm:$0xff]   ;;  %v16797_v45 = vld [vmem:[#allocation2 + $0x21c4] ss:$16 sps:$4 sm:$0xff]  }
 0x468   :  { %10375 = vmatprep.subr.bf16.mxu0 %v16705_v37  ;;  %11400 = vmatprep.subr.bf16.mxu1 %v16708_v47  ;;  %v16800_v37 = vld [vmem:[#allocation2 + $0x21cc] ss:$16 sps:$4 sm:$0xff]   ;;  %v16795_v47 = vld [vmem:[#allocation2 + $0x21c0] ss:$16 sps:$4 sm:$0xff]  }
 0x46b   :  { %10376 = vmatpush1.bf16.msra.mxu0 %v16703_v48  ;;  %11401 = vmatpush1.bf16.msra.mxu1 %v16706_v49  ;;  %v16798_v48 = vld [vmem:[#allocation2 + $0x21c8] ss:$16 sps:$4 sm:$0xff]   ;;  %v16803_v49 = vld [vmem:[#allocation2 + $0x21e4] ss:$16 sps:$4 sm:$0xff]  }
 0x46c   :  { %10386 = vmatprep.subr.bf16.mxu0 %v16713_v50  ;;  %11411 = vmatprep.subr.bf16.mxu1 %v16716_v51  ;;  %v16806_v50 = vld [vmem:[#allocation2 + $0x21ec] ss:$16 sps:$4 sm:$0xff]   ;;  %v16801_v51 = vld [vmem:[#allocation2 + $0x21e0] ss:$16 sps:$4 sm:$0xff]  }
 0x46e   :  { %10378 = vmatmul.mubr.bf16.vlgmr.msra.gmra.mrb[0].mxu0 %v13132_v52  ;;  %11403 = vmatmul.mubr.bf16.vlgmr.msra.gmra.mrb[0].mxu1 %v13132_v52  ;;  %v16804_v52 = vld [vmem:[#allocation2 + $0x21e8] ss:$16 sps:$4 sm:$0xff]  }
 0x46f   :  { %10387 = vmatpush1.bf16.msra.mxu0 %v16711_v53  ;;  %11412 = vmatpush1.bf16.msra.mxu1 %v16714_v46  ;;  %v16811_v53 = vld [vmem:[#allocation2 + $0x2204] ss:$16 sps:$4 sm:$0xff]   ;;  %v16814_v46 = vld [vmem:[#allocation2 + $0x220c] ss:$16 sps:$4 sm:$0xff]  }
 0x470   :  { %10388 = vmatprep.subr.bf16.mxu0 %v16719_v54  ;;  %11413 = vmatprep.subr.bf16.mxu1 %v16722_v55  ;;  %v13134_v54 = vcombine.low %v18172_v43, %v18172_v43  ;;  %v18181_v55 = vld [vmem:[%s18278_s0 + $0x88] sm:$0xff]  ;;  %v16815_v43 = vld [vmem:[#allocation2 + $0x2220] ss:$16 sps:$4 sm:$0xff]  }
 0x471   :  { %10418 = vmatprep.mubr.bf16.mxu0 %v13135_v56  ;;  %11443 = vmatprep.mubr.bf16.mxu1 %v13135_v56  ;;  %v16809_v56 = vld [vmem:[#allocation2 + $0x2200] ss:$16 sps:$4 sm:$0xff]  }
 0x473   :  { %10389 = vmatpush1.bf16.msra.mxu0 %v16717_v40  ;;  %11414 = vmatpush1.bf16.msra.mxu1 %v16720_v57  ;;  %v16812_v40 = vld [vmem:[#allocation2 + $0x2208] ss:$16 sps:$4 sm:$0xff]   ;;  %v16817_v57 = vld [vmem:[#allocation2 + $0x2224] ss:$16 sps:$4 sm:$0xff]  }
 0x474   :  { %10390 = vmatprep.subr.bf16.mxu0 %v16725_v58  ;;  %11415 = vmatprep.subr.bf16.mxu1 %v16728_v59  ;;  %v16820_v58 = vld [vmem:[#allocation2 + $0x222c] ss:$16 sps:$4 sm:$0xff]   ;;  %v13137_v59 = vcombine.high %v18181_v55, %v18181_v55 }
 0x477   :  { %10391 = vmatpush1.bf16.msra.mxu0 %v16723_v60  ;;  %11416 = vmatpush1.bf16.msra.mxu1 %v16726_v61  ;;  %v16818_v60 = vld [vmem:[#allocation2 + $0x2228] ss:$16 sps:$4 sm:$0xff]   ;;  %v16823_v61 = vld [vmem:[#allocation2 + $0x2244] ss:$16 sps:$4 sm:$0xff]  }
 0x478   :  { %10392 = vmatprep.subr.bf16.mxu0 %v16731_v62  ;;  %11417 = vmatprep.subr.bf16.mxu1 %v16734_v63  ;;  %v16826_v62 = vld [vmem:[#allocation2 + $0x224c] ss:$16 sps:$4 sm:$0xff]   ;;  %v16821_v63 = vld [vmem:[#allocation2 + $0x2240] ss:$16 sps:$4 sm:$0xff]  }
 0x47b   :  { %10393 = vmatpush1.bf16.msra.mxu0 %v16729_v0  ;;  %11418 = vmatpush1.bf16.msra.mxu1 %v16732_v1  ;;  %v16824_v0 = vld [vmem:[#allocation2 + $0x2248] ss:$16 sps:$4 sm:$0xff]   ;;  %v16829_v1 = vld [vmem:[#allocation2 + $0x2264] ss:$16 sps:$4 sm:$0xff]  }
 0x47c   :  { %10394 = vmatprep.subr.bf16.mxu0 %v16737_v2  ;;  %11419 = vmatprep.subr.bf16.mxu1 %v16740_v3  ;;  %v16832_v2 = vld [vmem:[#allocation2 + $0x226c] ss:$16 sps:$4 sm:$0xff]   ;;  %v16827_v3 = vld [vmem:[#allocation2 + $0x2260] ss:$16 sps:$4 sm:$0xff]  }
 0x47f   :  { %10395 = vmatpush1.bf16.msra.mxu0 %v16735_v4  ;;  %11420 = vmatpush1.bf16.msra.mxu1 %v16738_v5  ;;  %v16830_v4 = vld [vmem:[#allocation2 + $0x2268] ss:$16 sps:$4 sm:$0xff]   ;;  %v16835_v5 = vld [vmem:[#allocation2 + $0x2284] ss:$16 sps:$4 sm:$0xff]  }
 0x480   :  { %10396 = vmatprep.subr.bf16.mxu0 %v16743_v6  ;;  %11421 = vmatprep.subr.bf16.mxu1 %v16746_v7  ;;  %v16838_v6 = vld [vmem:[#allocation2 + $0x228c] ss:$16 sps:$4 sm:$0xff]   ;;  %v16833_v7 = vld [vmem:[#allocation2 + $0x2280] ss:$16 sps:$4 sm:$0xff]  }
 0x483   :  { %10397 = vmatpush1.bf16.msra.mxu0 %v16741_v8  ;;  %11422 = vmatpush1.bf16.msra.mxu1 %v16744_v9  ;;  %v16836_v8 = vld [vmem:[#allocation2 + $0x2288] ss:$16 sps:$4 sm:$0xff]   ;;  %v16841_v9 = vld [vmem:[#allocation2 + $0x22a4] ss:$16 sps:$4 sm:$0xff]  }
 0x484   :  { %10398 = vmatprep.subr.bf16.mxu0 %v16749_v10  ;;  %11423 = vmatprep.subr.bf16.mxu1 %v16752_v12  ;;  %v16844_v10 = vld [vmem:[#allocation2 + $0x22ac] ss:$16 sps:$4 sm:$0xff]   ;;  %v16839_v12 = vld [vmem:[#allocation2 + $0x22a0] ss:$16 sps:$4 sm:$0xff]  }
 0x487   :  { %10399 = vmatpush1.bf16.msra.mxu0 %v16747_v13  ;;  %11424 = vmatpush1.bf16.msra.mxu1 %v16750_v15  ;;  %v16842_v13 = vld [vmem:[#allocation2 + $0x22a8] ss:$16 sps:$4 sm:$0xff]   ;;  %v16847_v15 = vld [vmem:[#allocation2 + $0x22c4] ss:$16 sps:$4 sm:$0xff]  }
 0x488   :  { %10400 = vmatprep.subr.bf16.mxu0 %v16755_v16  ;;  %11425 = vmatprep.subr.bf16.mxu1 %v16758_v18  ;;  %v16850_v16 = vld [vmem:[#allocation2 + $0x22cc] ss:$16 sps:$4 sm:$0xff]   ;;  %v16845_v18 = vld [vmem:[#allocation2 + $0x22c0] ss:$16 sps:$4 sm:$0xff]  }
 0x48b   :  { %10401 = vmatpush1.bf16.msra.mxu0 %v16753_v11  ;;  %11426 = vmatpush1.bf16.msra.mxu1 %v16756_v20  ;;  %v16848_v11 = vld [vmem:[#allocation2 + $0x22c8] ss:$16 sps:$4 sm:$0xff]   ;;  %v16853_v20 = vld [vmem:[#allocation2 + $0x22e4] ss:$16 sps:$4 sm:$0xff]  }
 0x48c   :  { %10402 = vmatprep.subr.bf16.mxu0 %v16761_v14  ;;  %11427 = vmatprep.subr.bf16.mxu1 %v16764_v22  ;;  %v16856_v14 = vld [vmem:[#allocation2 + $0x22ec] ss:$16 sps:$4 sm:$0xff]   ;;  %v16851_v22 = vld [vmem:[#allocation2 + $0x22e0] ss:$16 sps:$4 sm:$0xff]  }
 0x48f   :  { %10403 = vmatpush1.bf16.msra.mxu0 %v16759_v23  ;;  %11428 = vmatpush1.bf16.msra.mxu1 %v16762_v24  ;;  %v16854_v23 = vld [vmem:[#allocation2 + $0x22e8] ss:$16 sps:$4 sm:$0xff]   ;;  %v16859_v24 = vld [vmem:[#allocation2 + $0x2304] ss:$16 sps:$4 sm:$0xff]  }
 0x490   :  { %10404 = vmatprep.subr.bf16.mxu0 %v16767_v17  ;;  %11429 = vmatprep.subr.bf16.mxu1 %v16770_v26  ;;  %v16862_v17 = vld [vmem:[#allocation2 + $0x230c] ss:$16 sps:$4 sm:$0xff]   ;;  %v16857_v26 = vld [vmem:[#allocation2 + $0x2300] ss:$16 sps:$4 sm:$0xff]  }
 0x493   :  { %10405 = vmatpush1.bf16.msra.mxu0 %v16765_v27  ;;  %11430 = vmatpush1.bf16.msra.mxu1 %v16768_v19  ;;  %v16860_v27 = vld [vmem:[#allocation2 + $0x2308] ss:$16 sps:$4 sm:$0xff]   ;;  %v16865_v19 = vld [vmem:[#allocation2 + $0x2324] ss:$16 sps:$4 sm:$0xff]  }
 0x494   :  { %10406 = vmatprep.subr.bf16.mxu0 %v16773_v29  ;;  %11431 = vmatprep.subr.bf16.mxu1 %v16776_v30  ;;  %v16868_v29 = vld [vmem:[#allocation2 + $0x232c] ss:$16 sps:$4 sm:$0xff]   ;;  %v16863_v30 = vld [vmem:[#allocation2 + $0x2320] ss:$16 sps:$4 sm:$0xff]  }
 0x497   :  { %10407 = vmatpush1.bf16.msra.mxu0 %v16771_v21  ;;  %11432 = vmatpush1.bf16.msra.mxu1 %v16774_v32  ;;  %v16866_v21 = vld [vmem:[#allocation2 + $0x2328] ss:$16 sps:$4 sm:$0xff]   ;;  %v16871_v32 = vld [vmem:[#allocation2 + $0x2344] ss:$16 sps:$4 sm:$0xff]  }
 0x498   :  { %10408 = vmatprep.subr.bf16.mxu0 %v16779_v33  ;;  %11433 = vmatprep.subr.bf16.mxu1 %v16782_v25  ;;  %v16874_v33 = vld [vmem:[#allocation2 + $0x234c] ss:$16 sps:$4 sm:$0xff]   ;;  %v16869_v25 = vld [vmem:[#allocation2 + $0x2340] ss:$16 sps:$4 sm:$0xff]  }
 0x49b   :  { %10409 = vmatpush1.bf16.msra.mxu0 %v16777_v35  ;;  %11434 = vmatpush1.bf16.msra.mxu1 %v16780_v36  ;;  %v16872_v35 = vld [vmem:[#allocation2 + $0x2348] ss:$16 sps:$4 sm:$0xff]   ;;  %v16877_v36 = vld [vmem:[#allocation2 + $0x2364] ss:$16 sps:$4 sm:$0xff]  }
 0x49c   :  { %10410 = vmatprep.subr.bf16.mxu0 %v16785_v28  ;;  %11435 = vmatprep.subr.bf16.mxu1 %v16788_v38  ;;  %v16880_v28 = vld [vmem:[#allocation2 + $0x236c] ss:$16 sps:$4 sm:$0xff]   ;;  %v16875_v38 = vld [vmem:[#allocation2 + $0x2360] ss:$16 sps:$4 sm:$0xff]  }
 0x49f   :  { %10411 = vmatpush1.bf16.msra.mxu0 %v16783_v39  ;;  %11436 = vmatpush1.bf16.msra.mxu1 %v16786_v31  ;;  %v16878_v39 = vld [vmem:[#allocation2 + $0x2368] ss:$16 sps:$4 sm:$0xff]   ;;  %v16883_v31 = vld [vmem:[#allocation2 + $0x2384] ss:$16 sps:$4 sm:$0xff]  }
 0x4a0   :  { %10412 = vmatprep.subr.bf16.mxu0 %v16791_v41  ;;  %11437 = vmatprep.subr.bf16.mxu1 %v16794_v42  ;;  %v16886_v41 = vld [vmem:[#allocation2 + $0x238c] ss:$16 sps:$4 sm:$0xff]   ;;  %v16881_v42 = vld [vmem:[#allocation2 + $0x2380] ss:$16 sps:$4 sm:$0xff]  }
 0x4a3   :  { %10413 = vmatpush1.bf16.msra.mxu0 %v16789_v34  ;;  %11438 = vmatpush1.bf16.msra.mxu1 %v16792_v44  ;;  %v16884_v34 = vld [vmem:[#allocation2 + $0x2388] ss:$16 sps:$4 sm:$0xff]   ;;  %v16889_v44 = vld [vmem:[#allocation2 + $0x23a4] ss:$16 sps:$4 sm:$0xff]  }
 0x4a4   :  { %10414 = vmatprep.subr.bf16.mxu0 %v16797_v45  ;;  %11439 = vmatprep.subr.bf16.mxu1 %v16800_v37  ;;  %v16892_v45 = vld [vmem:[#allocation2 + $0x23ac] ss:$16 sps:$4 sm:$0xff]   ;;  %v16887_v37 = vld [vmem:[#allocation2 + $0x23a0] ss:$16 sps:$4 sm:$0xff]  }
 0x4a7   :  { %10415 = vmatpush1.bf16.msra.mxu0 %v16795_v47  ;;  %11440 = vmatpush1.bf16.msra.mxu1 %v16798_v48  ;;  %v16890_v47 = vld [vmem:[#allocation2 + $0x23a8] ss:$16 sps:$4 sm:$0xff]   ;;  %v16895_v48 = vld [vmem:[#allocation2 + $0x23c4] ss:$16 sps:$4 sm:$0xff]  }
 0x4a8   :  { %10416 = vmatprep.subr.bf16.mxu0 %v16803_v49  ;;  %11441 = vmatprep.subr.bf16.mxu1 %v16806_v50  ;;  %v16898_v49 = vld [vmem:[#allocation2 + $0x23cc] ss:$16 sps:$4 sm:$0xff]   ;;  %v16893_v50 = vld [vmem:[#allocation2 + $0x23c0] ss:$16 sps:$4 sm:$0xff]  }
 0x4ab   :  { %10417 = vmatpush1.bf16.msra.mxu0 %v16801_v51  ;;  %11442 = vmatpush1.bf16.msra.mxu1 %v16804_v52  ;;  %v16896_v51 = vld [vmem:[#allocation2 + $0x23c8] ss:$16 sps:$4 sm:$0xff]   ;;  %v16901_v52 = vld [vmem:[#allocation2 + $0x23e4] ss:$16 sps:$4 sm:$0xff]  }
 0x4ac   :  { %10427 = vmatprep.subr.bf16.mxu0 %v16811_v53  ;;  %11452 = vmatprep.subr.bf16.mxu1 %v16814_v46  ;;  %v16904_v53 = vld [vmem:[#allocation2 + $0x23ec] ss:$16 sps:$4 sm:$0xff]   ;;  %v16899_v46 = vld [vmem:[#allocation2 + $0x23e0] ss:$16 sps:$4 sm:$0xff]  }
 0x4ae   :  { %10419 = vmatmul.mubr.bf16.vlgmr.msra.gmra.mrb[0].mxu0 %v13134_v54  ;;  %11444 = vmatmul.mubr.bf16.vlgmr.msra.gmra.mrb[0].mxu1 %v13134_v54  ;;  %v16902_v54 = vld [vmem:[#allocation2 + $0x23e8] ss:$16 sps:$4 sm:$0xff]  }
 0x4af   :  { %10428 = vmatpush1.bf16.msra.mxu0 %v16809_v56  ;;  %11453 = vmatpush1.bf16.msra.mxu1 %v16812_v40  ;;  %v16909_v56 = vld [vmem:[#allocation2 + $0x2404] ss:$16 sps:$4 sm:$0xff]   ;;  %v16912_v40 = vld [vmem:[#allocation2 + $0x240c] ss:$16 sps:$4 sm:$0xff]  }
 0x4b0   :  { %10429 = vmatprep.subr.bf16.mxu0 %v16817_v57  ;;  %11454 = vmatprep.subr.bf16.mxu1 %v16820_v58  ;;  %v13136_v57 = vcombine.low %v18181_v55, %v18181_v55  ;;  %v18190_v58 = vld [vmem:[%s18278_s0 + $0x90] sm:$0xff] }
 0x4b1   :  { %10459 = vmatprep.mubr.bf16.mxu0 %v13137_v59  ;;  %11484 = vmatprep.mubr.bf16.mxu1 %v13137_v59  ;;  %v16907_v59 = vld [vmem:[#allocation2 + $0x2400] ss:$16 sps:$4 sm:$0xff]  }
 0x4b2   :  { %v16913_v55 = vld [vmem:[#allocation2 + $0x2420] ss:$16 sps:$4 sm:$0xff]  }
 0x4b3   :  { %10430 = vmatpush1.bf16.msra.mxu0 %v16815_v43  ;;  %11455 = vmatpush1.bf16.msra.mxu1 %v16818_v60  ;;  %v16910_v43 = vld [vmem:[#allocation2 + $0x2408] ss:$16 sps:$4 sm:$0xff]   ;;  %v16915_v60 = vld [vmem:[#allocation2 + $0x2424] ss:$16 sps:$4 sm:$0xff]  }
 0x4b4   :  { %10431 = vmatprep.subr.bf16.mxu0 %v16823_v61  ;;  %11456 = vmatprep.subr.bf16.mxu1 %v16826_v62  ;;  %v16918_v61 = vld [vmem:[#allocation2 + $0x242c] ss:$16 sps:$4 sm:$0xff]   ;;  %v13139_v62 = vcombine.high %v18190_v58, %v18190_v58 }
 0x4b7   :  { %10432 = vmatpush1.bf16.msra.mxu0 %v16821_v63  ;;  %11457 = vmatpush1.bf16.msra.mxu1 %v16824_v0  ;;  %v16916_v63 = vld [vmem:[#allocation2 + $0x2428] ss:$16 sps:$4 sm:$0xff]   ;;  %v16921_v0 = vld [vmem:[#allocation2 + $0x2444] ss:$16 sps:$4 sm:$0xff]  }
 0x4b8   :  { %10433 = vmatprep.subr.bf16.mxu0 %v16829_v1  ;;  %11458 = vmatprep.subr.bf16.mxu1 %v16832_v2  ;;  %v16924_v1 = vld [vmem:[#allocation2 + $0x244c] ss:$16 sps:$4 sm:$0xff]   ;;  %v16919_v2 = vld [vmem:[#allocation2 + $0x2440] ss:$16 sps:$4 sm:$0xff]  }
 0x4bb   :  { %10434 = vmatpush1.bf16.msra.mxu0 %v16827_v3  ;;  %11459 = vmatpush1.bf16.msra.mxu1 %v16830_v4  ;;  %v16922_v3 = vld [vmem:[#allocation2 + $0x2448] ss:$16 sps:$4 sm:$0xff]   ;;  %v16927_v4 = vld [vmem:[#allocation2 + $0x2464] ss:$16 sps:$4 sm:$0xff]  }
 0x4bc   :  { %10435 = vmatprep.subr.bf16.mxu0 %v16835_v5  ;;  %11460 = vmatprep.subr.bf16.mxu1 %v16838_v6  ;;  %v16930_v5 = vld [vmem:[#allocation2 + $0x246c] ss:$16 sps:$4 sm:$0xff]   ;;  %v16925_v6 = vld [vmem:[#allocation2 + $0x2460] ss:$16 sps:$4 sm:$0xff]  }
 0x4bf   :  { %10436 = vmatpush1.bf16.msra.mxu0 %v16833_v7  ;;  %11461 = vmatpush1.bf16.msra.mxu1 %v16836_v8  ;;  %v16928_v7 = vld [vmem:[#allocation2 + $0x2468] ss:$16 sps:$4 sm:$0xff]   ;;  %v16933_v8 = vld [vmem:[#allocation2 + $0x2484] ss:$16 sps:$4 sm:$0xff]  }
 0x4c0   :  { %10437 = vmatprep.subr.bf16.mxu0 %v16841_v9  ;;  %11462 = vmatprep.subr.bf16.mxu1 %v16844_v10  ;;  %v16936_v9 = vld [vmem:[#allocation2 + $0x248c] ss:$16 sps:$4 sm:$0xff]   ;;  %v16931_v10 = vld [vmem:[#allocation2 + $0x2480] ss:$16 sps:$4 sm:$0xff]  }
 0x4c3   :  { %10438 = vmatpush1.bf16.msra.mxu0 %v16839_v12  ;;  %11463 = vmatpush1.bf16.msra.mxu1 %v16842_v13  ;;  %v16934_v12 = vld [vmem:[#allocation2 + $0x2488] ss:$16 sps:$4 sm:$0xff]   ;;  %v16939_v13 = vld [vmem:[#allocation2 + $0x24a4] ss:$16 sps:$4 sm:$0xff]  }
 0x4c4   :  { %10439 = vmatprep.subr.bf16.mxu0 %v16847_v15  ;;  %11464 = vmatprep.subr.bf16.mxu1 %v16850_v16  ;;  %v16942_v15 = vld [vmem:[#allocation2 + $0x24ac] ss:$16 sps:$4 sm:$0xff]   ;;  %v16937_v16 = vld [vmem:[#allocation2 + $0x24a0] ss:$16 sps:$4 sm:$0xff]  }
 0x4c7   :  { %10440 = vmatpush1.bf16.msra.mxu0 %v16845_v18  ;;  %11465 = vmatpush1.bf16.msra.mxu1 %v16848_v11  ;;  %v16940_v18 = vld [vmem:[#allocation2 + $0x24a8] ss:$16 sps:$4 sm:$0xff]   ;;  %v16945_v11 = vld [vmem:[#allocation2 + $0x24c4] ss:$16 sps:$4 sm:$0xff]  }
 0x4c8   :  { %10441 = vmatprep.subr.bf16.mxu0 %v16853_v20  ;;  %11466 = vmatprep.subr.bf16.mxu1 %v16856_v14  ;;  %v16948_v20 = vld [vmem:[#allocation2 + $0x24cc] ss:$16 sps:$4 sm:$0xff]   ;;  %v16943_v14 = vld [vmem:[#allocation2 + $0x24c0] ss:$16 sps:$4 sm:$0xff]  }
 0x4cb   :  { %10442 = vmatpush1.bf16.msra.mxu0 %v16851_v22  ;;  %11467 = vmatpush1.bf16.msra.mxu1 %v16854_v23  ;;  %v16946_v22 = vld [vmem:[#allocation2 + $0x24c8] ss:$16 sps:$4 sm:$0xff]   ;;  %v16951_v23 = vld [vmem:[#allocation2 + $0x24e4] ss:$16 sps:$4 sm:$0xff]  }
 0x4cc   :  { %10443 = vmatprep.subr.bf16.mxu0 %v16859_v24  ;;  %11468 = vmatprep.subr.bf16.mxu1 %v16862_v17  ;;  %v16954_v24 = vld [vmem:[#allocation2 + $0x24ec] ss:$16 sps:$4 sm:$0xff]   ;;  %v16949_v17 = vld [vmem:[#allocation2 + $0x24e0] ss:$16 sps:$4 sm:$0xff]  }
 0x4cf   :  { %10444 = vmatpush1.bf16.msra.mxu0 %v16857_v26  ;;  %11469 = vmatpush1.bf16.msra.mxu1 %v16860_v27  ;;  %v16952_v26 = vld [vmem:[#allocation2 + $0x24e8] ss:$16 sps:$4 sm:$0xff]   ;;  %v16957_v27 = vld [vmem:[#allocation2 + $0x2504] ss:$16 sps:$4 sm:$0xff]  }
 0x4d0   :  { %10445 = vmatprep.subr.bf16.mxu0 %v16865_v19  ;;  %11470 = vmatprep.subr.bf16.mxu1 %v16868_v29  ;;  %v16960_v19 = vld [vmem:[#allocation2 + $0x250c] ss:$16 sps:$4 sm:$0xff]   ;;  %v16955_v29 = vld [vmem:[#allocation2 + $0x2500] ss:$16 sps:$4 sm:$0xff]  }
 0x4d3   :  { %10446 = vmatpush1.bf16.msra.mxu0 %v16863_v30  ;;  %11471 = vmatpush1.bf16.msra.mxu1 %v16866_v21  ;;  %v16958_v30 = vld [vmem:[#allocation2 + $0x2508] ss:$16 sps:$4 sm:$0xff]   ;;  %v16963_v21 = vld [vmem:[#allocation2 + $0x2524] ss:$16 sps:$4 sm:$0xff]  }
 0x4d4   :  { %10447 = vmatprep.subr.bf16.mxu0 %v16871_v32  ;;  %11472 = vmatprep.subr.bf16.mxu1 %v16874_v33  ;;  %v16966_v32 = vld [vmem:[#allocation2 + $0x252c] ss:$16 sps:$4 sm:$0xff]   ;;  %v16961_v33 = vld [vmem:[#allocation2 + $0x2520] ss:$16 sps:$4 sm:$0xff]  }
 0x4d7   :  { %10448 = vmatpush1.bf16.msra.mxu0 %v16869_v25  ;;  %11473 = vmatpush1.bf16.msra.mxu1 %v16872_v35  ;;  %v16964_v25 = vld [vmem:[#allocation2 + $0x2528] ss:$16 sps:$4 sm:$0xff]   ;;  %v16969_v35 = vld [vmem:[#allocation2 + $0x2544] ss:$16 sps:$4 sm:$0xff]  }
 0x4d8   :  { %10449 = vmatprep.subr.bf16.mxu0 %v16877_v36  ;;  %11474 = vmatprep.subr.bf16.mxu1 %v16880_v28  ;;  %v16972_v36 = vld [vmem:[#allocation2 + $0x254c] ss:$16 sps:$4 sm:$0xff]   ;;  %v16967_v28 = vld [vmem:[#allocation2 + $0x2540] ss:$16 sps:$4 sm:$0xff]  }
 0x4db   :  { %10450 = vmatpush1.bf16.msra.mxu0 %v16875_v38  ;;  %11475 = vmatpush1.bf16.msra.mxu1 %v16878_v39  ;;  %v16970_v38 = vld [vmem:[#allocation2 + $0x2548] ss:$16 sps:$4 sm:$0xff]   ;;  %v16975_v39 = vld [vmem:[#allocation2 + $0x2564] ss:$16 sps:$4 sm:$0xff]  }
 0x4dc   :  { %10451 = vmatprep.subr.bf16.mxu0 %v16883_v31  ;;  %11476 = vmatprep.subr.bf16.mxu1 %v16886_v41  ;;  %v16978_v31 = vld [vmem:[#allocation2 + $0x256c] ss:$16 sps:$4 sm:$0xff]   ;;  %v16973_v41 = vld [vmem:[#allocation2 + $0x2560] ss:$16 sps:$4 sm:$0xff]  }
 0x4df   :  { %10452 = vmatpush1.bf16.msra.mxu0 %v16881_v42  ;;  %11477 = vmatpush1.bf16.msra.mxu1 %v16884_v34  ;;  %v16976_v42 = vld [vmem:[#allocation2 + $0x2568] ss:$16 sps:$4 sm:$0xff]   ;;  %v16981_v34 = vld [vmem:[#allocation2 + $0x2584] ss:$16 sps:$4 sm:$0xff]  }
 0x4e0   :  { %10453 = vmatprep.subr.bf16.mxu0 %v16889_v44  ;;  %11478 = vmatprep.subr.bf16.mxu1 %v16892_v45  ;;  %v16984_v44 = vld [vmem:[#allocation2 + $0x258c] ss:$16 sps:$4 sm:$0xff]   ;;  %v16979_v45 = vld [vmem:[#allocation2 + $0x2580] ss:$16 sps:$4 sm:$0xff]  }
 0x4e3   :  { %10454 = vmatpush1.bf16.msra.mxu0 %v16887_v37  ;;  %11479 = vmatpush1.bf16.msra.mxu1 %v16890_v47  ;;  %v16982_v37 = vld [vmem:[#allocation2 + $0x2588] ss:$16 sps:$4 sm:$0xff]   ;;  %v16987_v47 = vld [vmem:[#allocation2 + $0x25a4] ss:$16 sps:$4 sm:$0xff]  }
 0x4e4   :  { %10455 = vmatprep.subr.bf16.mxu0 %v16895_v48  ;;  %11480 = vmatprep.subr.bf16.mxu1 %v16898_v49  ;;  %v16990_v48 = vld [vmem:[#allocation2 + $0x25ac] ss:$16 sps:$4 sm:$0xff]   ;;  %v16985_v49 = vld [vmem:[#allocation2 + $0x25a0] ss:$16 sps:$4 sm:$0xff]  }
 0x4e7   :  { %10456 = vmatpush1.bf16.msra.mxu0 %v16893_v50  ;;  %11481 = vmatpush1.bf16.msra.mxu1 %v16896_v51  ;;  %v16988_v50 = vld [vmem:[#allocation2 + $0x25a8] ss:$16 sps:$4 sm:$0xff]   ;;  %v16993_v51 = vld [vmem:[#allocation2 + $0x25c4] ss:$16 sps:$4 sm:$0xff]  }
 0x4e8   :  { %10457 = vmatprep.subr.bf16.mxu0 %v16901_v52  ;;  %11482 = vmatprep.subr.bf16.mxu1 %v16904_v53  ;;  %v16996_v52 = vld [vmem:[#allocation2 + $0x25cc] ss:$16 sps:$4 sm:$0xff]   ;;  %v16991_v53 = vld [vmem:[#allocation2 + $0x25c0] ss:$16 sps:$4 sm:$0xff]  }
 0x4eb   :  { %10458 = vmatpush1.bf16.msra.mxu0 %v16899_v46  ;;  %11483 = vmatpush1.bf16.msra.mxu1 %v16902_v54  ;;  %v16994_v46 = vld [vmem:[#allocation2 + $0x25c8] ss:$16 sps:$4 sm:$0xff]   ;;  %v16999_v54 = vld [vmem:[#allocation2 + $0x25e4] ss:$16 sps:$4 sm:$0xff]  }
 0x4ec   :  { %10468 = vmatprep.subr.bf16.mxu0 %v16909_v56  ;;  %11493 = vmatprep.subr.bf16.mxu1 %v16912_v40  ;;  %v17002_v56 = vld [vmem:[#allocation2 + $0x25ec] ss:$16 sps:$4 sm:$0xff]   ;;  %v16997_v40 = vld [vmem:[#allocation2 + $0x25e0] ss:$16 sps:$4 sm:$0xff]  }
 0x4ee   :  { %10460 = vmatmul.mubr.bf16.vlgmr.msra.gmra.mrb[0].mxu0 %v13136_v57  ;;  %11485 = vmatmul.mubr.bf16.vlgmr.msra.gmra.mrb[0].mxu1 %v13136_v57  ;;  %v17000_v57 = vld [vmem:[#allocation2 + $0x25e8] ss:$16 sps:$4 sm:$0xff]  }
 0x4ef   :  { %10469 = vmatpush1.bf16.msra.mxu0 %v16907_v59  ;;  %11494 = vmatpush1.bf16.msra.mxu1 %v16910_v43  ;;  %v17007_v59 = vld [vmem:[#allocation2 + $0x2604] ss:$16 sps:$4 sm:$0xff]   ;;  %v17010_v43 = vld [vmem:[#allocation2 + $0x260c] ss:$16 sps:$4 sm:$0xff]  }
 0x4f0   :  { %10470 = vmatprep.subr.bf16.mxu0 %v16915_v60  ;;  %11495 = vmatprep.subr.bf16.mxu1 %v16918_v61  ;;  %v13138_v60 = vcombine.low %v18190_v58, %v18190_v58  ;;  %v18199_v61 = vld [vmem:[%s18278_s0 + $0x98] sm:$0xff]  ;;  %v17011_v58 = vld [vmem:[#allocation2 + $0x2620] ss:$16 sps:$4 sm:$0xff]  }
 0x4f1   :  { %10500 = vmatprep.mubr.bf16.mxu0 %v13139_v62  ;;  %11525 = vmatprep.mubr.bf16.mxu1 %v13139_v62  ;;  %v17005_v62 = vld [vmem:[#allocation2 + $0x2600] ss:$16 sps:$4 sm:$0xff]  }
 0x4f3   :  { %10471 = vmatpush1.bf16.msra.mxu0 %v16913_v55  ;;  %11496 = vmatpush1.bf16.msra.mxu1 %v16916_v63  ;;  %v17008_v55 = vld [vmem:[#allocation2 + $0x2608] ss:$16 sps:$4 sm:$0xff]   ;;  %v17013_v63 = vld [vmem:[#allocation2 + $0x2624] ss:$16 sps:$4 sm:$0xff]  }
 0x4f4   :  { %10472 = vmatprep.subr.bf16.mxu0 %v16921_v0  ;;  %11497 = vmatprep.subr.bf16.mxu1 %v16924_v1  ;;  %v17016_v0 = vld [vmem:[#allocation2 + $0x262c] ss:$16 sps:$4 sm:$0xff]   ;;  %v13141_v1 = vcombine.high %v18199_v61, %v18199_v61 }
 0x4f7   :  { %10473 = vmatpush1.bf16.msra.mxu0 %v16919_v2  ;;  %11498 = vmatpush1.bf16.msra.mxu1 %v16922_v3  ;;  %v17014_v2 = vld [vmem:[#allocation2 + $0x2628] ss:$16 sps:$4 sm:$0xff]   ;;  %v17019_v3 = vld [vmem:[#allocation2 + $0x2644] ss:$16 sps:$4 sm:$0xff]  }
 0x4f8   :  { %10474 = vmatprep.subr.bf16.mxu0 %v16927_v4  ;;  %11499 = vmatprep.subr.bf16.mxu1 %v16930_v5  ;;  %v17022_v4 = vld [vmem:[#allocation2 + $0x264c] ss:$16 sps:$4 sm:$0xff]   ;;  %v17017_v5 = vld [vmem:[#allocation2 + $0x2640] ss:$16 sps:$4 sm:$0xff]  }
 0x4fb   :  { %10475 = vmatpush1.bf16.msra.mxu0 %v16925_v6  ;;  %11500 = vmatpush1.bf16.msra.mxu1 %v16928_v7  ;;  %v17020_v6 = vld [vmem:[#allocation2 + $0x2648] ss:$16 sps:$4 sm:$0xff]   ;;  %v17025_v7 = vld [vmem:[#allocation2 + $0x2664] ss:$16 sps:$4 sm:$0xff]  }
 0x4fc   :  { %10476 = vmatprep.subr.bf16.mxu0 %v16933_v8  ;;  %11501 = vmatprep.subr.bf16.mxu1 %v16936_v9  ;;  %v17028_v8 = vld [vmem:[#allocation2 + $0x266c] ss:$16 sps:$4 sm:$0xff]   ;;  %v17023_v9 = vld [vmem:[#allocation2 + $0x2660] ss:$16 sps:$4 sm:$0xff]  }
 0x4ff   :  { %10477 = vmatpush1.bf16.msra.mxu0 %v16931_v10  ;;  %11502 = vmatpush1.bf16.msra.mxu1 %v16934_v12  ;;  %v17026_v10 = vld [vmem:[#allocation2 + $0x2668] ss:$16 sps:$4 sm:$0xff]   ;;  %v17031_v12 = vld [vmem:[#allocation2 + $0x2684] ss:$16 sps:$4 sm:$0xff]  }
 0x500   :  { %10478 = vmatprep.subr.bf16.mxu0 %v16939_v13  ;;  %11503 = vmatprep.subr.bf16.mxu1 %v16942_v15  ;;  %v17034_v13 = vld [vmem:[#allocation2 + $0x268c] ss:$16 sps:$4 sm:$0xff]   ;;  %v17029_v15 = vld [vmem:[#allocation2 + $0x2680] ss:$16 sps:$4 sm:$0xff]  }
 0x503   :  { %10479 = vmatpush1.bf16.msra.mxu0 %v16937_v16  ;;  %11504 = vmatpush1.bf16.msra.mxu1 %v16940_v18  ;;  %v17032_v16 = vld [vmem:[#allocation2 + $0x2688] ss:$16 sps:$4 sm:$0xff]   ;;  %v17037_v18 = vld [vmem:[#allocation2 + $0x26a4] ss:$16 sps:$4 sm:$0xff]  }
 0x504   :  { %10480 = vmatprep.subr.bf16.mxu0 %v16945_v11  ;;  %11505 = vmatprep.subr.bf16.mxu1 %v16948_v20  ;;  %v17040_v11 = vld [vmem:[#allocation2 + $0x26ac] ss:$16 sps:$4 sm:$0xff]   ;;  %v17035_v20 = vld [vmem:[#allocation2 + $0x26a0] ss:$16 sps:$4 sm:$0xff]  }
 0x507   :  { %10481 = vmatpush1.bf16.msra.mxu0 %v16943_v14  ;;  %11506 = vmatpush1.bf16.msra.mxu1 %v16946_v22  ;;  %v17038_v14 = vld [vmem:[#allocation2 + $0x26a8] ss:$16 sps:$4 sm:$0xff]   ;;  %v17043_v22 = vld [vmem:[#allocation2 + $0x26c4] ss:$16 sps:$4 sm:$0xff]  }
 0x508   :  { %10482 = vmatprep.subr.bf16.mxu0 %v16951_v23  ;;  %11507 = vmatprep.subr.bf16.mxu1 %v16954_v24  ;;  %v17046_v23 = vld [vmem:[#allocation2 + $0x26cc] ss:$16 sps:$4 sm:$0xff]   ;;  %v17041_v24 = vld [vmem:[#allocation2 + $0x26c0] ss:$16 sps:$4 sm:$0xff]  }
 0x50b   :  { %10483 = vmatpush1.bf16.msra.mxu0 %v16949_v17  ;;  %11508 = vmatpush1.bf16.msra.mxu1 %v16952_v26  ;;  %v17044_v17 = vld [vmem:[#allocation2 + $0x26c8] ss:$16 sps:$4 sm:$0xff]   ;;  %v17049_v26 = vld [vmem:[#allocation2 + $0x26e4] ss:$16 sps:$4 sm:$0xff]  }
 0x50c   :  { %10484 = vmatprep.subr.bf16.mxu0 %v16957_v27  ;;  %11509 = vmatprep.subr.bf16.mxu1 %v16960_v19  ;;  %v17052_v27 = vld [vmem:[#allocation2 + $0x26ec] ss:$16 sps:$4 sm:$0xff]   ;;  %v17047_v19 = vld [vmem:[#allocation2 + $0x26e0] ss:$16 sps:$4 sm:$0xff]  }
 0x50f   :  { %10485 = vmatpush1.bf16.msra.mxu0 %v16955_v29  ;;  %11510 = vmatpush1.bf16.msra.mxu1 %v16958_v30  ;;  %v17050_v29 = vld [vmem:[#allocation2 + $0x26e8] ss:$16 sps:$4 sm:$0xff]   ;;  %v17055_v30 = vld [vmem:[#allocation2 + $0x2704] ss:$16 sps:$4 sm:$0xff]  }
 0x510   :  { %10486 = vmatprep.subr.bf16.mxu0 %v16963_v21  ;;  %11511 = vmatprep.subr.bf16.mxu1 %v16966_v32  ;;  %v17058_v21 = vld [vmem:[#allocation2 + $0x270c] ss:$16 sps:$4 sm:$0xff]   ;;  %v17053_v32 = vld [vmem:[#allocation2 + $0x2700] ss:$16 sps:$4 sm:$0xff]  }
 0x513   :  { %10487 = vmatpush1.bf16.msra.mxu0 %v16961_v33  ;;  %11512 = vmatpush1.bf16.msra.mxu1 %v16964_v25  ;;  %v17056_v33 = vld [vmem:[#allocation2 + $0x2708] ss:$16 sps:$4 sm:$0xff]   ;;  %v17061_v25 = vld [vmem:[#allocation2 + $0x2724] ss:$16 sps:$4 sm:$0xff]  }
 0x514   :  { %10488 = vmatprep.subr.bf16.mxu0 %v16969_v35  ;;  %11513 = vmatprep.subr.bf16.mxu1 %v16972_v36  ;;  %v17064_v35 = vld [vmem:[#allocation2 + $0x272c] ss:$16 sps:$4 sm:$0xff]   ;;  %v17059_v36 = vld [vmem:[#allocation2 + $0x2720] ss:$16 sps:$4 sm:$0xff]  }
 0x517   :  { %10489 = vmatpush1.bf16.msra.mxu0 %v16967_v28  ;;  %11514 = vmatpush1.bf16.msra.mxu1 %v16970_v38  ;;  %v17062_v28 = vld [vmem:[#allocation2 + $0x2728] ss:$16 sps:$4 sm:$0xff]   ;;  %v17067_v38 = vld [vmem:[#allocation2 + $0x2744] ss:$16 sps:$4 sm:$0xff]  }
 0x518   :  { %10490 = vmatprep.subr.bf16.mxu0 %v16975_v39  ;;  %11515 = vmatprep.subr.bf16.mxu1 %v16978_v31  ;;  %v17070_v39 = vld [vmem:[#allocation2 + $0x274c] ss:$16 sps:$4 sm:$0xff]   ;;  %v17065_v31 = vld [vmem:[#allocation2 + $0x2740] ss:$16 sps:$4 sm:$0xff]  }
 0x51b   :  { %10491 = vmatpush1.bf16.msra.mxu0 %v16973_v41  ;;  %11516 = vmatpush1.bf16.msra.mxu1 %v16976_v42  ;;  %v17068_v41 = vld [vmem:[#allocation2 + $0x2748] ss:$16 sps:$4 sm:$0xff]   ;;  %v17073_v42 = vld [vmem:[#allocation2 + $0x2764] ss:$16 sps:$4 sm:$0xff]  }
 0x51c   :  { %10492 = vmatprep.subr.bf16.mxu0 %v16981_v34  ;;  %11517 = vmatprep.subr.bf16.mxu1 %v16984_v44  ;;  %v17076_v34 = vld [vmem:[#allocation2 + $0x276c] ss:$16 sps:$4 sm:$0xff]   ;;  %v17071_v44 = vld [vmem:[#allocation2 + $0x2760] ss:$16 sps:$4 sm:$0xff]  }
 0x51f   :  { %10493 = vmatpush1.bf16.msra.mxu0 %v16979_v45  ;;  %11518 = vmatpush1.bf16.msra.mxu1 %v16982_v37  ;;  %v17074_v45 = vld [vmem:[#allocation2 + $0x2768] ss:$16 sps:$4 sm:$0xff]   ;;  %v17079_v37 = vld [vmem:[#allocation2 + $0x2784] ss:$16 sps:$4 sm:$0xff]  }
 0x520   :  { %10494 = vmatprep.subr.bf16.mxu0 %v16987_v47  ;;  %11519 = vmatprep.subr.bf16.mxu1 %v16990_v48  ;;  %v17082_v47 = vld [vmem:[#allocation2 + $0x278c] ss:$16 sps:$4 sm:$0xff]   ;;  %v17077_v48 = vld [vmem:[#allocation2 + $0x2780] ss:$16 sps:$4 sm:$0xff]  }
 0x523   :  { %10495 = vmatpush1.bf16.msra.mxu0 %v16985_v49  ;;  %11520 = vmatpush1.bf16.msra.mxu1 %v16988_v50  ;;  %v17080_v49 = vld [vmem:[#allocation2 + $0x2788] ss:$16 sps:$4 sm:$0xff]   ;;  %v17085_v50 = vld [vmem:[#allocation2 + $0x27a4] ss:$16 sps:$4 sm:$0xff]  }
 0x524   :  { %10496 = vmatprep.subr.bf16.mxu0 %v16993_v51  ;;  %11521 = vmatprep.subr.bf16.mxu1 %v16996_v52  ;;  %v17088_v51 = vld [vmem:[#allocation2 + $0x27ac] ss:$16 sps:$4 sm:$0xff]   ;;  %v17083_v52 = vld [vmem:[#allocation2 + $0x27a0] ss:$16 sps:$4 sm:$0xff]  }
 0x527   :  { %10497 = vmatpush1.bf16.msra.mxu0 %v16991_v53  ;;  %11522 = vmatpush1.bf16.msra.mxu1 %v16994_v46  ;;  %v17086_v53 = vld [vmem:[#allocation2 + $0x27a8] ss:$16 sps:$4 sm:$0xff]   ;;  %v17091_v46 = vld [vmem:[#allocation2 + $0x27c4] ss:$16 sps:$4 sm:$0xff]  }
 0x528   :  { %10498 = vmatprep.subr.bf16.mxu0 %v16999_v54  ;;  %11523 = vmatprep.subr.bf16.mxu1 %v17002_v56  ;;  %v17094_v54 = vld [vmem:[#allocation2 + $0x27cc] ss:$16 sps:$4 sm:$0xff]   ;;  %v17089_v56 = vld [vmem:[#allocation2 + $0x27c0] ss:$16 sps:$4 sm:$0xff]  }
 0x52b   :  { %10499 = vmatpush1.bf16.msra.mxu0 %v16997_v40  ;;  %11524 = vmatpush1.bf16.msra.mxu1 %v17000_v57  ;;  %v17092_v40 = vld [vmem:[#allocation2 + $0x27c8] ss:$16 sps:$4 sm:$0xff]   ;;  %v17097_v57 = vld [vmem:[#allocation2 + $0x27e4] ss:$16 sps:$4 sm:$0xff]  }
 0x52c   :  { %10509 = vmatprep.subr.bf16.mxu0 %v17007_v59  ;;  %11534 = vmatprep.subr.bf16.mxu1 %v17010_v43  ;;  %v17100_v59 = vld [vmem:[#allocation2 + $0x27ec] ss:$16 sps:$4 sm:$0xff]   ;;  %v17095_v43 = vld [vmem:[#allocation2 + $0x27e0] ss:$16 sps:$4 sm:$0xff]  }
 0x52e   :  { %10501 = vmatmul.mubr.bf16.vlgmr.msra.gmra.mrb[0].mxu0 %v13138_v60  ;;  %11526 = vmatmul.mubr.bf16.vlgmr.msra.gmra.mrb[0].mxu1 %v13138_v60  ;;  %v17098_v60 = vld [vmem:[#allocation2 + $0x27e8] ss:$16 sps:$4 sm:$0xff]  }
 0x52f   :  { %10510 = vmatpush1.bf16.msra.mxu0 %v17005_v62  ;;  %11535 = vmatpush1.bf16.msra.mxu1 %v17008_v55  ;;  %v17105_v62 = vld [vmem:[#allocation2 + $0x2804] ss:$16 sps:$4 sm:$0xff]   ;;  %v17108_v55 = vld [vmem:[#allocation2 + $0x280c] ss:$16 sps:$4 sm:$0xff]  }
 0x530   :  { %10511 = vmatprep.subr.bf16.mxu0 %v17013_v63  ;;  %11536 = vmatprep.subr.bf16.mxu1 %v17016_v0  ;;  %v13140_v63 = vcombine.low %v18199_v61, %v18199_v61  ;;  %v18208_v0 = vld [vmem:[%s18278_s0 + $0xa0] sm:$0xff] }
 0x531   :  { %10541 = vmatprep.mubr.bf16.mxu0 %v13141_v1  ;;  %11566 = vmatprep.mubr.bf16.mxu1 %v13141_v1  ;;  %v17103_v1 = vld [vmem:[#allocation2 + $0x2800] ss:$16 sps:$4 sm:$0xff]  }
 0x532   :  { %v17109_v61 = vld [vmem:[#allocation2 + $0x2820] ss:$16 sps:$4 sm:$0xff]  }
 0x533   :  { %10512 = vmatpush1.bf16.msra.mxu0 %v17011_v58  ;;  %11537 = vmatpush1.bf16.msra.mxu1 %v17014_v2  ;;  %v17106_v58 = vld [vmem:[#allocation2 + $0x2808] ss:$16 sps:$4 sm:$0xff]   ;;  %v17111_v2 = vld [vmem:[#allocation2 + $0x2824] ss:$16 sps:$4 sm:$0xff]  }
 0x534   :  { %10513 = vmatprep.subr.bf16.mxu0 %v17019_v3  ;;  %11538 = vmatprep.subr.bf16.mxu1 %v17022_v4  ;;  %v17114_v3 = vld [vmem:[#allocation2 + $0x282c] ss:$16 sps:$4 sm:$0xff]   ;;  %v13143_v4 = vcombine.high %v18208_v0, %v18208_v0 }
 0x537   :  { %10514 = vmatpush1.bf16.msra.mxu0 %v17017_v5  ;;  %11539 = vmatpush1.bf16.msra.mxu1 %v17020_v6  ;;  %v17112_v5 = vld [vmem:[#allocation2 + $0x2828] ss:$16 sps:$4 sm:$0xff]   ;;  %v17117_v6 = vld [vmem:[#allocation2 + $0x2844] ss:$16 sps:$4 sm:$0xff]  }
 0x538   :  { %10515 = vmatprep.subr.bf16.mxu0 %v17025_v7  ;;  %11540 = vmatprep.subr.bf16.mxu1 %v17028_v8  ;;  %v17120_v7 = vld [vmem:[#allocation2 + $0x284c] ss:$16 sps:$4 sm:$0xff]   ;;  %v17115_v8 = vld [vmem:[#allocation2 + $0x2840] ss:$16 sps:$4 sm:$0xff]  }
 0x53b   :  { %10516 = vmatpush1.bf16.msra.mxu0 %v17023_v9  ;;  %11541 = vmatpush1.bf16.msra.mxu1 %v17026_v10  ;;  %v17118_v9 = vld [vmem:[#allocation2 + $0x2848] ss:$16 sps:$4 sm:$0xff]   ;;  %v17123_v10 = vld [vmem:[#allocation2 + $0x2864] ss:$16 sps:$4 sm:$0xff]  }
 0x53c   :  { %10517 = vmatprep.subr.bf16.mxu0 %v17031_v12  ;;  %11542 = vmatprep.subr.bf16.mxu1 %v17034_v13  ;;  %v17126_v12 = vld [vmem:[#allocation2 + $0x286c] ss:$16 sps:$4 sm:$0xff]   ;;  %v17121_v13 = vld [vmem:[#allocation2 + $0x2860] ss:$16 sps:$4 sm:$0xff]  }
 0x53f   :  { %10518 = vmatpush1.bf16.msra.mxu0 %v17029_v15  ;;  %11543 = vmatpush1.bf16.msra.mxu1 %v17032_v16  ;;  %v17124_v15 = vld [vmem:[#allocation2 + $0x2868] ss:$16 sps:$4 sm:$0xff]   ;;  %v17129_v16 = vld [vmem:[#allocation2 + $0x2884] ss:$16 sps:$4 sm:$0xff]  }
 0x540   :  { %10519 = vmatprep.subr.bf16.mxu0 %v17037_v18  ;;  %11544 = vmatprep.subr.bf16.mxu1 %v17040_v11  ;;  %v17132_v18 = vld [vmem:[#allocation2 + $0x288c] ss:$16 sps:$4 sm:$0xff]   ;;  %v17127_v11 = vld [vmem:[#allocation2 + $0x2880] ss:$16 sps:$4 sm:$0xff]  }
 0x543   :  { %10520 = vmatpush1.bf16.msra.mxu0 %v17035_v20  ;;  %11545 = vmatpush1.bf16.msra.mxu1 %v17038_v14  ;;  %v17130_v20 = vld [vmem:[#allocation2 + $0x2888] ss:$16 sps:$4 sm:$0xff]   ;;  %v17135_v14 = vld [vmem:[#allocation2 + $0x28a4] ss:$16 sps:$4 sm:$0xff]  }
 0x544   :  { %10521 = vmatprep.subr.bf16.mxu0 %v17043_v22  ;;  %11546 = vmatprep.subr.bf16.mxu1 %v17046_v23  ;;  %v17138_v22 = vld [vmem:[#allocation2 + $0x28ac] ss:$16 sps:$4 sm:$0xff]   ;;  %v17133_v23 = vld [vmem:[#allocation2 + $0x28a0] ss:$16 sps:$4 sm:$0xff]  }
 0x547   :  { %10522 = vmatpush1.bf16.msra.mxu0 %v17041_v24  ;;  %11547 = vmatpush1.bf16.msra.mxu1 %v17044_v17  ;;  %v17136_v24 = vld [vmem:[#allocation2 + $0x28a8] ss:$16 sps:$4 sm:$0xff]   ;;  %v17141_v17 = vld [vmem:[#allocation2 + $0x28c4] ss:$16 sps:$4 sm:$0xff]  }
 0x548   :  { %10523 = vmatprep.subr.bf16.mxu0 %v17049_v26  ;;  %11548 = vmatprep.subr.bf16.mxu1 %v17052_v27  ;;  %v17144_v26 = vld [vmem:[#allocation2 + $0x28cc] ss:$16 sps:$4 sm:$0xff]   ;;  %v17139_v27 = vld [vmem:[#allocation2 + $0x28c0] ss:$16 sps:$4 sm:$0xff]  }
 0x54b   :  { %10524 = vmatpush1.bf16.msra.mxu0 %v17047_v19  ;;  %11549 = vmatpush1.bf16.msra.mxu1 %v17050_v29  ;;  %v17142_v19 = vld [vmem:[#allocation2 + $0x28c8] ss:$16 sps:$4 sm:$0xff]   ;;  %v17147_v29 = vld [vmem:[#allocation2 + $0x28e4] ss:$16 sps:$4 sm:$0xff]  }
 0x54c   :  { %10525 = vmatprep.subr.bf16.mxu0 %v17055_v30  ;;  %11550 = vmatprep.subr.bf16.mxu1 %v17058_v21  ;;  %v17150_v30 = vld [vmem:[#allocation2 + $0x28ec] ss:$16 sps:$4 sm:$0xff]   ;;  %v17145_v21 = vld [vmem:[#allocation2 + $0x28e0] ss:$16 sps:$4 sm:$0xff]  }
 0x54f   :  { %10526 = vmatpush1.bf16.msra.mxu0 %v17053_v32  ;;  %11551 = vmatpush1.bf16.msra.mxu1 %v17056_v33  ;;  %v17148_v32 = vld [vmem:[#allocation2 + $0x28e8] ss:$16 sps:$4 sm:$0xff]   ;;  %v17153_v33 = vld [vmem:[#allocation2 + $0x2904] ss:$16 sps:$4 sm:$0xff]  }
 0x550   :  { %10527 = vmatprep.subr.bf16.mxu0 %v17061_v25  ;;  %11552 = vmatprep.subr.bf16.mxu1 %v17064_v35  ;;  %v17156_v25 = vld [vmem:[#allocation2 + $0x290c] ss:$16 sps:$4 sm:$0xff]   ;;  %v17151_v35 = vld [vmem:[#allocation2 + $0x2900] ss:$16 sps:$4 sm:$0xff]  }
 0x553   :  { %10528 = vmatpush1.bf16.msra.mxu0 %v17059_v36  ;;  %11553 = vmatpush1.bf16.msra.mxu1 %v17062_v28  ;;  %v17154_v36 = vld [vmem:[#allocation2 + $0x2908] ss:$16 sps:$4 sm:$0xff]   ;;  %v17159_v28 = vld [vmem:[#allocation2 + $0x2924] ss:$16 sps:$4 sm:$0xff]  }
 0x554   :  { %10529 = vmatprep.subr.bf16.mxu0 %v17067_v38  ;;  %11554 = vmatprep.subr.bf16.mxu1 %v17070_v39  ;;  %v17162_v38 = vld [vmem:[#allocation2 + $0x292c] ss:$16 sps:$4 sm:$0xff]   ;;  %v17157_v39 = vld [vmem:[#allocation2 + $0x2920] ss:$16 sps:$4 sm:$0xff]  }
 0x557   :  { %10530 = vmatpush1.bf16.msra.mxu0 %v17065_v31  ;;  %11555 = vmatpush1.bf16.msra.mxu1 %v17068_v41  ;;  %v17160_v31 = vld [vmem:[#allocation2 + $0x2928] ss:$16 sps:$4 sm:$0xff]   ;;  %v17165_v41 = vld [vmem:[#allocation2 + $0x2944] ss:$16 sps:$4 sm:$0xff]  }
 0x558   :  { %10531 = vmatprep.subr.bf16.mxu0 %v17073_v42  ;;  %11556 = vmatprep.subr.bf16.mxu1 %v17076_v34  ;;  %v17168_v42 = vld [vmem:[#allocation2 + $0x294c] ss:$16 sps:$4 sm:$0xff]   ;;  %v17163_v34 = vld [vmem:[#allocation2 + $0x2940] ss:$16 sps:$4 sm:$0xff]  }
 0x55b   :  { %10532 = vmatpush1.bf16.msra.mxu0 %v17071_v44  ;;  %11557 = vmatpush1.bf16.msra.mxu1 %v17074_v45  ;;  %v17166_v44 = vld [vmem:[#allocation2 + $0x2948] ss:$16 sps:$4 sm:$0xff]   ;;  %v17171_v45 = vld [vmem:[#allocation2 + $0x2964] ss:$16 sps:$4 sm:$0xff]  }
 0x55c   :  { %10533 = vmatprep.subr.bf16.mxu0 %v17079_v37  ;;  %11558 = vmatprep.subr.bf16.mxu1 %v17082_v47  ;;  %v17174_v37 = vld [vmem:[#allocation2 + $0x296c] ss:$16 sps:$4 sm:$0xff]   ;;  %v17169_v47 = vld [vmem:[#allocation2 + $0x2960] ss:$16 sps:$4 sm:$0xff]  }
 0x55f   :  { %10534 = vmatpush1.bf16.msra.mxu0 %v17077_v48  ;;  %11559 = vmatpush1.bf16.msra.mxu1 %v17080_v49  ;;  %v17172_v48 = vld [vmem:[#allocation2 + $0x2968] ss:$16 sps:$4 sm:$0xff]   ;;  %v17177_v49 = vld [vmem:[#allocation2 + $0x2984] ss:$16 sps:$4 sm:$0xff]  }
 0x560   :  { %10535 = vmatprep.subr.bf16.mxu0 %v17085_v50  ;;  %11560 = vmatprep.subr.bf16.mxu1 %v17088_v51  ;;  %v17180_v50 = vld [vmem:[#allocation2 + $0x298c] ss:$16 sps:$4 sm:$0xff]   ;;  %v17175_v51 = vld [vmem:[#allocation2 + $0x2980] ss:$16 sps:$4 sm:$0xff]  }
 0x563   :  { %10536 = vmatpush1.bf16.msra.mxu0 %v17083_v52  ;;  %11561 = vmatpush1.bf16.msra.mxu1 %v17086_v53  ;;  %v17178_v52 = vld [vmem:[#allocation2 + $0x2988] ss:$16 sps:$4 sm:$0xff]   ;;  %v17183_v53 = vld [vmem:[#allocation2 + $0x29a4] ss:$16 sps:$4 sm:$0xff]  }
 0x564   :  { %10537 = vmatprep.subr.bf16.mxu0 %v17091_v46  ;;  %11562 = vmatprep.subr.bf16.mxu1 %v17094_v54  ;;  %v17186_v46 = vld [vmem:[#allocation2 + $0x29ac] ss:$16 sps:$4 sm:$0xff]   ;;  %v17181_v54 = vld [vmem:[#allocation2 + $0x29a0] ss:$16 sps:$4 sm:$0xff]  }
 0x567   :  { %10538 = vmatpush1.bf16.msra.mxu0 %v17089_v56  ;;  %11563 = vmatpush1.bf16.msra.mxu1 %v17092_v40  ;;  %v17184_v56 = vld [vmem:[#allocation2 + $0x29a8] ss:$16 sps:$4 sm:$0xff]   ;;  %v17189_v40 = vld [vmem:[#allocation2 + $0x29c4] ss:$16 sps:$4 sm:$0xff]  }
 0x568   :  { %10539 = vmatprep.subr.bf16.mxu0 %v17097_v57  ;;  %11564 = vmatprep.subr.bf16.mxu1 %v17100_v59  ;;  %v17192_v57 = vld [vmem:[#allocation2 + $0x29cc] ss:$16 sps:$4 sm:$0xff]   ;;  %v17187_v59 = vld [vmem:[#allocation2 + $0x29c0] ss:$16 sps:$4 sm:$0xff]  }
 0x56b   :  { %10540 = vmatpush1.bf16.msra.mxu0 %v17095_v43  ;;  %11565 = vmatpush1.bf16.msra.mxu1 %v17098_v60  ;;  %v17190_v43 = vld [vmem:[#allocation2 + $0x29c8] ss:$16 sps:$4 sm:$0xff]   ;;  %v17195_v60 = vld [vmem:[#allocation2 + $0x29e4] ss:$16 sps:$4 sm:$0xff]  }
 0x56c   :  { %10550 = vmatprep.subr.bf16.mxu0 %v17105_v62  ;;  %11575 = vmatprep.subr.bf16.mxu1 %v17108_v55  ;;  %v17198_v62 = vld [vmem:[#allocation2 + $0x29ec] ss:$16 sps:$4 sm:$0xff]   ;;  %v17193_v55 = vld [vmem:[#allocation2 + $0x29e0] ss:$16 sps:$4 sm:$0xff]  }
 0x56e   :  { %10542 = vmatmul.mubr.bf16.vlgmr.msra.gmra.mrb[0].mxu0 %v13140_v63  ;;  %11567 = vmatmul.mubr.bf16.vlgmr.msra.gmra.mrb[0].mxu1 %v13140_v63  ;;  %v17196_v63 = vld [vmem:[#allocation2 + $0x29e8] ss:$16 sps:$4 sm:$0xff]  }
 0x56f   :  { %10551 = vmatpush1.bf16.msra.mxu0 %v17103_v1  ;;  %11576 = vmatpush1.bf16.msra.mxu1 %v17106_v58  ;;  %v17203_v1 = vld [vmem:[#allocation2 + $0x2a04] ss:$16 sps:$4 sm:$0xff]   ;;  %v17206_v58 = vld [vmem:[#allocation2 + $0x2a0c] ss:$16 sps:$4 sm:$0xff]  }
 0x570   :  { %10552 = vmatprep.subr.bf16.mxu0 %v17111_v2  ;;  %11577 = vmatprep.subr.bf16.mxu1 %v17114_v3  ;;  %v13142_v2 = vcombine.low %v18208_v0, %v18208_v0  ;;  %v18217_v3 = vld [vmem:[%s18278_s0 + $0xa8] sm:$0xff]  ;;  %v17207_v0 = vld [vmem:[#allocation2 + $0x2a20] ss:$16 sps:$4 sm:$0xff]  }
 0x571   :  { %10582 = vmatprep.mubr.bf16.mxu0 %v13143_v4  ;;  %11607 = vmatprep.mubr.bf16.mxu1 %v13143_v4  ;;  %v17201_v4 = vld [vmem:[#allocation2 + $0x2a00] ss:$16 sps:$4 sm:$0xff]  }
 0x573   :  { %10553 = vmatpush1.bf16.msra.mxu0 %v17109_v61  ;;  %11578 = vmatpush1.bf16.msra.mxu1 %v17112_v5  ;;  %v17204_v61 = vld [vmem:[#allocation2 + $0x2a08] ss:$16 sps:$4 sm:$0xff]   ;;  %v17209_v5 = vld [vmem:[#allocation2 + $0x2a24] ss:$16 sps:$4 sm:$0xff]  }
 0x574   :  { %10554 = vmatprep.subr.bf16.mxu0 %v17117_v6  ;;  %11579 = vmatprep.subr.bf16.mxu1 %v17120_v7  ;;  %v17212_v6 = vld [vmem:[#allocation2 + $0x2a2c] ss:$16 sps:$4 sm:$0xff]   ;;  %v13145_v7 = vcombine.high %v18217_v3, %v18217_v3 }
 0x577   :  { %10555 = vmatpush1.bf16.msra.mxu0 %v17115_v8  ;;  %11580 = vmatpush1.bf16.msra.mxu1 %v17118_v9  ;;  %v17210_v8 = vld [vmem:[#allocation2 + $0x2a28] ss:$16 sps:$4 sm:$0xff]   ;;  %v17215_v9 = vld [vmem:[#allocation2 + $0x2a44] ss:$16 sps:$4 sm:$0xff]  }
 0x578   :  { %10556 = vmatprep.subr.bf16.mxu0 %v17123_v10  ;;  %11581 = vmatprep.subr.bf16.mxu1 %v17126_v12  ;;  %v17218_v10 = vld [vmem:[#allocation2 + $0x2a4c] ss:$16 sps:$4 sm:$0xff]   ;;  %v17213_v12 = vld [vmem:[#allocation2 + $0x2a40] ss:$16 sps:$4 sm:$0xff]  }
 0x57b   :  { %10557 = vmatpush1.bf16.msra.mxu0 %v17121_v13  ;;  %11582 = vmatpush1.bf16.msra.mxu1 %v17124_v15  ;;  %v17216_v13 = vld [vmem:[#allocation2 + $0x2a48] ss:$16 sps:$4 sm:$0xff]   ;;  %v17221_v15 = vld [vmem:[#allocation2 + $0x2a64] ss:$16 sps:$4 sm:$0xff]  }
 0x57c   :  { %10558 = vmatprep.subr.bf16.mxu0 %v17129_v16  ;;  %11583 = vmatprep.subr.bf16.mxu1 %v17132_v18  ;;  %v17224_v16 = vld [vmem:[#allocation2 + $0x2a6c] ss:$16 sps:$4 sm:$0xff]   ;;  %v17219_v18 = vld [vmem:[#allocation2 + $0x2a60] ss:$16 sps:$4 sm:$0xff]  }
 0x57f   :  { %10559 = vmatpush1.bf16.msra.mxu0 %v17127_v11  ;;  %11584 = vmatpush1.bf16.msra.mxu1 %v17130_v20  ;;  %v17222_v11 = vld [vmem:[#allocation2 + $0x2a68] ss:$16 sps:$4 sm:$0xff]   ;;  %v17227_v20 = vld [vmem:[#allocation2 + $0x2a84] ss:$16 sps:$4 sm:$0xff]  }
 0x580   :  { %10560 = vmatprep.subr.bf16.mxu0 %v17135_v14  ;;  %11585 = vmatprep.subr.bf16.mxu1 %v17138_v22  ;;  %v17230_v14 = vld [vmem:[#allocation2 + $0x2a8c] ss:$16 sps:$4 sm:$0xff]   ;;  %v17225_v22 = vld [vmem:[#allocation2 + $0x2a80] ss:$16 sps:$4 sm:$0xff]  }
 0x583   :  { %10561 = vmatpush1.bf16.msra.mxu0 %v17133_v23  ;;  %11586 = vmatpush1.bf16.msra.mxu1 %v17136_v24  ;;  %v17228_v23 = vld [vmem:[#allocation2 + $0x2a88] ss:$16 sps:$4 sm:$0xff]   ;;  %v17233_v24 = vld [vmem:[#allocation2 + $0x2aa4] ss:$16 sps:$4 sm:$0xff]  }
 0x584   :  { %10562 = vmatprep.subr.bf16.mxu0 %v17141_v17  ;;  %11587 = vmatprep.subr.bf16.mxu1 %v17144_v26  ;;  %v17236_v17 = vld [vmem:[#allocation2 + $0x2aac] ss:$16 sps:$4 sm:$0xff]   ;;  %v17231_v26 = vld [vmem:[#allocation2 + $0x2aa0] ss:$16 sps:$4 sm:$0xff]  }
 0x587   :  { %10563 = vmatpush1.bf16.msra.mxu0 %v17139_v27  ;;  %11588 = vmatpush1.bf16.msra.mxu1 %v17142_v19  ;;  %v17234_v27 = vld [vmem:[#allocation2 + $0x2aa8] ss:$16 sps:$4 sm:$0xff]   ;;  %v17239_v19 = vld [vmem:[#allocation2 + $0x2ac4] ss:$16 sps:$4 sm:$0xff]  }
 0x588   :  { %10564 = vmatprep.subr.bf16.mxu0 %v17147_v29  ;;  %11589 = vmatprep.subr.bf16.mxu1 %v17150_v30  ;;  %v17242_v29 = vld [vmem:[#allocation2 + $0x2acc] ss:$16 sps:$4 sm:$0xff]   ;;  %v17237_v30 = vld [vmem:[#allocation2 + $0x2ac0] ss:$16 sps:$4 sm:$0xff]  }
 0x58b   :  { %10565 = vmatpush1.bf16.msra.mxu0 %v17145_v21  ;;  %11590 = vmatpush1.bf16.msra.mxu1 %v17148_v32  ;;  %v17240_v21 = vld [vmem:[#allocation2 + $0x2ac8] ss:$16 sps:$4 sm:$0xff]   ;;  %v17245_v32 = vld [vmem:[#allocation2 + $0x2ae4] ss:$16 sps:$4 sm:$0xff]  }
 0x58c   :  { %10566 = vmatprep.subr.bf16.mxu0 %v17153_v33  ;;  %11591 = vmatprep.subr.bf16.mxu1 %v17156_v25  ;;  %v17248_v33 = vld [vmem:[#allocation2 + $0x2aec] ss:$16 sps:$4 sm:$0xff]   ;;  %v17243_v25 = vld [vmem:[#allocation2 + $0x2ae0] ss:$16 sps:$4 sm:$0xff]  }
 0x58f   :  { %10567 = vmatpush1.bf16.msra.mxu0 %v17151_v35  ;;  %11592 = vmatpush1.bf16.msra.mxu1 %v17154_v36  ;;  %v17246_v35 = vld [vmem:[#allocation2 + $0x2ae8] ss:$16 sps:$4 sm:$0xff]   ;;  %v17251_v36 = vld [vmem:[#allocation2 + $0x2b04] ss:$16 sps:$4 sm:$0xff]  }
 0x590   :  { %10568 = vmatprep.subr.bf16.mxu0 %v17159_v28  ;;  %11593 = vmatprep.subr.bf16.mxu1 %v17162_v38  ;;  %v17254_v28 = vld [vmem:[#allocation2 + $0x2b0c] ss:$16 sps:$4 sm:$0xff]   ;;  %v17249_v38 = vld [vmem:[#allocation2 + $0x2b00] ss:$16 sps:$4 sm:$0xff]  }
 0x593   :  { %10569 = vmatpush1.bf16.msra.mxu0 %v17157_v39  ;;  %11594 = vmatpush1.bf16.msra.mxu1 %v17160_v31  ;;  %v17252_v39 = vld [vmem:[#allocation2 + $0x2b08] ss:$16 sps:$4 sm:$0xff]   ;;  %v17257_v31 = vld [vmem:[#allocation2 + $0x2b24] ss:$16 sps:$4 sm:$0xff]  }
 0x594   :  { %10570 = vmatprep.subr.bf16.mxu0 %v17165_v41  ;;  %11595 = vmatprep.subr.bf16.mxu1 %v17168_v42  ;;  %v17260_v41 = vld [vmem:[#allocation2 + $0x2b2c] ss:$16 sps:$4 sm:$0xff]   ;;  %v17255_v42 = vld [vmem:[#allocation2 + $0x2b20] ss:$16 sps:$4 sm:$0xff]  }
 0x597   :  { %10571 = vmatpush1.bf16.msra.mxu0 %v17163_v34  ;;  %11596 = vmatpush1.bf16.msra.mxu1 %v17166_v44  ;;  %v17258_v34 = vld [vmem:[#allocation2 + $0x2b28] ss:$16 sps:$4 sm:$0xff]   ;;  %v17263_v44 = vld [vmem:[#allocation2 + $0x2b44] ss:$16 sps:$4 sm:$0xff]  }
 0x598   :  { %10572 = vmatprep.subr.bf16.mxu0 %v17171_v45  ;;  %11597 = vmatprep.subr.bf16.mxu1 %v17174_v37  ;;  %v17266_v45 = vld [vmem:[#allocation2 + $0x2b4c] ss:$16 sps:$4 sm:$0xff]   ;;  %v17261_v37 = vld [vmem:[#allocation2 + $0x2b40] ss:$16 sps:$4 sm:$0xff]  }
 0x59b   :  { %10573 = vmatpush1.bf16.msra.mxu0 %v17169_v47  ;;  %11598 = vmatpush1.bf16.msra.mxu1 %v17172_v48  ;;  %v17264_v47 = vld [vmem:[#allocation2 + $0x2b48] ss:$16 sps:$4 sm:$0xff]   ;;  %v17269_v48 = vld [vmem:[#allocation2 + $0x2b64] ss:$16 sps:$4 sm:$0xff]  }
 0x59c   :  { %10574 = vmatprep.subr.bf16.mxu0 %v17177_v49  ;;  %11599 = vmatprep.subr.bf16.mxu1 %v17180_v50  ;;  %v17272_v49 = vld [vmem:[#allocation2 + $0x2b6c] ss:$16 sps:$4 sm:$0xff]   ;;  %v17267_v50 = vld [vmem:[#allocation2 + $0x2b60] ss:$16 sps:$4 sm:$0xff]  }
 0x59f   :  { %10575 = vmatpush1.bf16.msra.mxu0 %v17175_v51  ;;  %11600 = vmatpush1.bf16.msra.mxu1 %v17178_v52  ;;  %v17270_v51 = vld [vmem:[#allocation2 + $0x2b68] ss:$16 sps:$4 sm:$0xff]   ;;  %v17275_v52 = vld [vmem:[#allocation2 + $0x2b84] ss:$16 sps:$4 sm:$0xff]  }
 0x5a0   :  { %10576 = vmatprep.subr.bf16.mxu0 %v17183_v53  ;;  %11601 = vmatprep.subr.bf16.mxu1 %v17186_v46  ;;  %v17278_v53 = vld [vmem:[#allocation2 + $0x2b8c] ss:$16 sps:$4 sm:$0xff]   ;;  %v17273_v46 = vld [vmem:[#allocation2 + $0x2b80] ss:$16 sps:$4 sm:$0xff]  }
 0x5a3   :  { %10577 = vmatpush1.bf16.msra.mxu0 %v17181_v54  ;;  %11602 = vmatpush1.bf16.msra.mxu1 %v17184_v56  ;;  %v17276_v54 = vld [vmem:[#allocation2 + $0x2b88] ss:$16 sps:$4 sm:$0xff]   ;;  %v17281_v56 = vld [vmem:[#allocation2 + $0x2ba4] ss:$16 sps:$4 sm:$0xff]  }
 0x5a4   :  { %10578 = vmatprep.subr.bf16.mxu0 %v17189_v40  ;;  %11603 = vmatprep.subr.bf16.mxu1 %v17192_v57  ;;  %v17284_v40 = vld [vmem:[#allocation2 + $0x2bac] ss:$16 sps:$4 sm:$0xff]   ;;  %v17279_v57 = vld [vmem:[#allocation2 + $0x2ba0] ss:$16 sps:$4 sm:$0xff]  }
 0x5a7   :  { %10579 = vmatpush1.bf16.msra.mxu0 %v17187_v59  ;;  %11604 = vmatpush1.bf16.msra.mxu1 %v17190_v43  ;;  %v17282_v59 = vld [vmem:[#allocation2 + $0x2ba8] ss:$16 sps:$4 sm:$0xff]   ;;  %v17287_v43 = vld [vmem:[#allocation2 + $0x2bc4] ss:$16 sps:$4 sm:$0xff]  }
 0x5a8   :  { %10580 = vmatprep.subr.bf16.mxu0 %v17195_v60  ;;  %11605 = vmatprep.subr.bf16.mxu1 %v17198_v62  ;;  %v17290_v60 = vld [vmem:[#allocation2 + $0x2bcc] ss:$16 sps:$4 sm:$0xff]   ;;  %v17285_v62 = vld [vmem:[#allocation2 + $0x2bc0] ss:$16 sps:$4 sm:$0xff]  }
 0x5ab   :  { %10581 = vmatpush1.bf16.msra.mxu0 %v17193_v55  ;;  %11606 = vmatpush1.bf16.msra.mxu1 %v17196_v63  ;;  %v17288_v55 = vld [vmem:[#allocation2 + $0x2bc8] ss:$16 sps:$4 sm:$0xff]   ;;  %v17293_v63 = vld [vmem:[#allocation2 + $0x2be4] ss:$16 sps:$4 sm:$0xff]  }
 0x5ac   :  { %10591 = vmatprep.subr.bf16.mxu0 %v17203_v1  ;;  %11616 = vmatprep.subr.bf16.mxu1 %v17206_v58  ;;  %v17296_v1 = vld [vmem:[#allocation2 + $0x2bec] ss:$16 sps:$4 sm:$0xff]   ;;  %v17291_v58 = vld [vmem:[#allocation2 + $0x2be0] ss:$16 sps:$4 sm:$0xff]  }
 0x5ae   :  { %10583 = vmatmul.mubr.bf16.vlgmr.msra.gmra.mrb[0].mxu0 %v13142_v2  ;;  %11608 = vmatmul.mubr.bf16.vlgmr.msra.gmra.mrb[0].mxu1 %v13142_v2  ;;  %v17294_v2 = vld [vmem:[#allocation2 + $0x2be8] ss:$16 sps:$4 sm:$0xff]  }
 0x5af   :  { %10592 = vmatpush1.bf16.msra.mxu0 %v17201_v4  ;;  %11617 = vmatpush1.bf16.msra.mxu1 %v17204_v61  ;;  %v17301_v4 = vld [vmem:[#allocation2 + $0x2c04] ss:$16 sps:$4 sm:$0xff]   ;;  %v17304_v61 = vld [vmem:[#allocation2 + $0x2c0c] ss:$16 sps:$4 sm:$0xff]  }
 0x5b0   :  { %10593 = vmatprep.subr.bf16.mxu0 %v17209_v5  ;;  %11618 = vmatprep.subr.bf16.mxu1 %v17212_v6  ;;  %v13144_v5 = vcombine.low %v18217_v3, %v18217_v3  ;;  %v18226_v6 = vld [vmem:[%s18278_s0 + $0xb0] sm:$0xff] }
 0x5b1   :  { %10623 = vmatprep.mubr.bf16.mxu0 %v13145_v7  ;;  %11648 = vmatprep.mubr.bf16.mxu1 %v13145_v7  ;;  %v17299_v7 = vld [vmem:[#allocation2 + $0x2c00] ss:$16 sps:$4 sm:$0xff]  }
 0x5b2   :  { %v17305_v3 = vld [vmem:[#allocation2 + $0x2c20] ss:$16 sps:$4 sm:$0xff]  }
 0x5b3   :  { %10594 = vmatpush1.bf16.msra.mxu0 %v17207_v0  ;;  %11619 = vmatpush1.bf16.msra.mxu1 %v17210_v8  ;;  %v17302_v0 = vld [vmem:[#allocation2 + $0x2c08] ss:$16 sps:$4 sm:$0xff]   ;;  %v17307_v8 = vld [vmem:[#allocation2 + $0x2c24] ss:$16 sps:$4 sm:$0xff]  }
 0x5b4   :  { %10595 = vmatprep.subr.bf16.mxu0 %v17215_v9  ;;  %11620 = vmatprep.subr.bf16.mxu1 %v17218_v10  ;;  %v17310_v9 = vld [vmem:[#allocation2 + $0x2c2c] ss:$16 sps:$4 sm:$0xff]   ;;  %v13147_v10 = vcombine.high %v18226_v6, %v18226_v6 }
 0x5b7   :  { %10596 = vmatpush1.bf16.msra.mxu0 %v17213_v12  ;;  %11621 = vmatpush1.bf16.msra.mxu1 %v17216_v13  ;;  %v17308_v12 = vld [vmem:[#allocation2 + $0x2c28] ss:$16 sps:$4 sm:$0xff]   ;;  %v17313_v13 = vld [vmem:[#allocation2 + $0x2c44] ss:$16 sps:$4 sm:$0xff]  }
 0x5b8   :  { %10597 = vmatprep.subr.bf16.mxu0 %v17221_v15  ;;  %11622 = vmatprep.subr.bf16.mxu1 %v17224_v16  ;;  %v17316_v15 = vld [vmem:[#allocation2 + $0x2c4c] ss:$16 sps:$4 sm:$0xff]   ;;  %v17311_v16 = vld [vmem:[#allocation2 + $0x2c40] ss:$16 sps:$4 sm:$0xff]  }
 0x5bb   :  { %10598 = vmatpush1.bf16.msra.mxu0 %v17219_v18  ;;  %11623 = vmatpush1.bf16.msra.mxu1 %v17222_v11  ;;  %v17314_v18 = vld [vmem:[#allocation2 + $0x2c48] ss:$16 sps:$4 sm:$0xff]   ;;  %v17319_v11 = vld [vmem:[#allocation2 + $0x2c64] ss:$16 sps:$4 sm:$0xff]  }
 0x5bc   :  { %10599 = vmatprep.subr.bf16.mxu0 %v17227_v20  ;;  %11624 = vmatprep.subr.bf16.mxu1 %v17230_v14  ;;  %v17322_v20 = vld [vmem:[#allocation2 + $0x2c6c] ss:$16 sps:$4 sm:$0xff]   ;;  %v17317_v14 = vld [vmem:[#allocation2 + $0x2c60] ss:$16 sps:$4 sm:$0xff]  }
 0x5bf   :  { %10600 = vmatpush1.bf16.msra.mxu0 %v17225_v22  ;;  %11625 = vmatpush1.bf16.msra.mxu1 %v17228_v23  ;;  %v17320_v22 = vld [vmem:[#allocation2 + $0x2c68] ss:$16 sps:$4 sm:$0xff]   ;;  %v17325_v23 = vld [vmem:[#allocation2 + $0x2c84] ss:$16 sps:$4 sm:$0xff]  }
 0x5c0   :  { %10601 = vmatprep.subr.bf16.mxu0 %v17233_v24  ;;  %11626 = vmatprep.subr.bf16.mxu1 %v17236_v17  ;;  %v17328_v24 = vld [vmem:[#allocation2 + $0x2c8c] ss:$16 sps:$4 sm:$0xff]   ;;  %v17323_v17 = vld [vmem:[#allocation2 + $0x2c80] ss:$16 sps:$4 sm:$0xff]  }
 0x5c3   :  { %10602 = vmatpush1.bf16.msra.mxu0 %v17231_v26  ;;  %11627 = vmatpush1.bf16.msra.mxu1 %v17234_v27  ;;  %v17326_v26 = vld [vmem:[#allocation2 + $0x2c88] ss:$16 sps:$4 sm:$0xff]   ;;  %v17331_v27 = vld [vmem:[#allocation2 + $0x2ca4] ss:$16 sps:$4 sm:$0xff]  }
 0x5c4   :  { %10603 = vmatprep.subr.bf16.mxu0 %v17239_v19  ;;  %11628 = vmatprep.subr.bf16.mxu1 %v17242_v29  ;;  %v17334_v19 = vld [vmem:[#allocation2 + $0x2cac] ss:$16 sps:$4 sm:$0xff]   ;;  %v17329_v29 = vld [vmem:[#allocation2 + $0x2ca0] ss:$16 sps:$4 sm:$0xff]  }
 0x5c7   :  { %10604 = vmatpush1.bf16.msra.mxu0 %v17237_v30  ;;  %11629 = vmatpush1.bf16.msra.mxu1 %v17240_v21  ;;  %v17332_v30 = vld [vmem:[#allocation2 + $0x2ca8] ss:$16 sps:$4 sm:$0xff]   ;;  %v17337_v21 = vld [vmem:[#allocation2 + $0x2cc4] ss:$16 sps:$4 sm:$0xff]  }
 0x5c8   :  { %10605 = vmatprep.subr.bf16.mxu0 %v17245_v32  ;;  %11630 = vmatprep.subr.bf16.mxu1 %v17248_v33  ;;  %v17340_v32 = vld [vmem:[#allocation2 + $0x2ccc] ss:$16 sps:$4 sm:$0xff]   ;;  %v17335_v33 = vld [vmem:[#allocation2 + $0x2cc0] ss:$16 sps:$4 sm:$0xff]  }
 0x5cb   :  { %10606 = vmatpush1.bf16.msra.mxu0 %v17243_v25  ;;  %11631 = vmatpush1.bf16.msra.mxu1 %v17246_v35  ;;  %v17338_v25 = vld [vmem:[#allocation2 + $0x2cc8] ss:$16 sps:$4 sm:$0xff]   ;;  %v17343_v35 = vld [vmem:[#allocation2 + $0x2ce4] ss:$16 sps:$4 sm:$0xff]  }
 0x5cc   :  { %10607 = vmatprep.subr.bf16.mxu0 %v17251_v36  ;;  %11632 = vmatprep.subr.bf16.mxu1 %v17254_v28  ;;  %v17346_v36 = vld [vmem:[#allocation2 + $0x2cec] ss:$16 sps:$4 sm:$0xff]   ;;  %v17341_v28 = vld [vmem:[#allocation2 + $0x2ce0] ss:$16 sps:$4 sm:$0xff]  }
 0x5cf   :  { %10608 = vmatpush1.bf16.msra.mxu0 %v17249_v38  ;;  %11633 = vmatpush1.bf16.msra.mxu1 %v17252_v39  ;;  %v17344_v38 = vld [vmem:[#allocation2 + $0x2ce8] ss:$16 sps:$4 sm:$0xff]   ;;  %v17349_v39 = vld [vmem:[#allocation2 + $0x2d04] ss:$16 sps:$4 sm:$0xff]  }
 0x5d0   :  { %10609 = vmatprep.subr.bf16.mxu0 %v17257_v31  ;;  %11634 = vmatprep.subr.bf16.mxu1 %v17260_v41  ;;  %v17352_v31 = vld [vmem:[#allocation2 + $0x2d0c] ss:$16 sps:$4 sm:$0xff]   ;;  %v17347_v41 = vld [vmem:[#allocation2 + $0x2d00] ss:$16 sps:$4 sm:$0xff]  }
 0x5d3   :  { %10610 = vmatpush1.bf16.msra.mxu0 %v17255_v42  ;;  %11635 = vmatpush1.bf16.msra.mxu1 %v17258_v34  ;;  %v17350_v42 = vld [vmem:[#allocation2 + $0x2d08] ss:$16 sps:$4 sm:$0xff]   ;;  %v17355_v34 = vld [vmem:[#allocation2 + $0x2d24] ss:$16 sps:$4 sm:$0xff]  }
 0x5d4   :  { %10611 = vmatprep.subr.bf16.mxu0 %v17263_v44  ;;  %11636 = vmatprep.subr.bf16.mxu1 %v17266_v45  ;;  %v17358_v44 = vld [vmem:[#allocation2 + $0x2d2c] ss:$16 sps:$4 sm:$0xff]   ;;  %v17353_v45 = vld [vmem:[#allocation2 + $0x2d20] ss:$16 sps:$4 sm:$0xff]  }
 0x5d7   :  { %10612 = vmatpush1.bf16.msra.mxu0 %v17261_v37  ;;  %11637 = vmatpush1.bf16.msra.mxu1 %v17264_v47  ;;  %v17356_v37 = vld [vmem:[#allocation2 + $0x2d28] ss:$16 sps:$4 sm:$0xff]   ;;  %v17361_v47 = vld [vmem:[#allocation2 + $0x2d44] ss:$16 sps:$4 sm:$0xff]  }
 0x5d8   :  { %10613 = vmatprep.subr.bf16.mxu0 %v17269_v48  ;;  %11638 = vmatprep.subr.bf16.mxu1 %v17272_v49  ;;  %v17364_v48 = vld [vmem:[#allocation2 + $0x2d4c] ss:$16 sps:$4 sm:$0xff]   ;;  %v17359_v49 = vld [vmem:[#allocation2 + $0x2d40] ss:$16 sps:$4 sm:$0xff]  }
 0x5db   :  { %10614 = vmatpush1.bf16.msra.mxu0 %v17267_v50  ;;  %11639 = vmatpush1.bf16.msra.mxu1 %v17270_v51  ;;  %v17362_v50 = vld [vmem:[#allocation2 + $0x2d48] ss:$16 sps:$4 sm:$0xff]   ;;  %v17367_v51 = vld [vmem:[#allocation2 + $0x2d64] ss:$16 sps:$4 sm:$0xff]  }
 0x5dc   :  { %10615 = vmatprep.subr.bf16.mxu0 %v17275_v52  ;;  %11640 = vmatprep.subr.bf16.mxu1 %v17278_v53  ;;  %v17370_v52 = vld [vmem:[#allocation2 + $0x2d6c] ss:$16 sps:$4 sm:$0xff]   ;;  %v17365_v53 = vld [vmem:[#allocation2 + $0x2d60] ss:$16 sps:$4 sm:$0xff]  }
 0x5df   :  { %10616 = vmatpush1.bf16.msra.mxu0 %v17273_v46  ;;  %11641 = vmatpush1.bf16.msra.mxu1 %v17276_v54  ;;  %v17368_v46 = vld [vmem:[#allocation2 + $0x2d68] ss:$16 sps:$4 sm:$0xff]   ;;  %v17373_v54 = vld [vmem:[#allocation2 + $0x2d84] ss:$16 sps:$4 sm:$0xff]  }
 0x5e0   :  { %10617 = vmatprep.subr.bf16.mxu0 %v17281_v56  ;;  %11642 = vmatprep.subr.bf16.mxu1 %v17284_v40  ;;  %v17376_v56 = vld [vmem:[#allocation2 + $0x2d8c] ss:$16 sps:$4 sm:$0xff]   ;;  %v17371_v40 = vld [vmem:[#allocation2 + $0x2d80] ss:$16 sps:$4 sm:$0xff]  }
 0x5e3   :  { %10618 = vmatpush1.bf16.msra.mxu0 %v17279_v57  ;;  %11643 = vmatpush1.bf16.msra.mxu1 %v17282_v59  ;;  %v17374_v57 = vld [vmem:[#allocation2 + $0x2d88] ss:$16 sps:$4 sm:$0xff]   ;;  %v17379_v59 = vld [vmem:[#allocation2 + $0x2da4] ss:$16 sps:$4 sm:$0xff]  }
 0x5e4   :  { %10619 = vmatprep.subr.bf16.mxu0 %v17287_v43  ;;  %11644 = vmatprep.subr.bf16.mxu1 %v17290_v60  ;;  %v17382_v43 = vld [vmem:[#allocation2 + $0x2dac] ss:$16 sps:$4 sm:$0xff]   ;;  %v17377_v60 = vld [vmem:[#allocation2 + $0x2da0] ss:$16 sps:$4 sm:$0xff]  }
 0x5e7   :  { %10620 = vmatpush1.bf16.msra.mxu0 %v17285_v62  ;;  %11645 = vmatpush1.bf16.msra.mxu1 %v17288_v55  ;;  %v17380_v62 = vld [vmem:[#allocation2 + $0x2da8] ss:$16 sps:$4 sm:$0xff]   ;;  %v17385_v55 = vld [vmem:[#allocation2 + $0x2dc4] ss:$16 sps:$4 sm:$0xff]  }
 0x5e8   :  { %10621 = vmatprep.subr.bf16.mxu0 %v17293_v63  ;;  %11646 = vmatprep.subr.bf16.mxu1 %v17296_v1  ;;  %v17388_v63 = vld [vmem:[#allocation2 + $0x2dcc] ss:$16 sps:$4 sm:$0xff]   ;;  %v17383_v1 = vld [vmem:[#allocation2 + $0x2dc0] ss:$16 sps:$4 sm:$0xff]  }
 0x5eb   :  { %10622 = vmatpush1.bf16.msra.mxu0 %v17291_v58  ;;  %11647 = vmatpush1.bf16.msra.mxu1 %v17294_v2  ;;  %v17386_v58 = vld [vmem:[#allocation2 + $0x2dc8] ss:$16 sps:$4 sm:$0xff]   ;;  %v17391_v2 = vld [vmem:[#allocation2 + $0x2de4] ss:$16 sps:$4 sm:$0xff]  }
 0x5ec   :  { %10632 = vmatprep.subr.bf16.mxu0 %v17301_v4  ;;  %11657 = vmatprep.subr.bf16.mxu1 %v17304_v61  ;;  %v17394_v4 = vld [vmem:[#allocation2 + $0x2dec] ss:$16 sps:$4 sm:$0xff]   ;;  %v17389_v61 = vld [vmem:[#allocation2 + $0x2de0] ss:$16 sps:$4 sm:$0xff]  }
 0x5ee   :  { %10624 = vmatmul.mubr.bf16.vlgmr.msra.gmra.mrb[0].mxu0 %v13144_v5  ;;  %11649 = vmatmul.mubr.bf16.vlgmr.msra.gmra.mrb[0].mxu1 %v13144_v5  ;;  %v17392_v5 = vld [vmem:[#allocation2 + $0x2de8] ss:$16 sps:$4 sm:$0xff]  }
 0x5ef   :  { %10633 = vmatpush1.bf16.msra.mxu0 %v17299_v7  ;;  %11658 = vmatpush1.bf16.msra.mxu1 %v17302_v0  ;;  %v17399_v7 = vld [vmem:[#allocation2 + $0x2e04] ss:$16 sps:$4 sm:$0xff]   ;;  %v17402_v0 = vld [vmem:[#allocation2 + $0x2e0c] ss:$16 sps:$4 sm:$0xff]  }
 0x5f0   :  { %10634 = vmatprep.subr.bf16.mxu0 %v17307_v8  ;;  %11659 = vmatprep.subr.bf16.mxu1 %v17310_v9  ;;  %v13146_v8 = vcombine.low %v18226_v6, %v18226_v6  ;;  %v18235_v9 = vld [vmem:[%s18278_s0 + $0xb8] sm:$0xff]  ;;  %v17403_v6 = vld [vmem:[#allocation2 + $0x2e20] ss:$16 sps:$4 sm:$0xff]  }
 0x5f1   :  { %10664 = vmatprep.mubr.bf16.mxu0 %v13147_v10  ;;  %11689 = vmatprep.mubr.bf16.mxu1 %v13147_v10  ;;  %v17397_v10 = vld [vmem:[#allocation2 + $0x2e00] ss:$16 sps:$4 sm:$0xff]  }
 0x5f3   :  { %10635 = vmatpush1.bf16.msra.mxu0 %v17305_v3  ;;  %11660 = vmatpush1.bf16.msra.mxu1 %v17308_v12  ;;  %v17400_v3 = vld [vmem:[#allocation2 + $0x2e08] ss:$16 sps:$4 sm:$0xff]   ;;  %v17405_v12 = vld [vmem:[#allocation2 + $0x2e24] ss:$16 sps:$4 sm:$0xff]  }
 0x5f4   :  { %10636 = vmatprep.subr.bf16.mxu0 %v17313_v13  ;;  %11661 = vmatprep.subr.bf16.mxu1 %v17316_v15  ;;  %v17408_v13 = vld [vmem:[#allocation2 + $0x2e2c] ss:$16 sps:$4 sm:$0xff]   ;;  %v13149_v15 = vcombine.high %v18235_v9, %v18235_v9 }
 0x5f7   :  { %10637 = vmatpush1.bf16.msra.mxu0 %v17311_v16  ;;  %11662 = vmatpush1.bf16.msra.mxu1 %v17314_v18  ;;  %v17406_v16 = vld [vmem:[#allocation2 + $0x2e28] ss:$16 sps:$4 sm:$0xff]   ;;  %v17411_v18 = vld [vmem:[#allocation2 + $0x2e44] ss:$16 sps:$4 sm:$0xff]  }
 0x5f8   :  { %10638 = vmatprep.subr.bf16.mxu0 %v17319_v11  ;;  %11663 = vmatprep.subr.bf16.mxu1 %v17322_v20  ;;  %v17414_v11 = vld [vmem:[#allocation2 + $0x2e4c] ss:$16 sps:$4 sm:$0xff]   ;;  %v17409_v20 = vld [vmem:[#allocation2 + $0x2e40] ss:$16 sps:$4 sm:$0xff]  }
 0x5fb   :  { %10639 = vmatpush1.bf16.msra.mxu0 %v17317_v14  ;;  %11664 = vmatpush1.bf16.msra.mxu1 %v17320_v22  ;;  %v17412_v14 = vld [vmem:[#allocation2 + $0x2e48] ss:$16 sps:$4 sm:$0xff]   ;;  %v17417_v22 = vld [vmem:[#allocation2 + $0x2e64] ss:$16 sps:$4 sm:$0xff]  }
 0x5fc   :  { %10640 = vmatprep.subr.bf16.mxu0 %v17325_v23  ;;  %11665 = vmatprep.subr.bf16.mxu1 %v17328_v24  ;;  %v17420_v23 = vld [vmem:[#allocation2 + $0x2e6c] ss:$16 sps:$4 sm:$0xff]   ;;  %v17415_v24 = vld [vmem:[#allocation2 + $0x2e60] ss:$16 sps:$4 sm:$0xff]  }
 0x5ff   :  { %10641 = vmatpush1.bf16.msra.mxu0 %v17323_v17  ;;  %11666 = vmatpush1.bf16.msra.mxu1 %v17326_v26  ;;  %v17418_v17 = vld [vmem:[#allocation2 + $0x2e68] ss:$16 sps:$4 sm:$0xff]   ;;  %v17423_v26 = vld [vmem:[#allocation2 + $0x2e84] ss:$16 sps:$4 sm:$0xff]  }
 0x600   :  { %10642 = vmatprep.subr.bf16.mxu0 %v17331_v27  ;;  %11667 = vmatprep.subr.bf16.mxu1 %v17334_v19  ;;  %v17426_v27 = vld [vmem:[#allocation2 + $0x2e8c] ss:$16 sps:$4 sm:$0xff]   ;;  %v17421_v19 = vld [vmem:[#allocation2 + $0x2e80] ss:$16 sps:$4 sm:$0xff]  }
 0x603   :  { %10643 = vmatpush1.bf16.msra.mxu0 %v17329_v29  ;;  %11668 = vmatpush1.bf16.msra.mxu1 %v17332_v30  ;;  %v17424_v29 = vld [vmem:[#allocation2 + $0x2e88] ss:$16 sps:$4 sm:$0xff]   ;;  %v17429_v30 = vld [vmem:[#allocation2 + $0x2ea4] ss:$16 sps:$4 sm:$0xff]  }
 0x604   :  { %10644 = vmatprep.subr.bf16.mxu0 %v17337_v21  ;;  %11669 = vmatprep.subr.bf16.mxu1 %v17340_v32  ;;  %v17432_v21 = vld [vmem:[#allocation2 + $0x2eac] ss:$16 sps:$4 sm:$0xff]   ;;  %v17427_v32 = vld [vmem:[#allocation2 + $0x2ea0] ss:$16 sps:$4 sm:$0xff]  }
 0x607   :  { %10645 = vmatpush1.bf16.msra.mxu0 %v17335_v33  ;;  %11670 = vmatpush1.bf16.msra.mxu1 %v17338_v25  ;;  %v17430_v33 = vld [vmem:[#allocation2 + $0x2ea8] ss:$16 sps:$4 sm:$0xff]   ;;  %v17435_v25 = vld [vmem:[#allocation2 + $0x2ec4] ss:$16 sps:$4 sm:$0xff]  }
 0x608   :  { %10646 = vmatprep.subr.bf16.mxu0 %v17343_v35  ;;  %11671 = vmatprep.subr.bf16.mxu1 %v17346_v36  ;;  %v17438_v35 = vld [vmem:[#allocation2 + $0x2ecc] ss:$16 sps:$4 sm:$0xff]   ;;  %v17433_v36 = vld [vmem:[#allocation2 + $0x2ec0] ss:$16 sps:$4 sm:$0xff]  }
 0x60b   :  { %10647 = vmatpush1.bf16.msra.mxu0 %v17341_v28  ;;  %11672 = vmatpush1.bf16.msra.mxu1 %v17344_v38  ;;  %v17436_v28 = vld [vmem:[#allocation2 + $0x2ec8] ss:$16 sps:$4 sm:$0xff]   ;;  %v17441_v38 = vld [vmem:[#allocation2 + $0x2ee4] ss:$16 sps:$4 sm:$0xff]  }
 0x60c   :  { %10648 = vmatprep.subr.bf16.mxu0 %v17349_v39  ;;  %11673 = vmatprep.subr.bf16.mxu1 %v17352_v31  ;;  %v17444_v39 = vld [vmem:[#allocation2 + $0x2eec] ss:$16 sps:$4 sm:$0xff]   ;;  %v17439_v31 = vld [vmem:[#allocation2 + $0x2ee0] ss:$16 sps:$4 sm:$0xff]  }
 0x60f   :  { %10649 = vmatpush1.bf16.msra.mxu0 %v17347_v41  ;;  %11674 = vmatpush1.bf16.msra.mxu1 %v17350_v42  ;;  %v17442_v41 = vld [vmem:[#allocation2 + $0x2ee8] ss:$16 sps:$4 sm:$0xff]   ;;  %v17447_v42 = vld [vmem:[#allocation2 + $0x2f04] ss:$16 sps:$4 sm:$0xff]  }
 0x610   :  { %10650 = vmatprep.subr.bf16.mxu0 %v17355_v34  ;;  %11675 = vmatprep.subr.bf16.mxu1 %v17358_v44  ;;  %v17450_v34 = vld [vmem:[#allocation2 + $0x2f0c] ss:$16 sps:$4 sm:$0xff]   ;;  %v17445_v44 = vld [vmem:[#allocation2 + $0x2f00] ss:$16 sps:$4 sm:$0xff]  }
 0x613   :  { %10651 = vmatpush1.bf16.msra.mxu0 %v17353_v45  ;;  %11676 = vmatpush1.bf16.msra.mxu1 %v17356_v37  ;;  %v17448_v45 = vld [vmem:[#allocation2 + $0x2f08] ss:$16 sps:$4 sm:$0xff]   ;;  %v17453_v37 = vld [vmem:[#allocation2 + $0x2f24] ss:$16 sps:$4 sm:$0xff]  }
 0x614   :  { %10652 = vmatprep.subr.bf16.mxu0 %v17361_v47  ;;  %11677 = vmatprep.subr.bf16.mxu1 %v17364_v48  ;;  %v17456_v47 = vld [vmem:[#allocation2 + $0x2f2c] ss:$16 sps:$4 sm:$0xff]   ;;  %v17451_v48 = vld [vmem:[#allocation2 + $0x2f20] ss:$16 sps:$4 sm:$0xff]  }
 0x617   :  { %10653 = vmatpush1.bf16.msra.mxu0 %v17359_v49  ;;  %11678 = vmatpush1.bf16.msra.mxu1 %v17362_v50  ;;  %v17454_v49 = vld [vmem:[#allocation2 + $0x2f28] ss:$16 sps:$4 sm:$0xff]   ;;  %v17459_v50 = vld [vmem:[#allocation2 + $0x2f44] ss:$16 sps:$4 sm:$0xff]  }
 0x618   :  { %10654 = vmatprep.subr.bf16.mxu0 %v17367_v51  ;;  %11679 = vmatprep.subr.bf16.mxu1 %v17370_v52  ;;  %v17462_v51 = vld [vmem:[#allocation2 + $0x2f4c] ss:$16 sps:$4 sm:$0xff]   ;;  %v17457_v52 = vld [vmem:[#allocation2 + $0x2f40] ss:$16 sps:$4 sm:$0xff]  }
 0x61b   :  { %10655 = vmatpush1.bf16.msra.mxu0 %v17365_v53  ;;  %11680 = vmatpush1.bf16.msra.mxu1 %v17368_v46  ;;  %v17460_v53 = vld [vmem:[#allocation2 + $0x2f48] ss:$16 sps:$4 sm:$0xff]   ;;  %v17465_v46 = vld [vmem:[#allocation2 + $0x2f64] ss:$16 sps:$4 sm:$0xff]  }
 0x61c   :  { %10656 = vmatprep.subr.bf16.mxu0 %v17373_v54  ;;  %11681 = vmatprep.subr.bf16.mxu1 %v17376_v56  ;;  %v17468_v54 = vld [vmem:[#allocation2 + $0x2f6c] ss:$16 sps:$4 sm:$0xff]   ;;  %v17463_v56 = vld [vmem:[#allocation2 + $0x2f60] ss:$16 sps:$4 sm:$0xff]  }
 0x61f   :  { %10657 = vmatpush1.bf16.msra.mxu0 %v17371_v40  ;;  %11682 = vmatpush1.bf16.msra.mxu1 %v17374_v57  ;;  %v17466_v40 = vld [vmem:[#allocation2 + $0x2f68] ss:$16 sps:$4 sm:$0xff]   ;;  %v17471_v57 = vld [vmem:[#allocation2 + $0x2f84] ss:$16 sps:$4 sm:$0xff]  }
 0x620   :  { %10658 = vmatprep.subr.bf16.mxu0 %v17379_v59  ;;  %11683 = vmatprep.subr.bf16.mxu1 %v17382_v43  ;;  %v17474_v59 = vld [vmem:[#allocation2 + $0x2f8c] ss:$16 sps:$4 sm:$0xff]   ;;  %v17469_v43 = vld [vmem:[#allocation2 + $0x2f80] ss:$16 sps:$4 sm:$0xff]  }
 0x623   :  { %10659 = vmatpush1.bf16.msra.mxu0 %v17377_v60  ;;  %11684 = vmatpush1.bf16.msra.mxu1 %v17380_v62  ;;  %v17472_v60 = vld [vmem:[#allocation2 + $0x2f88] ss:$16 sps:$4 sm:$0xff]   ;;  %v17477_v62 = vld [vmem:[#allocation2 + $0x2fa4] ss:$16 sps:$4 sm:$0xff]  }
 0x624   :  { %10660 = vmatprep.subr.bf16.mxu0 %v17385_v55  ;;  %11685 = vmatprep.subr.bf16.mxu1 %v17388_v63  ;;  %v17480_v55 = vld [vmem:[#allocation2 + $0x2fac] ss:$16 sps:$4 sm:$0xff]   ;;  %v17475_v63 = vld [vmem:[#allocation2 + $0x2fa0] ss:$16 sps:$4 sm:$0xff]  }
 0x627   :  { %10661 = vmatpush1.bf16.msra.mxu0 %v17383_v1  ;;  %11686 = vmatpush1.bf16.msra.mxu1 %v17386_v58  ;;  %v17478_v1 = vld [vmem:[#allocation2 + $0x2fa8] ss:$16 sps:$4 sm:$0xff]   ;;  %v17483_v58 = vld [vmem:[#allocation2 + $0x2fc4] ss:$16 sps:$4 sm:$0xff]  }
 0x628   :  { %10662 = vmatprep.subr.bf16.mxu0 %v17391_v2  ;;  %11687 = vmatprep.subr.bf16.mxu1 %v17394_v4  ;;  %v17486_v2 = vld [vmem:[#allocation2 + $0x2fcc] ss:$16 sps:$4 sm:$0xff]   ;;  %v17481_v4 = vld [vmem:[#allocation2 + $0x2fc0] ss:$16 sps:$4 sm:$0xff]  }
 0x62b   :  { %10663 = vmatpush1.bf16.msra.mxu0 %v17389_v61  ;;  %11688 = vmatpush1.bf16.msra.mxu1 %v17392_v5  ;;  %v17484_v61 = vld [vmem:[#allocation2 + $0x2fc8] ss:$16 sps:$4 sm:$0xff]   ;;  %v17489_v5 = vld [vmem:[#allocation2 + $0x2fe4] ss:$16 sps:$4 sm:$0xff]  }
 0x62c   :  { %10673 = vmatprep.subr.bf16.mxu0 %v17399_v7  ;;  %11698 = vmatprep.subr.bf16.mxu1 %v17402_v0  ;;  %v17492_v7 = vld [vmem:[#allocation2 + $0x2fec] ss:$16 sps:$4 sm:$0xff]   ;;  %v17487_v0 = vld [vmem:[#allocation2 + $0x2fe0] ss:$16 sps:$4 sm:$0xff]  }
 0x62e   :  { %10665 = vmatmul.mubr.bf16.vlgmr.msra.gmra.mrb[0].mxu0 %v13146_v8  ;;  %11690 = vmatmul.mubr.bf16.vlgmr.msra.gmra.mrb[0].mxu1 %v13146_v8  ;;  %v17490_v8 = vld [vmem:[#allocation2 + $0x2fe8] ss:$16 sps:$4 sm:$0xff]  }
 0x62f   :  { %10674 = vmatpush1.bf16.msra.mxu0 %v17397_v10  ;;  %11699 = vmatpush1.bf16.msra.mxu1 %v17400_v3  ;;  %v17497_v10 = vld [vmem:[#allocation2 + $0x3004] ss:$16 sps:$4 sm:$0xff]   ;;  %v17500_v3 = vld [vmem:[#allocation2 + $0x300c] ss:$16 sps:$4 sm:$0xff]  }
 0x630   :  { %10675 = vmatprep.subr.bf16.mxu0 %v17405_v12  ;;  %11700 = vmatprep.subr.bf16.mxu1 %v17408_v13  ;;  %v13148_v12 = vcombine.low %v18235_v9, %v18235_v9  ;;  %v17495_v13 = vld [vmem:[#allocation2 + $0x3000] ss:$16 sps:$4 sm:$0xff]  }
 0x631   :  { %10705 = vmatprep.mubr.bf16.mxu0 %v13149_v15  ;;  %11730 = vmatprep.mubr.bf16.mxu1 %v13149_v15  ;;  %v17498_v15 = vld [vmem:[#allocation2 + $0x3008] ss:$16 sps:$4 sm:$0xff]   ;;  %v17507_v9 = vld [vmem:[#allocation2 + $0x3040] ss:$16 sps:$4 sm:$0xff]  }
 0x633   :  { %10676 = vmatpush1.bf16.msra.mxu0 %v17403_v6  ;;  %11701 = vmatpush1.bf16.msra.mxu1 %v17406_v16  ;;  %v17503_v6 = vld [vmem:[#allocation2 + $0x3024] ss:$16 sps:$4 sm:$0xff]   ;;  %v17506_v16 = vld [vmem:[#allocation2 + $0x302c] ss:$16 sps:$4 sm:$0xff]  }
 0x634   :  { %10677 = vmatprep.subr.bf16.mxu0 %v17411_v18  ;;  %11702 = vmatprep.subr.bf16.mxu1 %v17414_v11  ;;  %v17501_v18 = vld [vmem:[#allocation2 + $0x3020] ss:$16 sps:$4 sm:$0xff]   ;;  %v17504_v11 = vld [vmem:[#allocation2 + $0x3028] ss:$16 sps:$4 sm:$0xff]  }
 0x637   :  { %10678 = vmatpush1.bf16.msra.mxu0 %v17409_v20  ;;  %11703 = vmatpush1.bf16.msra.mxu1 %v17412_v14  ;;  %v17509_v20 = vld [vmem:[#allocation2 + $0x3044] ss:$16 sps:$4 sm:$0xff]   ;;  %v17512_v14 = vld [vmem:[#allocation2 + $0x304c] ss:$16 sps:$4 sm:$0xff]  }
 0x638   :  { %10679 = vmatprep.subr.bf16.mxu0 %v17417_v22  ;;  %11704 = vmatprep.subr.bf16.mxu1 %v17420_v23  ;;  %v17918_v22 = vmov 0   ;;  %v17510_v23 = vld [vmem:[#allocation2 + $0x3048] ss:$16 sps:$4 sm:$0xff]  }
 0x63b   :  { %10680 = vmatpush1.bf16.msra.mxu0 %v17415_v24  ;;  %11705 = vmatpush1.bf16.msra.mxu1 %v17418_v17  ;;  %v17515_v24 = vld [vmem:[#allocation2 + $0x3064] ss:$16 sps:$4 sm:$0xff]   ;;  %v17518_v17 = vld [vmem:[#allocation2 + $0x306c] ss:$16 sps:$4 sm:$0xff]  }
 0x63c   :  { %10681 = vmatprep.subr.bf16.mxu0 %v17423_v26  ;;  %11706 = vmatprep.subr.bf16.mxu1 %v17426_v27  ;;  %v17513_v26 = vld [vmem:[#allocation2 + $0x3060] ss:$16 sps:$4 sm:$0xff]   ;;  %v17516_v27 = vld [vmem:[#allocation2 + $0x3068] ss:$16 sps:$4 sm:$0xff]  }
 0x63f   :  { %10682 = vmatpush1.bf16.msra.mxu0 %v17421_v19  ;;  %11707 = vmatpush1.bf16.msra.mxu1 %v17424_v29  ;;  %v17521_v19 = vld [vmem:[#allocation2 + $0x3084] ss:$16 sps:$4 sm:$0xff]   ;;  %v17524_v29 = vld [vmem:[#allocation2 + $0x308c] ss:$16 sps:$4 sm:$0xff]  }
 0x640   :  { %10683 = vmatprep.subr.bf16.mxu0 %v17429_v30  ;;  %11708 = vmatprep.subr.bf16.mxu1 %v17432_v21  ;;  %v17519_v30 = vld [vmem:[#allocation2 + $0x3080] ss:$16 sps:$4 sm:$0xff]   ;;  %v17522_v21 = vld [vmem:[#allocation2 + $0x3088] ss:$16 sps:$4 sm:$0xff]  }
 0x643   :  { %10684 = vmatpush1.bf16.msra.mxu0 %v17427_v32  ;;  %11709 = vmatpush1.bf16.msra.mxu1 %v17430_v33  ;;  %v17527_v32 = vld [vmem:[#allocation2 + $0x30a4] ss:$16 sps:$4 sm:$0xff]   ;;  %v17530_v33 = vld [vmem:[#allocation2 + $0x30ac] ss:$16 sps:$4 sm:$0xff]  }
 0x644   :  { %10685 = vmatprep.subr.bf16.mxu0 %v17435_v25  ;;  %11710 = vmatprep.subr.bf16.mxu1 %v17438_v35  ;;  %v17525_v25 = vld [vmem:[#allocation2 + $0x30a0] ss:$16 sps:$4 sm:$0xff]   ;;  %v17528_v35 = vld [vmem:[#allocation2 + $0x30a8] ss:$16 sps:$4 sm:$0xff]  }
 0x647   :  { %10686 = vmatpush1.bf16.msra.mxu0 %v17433_v36  ;;  %11711 = vmatpush1.bf16.msra.mxu1 %v17436_v28  ;;  %v17533_v36 = vld [vmem:[#allocation2 + $0x30c4] ss:$16 sps:$4 sm:$0xff]   ;;  %v17536_v28 = vld [vmem:[#allocation2 + $0x30cc] ss:$16 sps:$4 sm:$0xff]  }
 0x648   :  { %10687 = vmatprep.subr.bf16.mxu0 %v17441_v38  ;;  %11712 = vmatprep.subr.bf16.mxu1 %v17444_v39  ;;  %v17531_v38 = vld [vmem:[#allocation2 + $0x30c0] ss:$16 sps:$4 sm:$0xff]   ;;  %v17534_v39 = vld [vmem:[#allocation2 + $0x30c8] ss:$16 sps:$4 sm:$0xff]  }
 0x64b   :  { %10688 = vmatpush1.bf16.msra.mxu0 %v17439_v31  ;;  %11713 = vmatpush1.bf16.msra.mxu1 %v17442_v41  ;;  %v17539_v31 = vld [vmem:[#allocation2 + $0x30e4] ss:$16 sps:$4 sm:$0xff]   ;;  %v17542_v41 = vld [vmem:[#allocation2 + $0x30ec] ss:$16 sps:$4 sm:$0xff]  }
 0x64c   :  { %10689 = vmatprep.subr.bf16.mxu0 %v17447_v42  ;;  %11714 = vmatprep.subr.bf16.mxu1 %v17450_v34  ;;  %v17537_v42 = vld [vmem:[#allocation2 + $0x30e0] ss:$16 sps:$4 sm:$0xff]   ;;  %v17540_v34 = vld [vmem:[#allocation2 + $0x30e8] ss:$16 sps:$4 sm:$0xff]  }
 0x64f   :  { %10690 = vmatpush1.bf16.msra.mxu0 %v17445_v44  ;;  %11715 = vmatpush1.bf16.msra.mxu1 %v17448_v45  ;;  %v17546_v44 = vld [vmem:[#allocation6 + $0x4] ss:$16 sps:$4 sm:$0xff]   ;;  %v17549_v45 = vld [vmem:[#allocation6 + $0xc] ss:$16 sps:$4 sm:$0xff]  }
 0x650   :  { %10691 = vmatprep.subr.bf16.mxu0 %v17453_v37  ;;  %11716 = vmatprep.subr.bf16.mxu1 %v17456_v47  ;;  %v17543_v37 = vld [vmem:[%s18278_s0 + $0xc0] ss:$0 sps:$4 sm:$0xff]   ;;  %v17544_v47 = vld [vmem:[#allocation6] ss:$16 sps:$4 sm:$0xff]  }
 0x653   :  { %10692 = vmatpush1.bf16.msra.mxu0 %v17451_v48  ;;  %11717 = vmatpush1.bf16.msra.mxu1 %v17454_v49  ;;  %v17547_v48 = vld [vmem:[#allocation6 + $0x8] ss:$16 sps:$4 sm:$0xff]   ;;  %v17552_v49 = vld [vmem:[#allocation6 + $0x24] ss:$16 sps:$4 sm:$0xff]  }
 0x654   :  { %10693 = vmatprep.subr.bf16.mxu0 %v17459_v50  ;;  %11718 = vmatprep.subr.bf16.mxu1 %v17462_v51  ;;  %v17555_v50 = vld [vmem:[#allocation6 + $0x2c] ss:$16 sps:$4 sm:$0xff]   ;;  %v17550_v51 = vld [vmem:[#allocation6 + $0x20] ss:$16 sps:$4 sm:$0xff]  }
 0x657   :  { %10694 = vmatpush1.bf16.msra.mxu0 %v17457_v52  ;;  %11719 = vmatpush1.bf16.msra.mxu1 %v17460_v53  ;;  %v17553_v52 = vld [vmem:[#allocation6 + $0x28] ss:$16 sps:$4 sm:$0xff]   ;;  %v17558_v53 = vld [vmem:[#allocation6 + $0x44] ss:$16 sps:$4 sm:$0xff]  }
 0x658   :  { %10695 = vmatprep.subr.bf16.mxu0 %v17465_v46  ;;  %11720 = vmatprep.subr.bf16.mxu1 %v17468_v54  ;;  %v17561_v46 = vld [vmem:[#allocation6 + $0x4c] ss:$16 sps:$4 sm:$0xff]   ;;  %v17556_v54 = vld [vmem:[#allocation6 + $0x40] ss:$16 sps:$4 sm:$0xff]  }
 0x65b   :  { %10696 = vmatpush1.bf16.msra.mxu0 %v17463_v56  ;;  %11721 = vmatpush1.bf16.msra.mxu1 %v17466_v40  ;;  %v17559_v56 = vld [vmem:[#allocation6 + $0x48] ss:$16 sps:$4 sm:$0xff]   ;;  %v17564_v40 = vld [vmem:[#allocation6 + $0x64] ss:$16 sps:$4 sm:$0xff]  }
 0x65c   :  { %10697 = vmatprep.subr.bf16.mxu0 %v17471_v57  ;;  %11722 = vmatprep.subr.bf16.mxu1 %v17474_v59  ;;  %v17567_v57 = vld [vmem:[#allocation6 + $0x6c] ss:$16 sps:$4 sm:$0xff]   ;;  %v17562_v59 = vld [vmem:[#allocation6 + $0x60] ss:$16 sps:$4 sm:$0xff]  }
 0x65f   :  { %10698 = vmatpush1.bf16.msra.mxu0 %v17469_v43  ;;  %11723 = vmatpush1.bf16.msra.mxu1 %v17472_v60  ;;  %v17565_v43 = vld [vmem:[#allocation6 + $0x68] ss:$16 sps:$4 sm:$0xff]   ;;  %v17570_v60 = vld [vmem:[#allocation6 + $0x84] ss:$16 sps:$4 sm:$0xff]  }
 0x660   :  { %10699 = vmatprep.subr.bf16.mxu0 %v17477_v62  ;;  %11724 = vmatprep.subr.bf16.mxu1 %v17480_v55  ;;  %v17573_v62 = vld [vmem:[#allocation6 + $0x8c] ss:$16 sps:$4 sm:$0xff]   ;;  %v17568_v55 = vld [vmem:[#allocation6 + $0x80] ss:$16 sps:$4 sm:$0xff]  }
 0x663   :  { %10700 = vmatpush1.bf16.msra.mxu0 %v17475_v63  ;;  %11725 = vmatpush1.bf16.msra.mxu1 %v17478_v1  ;;  %v17571_v63 = vld [vmem:[#allocation6 + $0x88] ss:$16 sps:$4 sm:$0xff]   ;;  %v17576_v1 = vld [vmem:[#allocation6 + $0xa4] ss:$16 sps:$4 sm:$0xff]  }
 0x664   :  { %10701 = vmatprep.subr.bf16.mxu0 %v17483_v58  ;;  %11726 = vmatprep.subr.bf16.mxu1 %v17486_v2  ;;  %v17579_v58 = vld [vmem:[#allocation6 + $0xac] ss:$16 sps:$4 sm:$0xff]   ;;  %v17574_v2 = vld [vmem:[#allocation6 + $0xa0] ss:$16 sps:$4 sm:$0xff]  }
 0x667   :  { %10702 = vmatpush1.bf16.msra.mxu0 %v17481_v4  ;;  %11727 = vmatpush1.bf16.msra.mxu1 %v17484_v61  ;;  %v17577_v4 = vld [vmem:[#allocation6 + $0xa8] ss:$16 sps:$4 sm:$0xff]   ;;  %v17582_v61 = vld [vmem:[#allocation6 + $0xc4] ss:$16 sps:$4 sm:$0xff]  }
 0x668   :  { %10703 = vmatprep.subr.bf16.mxu0 %v17489_v5  ;;  %11728 = vmatprep.subr.bf16.mxu1 %v17492_v7  ;;  %v17585_v5 = vld [vmem:[#allocation6 + $0xcc] ss:$16 sps:$4 sm:$0xff]   ;;  %v17580_v7 = vld [vmem:[#allocation6 + $0xc0] ss:$16 sps:$4 sm:$0xff]  }
 0x66b   :  { %10704 = vmatpush1.bf16.msra.mxu0 %v17487_v0  ;;  %11729 = vmatpush1.bf16.msra.mxu1 %v17490_v8  ;;  %v17583_v0 = vld [vmem:[#allocation6 + $0xc8] ss:$16 sps:$4 sm:$0xff]   ;;  %v17588_v8 = vld [vmem:[#allocation6 + $0xe4] ss:$16 sps:$4 sm:$0xff]  }
 0x66c   :  { %10714 = vmatprep.subr.bf16.mxu0 %v17497_v10  ;;  %11739 = vmatprep.subr.bf16.mxu1 %v17500_v3  ;;  %v17591_v10 = vld [vmem:[#allocation6 + $0xec] ss:$16 sps:$4 sm:$0xff]   ;;  %v17586_v3 = vld [vmem:[#allocation6 + $0xe0] ss:$16 sps:$4 sm:$0xff]  }
 0x66e   :  { %10706 = vmatmul.mubr.bf16.vlgmr.msra.gmra.mrb[0].mxu0 %v13148_v12  ;;  %11731 = vmatmul.mubr.bf16.vlgmr.msra.gmra.mrb[0].mxu1 %v13148_v12  ;;  %v17589_v12 = vld [vmem:[#allocation6 + $0xe8] ss:$16 sps:$4 sm:$0xff]  }
 0x66f   :  { %10715 = vmatpush1.bf16.msra.mxu0 %v17495_v13  ;;  %11740 = vmatpush1.bf16.msra.mxu1 %v17498_v15  ;;  %v17594_v13 = vld [vmem:[#allocation6 + $0x104] ss:$16 sps:$4 sm:$0xff]   ;;  %v17597_v15 = vld [vmem:[#allocation6 + $0x10c] ss:$16 sps:$4 sm:$0xff]  }
 0x670   :  { %10716 = vmatprep.subr.bf16.mxu0 %v17503_v6  ;;  %11741 = vmatprep.subr.bf16.mxu1 %v17506_v16  ;;  %v17592_v6 = vld [vmem:[#allocation6 + $0x100] ss:$16 sps:$4 sm:$0xff]   ;;  %v17595_v16 = vld [vmem:[#allocation6 + $0x108] ss:$16 sps:$4 sm:$0xff]  }
 0x671   :  { %10746 = vmatprep.mubr.bf16.mxu0 %v17918_v22  ;;  %11771 = vmatprep.mubr.bf16.mxu1 %v17918_v22  ;;  %v17606_v22 = vld [vmem:[#allocation6 + $0x144] ss:$16 sps:$4 sm:$0xff]  }
 0x673   :  { %10717 = vmatpush1.bf16.msra.mxu0 %v17501_v18  ;;  %11742 = vmatpush1.bf16.msra.mxu1 %v17504_v11  ;;  %v17600_v18 = vld [vmem:[#allocation6 + $0x124] ss:$16 sps:$4 sm:$0xff]   ;;  %v17603_v11 = vld [vmem:[#allocation6 + $0x12c] ss:$16 sps:$4 sm:$0xff]  }
 0x674   :  { %10718 = vmatprep.subr.bf16.mxu0 %v17509_v20  ;;  %11743 = vmatprep.subr.bf16.mxu1 %v17512_v14  ;;  %v17598_v20 = vld [vmem:[#allocation6 + $0x120] ss:$16 sps:$4 sm:$0xff]   ;;  %v17601_v14 = vld [vmem:[#allocation6 + $0x128] ss:$16 sps:$4 sm:$0xff]  }
 0x677   :  { %10719 = vmatpush1.bf16.msra.mxu0 %v17507_v9  ;;  %11744 = vmatpush1.bf16.msra.mxu1 %v17510_v23  ;;  %v17609_v9 = vld [vmem:[#allocation6 + $0x14c] ss:$16 sps:$4 sm:$0xff]   ;;  %v17604_v23 = vld [vmem:[#allocation6 + $0x140] ss:$16 sps:$4 sm:$0xff]  }
 0x678   :  { %10720 = vmatprep.subr.bf16.mxu0 %v17515_v24  ;;  %11745 = vmatprep.subr.bf16.mxu1 %v17518_v17  ;;  %v17607_v24 = vld [vmem:[#allocation6 + $0x148] ss:$16 sps:$4 sm:$0xff]   ;;  %v17612_v17 = vld [vmem:[#allocation6 + $0x164] ss:$16 sps:$4 sm:$0xff]  }
 0x67b   :  { %10721 = vmatpush1.bf16.msra.mxu0 %v17513_v26  ;;  %11746 = vmatpush1.bf16.msra.mxu1 %v17516_v27  ;;  %v17615_v26 = vld [vmem:[#allocation6 + $0x16c] ss:$16 sps:$4 sm:$0xff]   ;;  %v17610_v27 = vld [vmem:[#allocation6 + $0x160] ss:$16 sps:$4 sm:$0xff]  }
 0x67c   :  { %10722 = vmatprep.subr.bf16.mxu0 %v17521_v19  ;;  %11747 = vmatprep.subr.bf16.mxu1 %v17524_v29  ;;  %v17613_v19 = vld [vmem:[#allocation6 + $0x168] ss:$16 sps:$4 sm:$0xff]   ;;  %v17618_v29 = vld [vmem:[#allocation6 + $0x184] ss:$16 sps:$4 sm:$0xff]  }
 0x67f   :  { %10723 = vmatpush1.bf16.msra.mxu0 %v17519_v30  ;;  %11748 = vmatpush1.bf16.msra.mxu1 %v17522_v21  ;;  %v17621_v30 = vld [vmem:[#allocation6 + $0x18c] ss:$16 sps:$4 sm:$0xff]   ;;  %v17616_v21 = vld [vmem:[#allocation6 + $0x180] ss:$16 sps:$4 sm:$0xff]  }
 0x680   :  { %10724 = vmatprep.subr.bf16.mxu0 %v17527_v32  ;;  %11749 = vmatprep.subr.bf16.mxu1 %v17530_v33  ;;  %v17619_v32 = vld [vmem:[#allocation6 + $0x188] ss:$16 sps:$4 sm:$0xff]   ;;  %v17624_v33 = vld [vmem:[#allocation6 + $0x1a4] ss:$16 sps:$4 sm:$0xff]  }
 0x683   :  { %10725 = vmatpush1.bf16.msra.mxu0 %v17525_v25  ;;  %11750 = vmatpush1.bf16.msra.mxu1 %v17528_v35  ;;  %v17627_v25 = vld [vmem:[#allocation6 + $0x1ac] ss:$16 sps:$4 sm:$0xff]   ;;  %v17622_v35 = vld [vmem:[#allocation6 + $0x1a0] ss:$16 sps:$4 sm:$0xff]  }
 0x684   :  { %10726 = vmatprep.subr.bf16.mxu0 %v17533_v36  ;;  %11751 = vmatprep.subr.bf16.mxu1 %v17536_v28  ;;  %v17625_v36 = vld [vmem:[#allocation6 + $0x1a8] ss:$16 sps:$4 sm:$0xff]   ;;  %v17630_v28 = vld [vmem:[#allocation6 + $0x1c4] ss:$16 sps:$4 sm:$0xff]  }
 0x687   :  { %10727 = vmatpush1.bf16.msra.mxu0 %v17531_v38  ;;  %11752 = vmatpush1.bf16.msra.mxu1 %v17534_v39  ;;  %v17633_v38 = vld [vmem:[#allocation6 + $0x1cc] ss:$16 sps:$4 sm:$0xff]   ;;  %v17628_v39 = vld [vmem:[#allocation6 + $0x1c0] ss:$16 sps:$4 sm:$0xff]  }
 0x688   :  { %10728 = vmatprep.subr.bf16.mxu0 %v17539_v31  ;;  %11753 = vmatprep.subr.bf16.mxu1 %v17542_v41  ;;  %v17631_v31 = vld [vmem:[#allocation6 + $0x1c8] ss:$16 sps:$4 sm:$0xff]   ;;  %v17636_v41 = vld [vmem:[#allocation6 + $0x1e4] ss:$16 sps:$4 sm:$0xff]  }
 0x68b   :  { %10729 = vmatpush1.bf16.msra.mxu0 %v17537_v42  ;;  %11754 = vmatpush1.bf16.msra.mxu1 %v17540_v34  ;;  %v17639_v42 = vld [vmem:[#allocation6 + $0x1ec] ss:$16 sps:$4 sm:$0xff]   ;;  %v17634_v34 = vld [vmem:[#allocation6 + $0x1e0] ss:$16 sps:$4 sm:$0xff]  }
 0x68c   :  { %12578 = vmatprep.subr.bf16.mxu0 %v17546_v44  ;;  %12660 = vmatprep.subr.bf16.mxu1 %v17549_v45  ;;  %v17637_v44 = vld [vmem:[#allocation6 + $0x1e8] ss:$16 sps:$4 sm:$0xff]   ;;  %v17642_v45 = vld [vmem:[#allocation6 + $0x204] ss:$16 sps:$4 sm:$0xff]  }
 0x68e   :  { %10747 = vmatmul.mubr.bf16.vlgmr.msra.gmra.mrb[0].mxu0 %v17543_v37  ;;  %11772 = vmatmul.mubr.bf16.vlgmr.msra.gmra.mrb[0].mxu1 %v17543_v37  ;;  %v17645_v37 = vld [vmem:[#allocation6 + $0x20c] ss:$16 sps:$4 sm:$0xff]  }
 0x68f   :  { %12579 = vmatpush1.bf16.msra.mxu0 %v17544_v47  ;;  %12661 = vmatpush1.bf16.msra.mxu1 %v17547_v48  ;;  %v1698_v47 = vlaneseq }
 0x690   :  { %12580 = vmatprep.subr.bf16.mxu0 %v17552_v49  ;;  %12662 = vmatprep.subr.bf16.mxu1 %v17555_v50  ;;  %v18247_v50 = vld [vmem:[#allocation4] sm:$0xf] }
 0x691   :  { %v18244_v48 = vshrl.u32 %v1698_v47, 7  ;;  %v17702_v47 = vld [vmem:[#allocation6 + $0x344] ss:$16 sps:$4 sm:$0xff]  }
 0x693   :  { %12581 = vmatpush1.bf16.msra.mxu0 %v17550_v51  ;;  %12663 = vmatpush1.bf16.msra.mxu1 %v17553_v52  ;;  %v1700_v49 = vsub.s32 0, %v18244_v48  ;;  %v1704_v51 = vsub.s32 1, %v18244_v48  ;;  %v1712_v52 = vsub.s32 3, %v18244_v48 }
 0x694   :  { %12582 = vmatprep.subr.bf16.mxu0 %v17558_v53  ;;  %12664 = vmatprep.subr.bf16.mxu1 %v17561_v46 }
 0x695   :  { %v1701_v53 = vrot.slane %v18247_v50, %v1700_v49  ;;  %v1705_v46 = vrot.slane %v18247_v50, %v1704_v51 }
 0x697   :  { %12583 = vmatpush1.bf16.msra.mxu0 %v17556_v54  ;;  %12665 = vmatpush1.bf16.msra.mxu1 %v17559_v56  ;;  %v1713_v54 = vrot.slane %v18247_v50, %v1712_v52 }
 0x698   :  { %12584 = vmatprep.subr.bf16.mxu0 %v17564_v40  ;;  %12666 = vmatprep.subr.bf16.mxu1 %v17567_v57 }
 0x69b   :  { %12585 = vmatpush1.bf16.msra.mxu0 %v17562_v59  ;;  %12667 = vmatpush1.bf16.msra.mxu1 %v17565_v43 }
 0x69c   :  { %12586 = vmatprep.subr.bf16.mxu0 %v17570_v60  ;;  %12668 = vmatprep.subr.bf16.mxu1 %v17573_v62 }
 0x69f   :  { %12587 = vmatpush1.bf16.msra.mxu0 %v17568_v55  ;;  %12669 = vmatpush1.bf16.msra.mxu1 %v17571_v63 }
 0x6a0   :  { %12588 = vmatprep.subr.bf16.mxu0 %v17576_v1  ;;  %12670 = vmatprep.subr.bf16.mxu1 %v17579_v58 }
 0x6a3   :  { %12589 = vmatpush1.bf16.msra.mxu0 %v17574_v2  ;;  %12671 = vmatpush1.bf16.msra.mxu1 %v17577_v4 }
 0x6a4   :  { %12590 = vmatprep.subr.bf16.mxu0 %v17582_v61  ;;  %12672 = vmatprep.subr.bf16.mxu1 %v17585_v5 }
 0x6a7   :  { %12591 = vmatpush1.bf16.msra.mxu0 %v17580_v7  ;;  %12673 = vmatpush1.bf16.msra.mxu1 %v17583_v0  ;;  %v17640_v7 = vld [vmem:[#allocation6 + $0x200] ss:$16 sps:$4 sm:$0xff]   ;;  %v17643_v0 = vld [vmem:[#allocation6 + $0x208] ss:$16 sps:$4 sm:$0xff]  }
 0x6a8   :  { %12592 = vmatprep.subr.bf16.mxu0 %v17588_v8  ;;  %12674 = vmatprep.subr.bf16.mxu1 %v17591_v10  ;;  %v17648_v10 = vld [vmem:[#allocation6 + $0x224] ss:$16 sps:$4 sm:$0xff]  }
 0x6ab   :  { %12593 = vmatpush1.bf16.msra.mxu0 %v17586_v3  ;;  %12675 = vmatpush1.bf16.msra.mxu1 %v17589_v12  ;;  %v17651_v3 = vld [vmem:[#allocation6 + $0x22c] ss:$16 sps:$4 sm:$0xff]  }
 0x6ac   :  { %12594 = vmatprep.subr.bf16.mxu0 %v17594_v13  ;;  %12676 = vmatprep.subr.bf16.mxu1 %v17597_v15  ;;  %v17646_v13 = vld [vmem:[#allocation6 + $0x220] ss:$16 sps:$4 sm:$0xff]   ;;  %v17649_v15 = vld [vmem:[#allocation6 + $0x228] ss:$16 sps:$4 sm:$0xff]  }
 0x6af   :  { %12595 = vmatpush1.bf16.msra.mxu0 %v17592_v6  ;;  %12677 = vmatpush1.bf16.msra.mxu1 %v17595_v16  ;;  %v17654_v6 = vld [vmem:[#allocation6 + $0x244] ss:$16 sps:$4 sm:$0xff]   ;;  %v17657_v16 = vld [vmem:[#allocation6 + $0x24c] ss:$16 sps:$4 sm:$0xff]  }
 0x6b0   :  { %12596 = vmatprep.subr.bf16.mxu0 %v17600_v18  ;;  %12678 = vmatprep.subr.bf16.mxu1 %v17603_v11  ;;  %v17652_v18 = vld [vmem:[#allocation6 + $0x240] ss:$16 sps:$4 sm:$0xff]   ;;  %v17655_v11 = vld [vmem:[#allocation6 + $0x248] ss:$16 sps:$4 sm:$0xff]  }
 0x6b3   :  { %12597 = vmatpush1.bf16.msra.mxu0 %v17598_v20  ;;  %12679 = vmatpush1.bf16.msra.mxu1 %v17601_v14  ;;  %v17660_v20 = vld [vmem:[#allocation6 + $0x264] ss:$16 sps:$4 sm:$0xff]   ;;  %v17663_v14 = vld [vmem:[#allocation6 + $0x26c] ss:$16 sps:$4 sm:$0xff]  }
 0x6b4   :  { %12598 = vmatprep.subr.bf16.mxu0 %v17606_v22  ;;  %12680 = vmatprep.subr.bf16.mxu1 %v17609_v9  ;;  %v17658_v22 = vld [vmem:[#allocation6 + $0x260] ss:$16 sps:$4 sm:$0xff]   ;;  %v17661_v9 = vld [vmem:[#allocation6 + $0x268] ss:$16 sps:$4 sm:$0xff]  }
 0x6b7   :  { %12599 = vmatpush1.bf16.msra.mxu0 %v17604_v23  ;;  %12681 = vmatpush1.bf16.msra.mxu1 %v17607_v24  ;;  %v17666_v23 = vld [vmem:[#allocation6 + $0x284] ss:$16 sps:$4 sm:$0xff]   ;;  %v17669_v24 = vld [vmem:[#allocation6 + $0x28c] ss:$16 sps:$4 sm:$0xff]  }
 0x6b8   :  { %12600 = vmatprep.subr.bf16.mxu0 %v17612_v17  ;;  %12682 = vmatprep.subr.bf16.mxu1 %v17615_v26  ;;  %v17664_v17 = vld [vmem:[#allocation6 + $0x280] ss:$16 sps:$4 sm:$0xff]   ;;  %v17667_v26 = vld [vmem:[#allocation6 + $0x288] ss:$16 sps:$4 sm:$0xff]  }
 0x6bb   :  { %12601 = vmatpush1.bf16.msra.mxu0 %v17610_v27  ;;  %12683 = vmatpush1.bf16.msra.mxu1 %v17613_v19  ;;  %v17672_v27 = vld [vmem:[#allocation6 + $0x2a4] ss:$16 sps:$4 sm:$0xff]   ;;  %v17675_v19 = vld [vmem:[#allocation6 + $0x2ac] ss:$16 sps:$4 sm:$0xff]  }
 0x6bc   :  { %12602 = vmatprep.subr.bf16.mxu0 %v17618_v29  ;;  %12684 = vmatprep.subr.bf16.mxu1 %v17621_v30  ;;  %v17670_v29 = vld [vmem:[#allocation6 + $0x2a0] ss:$16 sps:$4 sm:$0xff]   ;;  %v17673_v30 = vld [vmem:[#allocation6 + $0x2a8] ss:$16 sps:$4 sm:$0xff]  }
 0x6bf   :  { %12603 = vmatpush1.bf16.msra.mxu0 %v17616_v21  ;;  %12685 = vmatpush1.bf16.msra.mxu1 %v17619_v32  ;;  %v17678_v21 = vld [vmem:[#allocation6 + $0x2c4] ss:$16 sps:$4 sm:$0xff]   ;;  %v17681_v32 = vld [vmem:[#allocation6 + $0x2cc] ss:$16 sps:$4 sm:$0xff]  }
 0x6c0   :  { %12604 = vmatprep.subr.bf16.mxu0 %v17624_v33  ;;  %12686 = vmatprep.subr.bf16.mxu1 %v17627_v25  ;;  %v17676_v33 = vld [vmem:[#allocation6 + $0x2c0] ss:$16 sps:$4 sm:$0xff]   ;;  %v17679_v25 = vld [vmem:[#allocation6 + $0x2c8] ss:$16 sps:$4 sm:$0xff]  }
 0x6c3   :  { %12605 = vmatpush1.bf16.msra.mxu0 %v17622_v35  ;;  %12687 = vmatpush1.bf16.msra.mxu1 %v17625_v36  ;;  %v17684_v35 = vld [vmem:[#allocation6 + $0x2e4] ss:$16 sps:$4 sm:$0xff]   ;;  %v17687_v36 = vld [vmem:[#allocation6 + $0x2ec] ss:$16 sps:$4 sm:$0xff]  }
 0x6c4   :  { %12606 = vmatprep.subr.bf16.mxu0 %v17630_v28  ;;  %12688 = vmatprep.subr.bf16.mxu1 %v17633_v38  ;;  %v17682_v28 = vld [vmem:[#allocation6 + $0x2e0] ss:$16 sps:$4 sm:$0xff]   ;;  %v17685_v38 = vld [vmem:[#allocation6 + $0x2e8] ss:$16 sps:$4 sm:$0xff]  }
 0x6c7   :  { %12607 = vmatpush1.bf16.msra.mxu0 %v17628_v39  ;;  %12689 = vmatpush1.bf16.msra.mxu1 %v17631_v31  ;;  %v17690_v39 = vld [vmem:[#allocation6 + $0x304] ss:$16 sps:$4 sm:$0xff]   ;;  %v17693_v31 = vld [vmem:[#allocation6 + $0x30c] ss:$16 sps:$4 sm:$0xff]  }
 0x6c8   :  { %12608 = vmatprep.subr.bf16.mxu0 %v17636_v41  ;;  %12690 = vmatprep.subr.bf16.mxu1 %v17639_v42  ;;  %v17688_v41 = vld [vmem:[#allocation6 + $0x300] ss:$16 sps:$4 sm:$0xff]   ;;  %v17691_v42 = vld [vmem:[#allocation6 + $0x308] ss:$16 sps:$4 sm:$0xff]  }
 0x6cb   :  { %12609 = vmatpush1.bf16.msra.mxu0 %v17634_v34  ;;  %12691 = vmatpush1.bf16.msra.mxu1 %v17637_v44  ;;  %v17696_v34 = vld [vmem:[#allocation6 + $0x324] ss:$16 sps:$4 sm:$0xff]   ;;  %v17699_v44 = vld [vmem:[#allocation6 + $0x32c] ss:$16 sps:$4 sm:$0xff]  }
 0x6cc   :  { %12619 = vmatprep.subr.bf16.mxu0 %v17642_v45  ;;  %12701 = vmatprep.subr.bf16.mxu1 %v17645_v37  ;;  %v17694_v45 = vld [vmem:[#allocation6 + $0x320] ss:$16 sps:$4 sm:$0xff]   ;;  %v17697_v37 = vld [vmem:[#allocation6 + $0x328] ss:$16 sps:$4 sm:$0xff]  }
 0x761   :  { %v10748_v56 = vpop.f32.mrb[0].mxu0  ;;  %v18260_v40 = vpop.f32.mrb[0].mxu1 }
 0x762   :  { %v14924_v57 = vadd.f32 %v10748_v56, %v1701_v53  ;;  %v10750_v59 = vpop.f32.mrb[1].mxu0  ;;  %v11775_v43 = vpop.f32.mrb[1].mxu1  ;;  %v17705_v53 = vld [vmem:[#allocation6 + $0x34c] ss:$16 sps:$4 sm:$0xff]   ;;  %v17708_v56 = vld [vmem:[#allocation6 + $0x364] ss:$16 sps:$4 sm:$0xff]  }
 0x763   :  { %v14925_v60 = vadd.f32 %v10750_v59, %v1705_v46  ;;  %v14927_v62 = vadd.f32 %v11775_v43, %v1713_v54  ;;  %v10752_v55 = vpop.f32.mrb[2].mxu0  ;;  %v11777_v63 = vpop.f32.mrb[2].mxu1  ;;  %v17700_v46 = vld [vmem:[#allocation6 + $0x340] ss:$16 sps:$4 sm:$0xff]   ;;  %v17703_v54 = vld [vmem:[#allocation6 + $0x348] ss:$16 sps:$4 sm:$0xff]  }
 0x764   :  { %v11780_v1 = vmax.f32 %v14924_v57, 0.0  ;;  %v10753_v58 = vpop.f32.mrb[3].mxu0  ;;  %v11778_v2 = vpop.f32.mrb[3].mxu1  ;;  %v17711_v57 = vld [vmem:[#allocation6 + $0x36c] ss:$16 sps:$4 sm:$0xff]  }
 0x765   :  { %v11781_v4 = vmax.f32 %v14925_v60, 0.0  ;;  %v11783_v61 = vmax.f32 %v14927_v62, 0.0  ;;  %v17706_v59 = vld [vmem:[#allocation6 + $0x360] ss:$16 sps:$4 sm:$0xff]   ;;  %v17709_v43 = vld [vmem:[#allocation6 + $0x368] ss:$16 sps:$4 sm:$0xff]  }
 0x766   :  { %v11784_v8 = vpack.c.bf16 %v11780_v1, %v11780_v1  ;;  %v17714_v60 = vld [vmem:[#allocation6 + $0x384] ss:$16 sps:$4 sm:$0xff]   ;;  %v17717_v62 = vld [vmem:[#allocation6 + $0x38c] ss:$16 sps:$4 sm:$0xff]   ;;  %v17712_v55 = vld [vmem:[#allocation6 + $0x380] ss:$16 sps:$4 sm:$0xff]  }
 0x767   :  { %v11785_v5 = vpack.c.bf16 %v11781_v4, %v11781_v4  ;;  %v11787_v12 = vpack.c.bf16 %v11783_v61, %v11783_v61  ;;  %v17715_v63 = vld [vmem:[#allocation6 + $0x388] ss:$16 sps:$4 sm:$0xff]   ;;  %v1708_v1 = vsub.s32 2, %v18244_v48  ;;  %v17720_v58 = vld [vmem:[#allocation6 + $0x3a4] ss:$16 sps:$4 sm:$0xff]  }
 0x768   :  { %v17723_v2 = vld [vmem:[#allocation6 + $0x3ac] ss:$16 sps:$4 sm:$0xff]   ;;  %v17718_v4 = vld [vmem:[#allocation6 + $0x3a0] ss:$16 sps:$4 sm:$0xff]   ;;  %v17721_v61 = vld [vmem:[#allocation6 + $0x3a8] ss:$16 sps:$4 sm:$0xff]  }
 0x769   :  { %12610 = vmatprep.mubr.bf16.mxu0 %v11785_v5  ;;  %12692 = vmatprep.mubr.bf16.mxu1 %v11785_v5  ;;  %v1709_v5 = vrot.slane %v18247_v50, %v1708_v1  ;;  %v17736_v50 = vld [vmem:[#allocation9 + $0x40] sm:$0xff]  }
 0x76a   :  { %12611 = vmatmul.mubr.bf16.vlgmr.msra.gmra.mrb[4].mxu0 %v11784_v8  ;;  %12693 = vmatmul.mubr.bf16.vlgmr.msra.gmra.mrb[4].mxu1 %v11784_v8  ;;  %v17724_v8 = vld [vmem:[#allocation6 + $0x3c0] ss:$16 sps:$4 sm:$0xff]  }
 0x76b   :  { %12620 = vmatpush1.bf16.msra.mxu0 %v17640_v7  ;;  %12702 = vmatpush1.bf16.msra.mxu1 %v17643_v0  ;;  %v17726_v7 = vld [vmem:[#allocation6 + $0x3c4] ss:$16 sps:$4 sm:$0xff]   ;;  %v17729_v0 = vld [vmem:[#allocation6 + $0x3cc] ss:$16 sps:$4 sm:$0xff]  }
 0x76c   :  { %12651 = vmatprep.mubr.bf16.mxu0 %v11787_v12  ;;  %12733 = vmatprep.mubr.bf16.mxu1 %v11787_v12  ;;  %v17732_v12 = vld [vmem:[#allocation6 + $0x3e4] ss:$16 sps:$4 sm:$0xff]  }
 0x76d   :  { %12621 = vmatprep.subr.bf16.mxu0 %v17648_v10  ;;  %12703 = vmatprep.subr.bf16.mxu1 %v17651_v3  ;;  %v17727_v10 = vld [vmem:[#allocation6 + $0x3c8] ss:$16 sps:$4 sm:$0xff]   ;;  %v14926_v3 = vadd.f32 %v18260_v40, %v1709_v5  ;;  %v17740_v40 = vld [vmem:[#allocation9 + $0x48] sm:$0xff]  }
 0x76f   :  { %12622 = vmatpush1.bf16.msra.mxu0 %v17646_v13  ;;  %12704 = vmatpush1.bf16.msra.mxu1 %v17649_v15  ;;  %v17735_v13 = vld [vmem:[#allocation6 + $0x3ec] ss:$16 sps:$4 sm:$0xff]   ;;  %v17730_v15 = vld [vmem:[#allocation6 + $0x3e0] ss:$16 sps:$4 sm:$0xff]  }
 0x770   :  { %12623 = vmatprep.subr.bf16.mxu0 %v17654_v6  ;;  %12705 = vmatprep.subr.bf16.mxu1 %v17657_v16  ;;  %v17733_v6 = vld [vmem:[#allocation6 + $0x3e8] ss:$16 sps:$4 sm:$0xff]   ;;  %v11782_v16 = vmax.f32 %v14926_v3, 0.0 }
 0x773   :  { %12624 = vmatpush1.bf16.msra.mxu0 %v17652_v18  ;;  %12706 = vmatpush1.bf16.msra.mxu1 %v17655_v11  ;;  %v17737_v18 = vld [vmem:[#allocation9 + $0xc0] sm:$0xff]  }
 0x774   :  { %12625 = vmatprep.subr.bf16.mxu0 %v17660_v20  ;;  %12707 = vmatprep.subr.bf16.mxu1 %v17663_v14  ;;  %v17738_v11 = vld [vmem:[#allocation9] sm:$0xff]   ;;  %v11786_v14 = vpack.c.bf16 %v11782_v16, %v11782_v16 }
 0x775   :  { %v17739_v20 = vld [vmem:[#allocation9 + $0x80] sm:$0xff]  }
 0x777   :  { %12626 = vmatpush1.bf16.msra.mxu0 %v17658_v22  ;;  %12708 = vmatpush1.bf16.msra.mxu1 %v17661_v9  ;;  %v17741_v22 = vld [vmem:[#allocation9 + $0xc8] sm:$0xff]  }
 0x778   :  { %12627 = vmatprep.subr.bf16.mxu0 %v17666_v23  ;;  %12709 = vmatprep.subr.bf16.mxu1 %v17669_v24  ;;  %v17742_v9 = vld [vmem:[#allocation9 + $0x8] sm:$0xff]   ;;  %v17744_v24 = vld [vmem:[#allocation9 + $0x50] sm:$0xff]  }
 0x779   :  { %v17743_v23 = vld [vmem:[#allocation9 + $0x88] sm:$0xff]  }
 0x77b   :  { %12628 = vmatpush1.bf16.msra.mxu0 %v17664_v17  ;;  %12710 = vmatpush1.bf16.msra.mxu1 %v17667_v26  ;;  %v17745_v17 = vld [vmem:[#allocation9 + $0xd0] sm:$0xff]  }
 0x77c   :  { %12629 = vmatprep.subr.bf16.mxu0 %v17672_v27  ;;  %12711 = vmatprep.subr.bf16.mxu1 %v17675_v19  ;;  %v17746_v26 = vld [vmem:[#allocation9 + $0x10] sm:$0xff]   ;;  %v17748_v19 = vld [vmem:[#allocation9 + $0x58] sm:$0xff]  }
 0x77d   :  { %v17747_v27 = vld [vmem:[#allocation9 + $0x90] sm:$0xff]  }
 0x77f   :  { %12630 = vmatpush1.bf16.msra.mxu0 %v17670_v29  ;;  %12712 = vmatpush1.bf16.msra.mxu1 %v17673_v30  ;;  %v17749_v29 = vld [vmem:[#allocation9 + $0xd8] sm:$0xff]  }
 0x780   :  { %12631 = vmatprep.subr.bf16.mxu0 %v17678_v21  ;;  %12713 = vmatprep.subr.bf16.mxu1 %v17681_v32  ;;  %v17750_v30 = vld [vmem:[#allocation9 + $0x18] sm:$0xff]   ;;  %v17752_v32 = vld [vmem:[#allocation9 + $0x60] sm:$0xff]  }
 0x781   :  { %v17751_v21 = vld [vmem:[#allocation9 + $0x98] sm:$0xff]  }
 0x783   :  { %12632 = vmatpush1.bf16.msra.mxu0 %v17676_v33  ;;  %12714 = vmatpush1.bf16.msra.mxu1 %v17679_v25  ;;  %v17753_v33 = vld [vmem:[#allocation9 + $0xe0] sm:$0xff]  }
 0x784   :  { %12633 = vmatprep.subr.bf16.mxu0 %v17684_v35  ;;  %12715 = vmatprep.subr.bf16.mxu1 %v17687_v36  ;;  %v17754_v25 = vld [vmem:[#allocation9 + $0x20] sm:$0xff]   ;;  %v17756_v36 = vld [vmem:[#allocation9 + $0x68] sm:$0xff]  }
 0x785   :  { %v17755_v35 = vld [vmem:[#allocation9 + $0xa0] sm:$0xff]  }
 0x787   :  { %12634 = vmatpush1.bf16.msra.mxu0 %v17682_v28  ;;  %12716 = vmatpush1.bf16.msra.mxu1 %v17685_v38  ;;  %v17757_v28 = vld [vmem:[#allocation9 + $0xe8] sm:$0xff]  }
 0x788   :  { %12635 = vmatprep.subr.bf16.mxu0 %v17690_v39  ;;  %12717 = vmatprep.subr.bf16.mxu1 %v17693_v31  ;;  %v17758_v38 = vld [vmem:[#allocation9 + $0x28] sm:$0xff]   ;;  %v17760_v31 = vld [vmem:[#allocation9 + $0x70] sm:$0xff]  }
 0x789   :  { %v17759_v39 = vld [vmem:[#allocation9 + $0xa8] sm:$0xff]  }
 0x78b   :  { %12636 = vmatpush1.bf16.msra.mxu0 %v17688_v41  ;;  %12718 = vmatpush1.bf16.msra.mxu1 %v17691_v42  ;;  %v17761_v41 = vld [vmem:[#allocation9 + $0xf0] sm:$0xff]  }
 0x78c   :  { %12637 = vmatprep.subr.bf16.mxu0 %v17696_v34  ;;  %12719 = vmatprep.subr.bf16.mxu1 %v17699_v44  ;;  %v17762_v42 = vld [vmem:[#allocation9 + $0x30] sm:$0xff]   ;;  %v17764_v44 = vld [vmem:[#allocation9 + $0x78] sm:$0xff]  }
 0x78d   :  { %v17763_v34 = vld [vmem:[#allocation9 + $0xb0] sm:$0xff]  }
 0x78f   :  { %12638 = vmatpush1.bf16.msra.mxu0 %v17694_v45  ;;  %12720 = vmatpush1.bf16.msra.mxu1 %v17697_v37  ;;  %v17765_v45 = vld [vmem:[#allocation9 + $0xf8] sm:$0xff]  }
 0x790   :  { %12639 = vmatprep.subr.bf16.mxu0 %v17702_v47  ;;  %12721 = vmatprep.subr.bf16.mxu1 %v17705_v53  ;;  %v17766_v37 = vld [vmem:[#allocation9 + $0x38] sm:$0xff]  }
 0x791   :  { %v17767_v47 = vld [vmem:[#allocation9 + $0xb8] sm:$0xff]  }
 0x792   :  { %v11916_v53 = vld [vmem:[#allocation7] sm:$0xf] }
 0x793   :  { %12640 = vmatpush1.bf16.msra.mxu0 %v17700_v46  ;;  %12722 = vmatpush1.bf16.msra.mxu1 %v17703_v54  ;;  %v11921_v46 = vrot.slane %v11916_v53, %v1700_v49  ;;  %v11929_v54 = vrot.slane %v11916_v53, %v1708_v1 }
 0x794   :  { %12641 = vmatprep.subr.bf16.mxu0 %v17708_v56  ;;  %12723 = vmatprep.subr.bf16.mxu1 %v17711_v57  ;;  %v11925_v56 = vrot.slane %v11916_v53, %v1704_v51  ;;  %v11933_v57 = vrot.slane %v11916_v53, %v1712_v52 }
 0x797   :  { %12642 = vmatpush1.bf16.msra.mxu0 %v17706_v59  ;;  %12724 = vmatpush1.bf16.msra.mxu1 %v17709_v43 }
 0x798   :  { %12643 = vmatprep.subr.bf16.mxu0 %v17714_v60  ;;  %12725 = vmatprep.subr.bf16.mxu1 %v17717_v62 }
 0x79b   :  { %12644 = vmatpush1.bf16.msra.mxu0 %v17712_v55  ;;  %12726 = vmatpush1.bf16.msra.mxu1 %v17715_v63 }
 0x79c   :  { %12645 = vmatprep.subr.bf16.mxu0 %v17720_v58  ;;  %12727 = vmatprep.subr.bf16.mxu1 %v17723_v2 }
 0x79f   :  { %12646 = vmatpush1.bf16.msra.mxu0 %v17718_v4  ;;  %12728 = vmatpush1.bf16.msra.mxu1 %v17721_v61 }
 0x7a0   :  { %12647 = vmatprep.subr.bf16.mxu0 %v17726_v7  ;;  %12729 = vmatprep.subr.bf16.mxu1 %v17729_v0 }
 0x7a3   :  { %12648 = vmatpush1.bf16.msra.mxu0 %v17724_v8  ;;  %12730 = vmatpush1.bf16.msra.mxu1 %v17727_v10 }
 0x7a4   :  { %12649 = vmatprep.subr.bf16.mxu0 %v17732_v12  ;;  %12731 = vmatprep.subr.bf16.mxu1 %v17735_v13  ;;  %v14847_v13 = vld [vmem:[#allocation10] ss:$0 sm:$0xff] }
 0x7a7   :  { %12650 = vmatpush1.bf16.msra.mxu0 %v17730_v15  ;;  %12732 = vmatpush1.bf16.msra.mxu1 %v17733_v6 }
 0x7a8   :  { %14880 = vmatprep.subr.bf16.mxu0 %v17736_v50  ;;  %14902 = vmatprep.subr.bf16.mxu1 %v17737_v18 }
 0x7aa   :  { %12652 = vmatmul.mubr.bf16.vlgmr.msra.gmra.mrb[4].mxu0 %v11786_v14  ;;  %12734 = vmatmul.mubr.bf16.vlgmr.msra.gmra.mrb[4].mxu1 %v11786_v14 }
 0x7ab   :  { %14881 = vmatpush3.bf16.msra.mxu0 %v17738_v11  ;;  %14903 = vmatpush3.bf16.msra.mxu1 %v17739_v20 }
 0x7ac   :  { %14882 = vmatprep.subr.bf16.mxu0 %v17740_v40  ;;  %14904 = vmatprep.subr.bf16.mxu1 %v17741_v22 }
 0x7af   :  { %14883 = vmatpush3.bf16.msra.mxu0 %v17742_v9  ;;  %14905 = vmatpush3.bf16.msra.mxu1 %v17743_v23 }
 0x7b0   :  { %14884 = vmatprep.subr.bf16.mxu0 %v17744_v24  ;;  %14906 = vmatprep.subr.bf16.mxu1 %v17745_v17 }
 0x7b3   :  { %14885 = vmatpush3.bf16.msra.mxu0 %v17746_v26  ;;  %14907 = vmatpush3.bf16.msra.mxu1 %v17747_v27 }
 0x7b4   :  { %14886 = vmatprep.subr.bf16.mxu0 %v17748_v19  ;;  %14908 = vmatprep.subr.bf16.mxu1 %v17749_v29 }
 0x7b7   :  { %14887 = vmatpush3.bf16.msra.mxu0 %v17750_v30  ;;  %14909 = vmatpush3.bf16.msra.mxu1 %v17751_v21 }
 0x7b8   :  { %14888 = vmatprep.subr.bf16.mxu0 %v17752_v32  ;;  %14910 = vmatprep.subr.bf16.mxu1 %v17753_v33 }
 0x7bb   :  { %14889 = vmatpush3.bf16.msra.mxu0 %v17754_v25  ;;  %14911 = vmatpush3.bf16.msra.mxu1 %v17755_v35 }
 0x7bc   :  { %14890 = vmatprep.subr.bf16.mxu0 %v17756_v36  ;;  %14912 = vmatprep.subr.bf16.mxu1 %v17757_v28 }
 0x7bf   :  { %14891 = vmatpush3.bf16.msra.mxu0 %v17758_v38  ;;  %14913 = vmatpush3.bf16.msra.mxu1 %v17759_v39 }
 0x7c0   :  { %14892 = vmatprep.subr.bf16.mxu0 %v17760_v31  ;;  %14914 = vmatprep.subr.bf16.mxu1 %v17761_v41 }
 0x7c3   :  { %14893 = vmatpush3.bf16.msra.mxu0 %v17762_v42  ;;  %14915 = vmatpush3.bf16.msra.mxu1 %v17763_v34 }
 0x7c4   :  { %14894 = vmatprep.subr.bf16.mxu0 %v17764_v44  ;;  %14916 = vmatprep.subr.bf16.mxu1 %v17765_v45 }
 0x7c7   :  { %14895 = vmatpush3.bf16.msra.mxu0 %v17766_v37  ;;  %14917 = vmatpush3.bf16.msra.mxu1 %v17767_v47 }
 0x87d   :  { %v12653_v59 = vpop.f32.mrb[4].mxu0  ;;  %v12735_v43 = vpop.f32.mrb[4].mxu1 }
 0x87e   :  { %v14928_v60 = vadd.f32 %v12653_v59, %v11921_v46  ;;  %v14930_v62 = vadd.f32 %v12735_v43, %v11929_v54  ;;  %v12655_v55 = vpop.f32.mrb[5].mxu0  ;;  %v12737_v63 = vpop.f32.mrb[5].mxu1 }
 0x87f   :  { %v14929_v58 = vadd.f32 %v12655_v55, %v11925_v56  ;;  %v14931_v2 = vadd.f32 %v12737_v63, %v11933_v57  ;;  %v12657_v4 = vpop.f32.mrb[6].mxu0  ;;  %v12739_v61 = vpop.f32.mrb[6].mxu1 }
 0x880   :  { %v12742_v49 = vmax.f32 %v14928_v60, 0.0  ;;  %v12744_v5 = vmax.f32 %v14930_v62, 0.0  ;;  %v12658_v7 = vpop.f32.mrb[7].mxu0  ;;  %v12740_v1 = vpop.f32.mrb[7].mxu1 }
 0x881   :  { %v12743_v0 = vmax.f32 %v14929_v58, 0.0  ;;  %v12745_v8 = vmax.f32 %v14931_v2, 0.0 }
 0x882   :  { %v12746_v48 = vpack.c.bf16 %v12742_v49, %v12742_v49  ;;  %v12748_v52 = vpack.c.bf16 %v12744_v5, %v12744_v5 }
 0x883   :  { %v12747_v51 = vpack.c.bf16 %v12743_v0, %v12743_v0  ;;  %v12749_v10 = vpack.c.bf16 %v12745_v8, %v12745_v8 }
 0x885   :  { %13045 = vmatprep.mubr.bf16.mxu0 %v12747_v51  ;;  %13085 = vmatprep.mubr.bf16.mxu1 %v12749_v10 }
 0x886   :  { %13046 = vmatmul.mubr.bf16.vlgmr.msra.gmra.mrb[8].mxu0 %v12746_v48  ;;  %13086 = vmatmul.mubr.bf16.vlgmr.msra.gmra.mrb[8].mxu1 %v12748_v52 }
 0x959   :  { %v14896_v3 = vpop.f32.mrb[8].mxu0  ;;  %v14918_v12 = vpop.f32.mrb[8].mxu1 }
 0x95a   :  { %v14897_v15 = vpop.f32.mrb[9].mxu0  ;;  %v14919_v6 = vpop.f32.mrb[9].mxu1 }
 0x95b   :  { %v14898_v16 = vadd.f32 %v14897_v15, %v14896_v3  ;;  %v14920_v50 = vadd.f32 %v14919_v6, %v14918_v12  ;;  %v14899_v18 = vpop.f32.mrb[10].mxu0  ;;  %v14921_v11 = vpop.f32.mrb[10].mxu1 }
 0x95c   :  { %v14900_v20 = vpop.f32.mrb[11].mxu0  ;;  %v14922_v14 = vpop.f32.mrb[11].mxu1 }
 0x95d   :  { %v13048_v40 = vadd.f32 %v14898_v16, %v14847_v13 }
 0x95f   :  { %v13088_v22 = vadd.f32 %v14920_v50, %v13048_v40 }
 0x961   :  { %13093 = vst [vmem:[%s18285_s7] sm:$0xff] %v13088_v22 }
 0x962   :  { %13098 = vsyncpa [#allocation3], 1 }
 0x963   :  { %13099 = vsyncpa [#allocation5], 1 }
 0x964   :  { %13100 = vsyncpa [#allocation8], 1 }
 0x965   :  { %13101 = vsyncpa [#allocation11], 1 }

</bundles_post_ra>
